<compile_context>
chip_gen: v7x
topology: tpu7x:2x2x1
jax: 0.10.0
libtpu: 0.0.40
codegen_flags: <defaults>
</compile_context>

<pallas_src>
import jax
import jax.numpy as jnp
from jax import lax
from jax.experimental import pallas as pl
from jax.experimental.pallas import tpu as pltpu

K = 3  # ksize


def residual_block(x, w1, b1, w2, b2, wlin):
    """ResidualBlock forward (valid padding, ksize=3), PyTorch conventions.

    Args:
      x:    (N, Cin, D, H, W)       NCDHW activations
      w1:   (Cout, Cin, K, K, K)    conv1 weight
      b1:   (Cout,)                 conv1 bias
      w2:   (Cout, Cout, K, K, K)   conv2 weight
      b2:   (Cout,)                 conv2 bias
      wlin: (Cout, Cin)             Linear weight (no bias)
    Returns:
      (N, Cout, D-4, H-4, W-4)
    """
    N, Cin, D, H, W = x.shape
    Cout = w1.shape[0]
    M = D * H * W
    pad = (K + 1) // 2                        # residual crop offset (= 2)
    roff = pad * (H * W + W + 1)              # flat offset of the crop start
    off_max = (K - 1) * (H * W + W + 1)       # largest conv tap offset
    Mpad = ((M + max(roff, off_max) + 127) // 128) * 128
    D2, H2, W2 = D - 2 * (K - 1), H - 2 * (K - 1), W - 2 * (K - 1)
    kkk = K * K * K

    # ---- layout plumbing (wrapper side, plain XLA) -------------------------
    xf = jnp.pad(x.reshape(N, Cin, M), ((0, 0), (0, 0), (0, Mpad - M)))
    # per-tap weight matrices, tap index = (kd*K + kh)*K + kw
    w1t = jnp.transpose(w1, (2, 3, 4, 0, 1)).reshape(kkk, Cout, Cin)
    w2t = jnp.transpose(w2, (2, 3, 4, 0, 1)).reshape(kkk, Cout, Cout)
    b1c = b1.reshape(Cout, 1)
    b2c = b2.reshape(Cout, 1)

    # static flat tap offsets -> fully unrolled inside the kernel
    taps = [(kd * H * W + kh * W + kw, (kd * K + kh) * K + kw)
            for kd in range(K) for kh in range(K) for kw in range(K)]

    def kernel(x_ref, w1_ref, b1_ref, w2_ref, b2_ref, wlin_ref, o_ref, h1_ref):
        # x_ref:    (Cin, Mpad)   one batch element, flat spatial in lanes
        # w1_ref:   (27, Cout, Cin)
        # b1_ref:   (Cout, 1)
        # w2_ref:   (27, Cout, Cout)
        # b2_ref:   (Cout, 1)
        # wlin_ref: (Cout, Cin)
        # o_ref:    (Cout, M)     full-grid result (wrapper crops valid region)
        # h1_ref:   VMEM scratch (Cout, Mpad), f32

        # ---- conv1 + tanh -> h1 scratch (27 whole-volume matmuls) ----------
        acc1 = jnp.broadcast_to(b1_ref[...], (Cout, M)).astype(jnp.float32)
        for off, t in taps:
            acc1 = acc1 + jnp.dot(w1_ref[t], x_ref[:, pl.ds(off, M)],
                                  preferred_element_type=jnp.float32)
        h1_ref[...] = jnp.zeros_like(h1_ref)       # keep padded tail defined
        h1_ref[:, pl.ds(0, M)] = jnp.tanh(acc1)

        # ---- conv2 + tanh + linear residual -> out --------------------------
        acc2 = jnp.broadcast_to(b2_ref[...], (Cout, M)).astype(jnp.float32)
        for off, t in taps:
            acc2 = acc2 + jnp.dot(w2_ref[t], h1_ref[:, pl.ds(off, M)],
                                  preferred_element_type=jnp.float32)
        res = jnp.dot(wlin_ref[...], x_ref[:, pl.ds(roff, M)],
                      preferred_element_type=jnp.float32)
        o_ref[...] = (jnp.tanh(acc2) + res).astype(o_ref.dtype)

    # advisory cost hint for the XLA scheduler
    flops = N * 2 * M * Cout * (kkk * Cin + kkk * Cout + Cin)
    transcendentals = N * 2 * M * Cout
    bytes_accessed = 4 * (N * Cin * Mpad + N * Cout * M
                          + kkk * Cout * (Cin + Cout) + 2 * Cout + Cout * Cin)

    out_flat = pl.pallas_call(
        kernel,
        out_shape=jax.ShapeDtypeStruct((N, Cout, M), x.dtype),
        grid_spec=pltpu.PrefetchScalarGridSpec(
            num_scalar_prefetch=0,
            grid=(N,),
            in_specs=[
                pl.BlockSpec((None, Cin, Mpad), lambda n: (n, 0, 0)),
                pl.BlockSpec((kkk, Cout, Cin), lambda n: (0, 0, 0)),
                pl.BlockSpec((Cout, 1), lambda n: (0, 0)),
                pl.BlockSpec((kkk, Cout, Cout), lambda n: (0, 0, 0)),
                pl.BlockSpec((Cout, 1), lambda n: (0, 0)),
                pl.BlockSpec((Cout, Cin), lambda n: (0, 0)),
            ],
            out_specs=pl.BlockSpec((None, Cout, M), lambda n: (n, 0, 0)),
            scratch_shapes=[pltpu.VMEM((Cout, Mpad), jnp.float32)],
        ),
        compiler_params=pltpu.CompilerParams(
            dimension_semantics=("parallel",)),
        cost_estimate=pl.CostEstimate(
            flops=flops, transcendentals=transcendentals,
            bytes_accessed=bytes_accessed),
    )(xf, w1t, b1c, w2t, b2c, wlin)

    # crop the valid region of the full-grid result
    out = out_flat.reshape(N, Cout, D, H, W)[:, :, :D2, :H2, :W2]
    return out


if __name__ == "__main__":
    key = jax.random.PRNGKey(0)
    N, Cin, Cout, S = 2, 4, 8, 12  # nf_inp=4, nf_out=8 (Linear branch active)
    ks = jax.random.split(key, 6)

    # Deterministic synthetic parameters, PyTorch shapes/conventions.
    x = jax.random.normal(ks[0], (N, Cin, S, S, S), jnp.float32)
    w1 = jax.random.normal(ks[1], (Cout, Cin, K, K, K), jnp.float32) * 0.1
    b1 = jax.random.normal(ks[2], (Cout,), jnp.float32) * 0.1
    w2 = jax.random.normal(ks[3], (Cout, Cout, K, K, K), jnp.float32) * 0.1
    b2 = jax.random.normal(ks[4], (Cout,), jnp.float32) * 0.1
    wlin = jax.random.normal(ks[5], (Cout, Cin), jnp.float32) * 0.1

    out = residual_block(x, w1, b1, w2, b2, wlin)
    out = jax.block_until_ready(out)

    # Pure-JAX reference (same NCDHW / PyTorch conventions).
    dn = lax.conv_dimension_numbers(x.shape, w1.shape,
                                    ('NCDHW', 'OIDHW', 'NCDHW'))
    h1 = jnp.tanh(
        lax.conv_general_dilated(x, w1, (1, 1, 1), 'VALID',
                                 dimension_numbers=dn,
                                 precision=lax.Precision.HIGHEST)
        + b1.reshape(1, Cout, 1, 1, 1))
    h2 = lax.conv_general_dilated(h1, w2, (1, 1, 1), 'VALID',
                                  dimension_numbers=dn,
                                  precision=lax.Precision.HIGHEST) \
         + b2.reshape(1, Cout, 1, 1, 1)
    p = (K + 1) // 2
    xc = x[:, :, p:-p, p:-p, p:-p]
    res = jnp.einsum('ncdhw,oc->nodhw', xc, wlin,
                     precision=lax.Precision.HIGHEST)
    ref = jnp.tanh(h2) + res

    assert out.shape == (N, Cout, S - 4, S - 4, S - 4), out.shape
    err = float(jnp.max(jnp.abs(out - ref)))
    assert jnp.allclose(out, ref, atol=1e-3, rtol=1e-3), err
    print("KERNEL_OK")
</pallas_src>

<mosaic_0001>
module attributes {stable_mosaic.version = 11 : i64} {
  func.func @kernel(%arg0: i32, %arg1: memref<1x4x2048xf32, #tpu.memory_space<vmem>>, %arg2: memref<27x8x4xf32, #tpu.memory_space<vmem>>, %arg3: memref<8x1xf32, #tpu.memory_space<vmem>>, %arg4: memref<27x8x8xf32, #tpu.memory_space<vmem>>, %arg5: memref<8x1xf32, #tpu.memory_space<vmem>>, %arg6: memref<8x4xf32, #tpu.memory_space<vmem>>, %arg7: memref<1x8x1728xf32, #tpu.memory_space<vmem>>, %arg8: memref<8x2048xf32, #tpu.memory_space<vmem>>) attributes {dimension_semantics = [#tpu.dimension_semantics<parallel>], iteration_bounds = array<i64: 2>, scalar_prefetch = 0 : i64, scratch_operands = 1 : i64, tpu.core_type = #tpu.core_type<tc>, window_params = [{transform_indices = @transform_0, window_bounds = array<i64: 1, 4, 2048>}, {pipeline_mode = #tpu.pipeline_mode<synchronous>, transform_indices = @transform_1, window_bounds = array<i64: 27, 8, 4>}, {pipeline_mode = #tpu.pipeline_mode<synchronous>, transform_indices = @transform_2, window_bounds = array<i64: 8, 1>}, {pipeline_mode = #tpu.pipeline_mode<synchronous>, transform_indices = @transform_3, window_bounds = array<i64: 27, 8, 8>}, {pipeline_mode = #tpu.pipeline_mode<synchronous>, transform_indices = @transform_4, window_bounds = array<i64: 8, 1>}, {pipeline_mode = #tpu.pipeline_mode<synchronous>, transform_indices = @transform_5, window_bounds = array<i64: 8, 4>}, {transform_indices = @transform_6, window_bounds = array<i64: 1, 8, 1728>}]} {
    %c0 = arith.constant 0 : index
    %c0_0 = arith.constant 0 : index
    %0 = vector.load %arg3[%c0, %c0_0] : memref<8x1xf32, #tpu.memory_space<vmem>>, vector<8x1xf32>
    %1 = vector.shape_cast %0 : vector<8x1xf32> to vector<8x1xf32>
    %2 = vector.broadcast %1 : vector<8x1xf32> to vector<8x1728xf32>
    %c0_1 = arith.constant 0 : index
    %c0_2 = arith.constant 0 : index
    %c0_3 = arith.constant 0 : index
    %3 = vector.load %arg2[%c0_1, %c0_2, %c0_3] : memref<27x8x4xf32, #tpu.memory_space<vmem>>, vector<1x8x4xf32>
    %4 = vector.shape_cast %3 : vector<1x8x4xf32> to vector<8x4xf32>
    %c0_4 = arith.constant 0 : index
    %c0_5 = arith.constant 0 : index
    %c0_6 = arith.constant 0 : index
    %5 = vector.load %arg1[%c0_4, %c0_5, %c0_6] : memref<1x4x2048xf32, #tpu.memory_space<vmem>>, vector<1x4x1728xf32>
    %6 = vector.shape_cast %5 : vector<1x4x1728xf32> to vector<4x1728xf32>
    %cst = arith.constant dense<0.000000e+00> : vector<8x1728xf32>
    %7 = tpu.matmul %4, %6, %cst {dimension_numbers = #tpu.dot_dimension_numbers<[1], [0], [0], [1], [0, 0, 1, 1], [], []>} : vector<8x4xf32>, vector<4x1728xf32>, vector<8x1728xf32> -> vector<8x1728xf32>
    %8 = arith.addf %2, %7 : vector<8x1728xf32>
    %c1 = arith.constant 1 : index
    %c0_7 = arith.constant 0 : index
    %c0_8 = arith.constant 0 : index
    %9 = vector.load %arg2[%c1, %c0_7, %c0_8] : memref<27x8x4xf32, #tpu.memory_space<vmem>>, vector<1x8x4xf32>
    %10 = vector.shape_cast %9 : vector<1x8x4xf32> to vector<8x4xf32>
    %c0_9 = arith.constant 0 : index
    %c0_10 = arith.constant 0 : index
    %c1_11 = arith.constant 1 : index
    %11 = vector.load %arg1[%c0_9, %c0_10, %c1_11] : memref<1x4x2048xf32, #tpu.memory_space<vmem>>, vector<1x4x1728xf32>
    %12 = vector.shape_cast %11 : vector<1x4x1728xf32> to vector<4x1728xf32>
    %cst_12 = arith.constant dense<0.000000e+00> : vector<8x1728xf32>
    %13 = tpu.matmul %10, %12, %cst_12 {dimension_numbers = #tpu.dot_dimension_numbers<[1], [0], [0], [1], [0, 0, 1, 1], [], []>} : vector<8x4xf32>, vector<4x1728xf32>, vector<8x1728xf32> -> vector<8x1728xf32>
    %14 = arith.addf %8, %13 : vector<8x1728xf32>
    %c2 = arith.constant 2 : index
    %c0_13 = arith.constant 0 : index
    %c0_14 = arith.constant 0 : index
    %15 = vector.load %arg2[%c2, %c0_13, %c0_14] : memref<27x8x4xf32, #tpu.memory_space<vmem>>, vector<1x8x4xf32>
    %16 = vector.shape_cast %15 : vector<1x8x4xf32> to vector<8x4xf32>
    %c0_15 = arith.constant 0 : index
    %c0_16 = arith.constant 0 : index
    %c2_17 = arith.constant 2 : index
    %17 = vector.load %arg1[%c0_15, %c0_16, %c2_17] : memref<1x4x2048xf32, #tpu.memory_space<vmem>>, vector<1x4x1728xf32>
    %18 = vector.shape_cast %17 : vector<1x4x1728xf32> to vector<4x1728xf32>
    %cst_18 = arith.constant dense<0.000000e+00> : vector<8x1728xf32>
    %19 = tpu.matmul %16, %18, %cst_18 {dimension_numbers = #tpu.dot_dimension_numbers<[1], [0], [0], [1], [0, 0, 1, 1], [], []>} : vector<8x4xf32>, vector<4x1728xf32>, vector<8x1728xf32> -> vector<8x1728xf32>
    %20 = arith.addf %14, %19 : vector<8x1728xf32>
    %c3 = arith.constant 3 : index
    %c0_19 = arith.constant 0 : index
    %c0_20 = arith.constant 0 : index
    %21 = vector.load %arg2[%c3, %c0_19, %c0_20] : memref<27x8x4xf32, #tpu.memory_space<vmem>>, vector<1x8x4xf32>
    %22 = vector.shape_cast %21 : vector<1x8x4xf32> to vector<8x4xf32>
    %c0_21 = arith.constant 0 : index
    %c0_22 = arith.constant 0 : index
    %c12 = arith.constant 12 : index
    %23 = vector.load %arg1[%c0_21, %c0_22, %c12] : memref<1x4x2048xf32, #tpu.memory_space<vmem>>, vector<1x4x1728xf32>
    %24 = vector.shape_cast %23 : vector<1x4x1728xf32> to vector<4x1728xf32>
    %cst_23 = arith.constant dense<0.000000e+00> : vector<8x1728xf32>
    %25 = tpu.matmul %22, %24, %cst_23 {dimension_numbers = #tpu.dot_dimension_numbers<[1], [0], [0], [1], [0, 0, 1, 1], [], []>} : vector<8x4xf32>, vector<4x1728xf32>, vector<8x1728xf32> -> vector<8x1728xf32>
    %26 = arith.addf %20, %25 : vector<8x1728xf32>
    %c4 = arith.constant 4 : index
    %c0_24 = arith.constant 0 : index
    %c0_25 = arith.constant 0 : index
    %27 = vector.load %arg2[%c4, %c0_24, %c0_25] : memref<27x8x4xf32, #tpu.memory_space<vmem>>, vector<1x8x4xf32>
    %28 = vector.shape_cast %27 : vector<1x8x4xf32> to vector<8x4xf32>
    %c0_26 = arith.constant 0 : index
    %c0_27 = arith.constant 0 : index
    %c13 = arith.constant 13 : index
    %29 = vector.load %arg1[%c0_26, %c0_27, %c13] : memref<1x4x2048xf32, #tpu.memory_space<vmem>>, vector<1x4x1728xf32>
    %30 = vector.shape_cast %29 : vector<1x4x1728xf32> to vector<4x1728xf32>
    %cst_28 = arith.constant dense<0.000000e+00> : vector<8x1728xf32>
    %31 = tpu.matmul %28, %30, %cst_28 {dimension_numbers = #tpu.dot_dimension_numbers<[1], [0], [0], [1], [0, 0, 1, 1], [], []>} : vector<8x4xf32>, vector<4x1728xf32>, vector<8x1728xf32> -> vector<8x1728xf32>
    %32 = arith.addf %26, %31 : vector<8x1728xf32>
    %c5 = arith.constant 5 : index
    %c0_29 = arith.constant 0 : index
    %c0_30 = arith.constant 0 : index
    %33 = vector.load %arg2[%c5, %c0_29, %c0_30] : memref<27x8x4xf32, #tpu.memory_space<vmem>>, vector<1x8x4xf32>
    %34 = vector.shape_cast %33 : vector<1x8x4xf32> to vector<8x4xf32>
    %c0_31 = arith.constant 0 : index
    %c0_32 = arith.constant 0 : index
    %c14 = arith.constant 14 : index
    %35 = vector.load %arg1[%c0_31, %c0_32, %c14] : memref<1x4x2048xf32, #tpu.memory_space<vmem>>, vector<1x4x1728xf32>
    %36 = vector.shape_cast %35 : vector<1x4x1728xf32> to vector<4x1728xf32>
    %cst_33 = arith.constant dense<0.000000e+00> : vector<8x1728xf32>
    %37 = tpu.matmul %34, %36, %cst_33 {dimension_numbers = #tpu.dot_dimension_numbers<[1], [0], [0], [1], [0, 0, 1, 1], [], []>} : vector<8x4xf32>, vector<4x1728xf32>, vector<8x1728xf32> -> vector<8x1728xf32>
    %38 = arith.addf %32, %37 : vector<8x1728xf32>
    %c6 = arith.constant 6 : index
    %c0_34 = arith.constant 0 : index
    %c0_35 = arith.constant 0 : index
    %39 = vector.load %arg2[%c6, %c0_34, %c0_35] : memref<27x8x4xf32, #tpu.memory_space<vmem>>, vector<1x8x4xf32>
    %40 = vector.shape_cast %39 : vector<1x8x4xf32> to vector<8x4xf32>
    %c0_36 = arith.constant 0 : index
    %c0_37 = arith.constant 0 : index
    %c24 = arith.constant 24 : index
    %41 = vector.load %arg1[%c0_36, %c0_37, %c24] : memref<1x4x2048xf32, #tpu.memory_space<vmem>>, vector<1x4x1728xf32>
    %42 = vector.shape_cast %41 : vector<1x4x1728xf32> to vector<4x1728xf32>
    %cst_38 = arith.constant dense<0.000000e+00> : vector<8x1728xf32>
    %43 = tpu.matmul %40, %42, %cst_38 {dimension_numbers = #tpu.dot_dimension_numbers<[1], [0], [0], [1], [0, 0, 1, 1], [], []>} : vector<8x4xf32>, vector<4x1728xf32>, vector<8x1728xf32> -> vector<8x1728xf32>
    %44 = arith.addf %38, %43 : vector<8x1728xf32>
    %c7 = arith.constant 7 : index
    %c0_39 = arith.constant 0 : index
    %c0_40 = arith.constant 0 : index
    %45 = vector.load %arg2[%c7, %c0_39, %c0_40] : memref<27x8x4xf32, #tpu.memory_space<vmem>>, vector<1x8x4xf32>
    %46 = vector.shape_cast %45 : vector<1x8x4xf32> to vector<8x4xf32>
    %c0_41 = arith.constant 0 : index
    %c0_42 = arith.constant 0 : index
    %c25 = arith.constant 25 : index
    %47 = vector.load %arg1[%c0_41, %c0_42, %c25] : memref<1x4x2048xf32, #tpu.memory_space<vmem>>, vector<1x4x1728xf32>
    %48 = vector.shape_cast %47 : vector<1x4x1728xf32> to vector<4x1728xf32>
    %cst_43 = arith.constant dense<0.000000e+00> : vector<8x1728xf32>
    %49 = tpu.matmul %46, %48, %cst_43 {dimension_numbers = #tpu.dot_dimension_numbers<[1], [0], [0], [1], [0, 0, 1, 1], [], []>} : vector<8x4xf32>, vector<4x1728xf32>, vector<8x1728xf32> -> vector<8x1728xf32>
    %50 = arith.addf %44, %49 : vector<8x1728xf32>
    %c8 = arith.constant 8 : index
    %c0_44 = arith.constant 0 : index
    %c0_45 = arith.constant 0 : index
    %51 = vector.load %arg2[%c8, %c0_44, %c0_45] : memref<27x8x4xf32, #tpu.memory_space<vmem>>, vector<1x8x4xf32>
    %52 = vector.shape_cast %51 : vector<1x8x4xf32> to vector<8x4xf32>
    %c0_46 = arith.constant 0 : index
    %c0_47 = arith.constant 0 : index
    %c26 = arith.constant 26 : index
    %53 = vector.load %arg1[%c0_46, %c0_47, %c26] : memref<1x4x2048xf32, #tpu.memory_space<vmem>>, vector<1x4x1728xf32>
    %54 = vector.shape_cast %53 : vector<1x4x1728xf32> to vector<4x1728xf32>
    %cst_48 = arith.constant dense<0.000000e+00> : vector<8x1728xf32>
    %55 = tpu.matmul %52, %54, %cst_48 {dimension_numbers = #tpu.dot_dimension_numbers<[1], [0], [0], [1], [0, 0, 1, 1], [], []>} : vector<8x4xf32>, vector<4x1728xf32>, vector<8x1728xf32> -> vector<8x1728xf32>
    %56 = arith.addf %50, %55 : vector<8x1728xf32>
    %c9 = arith.constant 9 : index
    %c0_49 = arith.constant 0 : index
    %c0_50 = arith.constant 0 : index
    %57 = vector.load %arg2[%c9, %c0_49, %c0_50] : memref<27x8x4xf32, #tpu.memory_space<vmem>>, vector<1x8x4xf32>
    %58 = vector.shape_cast %57 : vector<1x8x4xf32> to vector<8x4xf32>
    %c0_51 = arith.constant 0 : index
    %c0_52 = arith.constant 0 : index
    %c144 = arith.constant 144 : index
    %59 = vector.load %arg1[%c0_51, %c0_52, %c144] : memref<1x4x2048xf32, #tpu.memory_space<vmem>>, vector<1x4x1728xf32>
    %60 = vector.shape_cast %59 : vector<1x4x1728xf32> to vector<4x1728xf32>
    %cst_53 = arith.constant dense<0.000000e+00> : vector<8x1728xf32>
    %61 = tpu.matmul %58, %60, %cst_53 {dimension_numbers = #tpu.dot_dimension_numbers<[1], [0], [0], [1], [0, 0, 1, 1], [], []>} : vector<8x4xf32>, vector<4x1728xf32>, vector<8x1728xf32> -> vector<8x1728xf32>
    %62 = arith.addf %56, %61 : vector<8x1728xf32>
    %c10 = arith.constant 10 : index
    %c0_54 = arith.constant 0 : index
    %c0_55 = arith.constant 0 : index
    %63 = vector.load %arg2[%c10, %c0_54, %c0_55] : memref<27x8x4xf32, #tpu.memory_space<vmem>>, vector<1x8x4xf32>
    %64 = vector.shape_cast %63 : vector<1x8x4xf32> to vector<8x4xf32>
    %c0_56 = arith.constant 0 : index
    %c0_57 = arith.constant 0 : index
    %c145 = arith.constant 145 : index
    %65 = vector.load %arg1[%c0_56, %c0_57, %c145] : memref<1x4x2048xf32, #tpu.memory_space<vmem>>, vector<1x4x1728xf32>
    %66 = vector.shape_cast %65 : vector<1x4x1728xf32> to vector<4x1728xf32>
    %cst_58 = arith.constant dense<0.000000e+00> : vector<8x1728xf32>
    %67 = tpu.matmul %64, %66, %cst_58 {dimension_numbers = #tpu.dot_dimension_numbers<[1], [0], [0], [1], [0, 0, 1, 1], [], []>} : vector<8x4xf32>, vector<4x1728xf32>, vector<8x1728xf32> -> vector<8x1728xf32>
    %68 = arith.addf %62, %67 : vector<8x1728xf32>
    %c11 = arith.constant 11 : index
    %c0_59 = arith.constant 0 : index
    %c0_60 = arith.constant 0 : index
    %69 = vector.load %arg2[%c11, %c0_59, %c0_60] : memref<27x8x4xf32, #tpu.memory_space<vmem>>, vector<1x8x4xf32>
    %70 = vector.shape_cast %69 : vector<1x8x4xf32> to vector<8x4xf32>
    %c0_61 = arith.constant 0 : index
    %c0_62 = arith.constant 0 : index
    %c146 = arith.constant 146 : index
    %71 = vector.load %arg1[%c0_61, %c0_62, %c146] : memref<1x4x2048xf32, #tpu.memory_space<vmem>>, vector<1x4x1728xf32>
    %72 = vector.shape_cast %71 : vector<1x4x1728xf32> to vector<4x1728xf32>
    %cst_63 = arith.constant dense<0.000000e+00> : vector<8x1728xf32>
    %73 = tpu.matmul %70, %72, %cst_63 {dimension_numbers = #tpu.dot_dimension_numbers<[1], [0], [0], [1], [0, 0, 1, 1], [], []>} : vector<8x4xf32>, vector<4x1728xf32>, vector<8x1728xf32> -> vector<8x1728xf32>
    %74 = arith.addf %68, %73 : vector<8x1728xf32>
    %c12_64 = arith.constant 12 : index
    %c0_65 = arith.constant 0 : index
    %c0_66 = arith.constant 0 : index
    %75 = vector.load %arg2[%c12_64, %c0_65, %c0_66] : memref<27x8x4xf32, #tpu.memory_space<vmem>>, vector<1x8x4xf32>
    %76 = vector.shape_cast %75 : vector<1x8x4xf32> to vector<8x4xf32>
    %c0_67 = arith.constant 0 : index
    %c0_68 = arith.constant 0 : index
    %c156 = arith.constant 156 : index
    %77 = vector.load %arg1[%c0_67, %c0_68, %c156] : memref<1x4x2048xf32, #tpu.memory_space<vmem>>, vector<1x4x1728xf32>
    %78 = vector.shape_cast %77 : vector<1x4x1728xf32> to vector<4x1728xf32>
    %cst_69 = arith.constant dense<0.000000e+00> : vector<8x1728xf32>
    %79 = tpu.matmul %76, %78, %cst_69 {dimension_numbers = #tpu.dot_dimension_numbers<[1], [0], [0], [1], [0, 0, 1, 1], [], []>} : vector<8x4xf32>, vector<4x1728xf32>, vector<8x1728xf32> -> vector<8x1728xf32>
    %80 = arith.addf %74, %79 : vector<8x1728xf32>
    %c13_70 = arith.constant 13 : index
    %c0_71 = arith.constant 0 : index
    %c0_72 = arith.constant 0 : index
    %81 = vector.load %arg2[%c13_70, %c0_71, %c0_72] : memref<27x8x4xf32, #tpu.memory_space<vmem>>, vector<1x8x4xf32>
    %82 = vector.shape_cast %81 : vector<1x8x4xf32> to vector<8x4xf32>
    %c0_73 = arith.constant 0 : index
    %c0_74 = arith.constant 0 : index
    %c157 = arith.constant 157 : index
    %83 = vector.load %arg1[%c0_73, %c0_74, %c157] : memref<1x4x2048xf32, #tpu.memory_space<vmem>>, vector<1x4x1728xf32>
    %84 = vector.shape_cast %83 : vector<1x4x1728xf32> to vector<4x1728xf32>
    %cst_75 = arith.constant dense<0.000000e+00> : vector<8x1728xf32>
    %85 = tpu.matmul %82, %84, %cst_75 {dimension_numbers = #tpu.dot_dimension_numbers<[1], [0], [0], [1], [0, 0, 1, 1], [], []>} : vector<8x4xf32>, vector<4x1728xf32>, vector<8x1728xf32> -> vector<8x1728xf32>
    %86 = arith.addf %80, %85 : vector<8x1728xf32>
    %c14_76 = arith.constant 14 : index
    %c0_77 = arith.constant 0 : index
    %c0_78 = arith.constant 0 : index
    %87 = vector.load %arg2[%c14_76, %c0_77, %c0_78] : memref<27x8x4xf32, #tpu.memory_space<vmem>>, vector<1x8x4xf32>
    %88 = vector.shape_cast %87 : vector<1x8x4xf32> to vector<8x4xf32>
    %c0_79 = arith.constant 0 : index
    %c0_80 = arith.constant 0 : index
    %c158 = arith.constant 158 : index
    %89 = vector.load %arg1[%c0_79, %c0_80, %c158] : memref<1x4x2048xf32, #tpu.memory_space<vmem>>, vector<1x4x1728xf32>
    %90 = vector.shape_cast %89 : vector<1x4x1728xf32> to vector<4x1728xf32>
    %cst_81 = arith.constant dense<0.000000e+00> : vector<8x1728xf32>
    %91 = tpu.matmul %88, %90, %cst_81 {dimension_numbers = #tpu.dot_dimension_numbers<[1], [0], [0], [1], [0, 0, 1, 1], [], []>} : vector<8x4xf32>, vector<4x1728xf32>, vector<8x1728xf32> -> vector<8x1728xf32>
    %92 = arith.addf %86, %91 : vector<8x1728xf32>
    %c15 = arith.constant 15 : index
    %c0_82 = arith.constant 0 : index
    %c0_83 = arith.constant 0 : index
    %93 = vector.load %arg2[%c15, %c0_82, %c0_83] : memref<27x8x4xf32, #tpu.memory_space<vmem>>, vector<1x8x4xf32>
    %94 = vector.shape_cast %93 : vector<1x8x4xf32> to vector<8x4xf32>
    %c0_84 = arith.constant 0 : index
    %c0_85 = arith.constant 0 : index
    %c168 = arith.constant 168 : index
    %95 = vector.load %arg1[%c0_84, %c0_85, %c168] : memref<1x4x2048xf32, #tpu.memory_space<vmem>>, vector<1x4x1728xf32>
    %96 = vector.shape_cast %95 : vector<1x4x1728xf32> to vector<4x1728xf32>
    %cst_86 = arith.constant dense<0.000000e+00> : vector<8x1728xf32>
    %97 = tpu.matmul %94, %96, %cst_86 {dimension_numbers = #tpu.dot_dimension_numbers<[1], [0], [0], [1], [0, 0, 1, 1], [], []>} : vector<8x4xf32>, vector<4x1728xf32>, vector<8x1728xf32> -> vector<8x1728xf32>
    %98 = arith.addf %92, %97 : vector<8x1728xf32>
    %c16 = arith.constant 16 : index
    %c0_87 = arith.constant 0 : index
    %c0_88 = arith.constant 0 : index
    %99 = vector.load %arg2[%c16, %c0_87, %c0_88] : memref<27x8x4xf32, #tpu.memory_space<vmem>>, vector<1x8x4xf32>
    %100 = vector.shape_cast %99 : vector<1x8x4xf32> to vector<8x4xf32>
    %c0_89 = arith.constant 0 : index
    %c0_90 = arith.constant 0 : index
    %c169 = arith.constant 169 : index
    %101 = vector.load %arg1[%c0_89, %c0_90, %c169] : memref<1x4x2048xf32, #tpu.memory_space<vmem>>, vector<1x4x1728xf32>
    %102 = vector.shape_cast %101 : vector<1x4x1728xf32> to vector<4x1728xf32>
    %cst_91 = arith.constant dense<0.000000e+00> : vector<8x1728xf32>
    %103 = tpu.matmul %100, %102, %cst_91 {dimension_numbers = #tpu.dot_dimension_numbers<[1], [0], [0], [1], [0, 0, 1, 1], [], []>} : vector<8x4xf32>, vector<4x1728xf32>, vector<8x1728xf32> -> vector<8x1728xf32>
    %104 = arith.addf %98, %103 : vector<8x1728xf32>
    %c17 = arith.constant 17 : index
    %c0_92 = arith.constant 0 : index
    %c0_93 = arith.constant 0 : index
    %105 = vector.load %arg2[%c17, %c0_92, %c0_93] : memref<27x8x4xf32, #tpu.memory_space<vmem>>, vector<1x8x4xf32>
    %106 = vector.shape_cast %105 : vector<1x8x4xf32> to vector<8x4xf32>
    %c0_94 = arith.constant 0 : index
    %c0_95 = arith.constant 0 : index
    %c170 = arith.constant 170 : index
    %107 = vector.load %arg1[%c0_94, %c0_95, %c170] : memref<1x4x2048xf32, #tpu.memory_space<vmem>>, vector<1x4x1728xf32>
    %108 = vector.shape_cast %107 : vector<1x4x1728xf32> to vector<4x1728xf32>
    %cst_96 = arith.constant dense<0.000000e+00> : vector<8x1728xf32>
    %109 = tpu.matmul %106, %108, %cst_96 {dimension_numbers = #tpu.dot_dimension_numbers<[1], [0], [0], [1], [0, 0, 1, 1], [], []>} : vector<8x4xf32>, vector<4x1728xf32>, vector<8x1728xf32> -> vector<8x1728xf32>
    %110 = arith.addf %104, %109 : vector<8x1728xf32>
    %c18 = arith.constant 18 : index
    %c0_97 = arith.constant 0 : index
    %c0_98 = arith.constant 0 : index
    %111 = vector.load %arg2[%c18, %c0_97, %c0_98] : memref<27x8x4xf32, #tpu.memory_space<vmem>>, vector<1x8x4xf32>
    %112 = vector.shape_cast %111 : vector<1x8x4xf32> to vector<8x4xf32>
    %c0_99 = arith.constant 0 : index
    %c0_100 = arith.constant 0 : index
    %c288 = arith.constant 288 : index
    %113 = vector.load %arg1[%c0_99, %c0_100, %c288] : memref<1x4x2048xf32, #tpu.memory_space<vmem>>, vector<1x4x1728xf32>
    %114 = vector.shape_cast %113 : vector<1x4x1728xf32> to vector<4x1728xf32>
    %cst_101 = arith.constant dense<0.000000e+00> : vector<8x1728xf32>
    %115 = tpu.matmul %112, %114, %cst_101 {dimension_numbers = #tpu.dot_dimension_numbers<[1], [0], [0], [1], [0, 0, 1, 1], [], []>} : vector<8x4xf32>, vector<4x1728xf32>, vector<8x1728xf32> -> vector<8x1728xf32>
    %116 = arith.addf %110, %115 : vector<8x1728xf32>
    %c19 = arith.constant 19 : index
    %c0_102 = arith.constant 0 : index
    %c0_103 = arith.constant 0 : index
    %117 = vector.load %arg2[%c19, %c0_102, %c0_103] : memref<27x8x4xf32, #tpu.memory_space<vmem>>, vector<1x8x4xf32>
    %118 = vector.shape_cast %117 : vector<1x8x4xf32> to vector<8x4xf32>
    %c0_104 = arith.constant 0 : index
    %c0_105 = arith.constant 0 : index
    %c289 = arith.constant 289 : index
    %119 = vector.load %arg1[%c0_104, %c0_105, %c289] : memref<1x4x2048xf32, #tpu.memory_space<vmem>>, vector<1x4x1728xf32>
    %120 = vector.shape_cast %119 : vector<1x4x1728xf32> to vector<4x1728xf32>
    %cst_106 = arith.constant dense<0.000000e+00> : vector<8x1728xf32>
    %121 = tpu.matmul %118, %120, %cst_106 {dimension_numbers = #tpu.dot_dimension_numbers<[1], [0], [0], [1], [0, 0, 1, 1], [], []>} : vector<8x4xf32>, vector<4x1728xf32>, vector<8x1728xf32> -> vector<8x1728xf32>
    %122 = arith.addf %116, %121 : vector<8x1728xf32>
    %c20 = arith.constant 20 : index
    %c0_107 = arith.constant 0 : index
    %c0_108 = arith.constant 0 : index
    %123 = vector.load %arg2[%c20, %c0_107, %c0_108] : memref<27x8x4xf32, #tpu.memory_space<vmem>>, vector<1x8x4xf32>
    %124 = vector.shape_cast %123 : vector<1x8x4xf32> to vector<8x4xf32>
    %c0_109 = arith.constant 0 : index
    %c0_110 = arith.constant 0 : index
    %c290 = arith.constant 290 : index
    %125 = vector.load %arg1[%c0_109, %c0_110, %c290] : memref<1x4x2048xf32, #tpu.memory_space<vmem>>, vector<1x4x1728xf32>
    %126 = vector.shape_cast %125 : vector<1x4x1728xf32> to vector<4x1728xf32>
    %cst_111 = arith.constant dense<0.000000e+00> : vector<8x1728xf32>
    %127 = tpu.matmul %124, %126, %cst_111 {dimension_numbers = #tpu.dot_dimension_numbers<[1], [0], [0], [1], [0, 0, 1, 1], [], []>} : vector<8x4xf32>, vector<4x1728xf32>, vector<8x1728xf32> -> vector<8x1728xf32>
    %128 = arith.addf %122, %127 : vector<8x1728xf32>
    %c21 = arith.constant 21 : index
    %c0_112 = arith.constant 0 : index
    %c0_113 = arith.constant 0 : index
    %129 = vector.load %arg2[%c21, %c0_112, %c0_113] : memref<27x8x4xf32, #tpu.memory_space<vmem>>, vector<1x8x4xf32>
    %130 = vector.shape_cast %129 : vector<1x8x4xf32> to vector<8x4xf32>
    %c0_114 = arith.constant 0 : index
    %c0_115 = arith.constant 0 : index
    %c300 = arith.constant 300 : index
    %131 = vector.load %arg1[%c0_114, %c0_115, %c300] : memref<1x4x2048xf32, #tpu.memory_space<vmem>>, vector<1x4x1728xf32>
    %132 = vector.shape_cast %131 : vector<1x4x1728xf32> to vector<4x1728xf32>
    %cst_116 = arith.constant dense<0.000000e+00> : vector<8x1728xf32>
    %133 = tpu.matmul %130, %132, %cst_116 {dimension_numbers = #tpu.dot_dimension_numbers<[1], [0], [0], [1], [0, 0, 1, 1], [], []>} : vector<8x4xf32>, vector<4x1728xf32>, vector<8x1728xf32> -> vector<8x1728xf32>
    %134 = arith.addf %128, %133 : vector<8x1728xf32>
    %c22 = arith.constant 22 : index
    %c0_117 = arith.constant 0 : index
    %c0_118 = arith.constant 0 : index
    %135 = vector.load %arg2[%c22, %c0_117, %c0_118] : memref<27x8x4xf32, #tpu.memory_space<vmem>>, vector<1x8x4xf32>
    %136 = vector.shape_cast %135 : vector<1x8x4xf32> to vector<8x4xf32>
    %c0_119 = arith.constant 0 : index
    %c0_120 = arith.constant 0 : index
    %c301 = arith.constant 301 : index
    %137 = vector.load %arg1[%c0_119, %c0_120, %c301] : memref<1x4x2048xf32, #tpu.memory_space<vmem>>, vector<1x4x1728xf32>
    %138 = vector.shape_cast %137 : vector<1x4x1728xf32> to vector<4x1728xf32>
    %cst_121 = arith.constant dense<0.000000e+00> : vector<8x1728xf32>
    %139 = tpu.matmul %136, %138, %cst_121 {dimension_numbers = #tpu.dot_dimension_numbers<[1], [0], [0], [1], [0, 0, 1, 1], [], []>} : vector<8x4xf32>, vector<4x1728xf32>, vector<8x1728xf32> -> vector<8x1728xf32>
    %140 = arith.addf %134, %139 : vector<8x1728xf32>
    %c23 = arith.constant 23 : index
    %c0_122 = arith.constant 0 : index
    %c0_123 = arith.constant 0 : index
    %141 = vector.load %arg2[%c23, %c0_122, %c0_123] : memref<27x8x4xf32, #tpu.memory_space<vmem>>, vector<1x8x4xf32>
    %142 = vector.shape_cast %141 : vector<1x8x4xf32> to vector<8x4xf32>
    %c0_124 = arith.constant 0 : index
    %c0_125 = arith.constant 0 : index
    %c302 = arith.constant 302 : index
    %143 = vector.load %arg1[%c0_124, %c0_125, %c302] : memref<1x4x2048xf32, #tpu.memory_space<vmem>>, vector<1x4x1728xf32>
    %144 = vector.shape_cast %143 : vector<1x4x1728xf32> to vector<4x1728xf32>
    %cst_126 = arith.constant dense<0.000000e+00> : vector<8x1728xf32>
    %145 = tpu.matmul %142, %144, %cst_126 {dimension_numbers = #tpu.dot_dimension_numbers<[1], [0], [0], [1], [0, 0, 1, 1], [], []>} : vector<8x4xf32>, vector<4x1728xf32>, vector<8x1728xf32> -> vector<8x1728xf32>
    %146 = arith.addf %140, %145 : vector<8x1728xf32>
    %c24_127 = arith.constant 24 : index
    %c0_128 = arith.constant 0 : index
    %c0_129 = arith.constant 0 : index
    %147 = vector.load %arg2[%c24_127, %c0_128, %c0_129] : memref<27x8x4xf32, #tpu.memory_space<vmem>>, vector<1x8x4xf32>
    %148 = vector.shape_cast %147 : vector<1x8x4xf32> to vector<8x4xf32>
    %c0_130 = arith.constant 0 : index
    %c0_131 = arith.constant 0 : index
    %c312 = arith.constant 312 : index
    %149 = vector.load %arg1[%c0_130, %c0_131, %c312] : memref<1x4x2048xf32, #tpu.memory_space<vmem>>, vector<1x4x1728xf32>
    %150 = vector.shape_cast %149 : vector<1x4x1728xf32> to vector<4x1728xf32>
    %cst_132 = arith.constant dense<0.000000e+00> : vector<8x1728xf32>
    %151 = tpu.matmul %148, %150, %cst_132 {dimension_numbers = #tpu.dot_dimension_numbers<[1], [0], [0], [1], [0, 0, 1, 1], [], []>} : vector<8x4xf32>, vector<4x1728xf32>, vector<8x1728xf32> -> vector<8x1728xf32>
    %152 = arith.addf %146, %151 : vector<8x1728xf32>
    %c25_133 = arith.constant 25 : index
    %c0_134 = arith.constant 0 : index
    %c0_135 = arith.constant 0 : index
    %153 = vector.load %arg2[%c25_133, %c0_134, %c0_135] : memref<27x8x4xf32, #tpu.memory_space<vmem>>, vector<1x8x4xf32>
    %154 = vector.shape_cast %153 : vector<1x8x4xf32> to vector<8x4xf32>
    %c0_136 = arith.constant 0 : index
    %c0_137 = arith.constant 0 : index
    %c313 = arith.constant 313 : index
    %155 = vector.load %arg1[%c0_136, %c0_137, %c313] : memref<1x4x2048xf32, #tpu.memory_space<vmem>>, vector<1x4x1728xf32>
    %156 = vector.shape_cast %155 : vector<1x4x1728xf32> to vector<4x1728xf32>
    %cst_138 = arith.constant dense<0.000000e+00> : vector<8x1728xf32>
    %157 = tpu.matmul %154, %156, %cst_138 {dimension_numbers = #tpu.dot_dimension_numbers<[1], [0], [0], [1], [0, 0, 1, 1], [], []>} : vector<8x4xf32>, vector<4x1728xf32>, vector<8x1728xf32> -> vector<8x1728xf32>
    %158 = arith.addf %152, %157 : vector<8x1728xf32>
    %c26_139 = arith.constant 26 : index
    %c0_140 = arith.constant 0 : index
    %c0_141 = arith.constant 0 : index
    %159 = vector.load %arg2[%c26_139, %c0_140, %c0_141] : memref<27x8x4xf32, #tpu.memory_space<vmem>>, vector<1x8x4xf32>
    %160 = vector.shape_cast %159 : vector<1x8x4xf32> to vector<8x4xf32>
    %c0_142 = arith.constant 0 : index
    %c0_143 = arith.constant 0 : index
    %c314 = arith.constant 314 : index
    %161 = vector.load %arg1[%c0_142, %c0_143, %c314] : memref<1x4x2048xf32, #tpu.memory_space<vmem>>, vector<1x4x1728xf32>
    %162 = vector.shape_cast %161 : vector<1x4x1728xf32> to vector<4x1728xf32>
    %cst_144 = arith.constant dense<0.000000e+00> : vector<8x1728xf32>
    %163 = tpu.matmul %160, %162, %cst_144 {dimension_numbers = #tpu.dot_dimension_numbers<[1], [0], [0], [1], [0, 0, 1, 1], [], []>} : vector<8x4xf32>, vector<4x1728xf32>, vector<8x1728xf32> -> vector<8x1728xf32>
    %164 = arith.addf %158, %163 : vector<8x1728xf32>
    %cst_145 = arith.constant 0.000000e+00 : f32
    %165 = vector.broadcast %cst_145 : f32 to vector<8x2048xf32>
    %c0_146 = arith.constant 0 : index
    %c0_147 = arith.constant 0 : index
    %166 = vector.load %arg8[%c0_146, %c0_147] : memref<8x2048xf32, #tpu.memory_space<vmem>>, vector<8x2048xf32>
    tpu.vector_store %arg8[%c0_146, %c0_147], %165 {strides = array<i32>} : memref<8x2048xf32, #tpu.memory_space<vmem>>, vector<8x2048xf32>,
    %167 = math.tanh %164 : vector<8x1728xf32>
    %c0_148 = arith.constant 0 : index
    %c0_149 = arith.constant 0 : index
    %168 = vector.load %arg8[%c0_148, %c0_149] : memref<8x2048xf32, #tpu.memory_space<vmem>>, vector<8x1728xf32>
    tpu.vector_store %arg8[%c0_148, %c0_149], %167 {strides = array<i32>} : memref<8x2048xf32, #tpu.memory_space<vmem>>, vector<8x1728xf32>,
    %c0_150 = arith.constant 0 : index
    %c0_151 = arith.constant 0 : index
    %169 = vector.load %arg5[%c0_150, %c0_151] : memref<8x1xf32, #tpu.memory_space<vmem>>, vector<8x1xf32>
    %170 = vector.shape_cast %169 : vector<8x1xf32> to vector<8x1xf32>
    %171 = vector.broadcast %170 : vector<8x1xf32> to vector<8x1728xf32>
    %c0_152 = arith.constant 0 : index
    %c0_153 = arith.constant 0 : index
    %c0_154 = arith.constant 0 : index
    %172 = vector.load %arg4[%c0_152, %c0_153, %c0_154] : memref<27x8x8xf32, #tpu.memory_space<vmem>>, vector<1x8x8xf32>
    %173 = vector.shape_cast %172 : vector<1x8x8xf32> to vector<8x8xf32>
    %c0_155 = arith.constant 0 : index
    %c0_156 = arith.constant 0 : index
    %174 = vector.load %arg8[%c0_155, %c0_156] : memref<8x2048xf32, #tpu.memory_space<vmem>>, vector<8x1728xf32>
    %cst_157 = arith.constant dense<0.000000e+00> : vector<8x1728xf32>
    %175 = tpu.matmul %173, %174, %cst_157 {dimension_numbers = #tpu.dot_dimension_numbers<[1], [0], [0], [1], [0, 0, 1, 1], [], []>} : vector<8x8xf32>, vector<8x1728xf32>, vector<8x1728xf32> -> vector<8x1728xf32>
    %176 = arith.addf %171, %175 : vector<8x1728xf32>
    %c1_158 = arith.constant 1 : index
    %c0_159 = arith.constant 0 : index
    %c0_160 = arith.constant 0 : index
    %177 = vector.load %arg4[%c1_158, %c0_159, %c0_160] : memref<27x8x8xf32, #tpu.memory_space<vmem>>, vector<1x8x8xf32>
    %178 = vector.shape_cast %177 : vector<1x8x8xf32> to vector<8x8xf32>
    %c0_161 = arith.constant 0 : index
    %c1_162 = arith.constant 1 : index
    %179 = vector.load %arg8[%c0_161, %c1_162] : memref<8x2048xf32, #tpu.memory_space<vmem>>, vector<8x1728xf32>
    %cst_163 = arith.constant dense<0.000000e+00> : vector<8x1728xf32>
    %180 = tpu.matmul %178, %179, %cst_163 {dimension_numbers = #tpu.dot_dimension_numbers<[1], [0], [0], [1], [0, 0, 1, 1], [], []>} : vector<8x8xf32>, vector<8x1728xf32>, vector<8x1728xf32> -> vector<8x1728xf32>
    %181 = arith.addf %176, %180 : vector<8x1728xf32>
    %c2_164 = arith.constant 2 : index
    %c0_165 = arith.constant 0 : index
    %c0_166 = arith.constant 0 : index
    %182 = vector.load %arg4[%c2_164, %c0_165, %c0_166] : memref<27x8x8xf32, #tpu.memory_space<vmem>>, vector<1x8x8xf32>
    %183 = vector.shape_cast %182 : vector<1x8x8xf32> to vector<8x8xf32>
    %c0_167 = arith.constant 0 : index
    %c2_168 = arith.constant 2 : index
    %184 = vector.load %arg8[%c0_167, %c2_168] : memref<8x2048xf32, #tpu.memory_space<vmem>>, vector<8x1728xf32>
    %cst_169 = arith.constant dense<0.000000e+00> : vector<8x1728xf32>
    %185 = tpu.matmul %183, %184, %cst_169 {dimension_numbers = #tpu.dot_dimension_numbers<[1], [0], [0], [1], [0, 0, 1, 1], [], []>} : vector<8x8xf32>, vector<8x1728xf32>, vector<8x1728xf32> -> vector<8x1728xf32>
    %186 = arith.addf %181, %185 : vector<8x1728xf32>
    %c3_170 = arith.constant 3 : index
    %c0_171 = arith.constant 0 : index
    %c0_172 = arith.constant 0 : index
    %187 = vector.load %arg4[%c3_170, %c0_171, %c0_172] : memref<27x8x8xf32, #tpu.memory_space<vmem>>, vector<1x8x8xf32>
    %188 = vector.shape_cast %187 : vector<1x8x8xf32> to vector<8x8xf32>
    %c0_173 = arith.constant 0 : index
    %c12_174 = arith.constant 12 : index
    %189 = vector.load %arg8[%c0_173, %c12_174] : memref<8x2048xf32, #tpu.memory_space<vmem>>, vector<8x1728xf32>
    %cst_175 = arith.constant dense<0.000000e+00> : vector<8x1728xf32>
    %190 = tpu.matmul %188, %189, %cst_175 {dimension_numbers = #tpu.dot_dimension_numbers<[1], [0], [0], [1], [0, 0, 1, 1], [], []>} : vector<8x8xf32>, vector<8x1728xf32>, vector<8x1728xf32> -> vector<8x1728xf32>
    %191 = arith.addf %186, %190 : vector<8x1728xf32>
    %c4_176 = arith.constant 4 : index
    %c0_177 = arith.constant 0 : index
    %c0_178 = arith.constant 0 : index
    %192 = vector.load %arg4[%c4_176, %c0_177, %c0_178] : memref<27x8x8xf32, #tpu.memory_space<vmem>>, vector<1x8x8xf32>
    %193 = vector.shape_cast %192 : vector<1x8x8xf32> to vector<8x8xf32>
    %c0_179 = arith.constant 0 : index
    %c13_180 = arith.constant 13 : index
    %194 = vector.load %arg8[%c0_179, %c13_180] : memref<8x2048xf32, #tpu.memory_space<vmem>>, vector<8x1728xf32>
    %cst_181 = arith.constant dense<0.000000e+00> : vector<8x1728xf32>
    %195 = tpu.matmul %193, %194, %cst_181 {dimension_numbers = #tpu.dot_dimension_numbers<[1], [0], [0], [1], [0, 0, 1, 1], [], []>} : vector<8x8xf32>, vector<8x1728xf32>, vector<8x1728xf32> -> vector<8x1728xf32>
    %196 = arith.addf %191, %195 : vector<8x1728xf32>
    %c5_182 = arith.constant 5 : index
    %c0_183 = arith.constant 0 : index
    %c0_184 = arith.constant 0 : index
    %197 = vector.load %arg4[%c5_182, %c0_183, %c0_184] : memref<27x8x8xf32, #tpu.memory_space<vmem>>, vector<1x8x8xf32>
    %198 = vector.shape_cast %197 : vector<1x8x8xf32> to vector<8x8xf32>
    %c0_185 = arith.constant 0 : index
    %c14_186 = arith.constant 14 : index
    %199 = vector.load %arg8[%c0_185, %c14_186] : memref<8x2048xf32, #tpu.memory_space<vmem>>, vector<8x1728xf32>
    %cst_187 = arith.constant dense<0.000000e+00> : vector<8x1728xf32>
    %200 = tpu.matmul %198, %199, %cst_187 {dimension_numbers = #tpu.dot_dimension_numbers<[1], [0], [0], [1], [0, 0, 1, 1], [], []>} : vector<8x8xf32>, vector<8x1728xf32>, vector<8x1728xf32> -> vector<8x1728xf32>
    %201 = arith.addf %196, %200 : vector<8x1728xf32>
    %c6_188 = arith.constant 6 : index
    %c0_189 = arith.constant 0 : index
    %c0_190 = arith.constant 0 : index
    %202 = vector.load %arg4[%c6_188, %c0_189, %c0_190] : memref<27x8x8xf32, #tpu.memory_space<vmem>>, vector<1x8x8xf32>
    %203 = vector.shape_cast %202 : vector<1x8x8xf32> to vector<8x8xf32>
    %c0_191 = arith.constant 0 : index
    %c24_192 = arith.constant 24 : index
    %204 = vector.load %arg8[%c0_191, %c24_192] : memref<8x2048xf32, #tpu.memory_space<vmem>>, vector<8x1728xf32>
    %cst_193 = arith.constant dense<0.000000e+00> : vector<8x1728xf32>
    %205 = tpu.matmul %203, %204, %cst_193 {dimension_numbers = #tpu.dot_dimension_numbers<[1], [0], [0], [1], [0, 0, 1, 1], [], []>} : vector<8x8xf32>, vector<8x1728xf32>, vector<8x1728xf32> -> vector<8x1728xf32>
    %206 = arith.addf %201, %205 : vector<8x1728xf32>
    %c7_194 = arith.constant 7 : index
    %c0_195 = arith.constant 0 : index
    %c0_196 = arith.constant 0 : index
    %207 = vector.load %arg4[%c7_194, %c0_195, %c0_196] : memref<27x8x8xf32, #tpu.memory_space<vmem>>, vector<1x8x8xf32>
    %208 = vector.shape_cast %207 : vector<1x8x8xf32> to vector<8x8xf32>
    %c0_197 = arith.constant 0 : index
    %c25_198 = arith.constant 25 : index
    %209 = vector.load %arg8[%c0_197, %c25_198] : memref<8x2048xf32, #tpu.memory_space<vmem>>, vector<8x1728xf32>
    %cst_199 = arith.constant dense<0.000000e+00> : vector<8x1728xf32>
    %210 = tpu.matmul %208, %209, %cst_199 {dimension_numbers = #tpu.dot_dimension_numbers<[1], [0], [0], [1], [0, 0, 1, 1], [], []>} : vector<8x8xf32>, vector<8x1728xf32>, vector<8x1728xf32> -> vector<8x1728xf32>
    %211 = arith.addf %206, %210 : vector<8x1728xf32>
    %c8_200 = arith.constant 8 : index
    %c0_201 = arith.constant 0 : index
    %c0_202 = arith.constant 0 : index
    %212 = vector.load %arg4[%c8_200, %c0_201, %c0_202] : memref<27x8x8xf32, #tpu.memory_space<vmem>>, vector<1x8x8xf32>
    %213 = vector.shape_cast %212 : vector<1x8x8xf32> to vector<8x8xf32>
    %c0_203 = arith.constant 0 : index
    %c26_204 = arith.constant 26 : index
    %214 = vector.load %arg8[%c0_203, %c26_204] : memref<8x2048xf32, #tpu.memory_space<vmem>>, vector<8x1728xf32>
    %cst_205 = arith.constant dense<0.000000e+00> : vector<8x1728xf32>
    %215 = tpu.matmul %213, %214, %cst_205 {dimension_numbers = #tpu.dot_dimension_numbers<[1], [0], [0], [1], [0, 0, 1, 1], [], []>} : vector<8x8xf32>, vector<8x1728xf32>, vector<8x1728xf32> -> vector<8x1728xf32>
    %216 = arith.addf %211, %215 : vector<8x1728xf32>
    %c9_206 = arith.constant 9 : index
    %c0_207 = arith.constant 0 : index
    %c0_208 = arith.constant 0 : index
    %217 = vector.load %arg4[%c9_206, %c0_207, %c0_208] : memref<27x8x8xf32, #tpu.memory_space<vmem>>, vector<1x8x8xf32>
    %218 = vector.shape_cast %217 : vector<1x8x8xf32> to vector<8x8xf32>
    %c0_209 = arith.constant 0 : index
    %c144_210 = arith.constant 144 : index
    %219 = vector.load %arg8[%c0_209, %c144_210] : memref<8x2048xf32, #tpu.memory_space<vmem>>, vector<8x1728xf32>
    %cst_211 = arith.constant dense<0.000000e+00> : vector<8x1728xf32>
    %220 = tpu.matmul %218, %219, %cst_211 {dimension_numbers = #tpu.dot_dimension_numbers<[1], [0], [0], [1], [0, 0, 1, 1], [], []>} : vector<8x8xf32>, vector<8x1728xf32>, vector<8x1728xf32> -> vector<8x1728xf32>
    %221 = arith.addf %216, %220 : vector<8x1728xf32>
    %c10_212 = arith.constant 10 : index
    %c0_213 = arith.constant 0 : index
    %c0_214 = arith.constant 0 : index
    %222 = vector.load %arg4[%c10_212, %c0_213, %c0_214] : memref<27x8x8xf32, #tpu.memory_space<vmem>>, vector<1x8x8xf32>
    %223 = vector.shape_cast %222 : vector<1x8x8xf32> to vector<8x8xf32>
    %c0_215 = arith.constant 0 : index
    %c145_216 = arith.constant 145 : index
    %224 = vector.load %arg8[%c0_215, %c145_216] : memref<8x2048xf32, #tpu.memory_space<vmem>>, vector<8x1728xf32>
    %cst_217 = arith.constant dense<0.000000e+00> : vector<8x1728xf32>
    %225 = tpu.matmul %223, %224, %cst_217 {dimension_numbers = #tpu.dot_dimension_numbers<[1], [0], [0], [1], [0, 0, 1, 1], [], []>} : vector<8x8xf32>, vector<8x1728xf32>, vector<8x1728xf32> -> vector<8x1728xf32>
    %226 = arith.addf %221, %225 : vector<8x1728xf32>
    %c11_218 = arith.constant 11 : index
    %c0_219 = arith.constant 0 : index
    %c0_220 = arith.constant 0 : index
    %227 = vector.load %arg4[%c11_218, %c0_219, %c0_220] : memref<27x8x8xf32, #tpu.memory_space<vmem>>, vector<1x8x8xf32>
    %228 = vector.shape_cast %227 : vector<1x8x8xf32> to vector<8x8xf32>
    %c0_221 = arith.constant 0 : index
    %c146_222 = arith.constant 146 : index
    %229 = vector.load %arg8[%c0_221, %c146_222] : memref<8x2048xf32, #tpu.memory_space<vmem>>, vector<8x1728xf32>
    %cst_223 = arith.constant dense<0.000000e+00> : vector<8x1728xf32>
    %230 = tpu.matmul %228, %229, %cst_223 {dimension_numbers = #tpu.dot_dimension_numbers<[1], [0], [0], [1], [0, 0, 1, 1], [], []>} : vector<8x8xf32>, vector<8x1728xf32>, vector<8x1728xf32> -> vector<8x1728xf32>
    %231 = arith.addf %226, %230 : vector<8x1728xf32>
    %c12_224 = arith.constant 12 : index
    %c0_225 = arith.constant 0 : index
    %c0_226 = arith.constant 0 : index
    %232 = vector.load %arg4[%c12_224, %c0_225, %c0_226] : memref<27x8x8xf32, #tpu.memory_space<vmem>>, vector<1x8x8xf32>
    %233 = vector.shape_cast %232 : vector<1x8x8xf32> to vector<8x8xf32>
    %c0_227 = arith.constant 0 : index
    %c156_228 = arith.constant 156 : index
    %234 = vector.load %arg8[%c0_227, %c156_228] : memref<8x2048xf32, #tpu.memory_space<vmem>>, vector<8x1728xf32>
    %cst_229 = arith.constant dense<0.000000e+00> : vector<8x1728xf32>
    %235 = tpu.matmul %233, %234, %cst_229 {dimension_numbers = #tpu.dot_dimension_numbers<[1], [0], [0], [1], [0, 0, 1, 1], [], []>} : vector<8x8xf32>, vector<8x1728xf32>, vector<8x1728xf32> -> vector<8x1728xf32>
    %236 = arith.addf %231, %235 : vector<8x1728xf32>
    %c13_230 = arith.constant 13 : index
    %c0_231 = arith.constant 0 : index
    %c0_232 = arith.constant 0 : index
    %237 = vector.load %arg4[%c13_230, %c0_231, %c0_232] : memref<27x8x8xf32, #tpu.memory_space<vmem>>, vector<1x8x8xf32>
    %238 = vector.shape_cast %237 : vector<1x8x8xf32> to vector<8x8xf32>
    %c0_233 = arith.constant 0 : index
    %c157_234 = arith.constant 157 : index
    %239 = vector.load %arg8[%c0_233, %c157_234] : memref<8x2048xf32, #tpu.memory_space<vmem>>, vector<8x1728xf32>
    %cst_235 = arith.constant dense<0.000000e+00> : vector<8x1728xf32>
    %240 = tpu.matmul %238, %239, %cst_235 {dimension_numbers = #tpu.dot_dimension_numbers<[1], [0], [0], [1], [0, 0, 1, 1], [], []>} : vector<8x8xf32>, vector<8x1728xf32>, vector<8x1728xf32> -> vector<8x1728xf32>
    %241 = arith.addf %236, %240 : vector<8x1728xf32>
    %c14_236 = arith.constant 14 : index
    %c0_237 = arith.constant 0 : index
    %c0_238 = arith.constant 0 : index
    %242 = vector.load %arg4[%c14_236, %c0_237, %c0_238] : memref<27x8x8xf32, #tpu.memory_space<vmem>>, vector<1x8x8xf32>
    %243 = vector.shape_cast %242 : vector<1x8x8xf32> to vector<8x8xf32>
    %c0_239 = arith.constant 0 : index
    %c158_240 = arith.constant 158 : index
    %244 = vector.load %arg8[%c0_239, %c158_240] : memref<8x2048xf32, #tpu.memory_space<vmem>>, vector<8x1728xf32>
    %cst_241 = arith.constant dense<0.000000e+00> : vector<8x1728xf32>
    %245 = tpu.matmul %243, %244, %cst_241 {dimension_numbers = #tpu.dot_dimension_numbers<[1], [0], [0], [1], [0, 0, 1, 1], [], []>} : vector<8x8xf32>, vector<8x1728xf32>, vector<8x1728xf32> -> vector<8x1728xf32>
    %246 = arith.addf %241, %245 : vector<8x1728xf32>
    %c15_242 = arith.constant 15 : index
    %c0_243 = arith.constant 0 : index
    %c0_244 = arith.constant 0 : index
    %247 = vector.load %arg4[%c15_242, %c0_243, %c0_244] : memref<27x8x8xf32, #tpu.memory_space<vmem>>, vector<1x8x8xf32>
    %248 = vector.shape_cast %247 : vector<1x8x8xf32> to vector<8x8xf32>
    %c0_245 = arith.constant 0 : index
    %c168_246 = arith.constant 168 : index
    %249 = vector.load %arg8[%c0_245, %c168_246] : memref<8x2048xf32, #tpu.memory_space<vmem>>, vector<8x1728xf32>
    %cst_247 = arith.constant dense<0.000000e+00> : vector<8x1728xf32>
    %250 = tpu.matmul %248, %249, %cst_247 {dimension_numbers = #tpu.dot_dimension_numbers<[1], [0], [0], [1], [0, 0, 1, 1], [], []>} : vector<8x8xf32>, vector<8x1728xf32>, vector<8x1728xf32> -> vector<8x1728xf32>
    %251 = arith.addf %246, %250 : vector<8x1728xf32>
    %c16_248 = arith.constant 16 : index
    %c0_249 = arith.constant 0 : index
    %c0_250 = arith.constant 0 : index
    %252 = vector.load %arg4[%c16_248, %c0_249, %c0_250] : memref<27x8x8xf32, #tpu.memory_space<vmem>>, vector<1x8x8xf32>
    %253 = vector.shape_cast %252 : vector<1x8x8xf32> to vector<8x8xf32>
    %c0_251 = arith.constant 0 : index
    %c169_252 = arith.constant 169 : index
    %254 = vector.load %arg8[%c0_251, %c169_252] : memref<8x2048xf32, #tpu.memory_space<vmem>>, vector<8x1728xf32>
    %cst_253 = arith.constant dense<0.000000e+00> : vector<8x1728xf32>
    %255 = tpu.matmul %253, %254, %cst_253 {dimension_numbers = #tpu.dot_dimension_numbers<[1], [0], [0], [1], [0, 0, 1, 1], [], []>} : vector<8x8xf32>, vector<8x1728xf32>, vector<8x1728xf32> -> vector<8x1728xf32>
    %256 = arith.addf %251, %255 : vector<8x1728xf32>
    %c17_254 = arith.constant 17 : index
    %c0_255 = arith.constant 0 : index
    %c0_256 = arith.constant 0 : index
    %257 = vector.load %arg4[%c17_254, %c0_255, %c0_256] : memref<27x8x8xf32, #tpu.memory_space<vmem>>, vector<1x8x8xf32>
    %258 = vector.shape_cast %257 : vector<1x8x8xf32> to vector<8x8xf32>
    %c0_257 = arith.constant 0 : index
    %c170_258 = arith.constant 170 : index
    %259 = vector.load %arg8[%c0_257, %c170_258] : memref<8x2048xf32, #tpu.memory_space<vmem>>, vector<8x1728xf32>
    %cst_259 = arith.constant dense<0.000000e+00> : vector<8x1728xf32>
    %260 = tpu.matmul %258, %259, %cst_259 {dimension_numbers = #tpu.dot_dimension_numbers<[1], [0], [0], [1], [0, 0, 1, 1], [], []>} : vector<8x8xf32>, vector<8x1728xf32>, vector<8x1728xf32> -> vector<8x1728xf32>
    %261 = arith.addf %256, %260 : vector<8x1728xf32>
    %c18_260 = arith.constant 18 : index
    %c0_261 = arith.constant 0 : index
    %c0_262 = arith.constant 0 : index
    %262 = vector.load %arg4[%c18_260, %c0_261, %c0_262] : memref<27x8x8xf32, #tpu.memory_space<vmem>>, vector<1x8x8xf32>
    %263 = vector.shape_cast %262 : vector<1x8x8xf32> to vector<8x8xf32>
    %c0_263 = arith.constant 0 : index
    %c288_264 = arith.constant 288 : index
    %264 = vector.load %arg8[%c0_263, %c288_264] : memref<8x2048xf32, #tpu.memory_space<vmem>>, vector<8x1728xf32>
    %cst_265 = arith.constant dense<0.000000e+00> : vector<8x1728xf32>
    %265 = tpu.matmul %263, %264, %cst_265 {dimension_numbers = #tpu.dot_dimension_numbers<[1], [0], [0], [1], [0, 0, 1, 1], [], []>} : vector<8x8xf32>, vector<8x1728xf32>, vector<8x1728xf32> -> vector<8x1728xf32>
    %266 = arith.addf %261, %265 : vector<8x1728xf32>
    %c19_266 = arith.constant 19 : index
    %c0_267 = arith.constant 0 : index
    %c0_268 = arith.constant 0 : index
    %267 = vector.load %arg4[%c19_266, %c0_267, %c0_268] : memref<27x8x8xf32, #tpu.memory_space<vmem>>, vector<1x8x8xf32>
    %268 = vector.shape_cast %267 : vector<1x8x8xf32> to vector<8x8xf32>
    %c0_269 = arith.constant 0 : index
    %c289_270 = arith.constant 289 : index
    %269 = vector.load %arg8[%c0_269, %c289_270] : memref<8x2048xf32, #tpu.memory_space<vmem>>, vector<8x1728xf32>
    %cst_271 = arith.constant dense<0.000000e+00> : vector<8x1728xf32>
    %270 = tpu.matmul %268, %269, %cst_271 {dimension_numbers = #tpu.dot_dimension_numbers<[1], [0], [0], [1], [0, 0, 1, 1], [], []>} : vector<8x8xf32>, vector<8x1728xf32>, vector<8x1728xf32> -> vector<8x1728xf32>
    %271 = arith.addf %266, %270 : vector<8x1728xf32>
    %c20_272 = arith.constant 20 : index
    %c0_273 = arith.constant 0 : index
    %c0_274 = arith.constant 0 : index
    %272 = vector.load %arg4[%c20_272, %c0_273, %c0_274] : memref<27x8x8xf32, #tpu.memory_space<vmem>>, vector<1x8x8xf32>
    %273 = vector.shape_cast %272 : vector<1x8x8xf32> to vector<8x8xf32>
    %c0_275 = arith.constant 0 : index
    %c290_276 = arith.constant 290 : index
    %274 = vector.load %arg8[%c0_275, %c290_276] : memref<8x2048xf32, #tpu.memory_space<vmem>>, vector<8x1728xf32>
    %cst_277 = arith.constant dense<0.000000e+00> : vector<8x1728xf32>
    %275 = tpu.matmul %273, %274, %cst_277 {dimension_numbers = #tpu.dot_dimension_numbers<[1], [0], [0], [1], [0, 0, 1, 1], [], []>} : vector<8x8xf32>, vector<8x1728xf32>, vector<8x1728xf32> -> vector<8x1728xf32>
    %276 = arith.addf %271, %275 : vector<8x1728xf32>
    %c21_278 = arith.constant 21 : index
    %c0_279 = arith.constant 0 : index
    %c0_280 = arith.constant 0 : index
    %277 = vector.load %arg4[%c21_278, %c0_279, %c0_280] : memref<27x8x8xf32, #tpu.memory_space<vmem>>, vector<1x8x8xf32>
    %278 = vector.shape_cast %277 : vector<1x8x8xf32> to vector<8x8xf32>
    %c0_281 = arith.constant 0 : index
    %c300_282 = arith.constant 300 : index
    %279 = vector.load %arg8[%c0_281, %c300_282] : memref<8x2048xf32, #tpu.memory_space<vmem>>, vector<8x1728xf32>
    %cst_283 = arith.constant dense<0.000000e+00> : vector<8x1728xf32>
    %280 = tpu.matmul %278, %279, %cst_283 {dimension_numbers = #tpu.dot_dimension_numbers<[1], [0], [0], [1], [0, 0, 1, 1], [], []>} : vector<8x8xf32>, vector<8x1728xf32>, vector<8x1728xf32> -> vector<8x1728xf32>
    %281 = arith.addf %276, %280 : vector<8x1728xf32>
    %c22_284 = arith.constant 22 : index
    %c0_285 = arith.constant 0 : index
    %c0_286 = arith.constant 0 : index
    %282 = vector.load %arg4[%c22_284, %c0_285, %c0_286] : memref<27x8x8xf32, #tpu.memory_space<vmem>>, vector<1x8x8xf32>
    %283 = vector.shape_cast %282 : vector<1x8x8xf32> to vector<8x8xf32>
    %c0_287 = arith.constant 0 : index
    %c301_288 = arith.constant 301 : index
    %284 = vector.load %arg8[%c0_287, %c301_288] : memref<8x2048xf32, #tpu.memory_space<vmem>>, vector<8x1728xf32>
    %cst_289 = arith.constant dense<0.000000e+00> : vector<8x1728xf32>
    %285 = tpu.matmul %283, %284, %cst_289 {dimension_numbers = #tpu.dot_dimension_numbers<[1], [0], [0], [1], [0, 0, 1, 1], [], []>} : vector<8x8xf32>, vector<8x1728xf32>, vector<8x1728xf32> -> vector<8x1728xf32>
    %286 = arith.addf %281, %285 : vector<8x1728xf32>
    %c23_290 = arith.constant 23 : index
    %c0_291 = arith.constant 0 : index
    %c0_292 = arith.constant 0 : index
    %287 = vector.load %arg4[%c23_290, %c0_291, %c0_292] : memref<27x8x8xf32, #tpu.memory_space<vmem>>, vector<1x8x8xf32>
    %288 = vector.shape_cast %287 : vector<1x8x8xf32> to vector<8x8xf32>
    %c0_293 = arith.constant 0 : index
    %c302_294 = arith.constant 302 : index
    %289 = vector.load %arg8[%c0_293, %c302_294] : memref<8x2048xf32, #tpu.memory_space<vmem>>, vector<8x1728xf32>
    %cst_295 = arith.constant dense<0.000000e+00> : vector<8x1728xf32>
    %290 = tpu.matmul %288, %289, %cst_295 {dimension_numbers = #tpu.dot_dimension_numbers<[1], [0], [0], [1], [0, 0, 1, 1], [], []>} : vector<8x8xf32>, vector<8x1728xf32>, vector<8x1728xf32> -> vector<8x1728xf32>
    %291 = arith.addf %286, %290 : vector<8x1728xf32>
    %c24_296 = arith.constant 24 : index
    %c0_297 = arith.constant 0 : index
    %c0_298 = arith.constant 0 : index
    %292 = vector.load %arg4[%c24_296, %c0_297, %c0_298] : memref<27x8x8xf32, #tpu.memory_space<vmem>>, vector<1x8x8xf32>
    %293 = vector.shape_cast %292 : vector<1x8x8xf32> to vector<8x8xf32>
    %c0_299 = arith.constant 0 : index
    %c312_300 = arith.constant 312 : index
    %294 = vector.load %arg8[%c0_299, %c312_300] : memref<8x2048xf32, #tpu.memory_space<vmem>>, vector<8x1728xf32>
    %cst_301 = arith.constant dense<0.000000e+00> : vector<8x1728xf32>
    %295 = tpu.matmul %293, %294, %cst_301 {dimension_numbers = #tpu.dot_dimension_numbers<[1], [0], [0], [1], [0, 0, 1, 1], [], []>} : vector<8x8xf32>, vector<8x1728xf32>, vector<8x1728xf32> -> vector<8x1728xf32>
    %296 = arith.addf %291, %295 : vector<8x1728xf32>
    %c25_302 = arith.constant 25 : index
    %c0_303 = arith.constant 0 : index
    %c0_304 = arith.constant 0 : index
    %297 = vector.load %arg4[%c25_302, %c0_303, %c0_304] : memref<27x8x8xf32, #tpu.memory_space<vmem>>, vector<1x8x8xf32>
    %298 = vector.shape_cast %297 : vector<1x8x8xf32> to vector<8x8xf32>
    %c0_305 = arith.constant 0 : index
    %c313_306 = arith.constant 313 : index
    %299 = vector.load %arg8[%c0_305, %c313_306] : memref<8x2048xf32, #tpu.memory_space<vmem>>, vector<8x1728xf32>
    %cst_307 = arith.constant dense<0.000000e+00> : vector<8x1728xf32>
    %300 = tpu.matmul %298, %299, %cst_307 {dimension_numbers = #tpu.dot_dimension_numbers<[1], [0], [0], [1], [0, 0, 1, 1], [], []>} : vector<8x8xf32>, vector<8x1728xf32>, vector<8x1728xf32> -> vector<8x1728xf32>
    %301 = arith.addf %296, %300 : vector<8x1728xf32>
    %c26_308 = arith.constant 26 : index
    %c0_309 = arith.constant 0 : index
    %c0_310 = arith.constant 0 : index
    %302 = vector.load %arg4[%c26_308, %c0_309, %c0_310] : memref<27x8x8xf32, #tpu.memory_space<vmem>>, vector<1x8x8xf32>
    %303 = vector.shape_cast %302 : vector<1x8x8xf32> to vector<8x8xf32>
    %c0_311 = arith.constant 0 : index
    %c314_312 = arith.constant 314 : index
    %304 = vector.load %arg8[%c0_311, %c314_312] : memref<8x2048xf32, #tpu.memory_space<vmem>>, vector<8x1728xf32>
    %cst_313 = arith.constant dense<0.000000e+00> : vector<8x1728xf32>
    %305 = tpu.matmul %303, %304, %cst_313 {dimension_numbers = #tpu.dot_dimension_numbers<[1], [0], [0], [1], [0, 0, 1, 1], [], []>} : vector<8x8xf32>, vector<8x1728xf32>, vector<8x1728xf32> -> vector<8x1728xf32>
    %306 = arith.addf %301, %305 : vector<8x1728xf32>
    %c0_314 = arith.constant 0 : index
    %c0_315 = arith.constant 0 : index
    %307 = vector.load %arg6[%c0_314, %c0_315] : memref<8x4xf32, #tpu.memory_space<vmem>>, vector<8x4xf32>
    %c0_316 = arith.constant 0 : index
    %c0_317 = arith.constant 0 : index
    %c314_318 = arith.constant 314 : index
    %308 = vector.load %arg1[%c0_316, %c0_317, %c314_318] : memref<1x4x2048xf32, #tpu.memory_space<vmem>>, vector<1x4x1728xf32>
    %309 = vector.shape_cast %308 : vector<1x4x1728xf32> to vector<4x1728xf32>
    %cst_319 = arith.constant dense<0.000000e+00> : vector<8x1728xf32>
    %310 = tpu.matmul %307, %309, %cst_319 {dimension_numbers = #tpu.dot_dimension_numbers<[1], [0], [0], [1], [0, 0, 1, 1], [], []>} : vector<8x4xf32>, vector<4x1728xf32>, vector<8x1728xf32> -> vector<8x1728xf32>
    %311 = math.tanh %306 : vector<8x1728xf32>
    %312 = arith.addf %311, %310 : vector<8x1728xf32>
    %c0_320 = arith.constant 0 : index
    %c0_321 = arith.constant 0 : index
    %c0_322 = arith.constant 0 : index
    %313 = vector.load %arg7[%c0_320, %c0_321, %c0_322] : memref<1x8x1728xf32, #tpu.memory_space<vmem>>, vector<1x8x1728xf32>
    %314 = vector.shape_cast %313 : vector<1x8x1728xf32> to vector<8x1728xf32>
    %315 = vector.shape_cast %312 : vector<8x1728xf32> to vector<1x8x1728xf32>
    tpu.vector_store %arg7[%c0_320, %c0_321, %c0_322], %315 {strides = array<i32>} : memref<1x8x1728xf32, #tpu.memory_space<vmem>>, vector<1x8x1728xf32>,
    return
  }
  func.func @transform_0(%arg0: i32) -> (i32, i32, i32) {
    %c0_i32 = arith.constant 0 : i32
    %c0_i32_0 = arith.constant 0 : i32
    %c0_i32_1 = arith.constant 0 : i32
    return %arg0, %c0_i32, %c0_i32_0 : i32, i32, i32
  }
  func.func @transform_1(%arg0: i32) -> (i32, i32, i32) {
    %c0_i32 = arith.constant 0 : i32
    %c0_i32_0 = arith.constant 0 : i32
    %c0_i32_1 = arith.constant 0 : i32
    %c0_i32_2 = arith.constant 0 : i32
    return %c0_i32, %c0_i32_0, %c0_i32_1 : i32, i32, i32
  }
  func.func @transform_2(%arg0: i32) -> (i32, i32) {
    %c0_i32 = arith.constant 0 : i32
    %c0_i32_0 = arith.constant 0 : i32
    %c0_i32_1 = arith.constant 0 : i32
    return %c0_i32, %c0_i32_0 : i32, i32
  }
  func.func @transform_3(%arg0: i32) -> (i32, i32, i32) {
    %c0_i32 = arith.constant 0 : i32
    %c0_i32_0 = arith.constant 0 : i32
    %c0_i32_1 = arith.constant 0 : i32
    %c0_i32_2 = arith.constant 0 : i32
    return %c0_i32, %c0_i32_0, %c0_i32_1 : i32, i32, i32
  }
  func.func @transform_4(%arg0: i32) -> (i32, i32) {
    %c0_i32 = arith.constant 0 : i32
    %c0_i32_0 = arith.constant 0 : i32
    %c0_i32_1 = arith.constant 0 : i32
    return %c0_i32, %c0_i32_0 : i32, i32
  }
  func.func @transform_5(%arg0: i32) -> (i32, i32) {
    %c0_i32 = arith.constant 0 : i32
    %c0_i32_0 = arith.constant 0 : i32
    %c0_i32_1 = arith.constant 0 : i32
    return %c0_i32, %c0_i32_0 : i32, i32
  }
  func.func @transform_6(%arg0: i32) -> (i32, i32, i32) {
    %c0_i32 = arith.constant 0 : i32
    %c0_i32_0 = arith.constant 0 : i32
    %c0_i32_1 = arith.constant 0 : i32
    return %arg0, %c0_i32, %c0_i32_0 : i32, i32, i32
  }
}

</mosaic_0001>

<bundles_post_ra>
// kernel: tpu_custom_call.1
= control target key start
LH: loop header
LB: loop body
LE: loop exit
PB: predicated region body
PF: predicated region fallthrough
CT: control target
= control target key end

     0   :  { %11 = vsyncpa [#allocation4], 0  ;;  %s39214_s0 = inlined_call_operand.vmem [shape: f32[2,4,2048], index: 0, kind: input, shape index: {}]   ;;  %s39215_s1 = inlined_call_operand.vmem [shape: f32[27,8,4], index: 1, kind: input, shape index: {}]   ;;  %s39216_s2 = inlined_call_operand.vmem [shape: f32[8,1], index: 2, kind: input, shape index: {}]   ;;  %s39217_s3 = inlined_call_operand.vmem [shape: f32[27,8,8], index: 3, kind: input, shape index: {}]   ;;  %s39218_s4 = inlined_call_operand.vmem [shape: f32[8,1], index: 4, kind: input, shape index: {}]   ;;  %s39219_s5 = inlined_call_operand.vmem [shape: f32[8,4], index: 5, kind: input, shape index: {}]   ;;  %s39220_s6 = inlined_call_operand.hbm [shape: f32[2,8,1728], index: 6, kind: output, shape index: {}]  }
   0x1   :  { %13 = vsyncpa [#allocation4 + $0x1], 0  ;;  %s34777_s21 = smov 0   ;;  %s34779_s22 = smov 0  }
   0x2   :  { %s34781_s23 = smov 0   ;;  %s34783_s24 = smov 0  }
   0x3 LB: > { %s34798_s25 = sadd.s32 4294967295, %s34711_s24   ;;  %s32808_s26 = sadd.s32 4294967294, %s34711_s24   ;;  %s34711_s24 = sphi %s34783_s24, %s39457_s24   ;;  %s34707_s23 = sphi %s34781_s23, %s39456_s23   ;;  %s34703_s22 = sphi %s34779_s22, %s39455_s22   ;;  %s34699_s21 = sphi %s34777_s21, %s39454_s21  }
   0x4   : > { %s34802_s27 = sadd.s32 1, %s34711_s24   ;;  %s157_s28 = sadd.s32 1, %s34707_s23 }
   0x5   : > { %s154_s29 = ssub.s32 %s34711_s24, %s34802_s27  ;;  %p167_p0 = scmp.ne.s32.totalorder %s34707_s23, %s34703_s22 }
   0x6   : > { %p155_p1 = scmp.eq.s32.totalorder %s154_s29, 0  ;;  %p168_p2 = scmp.eq.s32.totalorder %s34798_s25, 1 }
   0x7   : > { %p173_p3 = scmp.ne.s32.totalorder %s34703_s22, %s34699_s21  ;;  %p174_p4 = scmp.eq.s32.totalorder %s32808_s26, 1 }
   0x8   : > { %s34813_s30 = scalar_select %p155_p1, %s34707_s23, %s157_s28  }
   0x9   : > { %p34815_p5 = por %p168_p2, %p167_p0  ;;  %p34819_p6 = por %p174_p4, %p173_p3 }
   0xa   : > { %p32811_p7 = scmp.ge.s32.totalorder %s34711_s24, 1  ;;  %p215_p8 = scmp.lt.s32.totalorder %s34711_s24, 3 }
   0xc   : > { %p216_p9 = pnand %p32811_p7, %p215_p8 }
   0xd   : > { %p245_p10 = scmp.lt.s32.totalorder (!%p216_p9), %s34798_s25, 1  ;;  %v34713_v0 = vmov (!%p216_p9), 0.0   ;;  %vm39262_vm0 = vcmask (!%p216_p9), 1043456   ;;  %s34714_s14 = smov (!%p216_p9), 127   ;;  %v256_v6 = vld [vmem:[%s39215_s1] sm:$0xff] (!%p216_p9)  ;;  %vm39261_vm1 = vcmask (!%p216_p9), 31744  }
   0xe   : > { %219 = sbr.rel (%p216_p9) target bundleno = 2168 (0x878), region = 44  ;;  %375 = vmatprep.mubr.f32.mxu0 (!%p216_p9), %v34713_v0  ;;  %16617 = vst [vmem:[#allocation2 + $0x68] sm:$0xff] (!%p216_p9), %v34713_v0  ;;  %16618 = vst [vmem:[#allocation2 + $0x70] sm:$0xff] (!%p216_p9), %v34713_v0  ;;  %15905 = vmatprep.mubr.f32.mxu1 (!%p216_p9), %v34713_v0  ;;  %s34715_s17 = smov (!%p216_p9), 126   ;;  %vm873_vm2 = vcmask (!%p216_p9), 1039360   ;;  %v35063_v24 = vld [vmem:[%s39215_s1 + $0x8] sm:$0xff] (!%p216_p9) }
   0xf   : > { %s34716_s18 = smov (!%p216_p9), 116   ;;  %s34717_s19 = smov (!%p216_p9), 115   ;;  %vm1480_vm3 = vcmask (!%p216_p9), 1031168   ;;  %v35144_v53 = vld [vmem:[%s39215_s1 + $0x10] sm:$0xff] (!%p216_p9)  ;;  %vm2087_vm4 = vcmask (!%p216_p9), 949248   ;;  %vm2694_vm5 = vcmask (!%p216_p9), 941056  }
  0x10   : > { %s34718_s20 = smov (!%p216_p9), 114   ;;  %s34719_s29 = smov (!%p216_p9), 104   ;;  %vm3301_vm6 = vcmask (!%p216_p9), 932864   ;;  %vm3908_vm7 = vcmask (!%p216_p9), 850944   ;;  %vm4515_vm8 = vcmask (!%p216_p9), 842752   ;;  %vm5122_vm9 = vcmask (!%p216_p9), 834560  }
  0x11   : > { %s34720_s11 = smov (!%p216_p9), 103   ;;  %s34721_s16 = smov (!%p216_p9), 102   ;;  %vm5729_vm10 = vcmask (!%p216_p9), 916480   ;;  %vm6336_vm11 = vcmask (!%p216_p9), 908288   ;;  %vm6943_vm12 = vcmask (!%p216_p9), 900096   ;;  %vm7550_vm13 = vcmask (!%p216_p9), 818176  }
  0x12   : > { %s34723_s15 = smov (!%p216_p9), 111   ;;  %s39221_s28 = smov (!%p216_p9), 100   ;;  %vm39233_vm14 = vcmask (!%p216_p9), 809984   ;;  %vm39236_vm15 = vcmask (!%p216_p9), 801792  }
  0x13   : > { %s39223_s12 = smov (!%p216_p9), 99   ;;  %s39294_s26 = smov (!%p216_p9), 95  }
  0x15   : > { %s246_s9 = scalar_select %p245_p10, %s34798_s25, 1 }
  0x17   : > { %s33646_s10 = sshll.u32 %s246_s9, 6  ;;  %s34722_s9 = smov 112  }
  0x18   : > { %s34834_s13 = scalar_lea.vmem %s39214_s0, %s33646_s10  ;;  %s34724_s10 = smov 110  }
  0x19   : > { %v34837_v1 = vld [vmem:[%s34834_s13 + $0x8] sm:$0xff]  ;;  %v34840_v2 = vld [vmem:[%s34834_s13] sm:$0xff]  ;;  %v34855_v5 = vld [vmem:[%s34834_s13 + $0x10] sm:$0xff] }
  0x1a   : > { %849 = vrot.lane.b32.xlu0 %v34837_v1, %s34714_s14  ;;  %v34846_v3 = vcombine.high %v34837_v1, %v34837_v1  ;;  %845 = vrot.lane.b32.xlu1 %v34840_v2, %s34714_s14  ;;  %v34852_v4 = vcombine.high %v34840_v2, %v34840_v2  ;;  %v34866_v7 = vcombine.high %v34855_v5, %v34855_v5  ;;  %v34873_v8 = vld [vmem:[%s34834_s13 + $0x18] sm:$0xff]  ;;  %v34892_v10 = vld [vmem:[%s34834_s13 + $0x20] sm:$0xff] }
  0x1b   : > { %v34889_v9 = vcombine.high %v34873_v8, %v34873_v8  ;;  %v34906_v11 = vcombine.high %v34892_v10, %v34892_v10  ;;  %v34909_v12 = vld [vmem:[%s34834_s13 + $0x28] sm:$0xff]  ;;  %v34926_v14 = vld [vmem:[%s34834_s13 + $0x30] sm:$0xff] }
  0x1c   : > { %32814 = vmatprep.subr.msk.mxu0 %vm39262_vm0, %v34852_v4  ;;  %v34923_v13 = vcombine.high %v34909_v12, %v34909_v12  ;;  %v34940_v15 = vcombine.high %v34926_v14, %v34926_v14 }
  0x1d   : > { %32815 = vmatpush1.msk.msra.mxu0 %vm39262_vm0, %v34840_v2 }
  0x1e   : > { %853 = vrot.lane.b32.xlu0 %v34855_v5, %s34714_s14  ;;  %851 = vrot.lane.b32.xlu1 %v34846_v3, %s34714_s14 }
  0x1f   : > { %32816 = vmatmul.mubr.msk.f32.vlgmr.msra.gmra.mrb[0].mxu0 %vm39261_vm1, %v256_v6  ;;  %32817 = vmatprep.subr.msk.mxu0 %vm39262_vm0, %v34846_v3 }
  0x20   : > { %32818 = vmatpush1.msk.msra.mxu0 %vm39262_vm0, %v34837_v1  ;;  %446 = vmatprep.mubr.f32.mxu0 %v34713_v0 }
  0x21   : > { %32820 = vmatprep.subr.msk.mxu0 %vm39262_vm0, %v34866_v7 }
  0x22   : > { %855 = vrot.lane.b32.xlu1 %v34866_v7, %s34714_s14  ;;  %847 = vrot.lane.b32.xlu0 %v34852_v4, %s34714_s14 }
  0x23   : > { %32819 = vmatmul.mubr.msk.f32.vlgmr.msra.gmra.mrb[2].mxu0 %vm39261_vm1, %v256_v6 }
  0x24   : > { %32821 = vmatpush1.msk.msra.mxu0 %vm39262_vm0, %v34855_v5  ;;  %517 = vmatprep.mubr.f32.mxu0 %v34713_v0 }
  0x25   : > { %32823 = vmatprep.subr.msk.mxu0 %vm39262_vm0, %v34889_v9 }
  0x26   : > { %859 = vrot.lane.b32.xlu1 %v34889_v9, %s34714_s14  ;;  %857 = vrot.lane.b32.xlu0 %v34873_v8, %s34714_s14 }
  0x27   : > { %32822 = vmatmul.mubr.msk.f32.vlgmr.msra.gmra.mrb[4].mxu0 %vm39261_vm1, %v256_v6 }
  0x28   : > { %32824 = vmatpush1.msk.msra.mxu0 %vm39262_vm0, %v34873_v8  ;;  %588 = vmatprep.mubr.f32.mxu0 %v34713_v0 }
  0x29   : > { %32826 = vmatprep.subr.msk.mxu0 %vm39262_vm0, %v34906_v11 }
  0x2a   : > { %863 = vrot.lane.b32.xlu1 %v34906_v11, %s34714_s14  ;;  %861 = vrot.lane.b32.xlu0 %v34892_v10, %s34714_s14 }
  0x2b   : > { %32825 = vmatmul.mubr.msk.f32.vlgmr.msra.gmra.mrb[6].mxu0 %vm39261_vm1, %v256_v6 }
  0x2c   : > { %32827 = vmatpush1.msk.msra.mxu0 %vm39262_vm0, %v34892_v10  ;;  %659 = vmatprep.mubr.f32.mxu0 %v34713_v0 }
  0x2d   : > { %32829 = vmatprep.subr.msk.mxu0 %vm39262_vm0, %v34923_v13 }
  0x2e   : > { %867 = vrot.lane.b32.xlu1 %v34923_v13, %s34714_s14  ;;  %865 = vrot.lane.b32.xlu0 %v34909_v12, %s34714_s14 }
  0x2f   : > { %32828 = vmatmul.mubr.msk.f32.vlgmr.msra.gmra.mrb[8].mxu0 %vm39261_vm1, %v256_v6 }
  0x30   : > { %32830 = vmatpush1.msk.msra.mxu0 %vm39262_vm0, %v34909_v12  ;;  %730 = vmatprep.mubr.f32.mxu0 %v34713_v0 }
  0x31   : > { %32832 = vmatprep.subr.msk.mxu0 %vm39262_vm0, %v34940_v15 }
  0x32   : > { %871 = vrot.lane.b32.xlu1 %v34940_v15, %s34714_s14  ;;  %869 = vrot.lane.b32.xlu0 %v34926_v14, %s34714_s14 }
  0x33   : > { %32831 = vmatmul.mubr.msk.f32.vlgmr.msra.gmra.mrb[10].mxu0 %vm39261_vm1, %v256_v6 }
  0x34   : > { %32833 = vmatpush1.msk.msra.mxu0 %vm39262_vm0, %v34926_v14  ;;  %801 = vmatprep.mubr.f32.mxu0 %v34713_v0 }
  0x36   : > { %1456 = vrot.lane.b32.xlu1 %v34837_v1, %s34715_s17  ;;  %1454 = vrot.lane.b32.xlu0 %v34852_v4, %s34715_s17 }
  0x37   : > { %32834 = vmatmul.mubr.msk.f32.vlgmr.msra.gmra.mrb[12].mxu0 %vm39261_vm1, %v256_v6 }
  0x38   : > { %982 = vmatprep.mubr.f32.mxu0 %v34713_v0 }
  0x3a   : > { %1458 = vrot.lane.b32.xlu1 %v34846_v3, %s34715_s17  ;;  %1452 = vrot.lane.b32.xlu0 %v34840_v2, %s34715_s17 }
  0x3e   : > { %1462 = vrot.lane.b32.xlu1 %v34866_v7, %s34715_s17  ;;  %1460 = vrot.lane.b32.xlu0 %v34855_v5, %s34715_s17 }
  0x42   : > { %1466 = vrot.lane.b32.xlu1 %v34889_v9, %s34715_s17  ;;  %1464 = vrot.lane.b32.xlu0 %v34873_v8, %s34715_s17 }
  0x46   : > { %1470 = vrot.lane.b32.xlu1 %v34906_v11, %s34715_s17  ;;  %1468 = vrot.lane.b32.xlu0 %v34892_v10, %s34715_s17 }
  0x4a   : > { %1474 = vrot.lane.b32.xlu1 %v34923_v13, %s34715_s17  ;;  %1472 = vrot.lane.b32.xlu0 %v34909_v12, %s34715_s17 }
  0x4e   : > { %1478 = vrot.lane.b32.xlu1 %v34940_v15, %s34715_s17  ;;  %1476 = vrot.lane.b32.xlu0 %v34926_v14, %s34715_s17 }
  0x52   : > { %2063 = vrot.lane.b32.xlu1 %v34837_v1, %s34716_s18  ;;  %2061 = vrot.lane.b32.xlu0 %v34852_v4, %s34716_s18 }
  0x56   : > { %2065 = vrot.lane.b32.xlu1 %v34846_v3, %s34716_s18  ;;  %2059 = vrot.lane.b32.xlu0 %v34840_v2, %s34716_s18 }
  0x5a   : > { %2069 = vrot.lane.b32.xlu1 %v34866_v7, %s34716_s18  ;;  %2067 = vrot.lane.b32.xlu0 %v34855_v5, %s34716_s18 }
  0x5e   : > { %2073 = vrot.lane.b32.xlu1 %v34889_v9, %s34716_s18  ;;  %2071 = vrot.lane.b32.xlu0 %v34873_v8, %s34716_s18 }
  0x62   : > { %2077 = vrot.lane.b32.xlu1 %v34906_v11, %s34716_s18  ;;  %2075 = vrot.lane.b32.xlu0 %v34892_v10, %s34716_s18 }
  0x66   : > { %2081 = vrot.lane.b32.xlu1 %v34923_v13, %s34716_s18  ;;  %2079 = vrot.lane.b32.xlu0 %v34909_v12, %s34716_s18 }
  0x6a   : > { %2085 = vrot.lane.b32.xlu1 %v34940_v15, %s34716_s18  ;;  %2083 = vrot.lane.b32.xlu0 %v34926_v14, %s34716_s18 }
  0x6e   : > { %2670 = vrot.lane.b32.xlu1 %v34837_v1, %s34717_s19  ;;  %2668 = vrot.lane.b32.xlu0 %v34852_v4, %s34717_s19 }
  0x72   : > { %2672 = vrot.lane.b32.xlu1 %v34846_v3, %s34717_s19  ;;  %2666 = vrot.lane.b32.xlu0 %v34840_v2, %s34717_s19 }
  0x76   : > { %2676 = vrot.lane.b32.xlu1 %v34866_v7, %s34717_s19  ;;  %2674 = vrot.lane.b32.xlu0 %v34855_v5, %s34717_s19 }
  0x7a   : > { %2680 = vrot.lane.b32.xlu1 %v34889_v9, %s34717_s19  ;;  %2678 = vrot.lane.b32.xlu0 %v34873_v8, %s34717_s19 }
  0x7e   : > { %2684 = vrot.lane.b32.xlu1 %v34906_v11, %s34717_s19  ;;  %2682 = vrot.lane.b32.xlu0 %v34892_v10, %s34717_s19 }
  0x82   : > { %2688 = vrot.lane.b32.xlu1 %v34923_v13, %s34717_s19  ;;  %2686 = vrot.lane.b32.xlu0 %v34909_v12, %s34717_s19 }
  0x86   : > { %2692 = vrot.lane.b32.xlu1 %v34940_v15, %s34717_s19  ;;  %2690 = vrot.lane.b32.xlu0 %v34926_v14, %s34717_s19 }
  0x8a   : > { %3277 = vrot.lane.b32.xlu1 %v34837_v1, %s34718_s20  ;;  %3275 = vrot.lane.b32.xlu0 %v34852_v4, %s34718_s20 }
  0x8c   : > { %v850_v16 = vpop.permute.xlu0 %849  ;;  %v846_v17 = vpop.permute.xlu1 %845 }
  0x8e   : > { %3279 = vrot.lane.b32.xlu1 %v34846_v3, %s34718_s20  ;;  %3273 = vrot.lane.b32.xlu0 %v34840_v2, %s34718_s20 }
  0x90   : > { %v854_v18 = vpop.permute.xlu0 %853  ;;  %v852_v19 = vpop.permute.xlu1 %851 }
  0x91   : > { %v877_v27 = vsel %vm873_vm2, %v852_v19, %v854_v18  ;;  %v876_v28 = vsel %vm873_vm2, %v850_v16, %v852_v19 }
  0x92   : > { %3283 = vrot.lane.b32.xlu1 %v34866_v7, %s34718_s20  ;;  %3281 = vrot.lane.b32.xlu0 %v34855_v5, %s34718_s20 }
  0x94   : > { %v856_v20 = vpop.permute.xlu1 %855  ;;  %v848_v21 = vpop.permute.xlu0 %847 }
  0x95   : > { %v874_v22 = vsel %vm873_vm2, %v846_v17, %v848_v21  ;;  %v875_v23 = vsel %vm873_vm2, %v848_v21, %v850_v16  ;;  %v878_v32 = vsel %vm873_vm2, %v854_v18, %v856_v20 }
  0x96   : > { %3287 = vrot.lane.b32.xlu1 %v34889_v9, %s34718_s20  ;;  %3285 = vrot.lane.b32.xlu0 %v34873_v8, %s34718_s20 }
  0x97   : > { %32836 = vmatprep.subr.msk.mxu0 %vm39262_vm0, %v875_v23 }
  0x98   : > { %32837 = vmatpush1.msk.msra.mxu0 %vm39262_vm0, %v874_v22  ;;  %v860_v25 = vpop.permute.xlu1 %859  ;;  %v858_v26 = vpop.permute.xlu0 %857 }
  0x99   : > { %32838 = vmatmul.mubr.msk.f32.vlgmr.msra.gmra.mrb[0].mxu0 %vm39261_vm1, %v35063_v24  ;;  %32839 = vmatprep.subr.msk.mxu0 %vm39262_vm0, %v877_v27  ;;  %v879_v29 = vsel %vm873_vm2, %v856_v20, %v858_v26  ;;  %v880_v36 = vsel %vm873_vm2, %v858_v26, %v860_v25 }
  0x9a   : > { %32840 = vmatpush1.msk.msra.mxu0 %vm39262_vm0, %v876_v28  ;;  %3291 = vrot.lane.b32.xlu1 %v34906_v11, %s34718_s20 }
  0x9b   : > { %3289 = vrot.lane.b32.xlu0 %v34892_v10, %s34718_s20  ;;  %32842 = vmatprep.subr.msk.mxu0 %vm39262_vm0, %v879_v29 }
  0x9c   : > { %1053 = vmatprep.mubr.f32.mxu0 %v34713_v0  ;;  %v864_v30 = vpop.permute.xlu1 %863  ;;  %v862_v31 = vpop.permute.xlu0 %861 }
  0x9d   : > { %32841 = vmatmul.mubr.msk.f32.vlgmr.msra.gmra.mrb[2].mxu0 %vm39261_vm1, %v35063_v24  ;;  %v881_v33 = vsel %vm873_vm2, %v860_v25, %v862_v31  ;;  %v882_v40 = vsel %vm873_vm2, %v862_v31, %v864_v30 }
  0x9e   : > { %32843 = vmatpush1.msk.msra.mxu0 %vm39262_vm0, %v878_v32  ;;  %3295 = vrot.lane.b32.xlu1 %v34923_v13, %s34718_s20  ;;  %v35225_v32 = vld [vmem:[%s39215_s1 + $0x18] sm:$0xff] }
  0x9f   : > { %3293 = vrot.lane.b32.xlu0 %v34909_v12, %s34718_s20  ;;  %32845 = vmatprep.subr.msk.mxu0 %vm39262_vm0, %v881_v33 }
  0xa0   : > { %1124 = vmatprep.mubr.f32.mxu0 %v34713_v0  ;;  %v868_v34 = vpop.permute.xlu1 %867  ;;  %v866_v35 = vpop.permute.xlu0 %865 }
  0xa1   : > { %32844 = vmatmul.mubr.msk.f32.vlgmr.msra.gmra.mrb[4].mxu0 %vm39261_vm1, %v35063_v24  ;;  %v883_v37 = vsel %vm873_vm2, %v864_v30, %v866_v35  ;;  %v884_v44 = vsel %vm873_vm2, %v866_v35, %v868_v34 }
  0xa2   : > { %32846 = vmatpush1.msk.msra.mxu0 %vm39262_vm0, %v880_v36  ;;  %3299 = vrot.lane.b32.xlu1 %v34940_v15, %s34718_s20 }
  0xa3   : > { %3297 = vrot.lane.b32.xlu0 %v34926_v14, %s34718_s20  ;;  %32848 = vmatprep.subr.msk.mxu0 %vm39262_vm0, %v883_v37 }
  0xa4   : > { %1195 = vmatprep.mubr.f32.mxu0 %v34713_v0  ;;  %v872_v38 = vpop.permute.xlu1 %871  ;;  %v870_v39 = vpop.permute.xlu0 %869 }
  0xa5   : > { %32847 = vmatmul.mubr.msk.f32.vlgmr.msra.gmra.mrb[6].mxu0 %vm39261_vm1, %v35063_v24  ;;  %v885_v41 = vsel %vm873_vm2, %v868_v34, %v870_v39  ;;  %v886_v47 = vsel %vm873_vm2, %v870_v39, %v872_v38 }
  0xa6   : > { %32849 = vmatpush1.msk.msra.mxu0 %vm39262_vm0, %v882_v40  ;;  %3884 = vrot.lane.b32.xlu1 %v34837_v1, %s34719_s29 }
  0xa7   : > { %3882 = vrot.lane.b32.xlu0 %v34852_v4, %s34719_s29  ;;  %32851 = vmatprep.subr.msk.mxu0 %vm39262_vm0, %v885_v41 }
  0xa8   : > { %1266 = vmatprep.mubr.f32.mxu0 %v34713_v0  ;;  %v1457_v42 = vpop.permute.xlu1 %1456  ;;  %v1455_v43 = vpop.permute.xlu0 %1454 }
  0xa9   : > { %32850 = vmatmul.mubr.msk.f32.vlgmr.msra.gmra.mrb[8].mxu0 %vm39261_vm1, %v35063_v24  ;;  %v1482_v48 = vsel %vm1480_vm3, %v1455_v43, %v1457_v42 }
  0xaa   : > { %32852 = vmatpush1.msk.msra.mxu0 %vm39262_vm0, %v884_v44  ;;  %3886 = vrot.lane.b32.xlu1 %v34846_v3, %s34719_s29 }
  0xab   : > { %32854 = vmatprep.subr.msk.mxu0 %vm39262_vm0, %v872_v38  ;;  %3880 = vrot.lane.b32.xlu0 %v34840_v2, %s34719_s29 }
  0xac   : > { %1337 = vmatprep.mubr.f32.mxu0 %v34713_v0  ;;  %v1459_v45 = vpop.permute.xlu1 %1458  ;;  %v1453_v46 = vpop.permute.xlu0 %1452 }
  0xad   : > { %32853 = vmatmul.mubr.msk.f32.vlgmr.msra.gmra.mrb[10].mxu0 %vm39261_vm1, %v35063_v24  ;;  %v1481_v51 = vsel %vm1480_vm3, %v1453_v46, %v1455_v43  ;;  %v1483_v56 = vsel %vm1480_vm3, %v1457_v42, %v1459_v45 }
  0xae   : > { %32855 = vmatpush1.msk.msra.mxu0 %vm39262_vm0, %v886_v47  ;;  %3890 = vrot.lane.b32.xlu1 %v34866_v7, %s34719_s29 }
  0xaf   : > { %32858 = vmatprep.subr.msk.mxu0 %vm39262_vm0, %v1482_v48  ;;  %3888 = vrot.lane.b32.xlu0 %v34855_v5, %s34719_s29 }
  0xb0   : > { %1408 = vmatprep.mubr.f32.mxu0 %v34713_v0  ;;  %v1463_v49 = vpop.permute.xlu1 %1462  ;;  %v1461_v50 = vpop.permute.xlu0 %1460 }
  0xb1   : > { %32856 = vmatmul.mubr.msk.f32.vlgmr.msra.gmra.mrb[12].mxu0 %vm39261_vm1, %v35063_v24  ;;  %v1484_v52 = vsel %vm1480_vm3, %v1459_v45, %v1461_v50  ;;  %v1485_v60 = vsel %vm1480_vm3, %v1461_v50, %v1463_v49 }
  0xb2   : > { %32859 = vmatpush1.msk.msra.mxu0 %vm39262_vm0, %v1481_v51  ;;  %3894 = vrot.lane.b32.xlu1 %v34889_v9, %s34719_s29 }
  0xb3   : > { %3892 = vrot.lane.b32.xlu0 %v34873_v8, %s34719_s29  ;;  %32861 = vmatprep.subr.msk.mxu0 %vm39262_vm0, %v1484_v52 }
  0xb4   : > { %1589 = vmatprep.mubr.f32.mxu0 %v34713_v0  ;;  %v1467_v54 = vpop.permute.xlu1 %1466  ;;  %v1465_v55 = vpop.permute.xlu0 %1464 }
  0xb5   : > { %32860 = vmatmul.mubr.msk.f32.vlgmr.msra.gmra.mrb[0].mxu0 %vm39261_vm1, %v35144_v53  ;;  %v1486_v57 = vsel %vm1480_vm3, %v1463_v49, %v1465_v55  ;;  %v1487_v6 = vsel %vm1480_vm3, %v1465_v55, %v1467_v54 }
  0xb6   : > { %32862 = vmatpush1.msk.msra.mxu0 %vm39262_vm0, %v1483_v56  ;;  %3898 = vrot.lane.b32.xlu1 %v34906_v11, %s34719_s29 }
  0xb7   : > { %3896 = vrot.lane.b32.xlu0 %v34892_v10, %s34719_s29  ;;  %32864 = vmatprep.subr.msk.mxu0 %vm39262_vm0, %v1486_v57 }
  0xb8   : > { %1660 = vmatprep.mubr.f32.mxu0 %v34713_v0  ;;  %v1471_v58 = vpop.permute.xlu1 %1470  ;;  %v1469_v59 = vpop.permute.xlu0 %1468 }
  0xb9   : > { %32863 = vmatmul.mubr.msk.f32.vlgmr.msra.gmra.mrb[2].mxu0 %vm39261_vm1, %v35144_v53  ;;  %v1488_v61 = vsel %vm1480_vm3, %v1467_v54, %v1469_v59  ;;  %v1489_v19 = vsel %vm1480_vm3, %v1469_v59, %v1471_v58 }
  0xba   : > { %32865 = vmatpush1.msk.msra.mxu0 %vm39262_vm0, %v1485_v60  ;;  %3902 = vrot.lane.b32.xlu1 %v34923_v13, %s34719_s29 }
  0xbb   : > { %3900 = vrot.lane.b32.xlu0 %v34909_v12, %s34719_s29  ;;  %32867 = vmatprep.subr.msk.mxu0 %vm39262_vm0, %v1488_v61  ;;  %v35335_v61 = vld [vmem:[%s34834_s13 + $0x4] sm:$0xff] }
  0xbc   : > { %1731 = vmatprep.mubr.f32.mxu0 %v34713_v0  ;;  %v1475_v62 = vpop.permute.xlu1 %1474  ;;  %v1473_v63 = vpop.permute.xlu0 %1472 }
  0xbd   : > { %32866 = vmatmul.mubr.msk.f32.vlgmr.msra.gmra.mrb[4].mxu0 %vm39261_vm1, %v35144_v53  ;;  %v1490_v16 = vsel %vm1480_vm3, %v1471_v58, %v1473_v63  ;;  %v1491_v23 = vsel %vm1480_vm3, %v1473_v63, %v1475_v62 }
  0xbe   : > { %32868 = vmatpush1.msk.msra.mxu0 %vm39262_vm0, %v1487_v6  ;;  %3906 = vrot.lane.b32.xlu1 %v34940_v15, %s34719_s29 }
  0xbf   : > { %3904 = vrot.lane.b32.xlu0 %v34926_v14, %s34719_s29  ;;  %32870 = vmatprep.subr.msk.mxu0 %vm39262_vm0, %v1490_v16 }
  0xc0   : > { %1802 = vmatprep.mubr.f32.mxu0 %v34713_v0  ;;  %v1479_v17 = vpop.permute.xlu1 %1478  ;;  %v1477_v18 = vpop.permute.xlu0 %1476 }
  0xc1   : > { %32869 = vmatmul.mubr.msk.f32.vlgmr.msra.gmra.mrb[6].mxu0 %vm39261_vm1, %v35144_v53  ;;  %v1492_v20 = vsel %vm1480_vm3, %v1475_v62, %v1477_v18  ;;  %v1493_v26 = vsel %vm1480_vm3, %v1477_v18, %v1479_v17  ;;  %v35370_v18 = vld [vmem:[%s34834_s13 + $0x14] sm:$0xff] }
  0xc2   : > { %32871 = vmatpush1.msk.msra.mxu0 %vm39262_vm0, %v1489_v19  ;;  %4491 = vrot.lane.b32.xlu1 %v34837_v1, %s34720_s11 }
  0xc3   : > { %4489 = vrot.lane.b32.xlu0 %v34852_v4, %s34720_s11  ;;  %32873 = vmatprep.subr.msk.mxu0 %vm39262_vm0, %v1492_v20 }
  0xc4   : > { %1873 = vmatprep.mubr.f32.mxu0 %v34713_v0  ;;  %v2064_v21 = vpop.permute.xlu1 %2063  ;;  %v2062_v22 = vpop.permute.xlu0 %2061 }
  0xc5   : > { %32872 = vmatmul.mubr.msk.f32.vlgmr.msra.gmra.mrb[8].mxu0 %vm39261_vm1, %v35144_v53  ;;  %v2089_v27 = vsel %vm2087_vm4, %v2062_v22, %v2064_v21 }
  0xc6   : > { %32874 = vmatpush1.msk.msra.mxu0 %vm39262_vm0, %v1491_v23  ;;  %4493 = vrot.lane.b32.xlu1 %v34846_v3, %s34720_s11  ;;  %v35387_v23 = vld [vmem:[%s34834_s13 + $0x1c] sm:$0xff] }
  0xc7   : > { %32876 = vmatprep.subr.msk.mxu0 %vm39262_vm0, %v1479_v17  ;;  %4487 = vrot.lane.b32.xlu0 %v34840_v2, %s34720_s11 }
  0xc8   : > { %1944 = vmatprep.mubr.f32.mxu0 %v34713_v0  ;;  %v2066_v24 = vpop.permute.xlu1 %2065  ;;  %v2060_v25 = vpop.permute.xlu0 %2059 }
  0xc9   : > { %32875 = vmatmul.mubr.msk.f32.vlgmr.msra.gmra.mrb[10].mxu0 %vm39261_vm1, %v35144_v53  ;;  %v2088_v30 = vsel %vm2087_vm4, %v2060_v25, %v2062_v22  ;;  %v2090_v35 = vsel %vm2087_vm4, %v2064_v21, %v2066_v24  ;;  %v35381_v22 = vcombine.high %v35370_v18, %v35370_v18 }
  0xca   : > { %32877 = vmatpush1.msk.msra.mxu0 %vm39262_vm0, %v1493_v26  ;;  %4497 = vrot.lane.b32.xlu1 %v34866_v7, %s34720_s11 }
  0xcb   : > { %32880 = vmatprep.subr.msk.mxu0 %vm39262_vm0, %v2089_v27  ;;  %4495 = vrot.lane.b32.xlu0 %v34855_v5, %s34720_s11 }
  0xcc   : > { %2015 = vmatprep.mubr.f32.mxu0 %v34713_v0  ;;  %v2070_v28 = vpop.permute.xlu1 %2069  ;;  %v2068_v29 = vpop.permute.xlu0 %2067 }
  0xcd   : > { %32878 = vmatmul.mubr.msk.f32.vlgmr.msra.gmra.mrb[12].mxu0 %vm39261_vm1, %v35144_v53  ;;  %v2091_v31 = vsel %vm2087_vm4, %v2066_v24, %v2068_v29  ;;  %v2092_v39 = vsel %vm2087_vm4, %v2068_v29, %v2070_v28  ;;  %v35405_v29 = vld [vmem:[%s34834_s13 + $0x24] sm:$0xff] }
  0xce   : > { %32881 = vmatpush1.msk.msra.mxu0 %vm39262_vm0, %v2088_v30  ;;  %4501 = vrot.lane.b32.xlu1 %v34889_v9, %s34720_s11 }
  0xcf   : > { %4499 = vrot.lane.b32.xlu0 %v34873_v8, %s34720_s11  ;;  %32883 = vmatprep.subr.msk.mxu0 %vm39262_vm0, %v2091_v31 }
  0xd0   : > { %2196 = vmatprep.mubr.f32.mxu0 %v34713_v0  ;;  %v2074_v33 = vpop.permute.xlu1 %2073  ;;  %v2072_v34 = vpop.permute.xlu0 %2071 }
  0xd1   : > { %32882 = vmatmul.mubr.msk.f32.vlgmr.msra.gmra.mrb[0].mxu0 %vm39261_vm1, %v35225_v32  ;;  %v2093_v36 = vsel %vm2087_vm4, %v2070_v28, %v2072_v34  ;;  %v2094_v43 = vsel %vm2087_vm4, %v2072_v34, %v2074_v33  ;;  %v35399_v28 = vcombine.high %v35387_v23, %v35387_v23  ;;  %v35418_v34 = vld [vmem:[%s39215_s1 + $0x28] sm:$0xff] }
  0xd2   : > { %32884 = vmatpush1.msk.msra.mxu0 %vm39262_vm0, %v2090_v35  ;;  %4505 = vrot.lane.b32.xlu1 %v34906_v11, %s34720_s11  ;;  %v35422_v35 = vcombine.high %v35405_v29, %v35405_v29 }
  0xd3   : > { %4503 = vrot.lane.b32.xlu0 %v34892_v10, %s34720_s11  ;;  %32886 = vmatprep.subr.msk.mxu0 %vm39262_vm0, %v2093_v36  ;;  %v35428_v36 = vld [vmem:[%s34834_s13 + $0x2c] sm:$0xff] }
  0xd4   : > { %2267 = vmatprep.mubr.f32.mxu0 %v34713_v0  ;;  %v2078_v37 = vpop.permute.xlu1 %2077  ;;  %v2076_v38 = vpop.permute.xlu0 %2075 }
  0xd5   : > { %32885 = vmatmul.mubr.msk.f32.vlgmr.msra.gmra.mrb[2].mxu0 %vm39261_vm1, %v35225_v32  ;;  %v2095_v40 = vsel %vm2087_vm4, %v2074_v33, %v2076_v38  ;;  %v2096_v47 = vsel %vm2087_vm4, %v2076_v38, %v2078_v37 }
  0xd6   : > { %32887 = vmatpush1.msk.msra.mxu0 %vm39262_vm0, %v2092_v39  ;;  %4509 = vrot.lane.b32.xlu1 %v34923_v13, %s34720_s11 }
  0xd7   : > { %4507 = vrot.lane.b32.xlu0 %v34909_v12, %s34720_s11  ;;  %32889 = vmatprep.subr.msk.mxu0 %vm39262_vm0, %v2095_v40 }
  0xd8   : > { %2338 = vmatprep.mubr.f32.mxu0 %v34713_v0  ;;  %v2082_v41 = vpop.permute.xlu1 %2081  ;;  %v2080_v42 = vpop.permute.xlu0 %2079 }
  0xd9   : > { %32888 = vmatmul.mubr.msk.f32.vlgmr.msra.gmra.mrb[4].mxu0 %vm39261_vm1, %v35225_v32  ;;  %v2097_v44 = vsel %vm2087_vm4, %v2078_v37, %v2080_v42  ;;  %v2098_v51 = vsel %vm2087_vm4, %v2080_v42, %v2082_v41  ;;  %v35446_v42 = vld [vmem:[%s34834_s13 + $0x34] sm:$0xff] }
  0xda   : > { %32890 = vmatpush1.msk.msra.mxu0 %vm39262_vm0, %v2094_v43  ;;  %4513 = vrot.lane.b32.xlu1 %v34940_v15, %s34720_s11 }
  0xdb   : > { %4511 = vrot.lane.b32.xlu0 %v34926_v14, %s34720_s11  ;;  %32892 = vmatprep.subr.msk.mxu0 %vm39262_vm0, %v2097_v44 }
  0xdc   : > { %2409 = vmatprep.mubr.f32.mxu0 %v34713_v0  ;;  %v2086_v45 = vpop.permute.xlu1 %2085  ;;  %v2084_v46 = vpop.permute.xlu0 %2083 }
  0xdd   : > { %32891 = vmatmul.mubr.msk.f32.vlgmr.msra.gmra.mrb[6].mxu0 %vm39261_vm1, %v35225_v32  ;;  %v2099_v48 = vsel %vm2087_vm4, %v2082_v41, %v2084_v46  ;;  %v2100_v52 = vsel %vm2087_vm4, %v2084_v46, %v2086_v45  ;;  %v35440_v41 = vcombine.high %v35428_v36, %v35428_v36 }
  0xde   : > { %32893 = vmatpush1.msk.msra.mxu0 %vm39262_vm0, %v2096_v47  ;;  %5098 = vrot.lane.b32.xlu1 %v34837_v1, %s34721_s16  ;;  %v35458_v47 = vcombine.high %v35446_v42, %v35446_v42 }
  0xdf   : > { %5096 = vrot.lane.b32.xlu0 %v34852_v4, %s34721_s16  ;;  %32895 = vmatprep.subr.msk.mxu0 %vm39262_vm0, %v2099_v48 }
  0xe0   : > { %2480 = vmatprep.mubr.f32.mxu0 %v34713_v0  ;;  %v2671_v49 = vpop.permute.xlu1 %2670  ;;  %v2669_v50 = vpop.permute.xlu0 %2668 }
  0xe1   : > { %32894 = vmatmul.mubr.msk.f32.vlgmr.msra.gmra.mrb[8].mxu0 %vm39261_vm1, %v35225_v32  ;;  %v2696_v53 = vsel %vm2694_vm5, %v2669_v50, %v2671_v49 }
  0xe2   : > { %32896 = vmatpush1.msk.msra.mxu0 %vm39262_vm0, %v2098_v51  ;;  %5100 = vrot.lane.b32.xlu1 %v34846_v3, %s34721_s16 }
  0xe3   : > { %32898 = vmatprep.subr.msk.mxu0 %vm39262_vm0, %v2086_v45  ;;  %5094 = vrot.lane.b32.xlu0 %v34840_v2, %s34721_s16 }
  0xe4   : > { %2551 = vmatprep.mubr.f32.mxu0 %v34713_v0  ;;  %v2673_v1 = vpop.permute.xlu1 %2672  ;;  %v2667_v4 = vpop.permute.xlu0 %2666 }
  0xe5   : > { %32897 = vmatmul.mubr.msk.f32.vlgmr.msra.gmra.mrb[10].mxu0 %vm39261_vm1, %v35225_v32  ;;  %v2695_v54 = vsel %vm2694_vm5, %v2667_v4, %v2669_v50  ;;  %v2697_v57 = vsel %vm2694_vm5, %v2671_v49, %v2673_v1 }
  0xe6   : > { %32899 = vmatpush1.msk.msra.mxu0 %vm39262_vm0, %v2100_v52  ;;  %5104 = vrot.lane.b32.xlu1 %v34866_v7, %s34721_s16 }
  0xe7   : > { %32902 = vmatprep.subr.msk.mxu0 %vm39262_vm0, %v2696_v53  ;;  %5102 = vrot.lane.b32.xlu0 %v34855_v5, %s34721_s16  ;;  %v35306_v5 = vld [vmem:[%s39215_s1 + $0x20] sm:$0xff] }
  0xe8   : > { %2622 = vmatprep.mubr.f32.mxu0 %v34713_v0  ;;  %v2677_v2 = vpop.permute.xlu1 %2676  ;;  %v2675_v3 = vpop.permute.xlu0 %2674 }
  0xe9   : > { %32900 = vmatmul.mubr.msk.f32.vlgmr.msra.gmra.mrb[12].mxu0 %vm39261_vm1, %v35225_v32  ;;  %v2698_v55 = vsel %vm2694_vm5, %v2673_v1, %v2675_v3  ;;  %v2699_v59 = vsel %vm2694_vm5, %v2675_v3, %v2677_v2 }
  0xea   : > { %32903 = vmatpush1.msk.msra.mxu0 %vm39262_vm0, %v2695_v54  ;;  %5108 = vrot.lane.b32.xlu1 %v34889_v9, %s34721_s16 }
  0xeb   : > { %5106 = vrot.lane.b32.xlu0 %v34873_v8, %s34721_s16  ;;  %32905 = vmatprep.subr.msk.mxu0 %vm39262_vm0, %v2698_v55 }
  0xec   : > { %2803 = vmatprep.mubr.f32.mxu0 %v34713_v0  ;;  %v2681_v7 = vpop.permute.xlu1 %2680  ;;  %v2679_v56 = vpop.permute.xlu0 %2678 }
  0xed   : > { %32904 = vmatmul.mubr.msk.f32.vlgmr.msra.gmra.mrb[0].mxu0 %vm39261_vm1, %v35306_v5  ;;  %v2700_v9 = vsel %vm2694_vm5, %v2677_v2, %v2679_v56  ;;  %v2701_v62 = vsel %vm2694_vm5, %v2679_v56, %v2681_v7 }
  0xee   : > { %32906 = vmatpush1.msk.msra.mxu0 %vm39262_vm0, %v2697_v57  ;;  %5112 = vrot.lane.b32.xlu1 %v34906_v11, %s34721_s16 }
  0xef   : > { %5110 = vrot.lane.b32.xlu0 %v34892_v10, %s34721_s16  ;;  %32908 = vmatprep.subr.msk.mxu0 %vm39262_vm0, %v2700_v9 }
  0xf0   : > { %2874 = vmatprep.mubr.f32.mxu0 %v34713_v0  ;;  %v2685_v8 = vpop.permute.xlu1 %2684  ;;  %v2683_v58 = vpop.permute.xlu0 %2682 }
  0xf1   : > { %32907 = vmatmul.mubr.msk.f32.vlgmr.msra.gmra.mrb[2].mxu0 %vm39261_vm1, %v35306_v5  ;;  %v2702_v60 = vsel %vm2694_vm5, %v2681_v7, %v2683_v58  ;;  %v2703_v17 = vsel %vm2694_vm5, %v2683_v58, %v2685_v8 }
  0xf2   : > { %32909 = vmatpush1.msk.msra.mxu0 %vm39262_vm0, %v2699_v59  ;;  %5116 = vrot.lane.b32.xlu1 %v34923_v13, %s34721_s16  ;;  %v35352_v13 = vcombine.high %v35335_v61, %v35335_v61  ;;  %v35517_v59 = vld [vmem:[%s39215_s1 + $0x30] sm:$0xff] }
  0xf3   : > { %5114 = vrot.lane.b32.xlu0 %v34909_v12, %s34721_s16  ;;  %32911 = vmatprep.subr.msk.mxu0 %vm39262_vm0, %v2702_v60  ;;  %v35348_v12 = vld [vmem:[%s34834_s13 + $0xc] sm:$0xff] }
  0xf4   : > { %2945 = vmatprep.mubr.f32.mxu0 %v34713_v0  ;;  %v2689_v10 = vpop.permute.xlu1 %2688  ;;  %v2687_v11 = vpop.permute.xlu0 %2686 }
  0xf5   : > { %32910 = vmatmul.mubr.msk.f32.vlgmr.msra.gmra.mrb[4].mxu0 %vm39261_vm1, %v35306_v5  ;;  %v2704_v63 = vsel %vm2694_vm5, %v2685_v8, %v2687_v11  ;;  %v2705_v21 = vsel %vm2694_vm5, %v2687_v11, %v2689_v10 }
  0xf6   : > { %32912 = vmatpush1.msk.msra.mxu0 %vm39262_vm0, %v2701_v62  ;;  %5120 = vrot.lane.b32.xlu1 %v34940_v15, %s34721_s16  ;;  %v35362_v15 = vcombine.high %v35348_v12, %v35348_v12 }
  0xf7   : > { %5118 = vrot.lane.b32.xlu0 %v34926_v14, %s34721_s16  ;;  %32914 = vmatprep.subr.msk.mxu0 %vm39262_vm0, %v2704_v63 }
  0xf8   : > { %3016 = vmatprep.mubr.f32.mxu0 %v34713_v0  ;;  %v2693_v6 = vpop.permute.xlu1 %2692  ;;  %v2691_v16 = vpop.permute.xlu0 %2690 }
  0xf9   : > { %32913 = vmatmul.mubr.msk.f32.vlgmr.msra.gmra.mrb[6].mxu0 %vm39261_vm1, %v35306_v5  ;;  %v2706_v14 = vsel %vm2694_vm5, %v2689_v10, %v2691_v16  ;;  %v2707_v26 = vsel %vm2694_vm5, %v2691_v16, %v2693_v6 }
  0xfa   : > { %32915 = vmatpush1.msk.msra.mxu0 %vm39262_vm0, %v2703_v17  ;;  %5705 = vrot.lane.b32.xlu1 %v35348_v12, %s34722_s9 }
  0xfb   : > { %5703 = vrot.lane.b32.xlu0 %v35352_v13, %s34722_s9  ;;  %32917 = vmatprep.subr.msk.mxu0 %vm39262_vm0, %v2706_v14 }
  0xfc   : > { %3087 = vmatprep.mubr.f32.mxu0 %v34713_v0  ;;  %v3278_v19 = vpop.permute.xlu1 %3277  ;;  %v3276_v20 = vpop.permute.xlu0 %3275 }
  0xfd   : > { %32916 = vmatmul.mubr.msk.f32.vlgmr.msra.gmra.mrb[8].mxu0 %vm39261_vm1, %v35306_v5  ;;  %v3303_v27 = vsel %vm3301_vm6, %v3276_v20, %v3278_v19 }
  0xfe   : > { %32918 = vmatpush1.msk.msra.mxu0 %vm39262_vm0, %v2705_v21  ;;  %5707 = vrot.lane.b32.xlu1 %v35362_v15, %s34722_s9 }
  0xff   : > { %32920 = vmatprep.subr.msk.mxu0 %vm39262_vm0, %v2693_v6  ;;  %5701 = vrot.lane.b32.xlu0 %v35335_v61, %s34722_s9 }
 0x100   : > { %3158 = vmatprep.mubr.f32.mxu0 %v34713_v0  ;;  %v3280_v24 = vpop.permute.xlu1 %3279  ;;  %v3274_v25 = vpop.permute.xlu0 %3273 }
 0x101   : > { %32919 = vmatmul.mubr.msk.f32.vlgmr.msra.gmra.mrb[10].mxu0 %vm39261_vm1, %v35306_v5  ;;  %v3302_v32 = vsel %vm3301_vm6, %v3274_v25, %v3276_v20  ;;  %v3304_v39 = vsel %vm3301_vm6, %v3278_v19, %v3280_v24 }
 0x102   : > { %32921 = vmatpush1.msk.msra.mxu0 %vm39262_vm0, %v2707_v26  ;;  %5711 = vrot.lane.b32.xlu1 %v35381_v22, %s34722_s9 }
 0x103   : > { %32924 = vmatprep.subr.msk.mxu0 %vm39262_vm0, %v3303_v27  ;;  %5709 = vrot.lane.b32.xlu0 %v35370_v18, %s34722_s9 }
 0x104   : > { %3229 = vmatprep.mubr.f32.mxu0 %v34713_v0  ;;  %v3284_v30 = vpop.permute.xlu1 %3283  ;;  %v3282_v31 = vpop.permute.xlu0 %3281 }
 0x105   : > { %32922 = vmatmul.mubr.msk.f32.vlgmr.msra.gmra.mrb[12].mxu0 %vm39261_vm1, %v35306_v5  ;;  %v3305_v33 = vsel %vm3301_vm6, %v3280_v24, %v3282_v31  ;;  %v3306_v44 = vsel %vm3301_vm6, %v3282_v31, %v3284_v30 }
 0x106   : > { %32925 = vmatpush1.msk.msra.mxu0 %vm39262_vm0, %v3302_v32  ;;  %5715 = vrot.lane.b32.xlu1 %v35399_v28, %s34722_s9 }
 0x107   : > { %5713 = vrot.lane.b32.xlu0 %v35387_v23, %s34722_s9  ;;  %32927 = vmatprep.subr.msk.mxu0 %vm39262_vm0, %v3305_v33 }
 0x108   : > { %3410 = vmatprep.mubr.f32.mxu0 %v34713_v0  ;;  %v3288_v37 = vpop.permute.xlu1 %3287  ;;  %v3286_v38 = vpop.permute.xlu0 %3285 }
 0x109   : > { %32926 = vmatmul.mubr.msk.f32.vlgmr.msra.gmra.mrb[0].mxu0 %vm39261_vm1, %v35418_v34  ;;  %v3307_v40 = vsel %vm3301_vm6, %v3284_v30, %v3286_v38  ;;  %v3308_v49 = vsel %vm3301_vm6, %v3286_v38, %v3288_v37 }
 0x10a   : > { %32928 = vmatpush1.msk.msra.mxu0 %vm39262_vm0, %v3304_v39  ;;  %5719 = vrot.lane.b32.xlu1 %v35422_v35, %s34722_s9 }
 0x10b   : > { %5717 = vrot.lane.b32.xlu0 %v35405_v29, %s34722_s9  ;;  %32930 = vmatprep.subr.msk.mxu0 %vm39262_vm0, %v3307_v40 }
 0x10c   : > { %3481 = vmatprep.mubr.f32.mxu0 %v34713_v0  ;;  %v3292_v43 = vpop.permute.xlu1 %3291 }
 0x10d   : > { %v3290_v45 = vpop.permute.xlu0 %3289  ;;  %32929 = vmatmul.mubr.msk.f32.vlgmr.msra.gmra.mrb[2].mxu0 %vm39261_vm1, %v35418_v34 }
 0x10e   : > { %32931 = vmatpush1.msk.msra.mxu0 %vm39262_vm0, %v3306_v44  ;;  %5723 = vrot.lane.b32.xlu1 %v35440_v41, %s34722_s9  ;;  %v3309_v46 = vsel %vm3301_vm6, %v3288_v37, %v3290_v45  ;;  %v3310_v4 = vsel %vm3301_vm6, %v3290_v45, %v3292_v43  ;;  %v35600_v45 = vld [vmem:[%s39215_s1 + $0x38] sm:$0xff] }
 0x10f   : > { %5721 = vrot.lane.b32.xlu0 %v35428_v36, %s34722_s9  ;;  %32933 = vmatprep.subr.msk.mxu0 %vm39262_vm0, %v3309_v46 }
 0x110   : > { %3552 = vmatprep.mubr.f32.mxu0 %v34713_v0  ;;  %v3296_v48 = vpop.permute.xlu1 %3295 }
 0x111   : > { %v3294_v50 = vpop.permute.xlu0 %3293  ;;  %32932 = vmatmul.mubr.msk.f32.vlgmr.msra.gmra.mrb[4].mxu0 %vm39261_vm1, %v35418_v34 }
 0x112   : > { %32934 = vmatpush1.msk.msra.mxu0 %vm39262_vm0, %v3308_v49  ;;  %5727 = vrot.lane.b32.xlu1 %v35458_v47, %s34722_s9  ;;  %v3311_v51 = vsel %vm3301_vm6, %v3292_v43, %v3294_v50  ;;  %v3312_v3 = vsel %vm3301_vm6, %v3294_v50, %v3296_v48 }
 0x113   : > { %5725 = vrot.lane.b32.xlu0 %v35446_v42, %s34722_s9  ;;  %32936 = vmatprep.subr.msk.mxu0 %vm39262_vm0, %v3311_v51 }
 0x114   : > { %3623 = vmatprep.mubr.f32.mxu0 %v34713_v0  ;;  %v3300_v1 = vpop.permute.xlu1 %3299 }
 0x115   : > { %v3298_v52 = vpop.permute.xlu0 %3297  ;;  %32935 = vmatmul.mubr.msk.f32.vlgmr.msra.gmra.mrb[6].mxu0 %vm39261_vm1, %v35418_v34 }
 0x116   : > { %32937 = vmatpush1.msk.msra.mxu0 %vm39262_vm0, %v3310_v4  ;;  %6312 = vrot.lane.b32.xlu1 %v35348_v12, %s34723_s15  ;;  %v3313_v53 = vsel %vm3301_vm6, %v3296_v48, %v3298_v52  ;;  %v3314_v5 = vsel %vm3301_vm6, %v3298_v52, %v3300_v1 }
 0x117   : > { %6310 = vrot.lane.b32.xlu0 %v35352_v13, %s34723_s15  ;;  %32939 = vmatprep.subr.msk.mxu0 %vm39262_vm0, %v3313_v53 }
 0x118   : > { %3694 = vmatprep.mubr.f32.mxu0 %v34713_v0  ;;  %v3885_v2 = vpop.permute.xlu1 %3884 }
 0x119   : > { %v3883_v54 = vpop.permute.xlu0 %3882  ;;  %32938 = vmatmul.mubr.msk.f32.vlgmr.msra.gmra.mrb[8].mxu0 %vm39261_vm1, %v35418_v34 }
 0x11a   : > { %32940 = vmatpush1.msk.msra.mxu0 %vm39262_vm0, %v3312_v3  ;;  %6314 = vrot.lane.b32.xlu1 %v35362_v15, %s34723_s15  ;;  %v3910_v56 = vsel %vm3908_vm7, %v3883_v54, %v3885_v2 }
 0x11b   : > { %32942 = vmatprep.subr.msk.mxu0 %vm39262_vm0, %v3300_v1  ;;  %6308 = vrot.lane.b32.xlu0 %v35335_v61, %s34723_s15 }
 0x11c   : > { %3765 = vmatprep.mubr.f32.mxu0 %v34713_v0  ;;  %v3887_v55 = vpop.permute.xlu1 %3886 }
 0x11d   : > { %v3881_v7 = vpop.permute.xlu0 %3880  ;;  %32941 = vmatmul.mubr.msk.f32.vlgmr.msra.gmra.mrb[10].mxu0 %vm39261_vm1, %v35418_v34  ;;  %v3911_v10 = vsel %vm3908_vm7, %v3885_v2, %v3887_v55 }
 0x11e   : > { %32943 = vmatpush1.msk.msra.mxu0 %vm39262_vm0, %v3314_v5  ;;  %6318 = vrot.lane.b32.xlu1 %v35381_v22, %s34723_s15  ;;  %v3909_v9 = vsel %vm3908_vm7, %v3881_v7, %v3883_v54 }
 0x11f   : > { %32946 = vmatprep.subr.msk.mxu0 %vm39262_vm0, %v3910_v56  ;;  %6316 = vrot.lane.b32.xlu0 %v35370_v18, %s34723_s15 }
 0x120   : > { %3836 = vmatprep.mubr.f32.mxu0 %v34713_v0  ;;  %v3891_v57 = vpop.permute.xlu1 %3890 }
 0x121   : > { %v3889_v8 = vpop.permute.xlu0 %3888  ;;  %32944 = vmatmul.mubr.msk.f32.vlgmr.msra.gmra.mrb[12].mxu0 %vm39261_vm1, %v35418_v34 }
 0x122   : > { %32947 = vmatpush1.msk.msra.mxu0 %vm39262_vm0, %v3909_v9  ;;  %6322 = vrot.lane.b32.xlu1 %v35399_v28, %s34723_s15  ;;  %v3912_v58 = vsel %vm3908_vm7, %v3887_v55, %v3889_v8  ;;  %v3913_v6 = vsel %vm3908_vm7, %v3889_v8, %v3891_v57 }
 0x123   : > { %6320 = vrot.lane.b32.xlu0 %v35387_v23, %s34723_s15  ;;  %32949 = vmatprep.subr.msk.mxu0 %vm39262_vm0, %v3912_v58 }
 0x124   : > { %4017 = vmatprep.mubr.f32.mxu0 %v34713_v0  ;;  %v3895_v60 = vpop.permute.xlu1 %3894  ;;  %v35533_v0 = vld [vmem:[#allocation2 + $0x68] sm:$0xff] }
 0x125   : > { %v3893_v11 = vpop.permute.xlu0 %3892  ;;  %32948 = vmatmul.mubr.msk.f32.vlgmr.msra.gmra.mrb[0].mxu0 %vm39261_vm1, %v35517_v59 }
 0x126   : > { %32950 = vmatpush1.msk.msra.mxu0 %vm39262_vm0, %v3911_v10  ;;  %6326 = vrot.lane.b32.xlu1 %v35422_v35, %s34723_s15  ;;  %v3914_v62 = vsel %vm3908_vm7, %v3891_v57, %v3893_v11  ;;  %v3915_v19 = vsel %vm3908_vm7, %v3893_v11, %v3895_v60 }
 0x127   : > { %6324 = vrot.lane.b32.xlu0 %v35405_v29, %s34723_s15  ;;  %32952 = vmatprep.subr.msk.mxu0 %vm39262_vm0, %v3914_v62 }
 0x128   : > { %4088 = vmatprep.mubr.f32.mxu0 %v35533_v0  ;;  %v3899_v63 = vpop.permute.xlu1 %3898 }
 0x129   : > { %v3897_v16 = vpop.permute.xlu0 %3896  ;;  %32951 = vmatmul.mubr.msk.f32.vlgmr.msra.gmra.mrb[2].mxu0 %vm39261_vm1, %v35517_v59 }
 0x12a   : > { %32953 = vmatpush1.msk.msra.mxu0 %vm39262_vm0, %v3913_v6  ;;  %6330 = vrot.lane.b32.xlu1 %v35440_v41, %s34723_s15  ;;  %v3916_v17 = vsel %vm3908_vm7, %v3895_v60, %v3897_v16  ;;  %v3917_v25 = vsel %vm3908_vm7, %v3897_v16, %v3899_v63  ;;  %v35681_v16 = vld [vmem:[%s39215_s1 + $0x40] sm:$0xff] }
 0x12b   : > { %6328 = vrot.lane.b32.xlu0 %v35428_v36, %s34723_s15  ;;  %32955 = vmatprep.subr.msk.mxu0 %vm39262_vm0, %v3916_v17 }
 0x12c   : > { %4159 = vmatprep.mubr.f32.mxu0 %v35533_v0  ;;  %v3903_v14 = vpop.permute.xlu1 %3902 }
 0x12d   : > { %v3901_v20 = vpop.permute.xlu0 %3900  ;;  %32954 = vmatmul.mubr.msk.f32.vlgmr.msra.gmra.mrb[4].mxu0 %vm39261_vm1, %v35517_v59 }
 0x12e   : > { %32956 = vmatpush1.msk.msra.mxu0 %vm39262_vm0, %v3915_v19  ;;  %6334 = vrot.lane.b32.xlu1 %v35458_v47, %s34723_s15  ;;  %v3918_v21 = vsel %vm3908_vm7, %v3899_v63, %v3901_v20  ;;  %v3919_v31 = vsel %vm3908_vm7, %v3901_v20, %v3903_v14 }
 0x12f   : > { %6332 = vrot.lane.b32.xlu0 %v35446_v42, %s34723_s15  ;;  %32958 = vmatprep.subr.msk.mxu0 %vm39262_vm0, %v3918_v21 }
 0x130   : > { %4230 = vmatprep.mubr.f32.mxu0 %v35533_v0  ;;  %v3907_v24 = vpop.permute.xlu1 %3906 }
 0x131   : > { %v3905_v26 = vpop.permute.xlu0 %3904  ;;  %32957 = vmatmul.mubr.msk.f32.vlgmr.msra.gmra.mrb[6].mxu0 %vm39261_vm1, %v35517_v59 }
 0x132   : > { %32959 = vmatpush1.msk.msra.mxu0 %vm39262_vm0, %v3917_v25  ;;  %6919 = vrot.lane.b32.xlu1 %v35348_v12, %s34724_s10  ;;  %v3920_v27 = vsel %vm3908_vm7, %v3903_v14, %v3905_v26  ;;  %v3921_v34 = vsel %vm3908_vm7, %v3905_v26, %v3907_v24 }
 0x133   : > { %6917 = vrot.lane.b32.xlu0 %v35352_v13, %s34724_s10  ;;  %32961 = vmatprep.subr.msk.mxu0 %vm39262_vm0, %v3920_v27 }
 0x134   : > { %4301 = vmatprep.mubr.f32.mxu0 %v35533_v0  ;;  %v4492_v30 = vpop.permute.xlu1 %4491 }
 0x135   : > { %v4490_v32 = vpop.permute.xlu0 %4489  ;;  %32960 = vmatmul.mubr.msk.f32.vlgmr.msra.gmra.mrb[8].mxu0 %vm39261_vm1, %v35517_v59 }
 0x136   : > { %32962 = vmatpush1.msk.msra.mxu0 %vm39262_vm0, %v3919_v31  ;;  %6921 = vrot.lane.b32.xlu1 %v35362_v15, %s34724_s10  ;;  %v4517_v38 = vsel %vm4515_vm8, %v4490_v32, %v4492_v30 }
 0x137   : > { %32964 = vmatprep.subr.msk.mxu0 %vm39262_vm0, %v3907_v24  ;;  %6915 = vrot.lane.b32.xlu0 %v35335_v61, %s34724_s10 }
 0x138   : > { %4372 = vmatprep.mubr.f32.mxu0 %v35533_v0  ;;  %v4494_v33 = vpop.permute.xlu1 %4493 }
 0x139   : > { %v4488_v37 = vpop.permute.xlu0 %4487  ;;  %32963 = vmatmul.mubr.msk.f32.vlgmr.msra.gmra.mrb[10].mxu0 %vm39261_vm1, %v35517_v59  ;;  %v4518_v48 = vsel %vm4515_vm8, %v4492_v30, %v4494_v33 }
 0x13a   : > { %32965 = vmatpush1.msk.msra.mxu0 %vm39262_vm0, %v3921_v34  ;;  %6925 = vrot.lane.b32.xlu1 %v35381_v22, %s34724_s10  ;;  %v4516_v40 = vsel %vm4515_vm8, %v4488_v37, %v4490_v32 }
 0x13b   : > { %32968 = vmatprep.subr.msk.mxu0 %vm39262_vm0, %v4517_v38  ;;  %6923 = vrot.lane.b32.xlu0 %v35370_v18, %s34724_s10 }
 0x13c   : > { %4443 = vmatprep.mubr.f32.mxu0 %v35533_v0  ;;  %v4498_v39 = vpop.permute.xlu1 %4497 }
 0x13d   : > { %v4496_v43 = vpop.permute.xlu0 %4495  ;;  %32966 = vmatmul.mubr.msk.f32.vlgmr.msra.gmra.mrb[12].mxu0 %vm39261_vm1, %v35517_v59 }
 0x13e   : > { %32969 = vmatpush1.msk.msra.mxu0 %vm39262_vm0, %v4516_v40  ;;  %6929 = vrot.lane.b32.xlu1 %v35399_v28, %s34724_s10  ;;  %v4519_v44 = vsel %vm4515_vm8, %v4494_v33, %v4496_v43  ;;  %v4520_v1 = vsel %vm4515_vm8, %v4496_v43, %v4498_v39 }
 0x13f   : > { %6927 = vrot.lane.b32.xlu0 %v35387_v23, %s34724_s10  ;;  %32971 = vmatprep.subr.msk.mxu0 %vm39262_vm0, %v4519_v44 }
 0x140   : > { %4624 = vmatprep.mubr.f32.mxu0 %v35533_v0  ;;  %v4502_v46 = vpop.permute.xlu1 %4501 }
 0x141   : > { %v4500_v49 = vpop.permute.xlu0 %4499  ;;  %32970 = vmatmul.mubr.msk.f32.vlgmr.msra.gmra.mrb[0].mxu0 %vm39261_vm1, %v35600_v45 }
 0x142   : > { %32972 = vmatpush1.msk.msra.mxu0 %vm39262_vm0, %v4518_v48  ;;  %6933 = vrot.lane.b32.xlu1 %v35422_v35, %s34724_s10  ;;  %v4521_v50 = vsel %vm4515_vm8, %v4498_v39, %v4500_v49  ;;  %v4522_v2 = vsel %vm4515_vm8, %v4500_v49, %v4502_v46 }
 0x143   : > { %6931 = vrot.lane.b32.xlu0 %v35405_v29, %s34724_s10  ;;  %32974 = vmatprep.subr.msk.mxu0 %vm39262_vm0, %v4521_v50 }
 0x144   : > { %4695 = vmatprep.mubr.f32.mxu0 %v35533_v0  ;;  %v4506_v51 = vpop.permute.xlu1 %4505 }
 0x145   : > { %v4504_v4 = vpop.permute.xlu0 %4503  ;;  %32973 = vmatmul.mubr.msk.f32.vlgmr.msra.gmra.mrb[2].mxu0 %vm39261_vm1, %v35600_v45 }
 0x146   : > { %32975 = vmatpush1.msk.msra.mxu0 %vm39262_vm0, %v4520_v1  ;;  %6937 = vrot.lane.b32.xlu1 %v35440_v41, %s34724_s10  ;;  %v4523_v52 = vsel %vm4515_vm8, %v4502_v46, %v4504_v4  ;;  %v4524_v5 = vsel %vm4515_vm8, %v4504_v4, %v4506_v51  ;;  %v35762_v4 = vld [vmem:[%s39215_s1 + $0x48] sm:$0xff] }
 0x147   : > { %6935 = vrot.lane.b32.xlu0 %v35428_v36, %s34724_s10  ;;  %32977 = vmatprep.subr.msk.mxu0 %vm39262_vm0, %v4523_v52 }
 0x148   : > { %4766 = vmatprep.mubr.f32.mxu0 %v35533_v0  ;;  %v4510_v53 = vpop.permute.xlu1 %4509 }
 0x149   : > { %v4508_v3 = vpop.permute.xlu0 %4507  ;;  %32976 = vmatmul.mubr.msk.f32.vlgmr.msra.gmra.mrb[4].mxu0 %vm39261_vm1, %v35600_v45 }
 0x14a   : > { %32978 = vmatpush1.msk.msra.mxu0 %vm39262_vm0, %v4522_v2  ;;  %6941 = vrot.lane.b32.xlu1 %v35458_v47, %s34724_s10  ;;  %v4525_v54 = vsel %vm4515_vm8, %v4506_v51, %v4508_v3  ;;  %v4526_v9 = vsel %vm4515_vm8, %v4508_v3, %v4510_v53 }
 0x14b   : > { %6939 = vrot.lane.b32.xlu0 %v35446_v42, %s34724_s10  ;;  %32980 = vmatprep.subr.msk.mxu0 %vm39262_vm0, %v4525_v54 }
 0x14c   : > { %4837 = vmatprep.mubr.f32.mxu0 %v35533_v0  ;;  %v4514_v55 = vpop.permute.xlu1 %4513 }
 0x14d   : > { %v4512_v7 = vpop.permute.xlu0 %4511  ;;  %32979 = vmatmul.mubr.msk.f32.vlgmr.msra.gmra.mrb[6].mxu0 %vm39261_vm1, %v35600_v45 }
 0x14e   : > { %32981 = vmatpush1.msk.msra.mxu0 %vm39262_vm0, %v4524_v5  ;;  %7526 = vrot.lane.b32.xlu1 %v35348_v12, %s39221_s28  ;;  %v4527_v56 = vsel %vm4515_vm8, %v4510_v53, %v4512_v7  ;;  %v4528_v59 = vsel %vm4515_vm8, %v4512_v7, %v4514_v55 }
 0x14f   : > { %7524 = vrot.lane.b32.xlu0 %v35352_v13, %s39221_s28  ;;  %32983 = vmatprep.subr.msk.mxu0 %vm39262_vm0, %v4527_v56 }
 0x150   : > { %4908 = vmatprep.mubr.f32.mxu0 %v35533_v0  ;;  %v5099_v57 = vpop.permute.xlu1 %5098 }
 0x151   : > { %v5097_v8 = vpop.permute.xlu0 %5096  ;;  %32982 = vmatmul.mubr.msk.f32.vlgmr.msra.gmra.mrb[8].mxu0 %vm39261_vm1, %v35600_v45 }
 0x152   : > { %32984 = vmatpush1.msk.msra.mxu0 %vm39262_vm0, %v4526_v9  ;;  %7528 = vrot.lane.b32.xlu1 %v35362_v15, %s39221_s28  ;;  %v5124_v10 = vsel %vm5122_vm9, %v5097_v8, %v5099_v57 }
 0x153   : > { %32986 = vmatprep.subr.msk.mxu0 %vm39262_vm0, %v4514_v55  ;;  %7522 = vrot.lane.b32.xlu0 %v35335_v61, %s39221_s28 }
 0x154   : > { %4979 = vmatprep.mubr.f32.mxu0 %v35533_v0  ;;  %v5101_v58 = vpop.permute.xlu1 %5100 }
 0x155   : > { %v5095_v60 = vpop.permute.xlu0 %5094  ;;  %32985 = vmatmul.mubr.msk.f32.vlgmr.msra.gmra.mrb[10].mxu0 %vm39261_vm1, %v35600_v45  ;;  %v5125_v14 = vsel %vm5122_vm9, %v5099_v57, %v5101_v58 }
 0x156   : > { %32987 = vmatpush1.msk.msra.mxu0 %vm39262_vm0, %v4528_v59  ;;  %7532 = vrot.lane.b32.xlu1 %v35381_v22, %s39221_s28  ;;  %v5123_v62 = vsel %vm5122_vm9, %v5095_v60, %v5097_v8 }
 0x157   : > { %32990 = vmatprep.subr.msk.mxu0 %vm39262_vm0, %v5124_v10  ;;  %7530 = vrot.lane.b32.xlu0 %v35370_v18, %s39221_s28 }
 0x158   : > { %5050 = vmatprep.mubr.f32.mxu0 %v35533_v0  ;;  %v5105_v11 = vpop.permute.xlu1 %5104 }
 0x159   : > { %v5103_v63 = vpop.permute.xlu0 %5102  ;;  %32988 = vmatmul.mubr.msk.f32.vlgmr.msra.gmra.mrb[12].mxu0 %vm39261_vm1, %v35600_v45 }
 0x15a   : > { %32991 = vmatpush1.msk.msra.mxu0 %vm39262_vm0, %v5123_v62  ;;  %7536 = vrot.lane.b32.xlu1 %v35399_v28, %s39221_s28  ;;  %v5126_v6 = vsel %vm5122_vm9, %v5101_v58, %v5103_v63  ;;  %v5127_v24 = vsel %vm5122_vm9, %v5103_v63, %v5105_v11 }
 0x15b   : > { %7534 = vrot.lane.b32.xlu0 %v35387_v23, %s39221_s28  ;;  %32993 = vmatprep.subr.msk.mxu0 %vm39262_vm0, %v5126_v6 }
 0x15c   : > { %5231 = vmatprep.mubr.f32.mxu0 %v35533_v0  ;;  %v5109_v17 = vpop.permute.xlu1 %5108 }
 0x15d   : > { %v5107_v19 = vpop.permute.xlu0 %5106  ;;  %32992 = vmatmul.mubr.msk.f32.vlgmr.msra.gmra.mrb[0].mxu0 %vm39261_vm1, %v35681_v16 }
 0x15e   : > { %32994 = vmatpush1.msk.msra.mxu0 %vm39262_vm0, %v5125_v14  ;;  %7540 = vrot.lane.b32.xlu1 %v35422_v35, %s39221_s28  ;;  %v5128_v20 = vsel %vm5122_vm9, %v5105_v11, %v5107_v19  ;;  %v5129_v30 = vsel %vm5122_vm9, %v5107_v19, %v5109_v17 }
 0x15f   : > { %7538 = vrot.lane.b32.xlu0 %v35405_v29, %s39221_s28  ;;  %32996 = vmatprep.subr.msk.mxu0 %vm39262_vm0, %v5128_v20 }
 0x160   : > { %5302 = vmatprep.mubr.f32.mxu0 %v35533_v0  ;;  %v5113_v21 = vpop.permute.xlu1 %5112 }
 0x161   : > { %v5111_v25 = vpop.permute.xlu0 %5110  ;;  %32995 = vmatmul.mubr.msk.f32.vlgmr.msra.gmra.mrb[2].mxu0 %vm39261_vm1, %v35681_v16 }
 0x162   : > { %32997 = vmatpush1.msk.msra.mxu0 %vm39262_vm0, %v5127_v24  ;;  %7544 = vrot.lane.b32.xlu1 %v35440_v41, %s39221_s28  ;;  %v5130_v26 = vsel %vm5122_vm9, %v5109_v17, %v5111_v25  ;;  %v5131_v34 = vsel %vm5122_vm9, %v5111_v25, %v5113_v21  ;;  %v35872_v25 = vld [vmem:[%s34834_s13 + $0x4] sm:$0xff] }
 0x163   : > { %7542 = vrot.lane.b32.xlu0 %v35428_v36, %s39221_s28  ;;  %32999 = vmatprep.subr.msk.mxu0 %vm39262_vm0, %v5130_v26 }
 0x164   : > { %5373 = vmatprep.mubr.f32.mxu0 %v35533_v0  ;;  %v5117_v27 = vpop.permute.xlu1 %5116 }
 0x165   : > { %v5115_v31 = vpop.permute.xlu0 %5114  ;;  %32998 = vmatmul.mubr.msk.f32.vlgmr.msra.gmra.mrb[4].mxu0 %vm39261_vm1, %v35681_v16 }
 0x166   : > { %33000 = vmatpush1.msk.msra.mxu0 %vm39262_vm0, %v5129_v30  ;;  %7548 = vrot.lane.b32.xlu1 %v35458_v47, %s39221_s28  ;;  %v5132_v32 = vsel %vm5122_vm9, %v5113_v21, %v5115_v31  ;;  %v5133_v40 = vsel %vm5122_vm9, %v5115_v31, %v5117_v27  ;;  %v35889_v30 = vcombine.high %v35872_v25, %v35872_v25 }
 0x167   : > { %7546 = vrot.lane.b32.xlu0 %v35446_v42, %s39221_s28  ;;  %33002 = vmatprep.subr.msk.mxu0 %vm39262_vm0, %v5132_v32  ;;  %s39225_s28 = smov 98  }
 0x168   : > { %5444 = vmatprep.mubr.f32.mxu0 %v35533_v0  ;;  %v5121_v33 = vpop.permute.xlu1 %5120 }
 0x169   : > { %v5119_v37 = vpop.permute.xlu0 %5118  ;;  %33001 = vmatmul.mubr.msk.f32.vlgmr.msra.gmra.mrb[6].mxu0 %vm39261_vm1, %v35681_v16 }
 0x16a   : > { %33003 = vmatpush1.msk.msra.mxu0 %vm39262_vm0, %v5131_v34  ;;  %8133 = vrot.lane.b32.xlu1 %v35348_v12, %s39223_s12  ;;  %v5134_v38 = vsel %vm5122_vm9, %v5117_v27, %v5119_v37  ;;  %v5135_v45 = vsel %vm5122_vm9, %v5119_v37, %v5121_v33  ;;  %v35907_v34 = vld [vmem:[%s34834_s13 + $0x14] sm:$0xff] }
 0x16b   : > { %8131 = vrot.lane.b32.xlu0 %v35352_v13, %s39223_s12  ;;  %33005 = vmatprep.subr.msk.mxu0 %vm39262_vm0, %v5134_v38 }
 0x16c   : > { %5515 = vmatprep.mubr.f32.mxu0 %v35533_v0  ;;  %v5706_v39 = vpop.permute.xlu1 %5705 }
 0x16d   : > { %v5704_v43 = vpop.permute.xlu0 %5703  ;;  %33004 = vmatmul.mubr.msk.f32.vlgmr.msra.gmra.mrb[8].mxu0 %vm39261_vm1, %v35681_v16 }
 0x16e   : > { %33006 = vmatpush1.msk.msra.mxu0 %vm39262_vm0, %v5133_v40  ;;  %8135 = vrot.lane.b32.xlu1 %v35362_v15, %s39223_s12  ;;  %v5731_v48 = vsel %vm5729_vm10, %v5704_v43, %v5706_v39  ;;  %v35918_v40 = vcombine.high %v35907_v34, %v35907_v34 }
 0x16f   : > { %33008 = vmatprep.subr.msk.mxu0 %vm39262_vm0, %v5121_v33  ;;  %8129 = vrot.lane.b32.xlu0 %v35335_v61, %s39223_s12 }
 0x170   : > { %5586 = vmatprep.mubr.f32.mxu0 %v35533_v0  ;;  %v5708_v44 = vpop.permute.xlu1 %5707 }
 0x171   : > { %v5702_v46 = vpop.permute.xlu0 %5701  ;;  %33007 = vmatmul.mubr.msk.f32.vlgmr.msra.gmra.mrb[10].mxu0 %vm39261_vm1, %v35681_v16  ;;  %v5732_v53 = vsel %vm5729_vm10, %v5706_v39, %v5708_v44 }
 0x172   : > { %33009 = vmatpush1.msk.msra.mxu0 %vm39262_vm0, %v5135_v45  ;;  %8139 = vrot.lane.b32.xlu1 %v35381_v22, %s39223_s12  ;;  %v5730_v50 = vsel %vm5729_vm10, %v5702_v46, %v5704_v43  ;;  %v35924_v43 = vld [vmem:[%s34834_s13 + $0x1c] sm:$0xff] }
 0x173   : > { %33012 = vmatprep.subr.msk.mxu0 %vm39262_vm0, %v5731_v48  ;;  %8137 = vrot.lane.b32.xlu0 %v35370_v18, %s39223_s12 }
 0x174   : > { %5657 = vmatprep.mubr.f32.mxu0 %v35533_v0  ;;  %v5712_v49 = vpop.permute.xlu1 %5711 }
 0x175   : > { %v5710_v51 = vpop.permute.xlu0 %5709  ;;  %33010 = vmatmul.mubr.msk.f32.vlgmr.msra.gmra.mrb[12].mxu0 %vm39261_vm1, %v35681_v16 }
 0x176   : > { %33013 = vmatpush1.msk.msra.mxu0 %vm39262_vm0, %v5730_v50  ;;  %8143 = vrot.lane.b32.xlu1 %v35399_v28, %s39223_s12  ;;  %v5733_v1 = vsel %vm5729_vm10, %v5708_v44, %v5710_v51  ;;  %v5734_v55 = vsel %vm5729_vm10, %v5710_v51, %v5712_v49  ;;  %v35942_v50 = vld [vmem:[%s34834_s13 + $0x24] sm:$0xff] }
 0x177   : > { %8141 = vrot.lane.b32.xlu0 %v35387_v23, %s39223_s12  ;;  %33015 = vmatprep.subr.msk.mxu0 %vm39262_vm0, %v5733_v1 }
 0x178   : > { %5838 = vmatprep.mubr.f32.mxu0 %v35533_v0  ;;  %v5716_v52 = vpop.permute.xlu1 %5715 }
 0x179   : > { %v5714_v2 = vpop.permute.xlu0 %5713  ;;  %33014 = vmatmul.mubr.msk.f32.vlgmr.msra.gmra.mrb[0].mxu0 %vm39261_vm1, %v35762_v4 }
 0x17a   : > { %33016 = vmatpush1.msk.msra.mxu0 %vm39262_vm0, %v5732_v53  ;;  %8147 = vrot.lane.b32.xlu1 %v35422_v35, %s39223_s12  ;;  %v5735_v3 = vsel %vm5729_vm10, %v5712_v49, %v5714_v2  ;;  %v5736_v57 = vsel %vm5729_vm10, %v5714_v2, %v5716_v52  ;;  %v35936_v49 = vcombine.high %v35924_v43, %v35924_v43  ;;  %v35955_v53 = vld [vmem:[%s39215_s1 + $0x58] sm:$0xff] }
 0x17b   : > { %8145 = vrot.lane.b32.xlu0 %v35405_v29, %s39223_s12  ;;  %33018 = vmatprep.subr.msk.mxu0 %vm39262_vm0, %v5735_v3  ;;  %v35959_v2 = vcombine.high %v35942_v50, %v35942_v50  ;;  %v35965_v3 = vld [vmem:[%s34834_s13 + $0x2c] sm:$0xff] }
 0x17c   : > { %5909 = vmatprep.mubr.f32.mxu0 %v35533_v0  ;;  %v5720_v54 = vpop.permute.xlu1 %5719 }
 0x17d   : > { %v5718_v5 = vpop.permute.xlu0 %5717  ;;  %33017 = vmatmul.mubr.msk.f32.vlgmr.msra.gmra.mrb[2].mxu0 %vm39261_vm1, %v35762_v4 }
 0x17e   : > { %33019 = vmatpush1.msk.msra.mxu0 %vm39262_vm0, %v5734_v55  ;;  %8151 = vrot.lane.b32.xlu1 %v35440_v41, %s39223_s12  ;;  %v5737_v7 = vsel %vm5729_vm10, %v5716_v52, %v5718_v5  ;;  %v5738_v59 = vsel %vm5729_vm10, %v5718_v5, %v5720_v54 }
 0x17f   : > { %8149 = vrot.lane.b32.xlu0 %v35428_v36, %s39223_s12  ;;  %33021 = vmatprep.subr.msk.mxu0 %vm39262_vm0, %v5737_v7 }
 0x180   : > { %5980 = vmatprep.mubr.f32.mxu0 %v35533_v0  ;;  %v5724_v56 = vpop.permute.xlu1 %5723 }
 0x181   : > { %v5722_v9 = vpop.permute.xlu0 %5721  ;;  %33020 = vmatmul.mubr.msk.f32.vlgmr.msra.gmra.mrb[4].mxu0 %vm39261_vm1, %v35762_v4 }
 0x182   : > { %33022 = vmatpush1.msk.msra.mxu0 %vm39262_vm0, %v5736_v57  ;;  %8155 = vrot.lane.b32.xlu1 %v35458_v47, %s39223_s12  ;;  %v5739_v8 = vsel %vm5729_vm10, %v5720_v54, %v5722_v9  ;;  %v5740_v62 = vsel %vm5729_vm10, %v5722_v9, %v5724_v56  ;;  %v35983_v57 = vld [vmem:[%s34834_s13 + $0x34] sm:$0xff] }
 0x183   : > { %8153 = vrot.lane.b32.xlu0 %v35446_v42, %s39223_s12  ;;  %33024 = vmatprep.subr.msk.mxu0 %vm39262_vm0, %v5739_v8  ;;  %s39227_s12 = smov 88  }
 0x184   : > { %6051 = vmatprep.mubr.f32.mxu0 %v35533_v0  ;;  %v5728_v58 = vpop.permute.xlu1 %5727 }
 0x185   : > { %v5726_v60 = vpop.permute.xlu0 %5725  ;;  %33023 = vmatmul.mubr.msk.f32.vlgmr.msra.gmra.mrb[6].mxu0 %vm39261_vm1, %v35762_v4 }
 0x186   : > { %33025 = vmatpush1.msk.msra.mxu0 %vm39262_vm0, %v5738_v59  ;;  %8740 = vrot.lane.b32.xlu1 %v35348_v12, %s39225_s28  ;;  %v5741_v10 = vsel %vm5729_vm10, %v5724_v56, %v5726_v60  ;;  %v35977_v56 = vcombine.high %v35965_v3, %v35965_v3 }
 0x187   : > { %8738 = vrot.lane.b32.xlu0 %v35352_v13, %s39225_s28  ;;  %33027 = vmatprep.subr.msk.mxu0 %vm39262_vm0, %v5741_v10  ;;  %v5742_v13 = vsel %vm5729_vm10, %v5726_v60, %v5728_v58  ;;  %v35995_v60 = vcombine.high %v35983_v57, %v35983_v57 }
 0x188   : > { %6122 = vmatprep.mubr.f32.mxu0 %v35533_v0  ;;  %v6313_v11 = vpop.permute.xlu1 %6312 }
 0x189   : > { %v6311_v63 = vpop.permute.xlu0 %6310  ;;  %33026 = vmatmul.mubr.msk.f32.vlgmr.msra.gmra.mrb[8].mxu0 %vm39261_vm1, %v35762_v4 }
 0x18a   : > { %33028 = vmatpush1.msk.msra.mxu0 %vm39262_vm0, %v5740_v62  ;;  %8742 = vrot.lane.b32.xlu1 %v35362_v15, %s39225_s28  ;;  %v6338_v16 = vsel %vm6336_vm11, %v6311_v63, %v6313_v11 }
 0x18b   : > { %33030 = vmatprep.subr.msk.mxu0 %vm39262_vm0, %v5728_v58  ;;  %8736 = vrot.lane.b32.xlu0 %v35335_v61, %s39225_s28 }
 0x18c   : > { %6193 = vmatprep.mubr.f32.mxu0 %v35533_v0  ;;  %v6315_v12 = vpop.permute.xlu1 %6314 }
 0x18d   : > { %v6309_v6 = vpop.permute.xlu0 %6308  ;;  %33029 = vmatmul.mubr.msk.f32.vlgmr.msra.gmra.mrb[10].mxu0 %vm39261_vm1, %v35762_v4  ;;  %v6339_v19 = vsel %vm6336_vm11, %v6313_v11, %v6315_v12 }
 0x18e   : > { %33031 = vmatpush1.msk.msra.mxu0 %vm39262_vm0, %v5742_v13  ;;  %8746 = vrot.lane.b32.xlu1 %v35381_v22, %s39225_s28  ;;  %v6337_v15 = vsel %vm6336_vm11, %v6309_v6, %v6311_v63 }
 0x18f   : > { %33034 = vmatprep.subr.msk.mxu0 %vm39262_vm0, %v6338_v16  ;;  %8744 = vrot.lane.b32.xlu0 %v35370_v18, %s39225_s28  ;;  %v35843_v18 = vld [vmem:[%s39215_s1 + $0x50] sm:$0xff] }
 0x190   : > { %6264 = vmatprep.mubr.f32.mxu0 %v35533_v0  ;;  %v6319_v61 = vpop.permute.xlu1 %6318 }
 0x191   : > { %v6317_v17 = vpop.permute.xlu0 %6316  ;;  %33032 = vmatmul.mubr.msk.f32.vlgmr.msra.gmra.mrb[12].mxu0 %vm39261_vm1, %v35762_v4 }
 0x192   : > { %33035 = vmatpush1.msk.msra.mxu0 %vm39262_vm0, %v6337_v15  ;;  %8750 = vrot.lane.b32.xlu1 %v35399_v28, %s39225_s28  ;;  %v6340_v22 = vsel %vm6336_vm11, %v6315_v12, %v6317_v17  ;;  %v6341_v21 = vsel %vm6336_vm11, %v6317_v17, %v6319_v61 }
 0x193   : > { %8748 = vrot.lane.b32.xlu0 %v35387_v23, %s39225_s28  ;;  %33037 = vmatprep.subr.msk.mxu0 %vm39262_vm0, %v6340_v22 }
 0x194   : > { %6445 = vmatprep.mubr.f32.mxu0 %v35533_v0  ;;  %v6323_v14 = vpop.permute.xlu1 %6322 }
 0x195   : > { %v6321_v20 = vpop.permute.xlu0 %6320  ;;  %33036 = vmatmul.mubr.msk.f32.vlgmr.msra.gmra.mrb[0].mxu0 %vm39261_vm1, %v35843_v18 }
 0x196   : > { %33038 = vmatpush1.msk.msra.mxu0 %vm39262_vm0, %v6339_v19  ;;  %8754 = vrot.lane.b32.xlu1 %v35422_v35, %s39225_s28  ;;  %v6342_v28 = vsel %vm6336_vm11, %v6319_v61, %v6321_v20  ;;  %v6343_v26 = vsel %vm6336_vm11, %v6321_v20, %v6323_v14 }
 0x197   : > { %8752 = vrot.lane.b32.xlu0 %v35405_v29, %s39225_s28  ;;  %33040 = vmatprep.subr.msk.mxu0 %vm39262_vm0, %v6342_v28 }
 0x198   : > { %6516 = vmatprep.mubr.f32.mxu0 %v35533_v0  ;;  %v6327_v23 = vpop.permute.xlu1 %6326 }
 0x199   : > { %v6325_v24 = vpop.permute.xlu0 %6324  ;;  %33039 = vmatmul.mubr.msk.f32.vlgmr.msra.gmra.mrb[2].mxu0 %vm39261_vm1, %v35843_v18 }
 0x19a   : > { %33041 = vmatpush1.msk.msra.mxu0 %vm39262_vm0, %v6341_v21  ;;  %8758 = vrot.lane.b32.xlu1 %v35440_v41, %s39225_s28  ;;  %v6344_v35 = vsel %vm6336_vm11, %v6323_v14, %v6325_v24  ;;  %v35885_v41 = vld [vmem:[%s34834_s13 + $0xc] sm:$0xff]  ;;  %v6345_v32 = vsel %vm6336_vm11, %v6325_v24, %v6327_v23  ;;  %v36054_v24 = vld [vmem:[%s39215_s1 + $0x60] sm:$0xff] }
 0x19b   : > { %8756 = vrot.lane.b32.xlu0 %v35428_v36, %s39225_s28  ;;  %33043 = vmatprep.subr.msk.mxu0 %vm39262_vm0, %v6344_v35 }
 0x19c   : > { %6587 = vmatprep.mubr.f32.mxu0 %v35533_v0  ;;  %v6331_v29 = vpop.permute.xlu1 %6330 }
 0x19d   : > { %v6329_v27 = vpop.permute.xlu0 %6328  ;;  %33042 = vmatmul.mubr.msk.f32.vlgmr.msra.gmra.mrb[4].mxu0 %vm39261_vm1, %v35843_v18 }
 0x19e   : > { %33044 = vmatpush1.msk.msra.mxu0 %vm39262_vm0, %v6343_v26  ;;  %8762 = vrot.lane.b32.xlu1 %v35458_v47, %s39225_s28  ;;  %v6346_v36 = vsel %vm6336_vm11, %v6327_v23, %v6329_v27  ;;  %v6347_v38 = vsel %vm6336_vm11, %v6329_v27, %v6331_v29 }
 0x19f   : > { %8760 = vrot.lane.b32.xlu0 %v35446_v42, %s39225_s28  ;;  %33046 = vmatprep.subr.msk.mxu0 %vm39262_vm0, %v6346_v36  ;;  %v35898_v42 = vcombine.high %v35885_v41, %v35885_v41  ;;  %s39229_s28 = smov 87  }
 0x1a0   : > { %6658 = vmatprep.mubr.f32.mxu0 %v35533_v0  ;;  %v6335_v31 = vpop.permute.xlu1 %6334 }
 0x1a1   : > { %v6333_v47 = vpop.permute.xlu0 %6332  ;;  %33045 = vmatmul.mubr.msk.f32.vlgmr.msra.gmra.mrb[6].mxu0 %vm39261_vm1, %v35843_v18 }
 0x1a2   : > { %33047 = vmatpush1.msk.msra.mxu0 %vm39262_vm0, %v6345_v32  ;;  %9347 = vrot.lane.b32.xlu1 %v35885_v41, %s39227_s12  ;;  %v6348_v33 = vsel %vm6336_vm11, %v6331_v29, %v6333_v47  ;;  %v6349_v45 = vsel %vm6336_vm11, %v6333_v47, %v6335_v31 }
 0x1a3   : > { %9345 = vrot.lane.b32.xlu0 %v35889_v30, %s39227_s12  ;;  %33049 = vmatprep.subr.msk.mxu0 %vm39262_vm0, %v6348_v33 }
 0x1a4   : > { %6729 = vmatprep.mubr.f32.mxu0 %v35533_v0  ;;  %v6920_v37 = vpop.permute.xlu1 %6919 }
 0x1a5   : > { %v6918_v39 = vpop.permute.xlu0 %6917  ;;  %33048 = vmatmul.mubr.msk.f32.vlgmr.msra.gmra.mrb[8].mxu0 %vm39261_vm1, %v35843_v18 }
 0x1a6   : > { %33050 = vmatpush1.msk.msra.mxu0 %vm39262_vm0, %v6347_v38  ;;  %9349 = vrot.lane.b32.xlu1 %v35898_v42, %s39227_s12  ;;  %v6945_v48 = vsel %vm6943_vm12, %v6918_v39, %v6920_v37 }
 0x1a7   : > { %33052 = vmatprep.subr.msk.mxu0 %vm39262_vm0, %v6335_v31  ;;  %9343 = vrot.lane.b32.xlu0 %v35872_v25, %s39227_s12 }
 0x1a8   : > { %6800 = vmatprep.mubr.f32.mxu0 %v35533_v0  ;;  %v6922_v44 = vpop.permute.xlu1 %6921 }
 0x1a9   : > { %v6916_v46 = vpop.permute.xlu0 %6915  ;;  %33051 = vmatmul.mubr.msk.f32.vlgmr.msra.gmra.mrb[10].mxu0 %vm39261_vm1, %v35843_v18  ;;  %v6946_v55 = vsel %vm6943_vm12, %v6920_v37, %v6922_v44 }
 0x1aa   : > { %33053 = vmatpush1.msk.msra.mxu0 %vm39262_vm0, %v6349_v45  ;;  %9353 = vrot.lane.b32.xlu1 %v35918_v40, %s39227_s12  ;;  %v6944_v1 = vsel %vm6943_vm12, %v6916_v46, %v6918_v39 }
 0x1ab   : > { %33056 = vmatprep.subr.msk.mxu0 %vm39262_vm0, %v6945_v48  ;;  %9351 = vrot.lane.b32.xlu0 %v35907_v34, %s39227_s12 }
 0x1ac   : > { %6871 = vmatprep.mubr.f32.mxu0 %v35533_v0  ;;  %v6926_v51 = vpop.permute.xlu1 %6925 }
 0x1ad   : > { %v6924_v4 = vpop.permute.xlu0 %6923  ;;  %33054 = vmatmul.mubr.msk.f32.vlgmr.msra.gmra.mrb[12].mxu0 %vm39261_vm1, %v35843_v18 }
 0x1ae   : > { %33057 = vmatpush1.msk.msra.mxu0 %vm39262_vm0, %v6944_v1  ;;  %9357 = vrot.lane.b32.xlu1 %v35936_v49, %s39227_s12  ;;  %v6947_v52 = vsel %vm6943_vm12, %v6922_v44, %v6924_v4  ;;  %v6948_v8 = vsel %vm6943_vm12, %v6924_v4, %v6926_v51 }
 0x1af   : > { %9355 = vrot.lane.b32.xlu0 %v35924_v43, %s39227_s12  ;;  %33059 = vmatprep.subr.msk.mxu0 %vm39262_vm0, %v6947_v52 }
 0x1b0   : > { %7052 = vmatprep.mubr.f32.mxu0 %v35533_v0  ;;  %v6930_v54 = vpop.permute.xlu1 %6929 }
 0x1b1   : > { %v6928_v5 = vpop.permute.xlu0 %6927  ;;  %33058 = vmatmul.mubr.msk.f32.vlgmr.msra.gmra.mrb[0].mxu0 %vm39261_vm1, %v35955_v53 }
 0x1b2   : > { %33060 = vmatpush1.msk.msra.mxu0 %vm39262_vm0, %v6946_v55  ;;  %9361 = vrot.lane.b32.xlu1 %v35959_v2, %s39227_s12  ;;  %v6949_v7 = vsel %vm6943_vm12, %v6926_v51, %v6928_v5  ;;  %v6950_v11 = vsel %vm6943_vm12, %v6928_v5, %v6930_v54 }
 0x1b3   : > { %9359 = vrot.lane.b32.xlu0 %v35942_v50, %s39227_s12  ;;  %33062 = vmatprep.subr.msk.mxu0 %vm39262_vm0, %v6949_v7 }
 0x1b4   : > { %7123 = vmatprep.mubr.f32.mxu0 %v35533_v0  ;;  %v6934_v9 = vpop.permute.xlu1 %6933 }
 0x1b5   : > { %v6932_v58 = vpop.permute.xlu0 %6931  ;;  %33061 = vmatmul.mubr.msk.f32.vlgmr.msra.gmra.mrb[2].mxu0 %vm39261_vm1, %v35955_v53 }
 0x1b6   : > { %33063 = vmatpush1.msk.msra.mxu0 %vm39262_vm0, %v6948_v8  ;;  %9365 = vrot.lane.b32.xlu1 %v35977_v56, %s39227_s12  ;;  %v6951_v59 = vsel %vm6943_vm12, %v6930_v54, %v6932_v58  ;;  %v6952_v13 = vsel %vm6943_vm12, %v6932_v58, %v6934_v9  ;;  %v36166_v58 = vld [vmem:[%s34834_s13 + $0x8] sm:$0xff] }
 0x1b7   : > { %9363 = vrot.lane.b32.xlu0 %v35965_v3, %s39227_s12  ;;  %33065 = vmatprep.subr.msk.mxu0 %vm39262_vm0, %v6951_v59 }
 0x1b8   : > { %7194 = vmatprep.mubr.f32.mxu0 %v35533_v0  ;;  %v6938_v10 = vpop.permute.xlu1 %6937 }
 0x1b9   : > { %v6936_v62 = vpop.permute.xlu0 %6935  ;;  %33064 = vmatmul.mubr.msk.f32.vlgmr.msra.gmra.mrb[4].mxu0 %vm39261_vm1, %v35955_v53 }
 0x1ba   : > { %33066 = vmatpush1.msk.msra.mxu0 %vm39262_vm0, %v6950_v11  ;;  %9369 = vrot.lane.b32.xlu1 %v35995_v60, %s39227_s12  ;;  %v6953_v63 = vsel %vm6943_vm12, %v6934_v9, %v6936_v62  ;;  %v6954_v15 = vsel %vm6943_vm12, %v6936_v62, %v6938_v10  ;;  %v36183_v11 = vcombine.high %v36166_v58, %v36166_v58 }
 0x1bb   : > { %9367 = vrot.lane.b32.xlu0 %v35983_v57, %s39227_s12  ;;  %33068 = vmatprep.subr.msk.mxu0 %vm39262_vm0, %v6953_v63  ;;  %s39231_s12 = smov 86  }
 0x1bc   : > { %7265 = vmatprep.mubr.f32.mxu0 %v35533_v0  ;;  %v6942_v12 = vpop.permute.xlu1 %6941 }
 0x1bd   : > { %v6940_v6 = vpop.permute.xlu0 %6939  ;;  %33067 = vmatmul.mubr.msk.f32.vlgmr.msra.gmra.mrb[6].mxu0 %vm39261_vm1, %v35955_v53 }
 0x1be   : > { %33069 = vmatpush1.msk.msra.mxu0 %vm39262_vm0, %v6952_v13  ;;  %9954 = vrot.lane.b32.xlu1 %v35885_v41, %s39229_s28  ;;  %v6955_v16 = vsel %vm6943_vm12, %v6938_v10, %v6940_v6  ;;  %v6956_v18 = vsel %vm6943_vm12, %v6940_v6, %v6942_v12  ;;  %v36201_v13 = vld [vmem:[%s34834_s13 + $0x18] sm:$0xff] }
 0x1bf   : > { %9952 = vrot.lane.b32.xlu0 %v35889_v30, %s39229_s28  ;;  %33071 = vmatprep.subr.msk.mxu0 %vm39262_vm0, %v6955_v16 }
 0x1c0   : > { %7336 = vmatprep.mubr.f32.mxu0 %v35533_v0  ;;  %v7527_v61 = vpop.permute.xlu1 %7526 }
 0x1c1   : > { %v7525_v17 = vpop.permute.xlu0 %7524  ;;  %33070 = vmatmul.mubr.msk.f32.vlgmr.msra.gmra.mrb[8].mxu0 %vm39261_vm1, %v35955_v53 }
 0x1c2   : > { %33072 = vmatpush1.msk.msra.mxu0 %vm39262_vm0, %v6954_v15  ;;  %9956 = vrot.lane.b32.xlu1 %v35898_v42, %s39229_s28  ;;  %v7552_v19 = vsel %vm7550_vm13, %v7525_v17, %v7527_v61  ;;  %v36212_v15 = vcombine.high %v36201_v13, %v36201_v13 }
 0x1c3   : > { %33074 = vmatprep.subr.msk.mxu0 %vm39262_vm0, %v6942_v12  ;;  %9950 = vrot.lane.b32.xlu0 %v35872_v25, %s39229_s28 }
 0x1c4   : > { %7407 = vmatprep.mubr.f32.mxu0 %v35533_v0  ;;  %v7529_v22 = vpop.permute.xlu1 %7528 }
 0x1c5   : > { %v7523_v14 = vpop.permute.xlu0 %7522  ;;  %33073 = vmatmul.mubr.msk.f32.vlgmr.msra.gmra.mrb[10].mxu0 %vm39261_vm1, %v35955_v53  ;;  %v7553_v29 = vsel %vm7550_vm13, %v7527_v61, %v7529_v22 }
 0x1c6   : > { %33075 = vmatpush1.msk.msra.mxu0 %vm39262_vm0, %v6956_v18  ;;  %9960 = vrot.lane.b32.xlu1 %v35918_v40, %s39229_s28  ;;  %v7551_v28 = vsel %vm7550_vm13, %v7523_v14, %v7525_v17  ;;  %v36218_v17 = vld [vmem:[%s34834_s13 + $0x20] sm:$0xff] }
 0x1c7   : > { %33078 = vmatprep.subr.msk.mxu0 %vm39262_vm0, %v7552_v19  ;;  %9958 = vrot.lane.b32.xlu0 %v35907_v34, %s39229_s28 }
 0x1c8   : > { %7478 = vmatprep.mubr.f32.mxu0 %v35533_v0  ;;  %v7533_v20 = vpop.permute.xlu1 %7532 }
 0x1c9   : > { %v7531_v23 = vpop.permute.xlu0 %7530  ;;  %33076 = vmatmul.mubr.msk.f32.vlgmr.msra.gmra.mrb[12].mxu0 %vm39261_vm1, %v35955_v53 }
 0x1ca   : > { %33079 = vmatpush1.msk.msra.mxu0 %vm39262_vm0, %v7551_v28  ;;  %9964 = vrot.lane.b32.xlu1 %v35936_v49, %s39229_s28  ;;  %v7554_v21 = vsel %vm7550_vm13, %v7529_v22, %v7531_v23  ;;  %v7555_v31 = vsel %vm7550_vm13, %v7531_v23, %v7533_v20  ;;  %v36236_v28 = vld [vmem:[%s34834_s13 + $0x28] sm:$0xff] }
 0x1cb   : > { %9962 = vrot.lane.b32.xlu0 %v35924_v43, %s39229_s28  ;;  %33081 = vmatprep.subr.msk.mxu0 %vm39262_vm0, %v7554_v21 }
 0x1cc   : > { %7659 = vmatprep.mubr.f32.mxu0 %v35533_v0  ;;  %v7537_v35 = vpop.permute.xlu1 %7536 }
 0x1cd   : > { %v7535_v26 = vpop.permute.xlu0 %7534  ;;  %33080 = vmatmul.mubr.msk.f32.vlgmr.msra.gmra.mrb[0].mxu0 %vm39261_vm1, %v36054_v24 }
 0x1ce   : > { %33082 = vmatpush1.msk.msra.mxu0 %vm39262_vm0, %v7553_v29  ;;  %9968 = vrot.lane.b32.xlu1 %v35959_v2, %s39229_s28  ;;  %v7556_v27 = vsel %vm7550_vm13, %v7533_v20, %v7535_v26  ;;  %v7557_v37 = vsel %vm7550_vm13, %v7535_v26, %v7537_v35  ;;  %v36230_v20 = vcombine.high %v36218_v17, %v36218_v17  ;;  %v36249_v29 = vld [vmem:[%s39215_s1 + $0x70] sm:$0xff] }
 0x1cf   : > { %9966 = vrot.lane.b32.xlu0 %v35942_v50, %s39229_s28  ;;  %33084 = vmatprep.subr.msk.mxu0 %vm39262_vm0, %v7556_v27  ;;  %v36253_v26 = vcombine.high %v36236_v28, %v36236_v28  ;;  %v36259_v27 = vld [vmem:[%s34834_s13 + $0x30] sm:$0xff] }
 0x1d0   : > { %7730 = vmatprep.mubr.f32.mxu0 %v35533_v0  ;;  %v7541_v36 = vpop.permute.xlu1 %7540 }
 0x1d1   : > { %v7539_v32 = vpop.permute.xlu0 %7538  ;;  %33083 = vmatmul.mubr.msk.f32.vlgmr.msra.gmra.mrb[2].mxu0 %vm39261_vm1, %v36054_v24 }
 0x1d2   : > { %33085 = vmatpush1.msk.msra.mxu0 %vm39262_vm0, %v7555_v31  ;;  %9972 = vrot.lane.b32.xlu1 %v35977_v56, %s39229_s28  ;;  %v7558_v47 = vsel %vm7550_vm13, %v7537_v35, %v7539_v32  ;;  %v7559_v45 = vsel %vm7550_vm13, %v7539_v32, %v7541_v36 }
 0x1d3   : > { %9970 = vrot.lane.b32.xlu0 %v35965_v3, %s39229_s28  ;;  %33087 = vmatprep.subr.msk.mxu0 %vm39262_vm0, %v7558_v47 }
 0x1d4   : > { %7801 = vmatprep.mubr.f32.mxu0 %v35533_v0  ;;  %v7545_v33 = vpop.permute.xlu1 %7544 }
 0x1d5   : > { %v7543_v38 = vpop.permute.xlu0 %7542  ;;  %33086 = vmatmul.mubr.msk.f32.vlgmr.msra.gmra.mrb[4].mxu0 %vm39261_vm1, %v36054_v24 }
 0x1d6   : > { %33088 = vmatpush1.msk.msra.mxu0 %vm39262_vm0, %v7557_v37  ;;  %9976 = vrot.lane.b32.xlu1 %v35995_v60, %s39229_s28  ;;  %v7560_v39 = vsel %vm7550_vm13, %v7541_v36, %v7543_v38  ;;  %v7561_v1 = vsel %vm7550_vm13, %v7543_v38, %v7545_v33  ;;  %v36277_v37 = vld [vmem:[%s34834_s13 + $0x38] sm:$0xff] }
 0x1d7   : > { %9974 = vrot.lane.b32.xlu0 %v35983_v57, %s39229_s28  ;;  %33090 = vmatprep.subr.msk.mxu0 %vm39262_vm0, %v7560_v39  ;;  %s39234_s28 = smov 96  }
 0x1d8   : > { %7872 = vmatprep.mubr.f32.mxu0 %v35533_v0  ;;  %v7549_v44 = vpop.permute.xlu1 %7548 }
 0x1d9   : > { %v7547_v46 = vpop.permute.xlu0 %7546  ;;  %33089 = vmatmul.mubr.msk.f32.vlgmr.msra.gmra.mrb[6].mxu0 %vm39261_vm1, %v36054_v24 }
 0x1da   : > { %33091 = vmatpush1.msk.msra.mxu0 %vm39262_vm0, %v7559_v45  ;;  %10561 = vrot.lane.b32.xlu1 %v35885_v41, %s39231_s12  ;;  %v7562_v48 = vsel %vm7550_vm13, %v7545_v33, %v7547_v46  ;;  %v36271_v33 = vcombine.high %v36259_v27, %v36259_v27 }
 0x1db   : > { %10559 = vrot.lane.b32.xlu0 %v35889_v30, %s39231_s12  ;;  %33093 = vmatprep.subr.msk.mxu0 %vm39262_vm0, %v7562_v48  ;;  %v7563_v30 = vsel %vm7550_vm13, %v7547_v46, %v7549_v44  ;;  %v36289_v46 = vcombine.high %v36277_v37, %v36277_v37 }
 0x1dc   : > { %7943 = vmatprep.mubr.f32.mxu0 %v35533_v0  ;;  %v8134_v51 = vpop.permute.xlu1 %8133 }
 0x1dd   : > { %v8132_v4 = vpop.permute.xlu0 %8131  ;;  %33092 = vmatmul.mubr.msk.f32.vlgmr.msra.gmra.mrb[8].mxu0 %vm39261_vm1, %v36054_v24 }
 0x1de   : > { %33094 = vmatpush1.msk.msra.mxu0 %vm39262_vm0, %v7561_v1  ;;  %10563 = vrot.lane.b32.xlu1 %v35898_v42, %s39231_s12  ;;  %v8159_v53 = vsel %vm39233_vm14, %v8132_v4, %v8134_v51 }
 0x1df   : > { %33096 = vmatprep.subr.msk.mxu0 %vm39262_vm0, %v7549_v44  ;;  %10557 = vrot.lane.b32.xlu0 %v35872_v25, %s39231_s12 }
 0x1e0   : > { %8014 = vmatprep.mubr.f32.mxu0 %v35533_v0  ;;  %v8136_v41 = vpop.permute.xlu1 %8135 }
 0x1e1   : > { %v8130_v52 = vpop.permute.xlu0 %8129  ;;  %33095 = vmatmul.mubr.msk.f32.vlgmr.msra.gmra.mrb[10].mxu0 %vm39261_vm1, %v36054_v24  ;;  %v8160_v5 = vsel %vm39233_vm14, %v8134_v51, %v8136_v41 }
 0x1e2   : > { %33097 = vmatpush1.msk.msra.mxu0 %vm39262_vm0, %v7563_v30  ;;  %10567 = vrot.lane.b32.xlu1 %v35918_v40, %s39231_s12  ;;  %v8158_v42 = vsel %vm39233_vm14, %v8130_v52, %v8132_v4 }
 0x1e3   : > { %33100 = vmatprep.subr.msk.mxu0 %vm39262_vm0, %v8159_v53  ;;  %10565 = vrot.lane.b32.xlu0 %v35907_v34, %s39231_s12  ;;  %v36135_v34 = vld [vmem:[%s39215_s1 + $0x68] sm:$0xff] }
 0x1e4   : > { %8085 = vmatprep.mubr.f32.mxu0 %v35533_v0  ;;  %v8140_v25 = vpop.permute.xlu1 %8139 }
 0x1e5   : > { %v8138_v54 = vpop.permute.xlu0 %8137  ;;  %33098 = vmatmul.mubr.msk.f32.vlgmr.msra.gmra.mrb[12].mxu0 %vm39261_vm1, %v36054_v24 }
 0x1e6   : > { %33101 = vmatpush1.msk.msra.mxu0 %vm39262_vm0, %v8158_v42  ;;  %10571 = vrot.lane.b32.xlu1 %v35936_v49, %s39231_s12  ;;  %v8161_v40 = vsel %vm39233_vm14, %v8136_v41, %v8138_v54  ;;  %v8162_v9 = vsel %vm39233_vm14, %v8138_v54, %v8140_v25 }
 0x1e7   : > { %10569 = vrot.lane.b32.xlu0 %v35924_v43, %s39231_s12  ;;  %33103 = vmatprep.subr.msk.mxu0 %vm39262_vm0, %v8161_v40 }
 0x1e8   : > { %8266 = vmatprep.mubr.f32.mxu0 %v35533_v0  ;;  %v8144_v55 = vpop.permute.xlu1 %8143  ;;  %v36151_v0 = vld [vmem:[#allocation2 + $0x68] sm:$0xff] }
 0x1e9   : > { %v8142_v7 = vpop.permute.xlu0 %8141  ;;  %33102 = vmatmul.mubr.msk.f32.vlgmr.msra.gmra.mrb[0].mxu0 %vm39261_vm1, %v36135_v34 }
 0x1ea   : > { %33104 = vmatpush1.msk.msra.mxu0 %vm39262_vm0, %v8160_v5  ;;  %10575 = vrot.lane.b32.xlu1 %v35959_v2, %s39231_s12  ;;  %v8163_v49 = vsel %vm39233_vm14, %v8140_v25, %v8142_v7  ;;  %v8164_v59 = vsel %vm39233_vm14, %v8142_v7, %v8144_v55 }
 0x1eb   : > { %10573 = vrot.lane.b32.xlu0 %v35942_v50, %s39231_s12  ;;  %33106 = vmatprep.subr.msk.mxu0 %vm39262_vm0, %v8163_v49 }
 0x1ec   : > { %8337 = vmatprep.mubr.f32.mxu0 %v36151_v0  ;;  %v8148_v43 = vpop.permute.xlu1 %8147 }
 0x1ed   : > { %v8146_v8 = vpop.permute.xlu0 %8145  ;;  %33105 = vmatmul.mubr.msk.f32.vlgmr.msra.gmra.mrb[2].mxu0 %vm39261_vm1, %v36135_v34 }
 0x1ee   : > { %33107 = vmatpush1.msk.msra.mxu0 %vm39262_vm0, %v8162_v9  ;;  %10579 = vrot.lane.b32.xlu1 %v35977_v56, %s39231_s12  ;;  %v8165_v50 = vsel %vm39233_vm14, %v8144_v55, %v8146_v8  ;;  %v36179_v56 = vld [vmem:[%s34834_s13 + $0x10] sm:$0xff]  ;;  %v8166_v63 = vsel %vm39233_vm14, %v8146_v8, %v8148_v43  ;;  %v36348_v8 = vld [vmem:[%s39215_s1 + $0x78] sm:$0xff] }
 0x1ef   : > { %10577 = vrot.lane.b32.xlu0 %v35965_v3, %s39231_s12  ;;  %33109 = vmatprep.subr.msk.mxu0 %vm39262_vm0, %v8165_v50 }
 0x1f0   : > { %8408 = vmatprep.mubr.f32.mxu0 %v36151_v0  ;;  %v8152_v2 = vpop.permute.xlu1 %8151 }
 0x1f1   : > { %v8150_v10 = vpop.permute.xlu0 %8149  ;;  %33108 = vmatmul.mubr.msk.f32.vlgmr.msra.gmra.mrb[4].mxu0 %vm39261_vm1, %v36135_v34 }
 0x1f2   : > { %33110 = vmatpush1.msk.msra.mxu0 %vm39262_vm0, %v8164_v59  ;;  %10583 = vrot.lane.b32.xlu1 %v35995_v60, %s39231_s12  ;;  %v8167_v3 = vsel %vm39233_vm14, %v8148_v43, %v8150_v10  ;;  %v8168_v16 = vsel %vm39233_vm14, %v8150_v10, %v8152_v2 }
 0x1f3   : > { %10581 = vrot.lane.b32.xlu0 %v35983_v57, %s39231_s12  ;;  %33112 = vmatprep.subr.msk.mxu0 %vm39262_vm0, %v8167_v3  ;;  %v36192_v57 = vcombine.high %v36179_v56, %v36179_v56  ;;  %s39237_s12 = smov 95  }
 0x1f4   : > { %8479 = vmatprep.mubr.f32.mxu0 %v36151_v0  ;;  %v8156_v62 = vpop.permute.xlu1 %8155 }
 0x1f5   : > { %v8154_v60 = vpop.permute.xlu0 %8153  ;;  %33111 = vmatmul.mubr.msk.f32.vlgmr.msra.gmra.mrb[6].mxu0 %vm39261_vm1, %v36135_v34 }
 0x1f6   : > { %33113 = vmatpush1.msk.msra.mxu0 %vm39262_vm0, %v8166_v63  ;;  %11168 = vrot.lane.b32.xlu1 %v36179_v56, %s39234_s28  ;;  %v8169_v12 = vsel %vm39233_vm14, %v8152_v2, %v8154_v60  ;;  %v8170_v18 = vsel %vm39233_vm14, %v8154_v60, %v8156_v62  ;;  %vm39239_vm14 = vcmask 719872  }
 0x1f7   : > { %11166 = vrot.lane.b32.xlu0 %v36183_v11, %s39234_s28  ;;  %33115 = vmatprep.subr.msk.mxu0 %vm39262_vm0, %v8169_v12 }
 0x1f8   : > { %8550 = vmatprep.mubr.f32.mxu0 %v36151_v0  ;;  %v8741_v6 = vpop.permute.xlu1 %8740 }
 0x1f9   : > { %v8739_v61 = vpop.permute.xlu0 %8738  ;;  %33114 = vmatmul.mubr.msk.f32.vlgmr.msra.gmra.mrb[8].mxu0 %vm39261_vm1, %v36135_v34 }
 0x1fa   : > { %33116 = vmatpush1.msk.msra.mxu0 %vm39262_vm0, %v8168_v16  ;;  %11170 = vrot.lane.b32.xlu1 %v36192_v57, %s39234_s28  ;;  %v8766_v19 = vsel %vm39236_vm15, %v8739_v61, %v8741_v6 }
 0x1fb   : > { %33118 = vmatprep.subr.msk.mxu0 %vm39262_vm0, %v8156_v62  ;;  %11164 = vrot.lane.b32.xlu0 %v36166_v58, %s39234_s28 }
 0x1fc   : > { %8621 = vmatprep.mubr.f32.mxu0 %v36151_v0  ;;  %v8743_v22 = vpop.permute.xlu1 %8742 }
 0x1fd   : > { %v8737_v14 = vpop.permute.xlu0 %8736  ;;  %33117 = vmatmul.mubr.msk.f32.vlgmr.msra.gmra.mrb[10].mxu0 %vm39261_vm1, %v36135_v34  ;;  %v8767_v31 = vsel %vm39236_vm15, %v8741_v6, %v8743_v22 }
 0x1fe   : > { %33119 = vmatpush1.msk.msra.mxu0 %vm39262_vm0, %v8170_v18  ;;  %11174 = vrot.lane.b32.xlu1 %v36212_v15, %s39234_s28  ;;  %v8765_v21 = vsel %vm39236_vm15, %v8737_v14, %v8739_v61 }
 0x1ff   : > { %33122 = vmatprep.subr.msk.mxu0 %vm39262_vm0, %v8766_v19  ;;  %11172 = vrot.lane.b32.xlu0 %v36201_v13, %s39234_s28 }
 0x200   : > { %8692 = vmatprep.mubr.f32.mxu0 %v36151_v0  ;;  %v8747_v23 = vpop.permute.xlu1 %8746 }
 0x201   : > { %v8745_v24 = vpop.permute.xlu0 %8744  ;;  %33120 = vmatmul.mubr.msk.f32.vlgmr.msra.gmra.mrb[12].mxu0 %vm39261_vm1, %v36135_v34 }
 0x202   : > { %33123 = vmatpush1.msk.msra.mxu0 %vm39262_vm0, %v8765_v21  ;;  %11178 = vrot.lane.b32.xlu1 %v36230_v20, %s39234_s28  ;;  %v8768_v35 = vsel %vm39236_vm15, %v8743_v22, %v8745_v24  ;;  %v8769_v39 = vsel %vm39236_vm15, %v8745_v24, %v8747_v23 }
 0x203   : > { %11176 = vrot.lane.b32.xlu0 %v36218_v17, %s39234_s28  ;;  %33125 = vmatprep.subr.msk.mxu0 %vm39262_vm0, %v8768_v35 }
 0x204   : > { %8873 = vmatprep.mubr.f32.mxu0 %v36151_v0  ;;  %v8751_v36 = vpop.permute.xlu1 %8750 }
 0x205   : > { %v8749_v32 = vpop.permute.xlu0 %8748  ;;  %33124 = vmatmul.mubr.msk.f32.vlgmr.msra.gmra.mrb[0].mxu0 %vm39261_vm1, %v36249_v29 }
 0x206   : > { %33126 = vmatpush1.msk.msra.mxu0 %vm39262_vm0, %v8767_v31  ;;  %11182 = vrot.lane.b32.xlu1 %v36253_v26, %s39234_s28  ;;  %v8770_v47 = vsel %vm39236_vm15, %v8747_v23, %v8749_v32  ;;  %v8771_v51 = vsel %vm39236_vm15, %v8749_v32, %v8751_v36 }
 0x207   : > { %11180 = vrot.lane.b32.xlu0 %v36236_v28, %s39234_s28  ;;  %33128 = vmatprep.subr.msk.mxu0 %vm39262_vm0, %v8770_v47 }
 0x208   : > { %8944 = vmatprep.mubr.f32.mxu0 %v36151_v0  ;;  %v8755_v38 = vpop.permute.xlu1 %8754 }
 0x209   : > { %v8753_v44 = vpop.permute.xlu0 %8752  ;;  %33127 = vmatmul.mubr.msk.f32.vlgmr.msra.gmra.mrb[2].mxu0 %vm39261_vm1, %v36249_v29 }
 0x20a   : > { %33129 = vmatpush1.msk.msra.mxu0 %vm39262_vm0, %v8769_v39  ;;  %11186 = vrot.lane.b32.xlu1 %v36271_v33, %s39234_s28  ;;  %v8772_v45 = vsel %vm39236_vm15, %v8751_v36, %v8753_v44  ;;  %v8773_v30 = vsel %vm39236_vm15, %v8753_v44, %v8755_v38  ;;  %v36429_v44 = vld [vmem:[%s39215_s1 + $0x80] sm:$0xff] }
 0x20b   : > { %11184 = vrot.lane.b32.xlu0 %v36259_v27, %s39234_s28  ;;  %33131 = vmatprep.subr.msk.mxu0 %vm39262_vm0, %v8772_v45 }
 0x20c   : > { %9015 = vmatprep.mubr.f32.mxu0 %v36151_v0  ;;  %v8759_v48 = vpop.permute.xlu1 %8758 }
 0x20d   : > { %v8757_v1 = vpop.permute.xlu0 %8756  ;;  %33130 = vmatmul.mubr.msk.f32.vlgmr.msra.gmra.mrb[4].mxu0 %vm39261_vm1, %v36249_v29 }
 0x20e   : > { %33132 = vmatpush1.msk.msra.mxu0 %vm39262_vm0, %v8771_v51  ;;  %11190 = vrot.lane.b32.xlu1 %v36289_v46, %s39234_s28  ;;  %v8774_v4 = vsel %vm39236_vm15, %v8755_v38, %v8757_v1  ;;  %v8775_v42 = vsel %vm39236_vm15, %v8757_v1, %v8759_v48 }
 0x20f   : > { %11188 = vrot.lane.b32.xlu0 %v36277_v37, %s39234_s28  ;;  %33134 = vmatprep.subr.msk.mxu0 %vm39262_vm0, %v8774_v4  ;;  %s39240_s28 = smov 94  }
 0x210   : > { %9086 = vmatprep.mubr.f32.mxu0 %v36151_v0  ;;  %v8763_v41 = vpop.permute.xlu1 %8762 }
 0x211   : > { %v8761_v52 = vpop.permute.xlu0 %8760  ;;  %33133 = vmatmul.mubr.msk.f32.vlgmr.msra.gmra.mrb[6].mxu0 %vm39261_vm1, %v36249_v29 }
 0x212   : > { %33135 = vmatpush1.msk.msra.mxu0 %vm39262_vm0, %v8773_v30  ;;  %11775 = vrot.lane.b32.xlu1 %v36179_v56, %s39237_s12  ;;  %v8776_v53 = vsel %vm39236_vm15, %v8759_v48, %v8761_v52  ;;  %v8777_v34 = vsel %vm39236_vm15, %v8761_v52, %v8763_v41  ;;  %vm39242_vm15 = vcmask 711680  }
 0x213   : > { %11773 = vrot.lane.b32.xlu0 %v36183_v11, %s39237_s12  ;;  %33137 = vmatprep.subr.msk.mxu0 %vm39262_vm0, %v8776_v53 }
 0x214   : > { %9157 = vmatprep.mubr.f32.mxu0 %v36151_v0  ;;  %v9348_v25 = vpop.permute.xlu1 %9347 }
 0x215   : > { %v9346_v54 = vpop.permute.xlu0 %9345  ;;  %33136 = vmatmul.mubr.msk.f32.vlgmr.msra.gmra.mrb[8].mxu0 %vm39261_vm1, %v36249_v29 }
 0x216   : > { %33138 = vmatpush1.msk.msra.mxu0 %vm39262_vm0, %v8775_v42  ;;  %11777 = vrot.lane.b32.xlu1 %v36192_v57, %s39237_s12  ;;  %v9373_v5 = vsel %vm39239_vm14, %v9346_v54, %v9348_v25 }
 0x217   : > { %33140 = vmatprep.subr.msk.mxu0 %vm39262_vm0, %v8763_v41  ;;  %11771 = vrot.lane.b32.xlu0 %v36166_v58, %s39237_s12 }
 0x218   : > { %9228 = vmatprep.mubr.f32.mxu0 %v36151_v0  ;;  %v9350_v40 = vpop.permute.xlu1 %9349 }
 0x219   : > { %v9344_v55 = vpop.permute.xlu0 %9343  ;;  %33139 = vmatmul.mubr.msk.f32.vlgmr.msra.gmra.mrb[10].mxu0 %vm39261_vm1, %v36249_v29  ;;  %v9374_v2 = vsel %vm39239_vm14, %v9348_v25, %v9350_v40 }
 0x21a   : > { %33141 = vmatpush1.msk.msra.mxu0 %vm39262_vm0, %v8777_v34  ;;  %11781 = vrot.lane.b32.xlu1 %v36212_v15, %s39237_s12  ;;  %v9372_v49 = vsel %vm39239_vm14, %v9344_v55, %v9346_v54 }
 0x21b   : > { %33144 = vmatprep.subr.msk.mxu0 %vm39262_vm0, %v9373_v5  ;;  %11779 = vrot.lane.b32.xlu0 %v36201_v13, %s39237_s12 }
 0x21c   : > { %9299 = vmatprep.mubr.f32.mxu0 %v36151_v0  ;;  %v9354_v7 = vpop.permute.xlu1 %9353 }
 0x21d   : > { %v9352_v43 = vpop.permute.xlu0 %9351  ;;  %33142 = vmatmul.mubr.msk.f32.vlgmr.msra.gmra.mrb[12].mxu0 %vm39261_vm1, %v36249_v29 }
 0x21e   : > { %33145 = vmatpush1.msk.msra.mxu0 %vm39262_vm0, %v9372_v49  ;;  %11785 = vrot.lane.b32.xlu1 %v36230_v20, %s39237_s12  ;;  %v9375_v9 = vsel %vm39239_vm14, %v9350_v40, %v9352_v43  ;;  %v9376_v62 = vsel %vm39239_vm14, %v9352_v43, %v9354_v7 }
 0x21f   : > { %11783 = vrot.lane.b32.xlu0 %v36218_v17, %s39237_s12  ;;  %33147 = vmatprep.subr.msk.mxu0 %vm39262_vm0, %v9375_v9 }
 0x220   : > { %9480 = vmatprep.mubr.f32.mxu0 %v36151_v0  ;;  %v9358_v50 = vpop.permute.xlu1 %9357 }
 0x221   : > { %v9356_v59 = vpop.permute.xlu0 %9355  ;;  %33146 = vmatmul.mubr.msk.f32.vlgmr.msra.gmra.mrb[0].mxu0 %vm39261_vm1, %v36348_v8 }
 0x222   : > { %33148 = vmatpush1.msk.msra.mxu0 %vm39262_vm0, %v9374_v2  ;;  %11789 = vrot.lane.b32.xlu1 %v36253_v26, %s39237_s12  ;;  %v9377_v10 = vsel %vm39239_vm14, %v9354_v7, %v9356_v59  ;;  %v9378_v6 = vsel %vm39239_vm14, %v9356_v59, %v9358_v50 }
 0x223   : > { %11787 = vrot.lane.b32.xlu0 %v36236_v28, %s39237_s12  ;;  %33150 = vmatprep.subr.msk.mxu0 %vm39262_vm0, %v9377_v10 }
 0x224   : > { %9551 = vmatprep.mubr.f32.mxu0 %v36151_v0  ;;  %v9362_v3 = vpop.permute.xlu1 %9361 }
 0x225   : > { %v9360_v63 = vpop.permute.xlu0 %9359  ;;  %33149 = vmatmul.mubr.msk.f32.vlgmr.msra.gmra.mrb[2].mxu0 %vm39261_vm1, %v36348_v8 }
 0x226   : > { %33151 = vmatpush1.msk.msra.mxu0 %vm39262_vm0, %v9376_v62  ;;  %11793 = vrot.lane.b32.xlu1 %v36271_v33, %s39237_s12  ;;  %v9379_v60 = vsel %vm39239_vm14, %v9358_v50, %v9360_v63  ;;  %v9380_v18 = vsel %vm39239_vm14, %v9360_v63, %v9362_v3  ;;  %v36510_v63 = vld [vmem:[%s39215_s1 + $0x88] sm:$0xff] }
 0x227   : > { %11791 = vrot.lane.b32.xlu0 %v36259_v27, %s39237_s12  ;;  %33153 = vmatprep.subr.msk.mxu0 %vm39262_vm0, %v9379_v60 }
 0x228   : > { %9622 = vmatprep.mubr.f32.mxu0 %v36151_v0  ;;  %v9366_v12 = vpop.permute.xlu1 %9365 }
 0x229   : > { %v9364_v16 = vpop.permute.xlu0 %9363  ;;  %33152 = vmatmul.mubr.msk.f32.vlgmr.msra.gmra.mrb[4].mxu0 %vm39261_vm1, %v36348_v8 }
 0x22a   : > { %33154 = vmatpush1.msk.msra.mxu0 %vm39262_vm0, %v9378_v6  ;;  %11797 = vrot.lane.b32.xlu1 %v36289_v46, %s39237_s12  ;;  %v9381_v61 = vsel %vm39239_vm14, %v9362_v3, %v9364_v16  ;;  %v9382_v21 = vsel %vm39239_vm14, %v9364_v16, %v9366_v12 }
 0x22b   : > { %11795 = vrot.lane.b32.xlu0 %v36277_v37, %s39237_s12  ;;  %33156 = vmatprep.subr.msk.mxu0 %vm39262_vm0, %v9381_v61  ;;  %s39243_s12 = smov 84  }
 0x22c   : > { %9693 = vmatprep.mubr.f32.mxu0 %v36151_v0  ;;  %v9370_v22 = vpop.permute.xlu1 %9369 }
 0x22d   : > { %v9368_v14 = vpop.permute.xlu0 %9367  ;;  %33155 = vmatmul.mubr.msk.f32.vlgmr.msra.gmra.mrb[6].mxu0 %vm39261_vm1, %v36348_v8 }
 0x22e   : > { %33157 = vmatpush1.msk.msra.mxu0 %vm39262_vm0, %v9380_v18  ;;  %12382 = vrot.lane.b32.xlu1 %v36179_v56, %s39240_s28  ;;  %v9383_v19 = vsel %vm39239_vm14, %v9366_v12, %v9368_v14  ;;  %v9384_v29 = vsel %vm39239_vm14, %v9368_v14, %v9370_v22  ;;  %vm39245_vm14 = vcmask 703488  }
 0x22f   : > { %12380 = vrot.lane.b32.xlu0 %v36183_v11, %s39240_s28  ;;  %33159 = vmatprep.subr.msk.mxu0 %vm39262_vm0, %v9383_v19 }
 0x230   : > { %9764 = vmatprep.mubr.f32.mxu0 %v36151_v0  ;;  %v9955_v23 = vpop.permute.xlu1 %9954 }
 0x231   : > { %v9953_v24 = vpop.permute.xlu0 %9952  ;;  %33158 = vmatmul.mubr.msk.f32.vlgmr.msra.gmra.mrb[8].mxu0 %vm39261_vm1, %v36348_v8 }
 0x232   : > { %33160 = vmatpush1.msk.msra.mxu0 %vm39262_vm0, %v9382_v21  ;;  %12384 = vrot.lane.b32.xlu1 %v36192_v57, %s39240_s28  ;;  %v9980_v31 = vsel %vm39242_vm15, %v9953_v24, %v9955_v23 }
 0x233   : > { %33162 = vmatprep.subr.msk.mxu0 %vm39262_vm0, %v9370_v22  ;;  %12378 = vrot.lane.b32.xlu0 %v36166_v58, %s39240_s28 }
 0x234   : > { %9835 = vmatprep.mubr.f32.mxu0 %v36151_v0  ;;  %v9957_v35 = vpop.permute.xlu1 %9956 }
 0x235   : > { %v9951_v36 = vpop.permute.xlu0 %9950  ;;  %33161 = vmatmul.mubr.msk.f32.vlgmr.msra.gmra.mrb[10].mxu0 %vm39261_vm1, %v36348_v8  ;;  %v9981_v48 = vsel %vm39242_vm15, %v9955_v23, %v9957_v35 }
 0x236   : > { %33163 = vmatpush1.msk.msra.mxu0 %vm39262_vm0, %v9384_v29  ;;  %12388 = vrot.lane.b32.xlu1 %v36212_v15, %s39240_s28  ;;  %v9979_v47 = vsel %vm39242_vm15, %v9951_v36, %v9953_v24 }
 0x237   : > { %33166 = vmatprep.subr.msk.mxu0 %vm39262_vm0, %v9980_v31  ;;  %12386 = vrot.lane.b32.xlu0 %v36201_v13, %s39240_s28 }
 0x238   : > { %9906 = vmatprep.mubr.f32.mxu0 %v36151_v0  ;;  %v9961_v32 = vpop.permute.xlu1 %9960 }
 0x239   : > { %v9959_v38 = vpop.permute.xlu0 %9958  ;;  %33164 = vmatmul.mubr.msk.f32.vlgmr.msra.gmra.mrb[12].mxu0 %vm39261_vm1, %v36348_v8 }
 0x23a   : > { %33167 = vmatpush1.msk.msra.mxu0 %vm39262_vm0, %v9979_v47  ;;  %12392 = vrot.lane.b32.xlu1 %v36230_v20, %s39240_s28  ;;  %v9982_v39 = vsel %vm39242_vm15, %v9957_v35, %v9959_v38  ;;  %v9983_v41 = vsel %vm39242_vm15, %v9959_v38, %v9961_v32 }
 0x23b   : > { %12390 = vrot.lane.b32.xlu0 %v36218_v17, %s39240_s28  ;;  %33169 = vmatprep.subr.msk.mxu0 %vm39262_vm0, %v9982_v39 }
 0x23c   : > { %10087 = vmatprep.mubr.f32.mxu0 %v36151_v0  ;;  %v9965_v45 = vpop.permute.xlu1 %9964 }
 0x23d   : > { %v9963_v51 = vpop.permute.xlu0 %9962  ;;  %33168 = vmatmul.mubr.msk.f32.vlgmr.msra.gmra.mrb[0].mxu0 %vm39261_vm1, %v36429_v44 }
 0x23e   : > { %33170 = vmatpush1.msk.msra.mxu0 %vm39262_vm0, %v9981_v48  ;;  %12396 = vrot.lane.b32.xlu1 %v36253_v26, %s39240_s28  ;;  %v9984_v1 = vsel %vm39242_vm15, %v9961_v32, %v9963_v51  ;;  %v9985_v25 = vsel %vm39242_vm15, %v9963_v51, %v9965_v45 }
 0x23f   : > { %12394 = vrot.lane.b32.xlu0 %v36236_v28, %s39240_s28  ;;  %33172 = vmatprep.subr.msk.mxu0 %vm39262_vm0, %v9984_v1 }
 0x240   : > { %10158 = vmatprep.mubr.f32.mxu0 %v36151_v0  ;;  %v9969_v4 = vpop.permute.xlu1 %9968 }
 0x241   : > { %v9967_v30 = vpop.permute.xlu0 %9966  ;;  %33171 = vmatmul.mubr.msk.f32.vlgmr.msra.gmra.mrb[2].mxu0 %vm39261_vm1, %v36429_v44 }
 0x242   : > { %33173 = vmatpush1.msk.msra.mxu0 %vm39262_vm0, %v9983_v41  ;;  %12400 = vrot.lane.b32.xlu1 %v36271_v33, %s39240_s28  ;;  %v9986_v52 = vsel %vm39242_vm15, %v9965_v45, %v9967_v30  ;;  %v9987_v34 = vsel %vm39242_vm15, %v9967_v30, %v9969_v4  ;;  %v36591_v30 = vld [vmem:[%s39215_s1 + $0x90] sm:$0xff] }
 0x243   : > { %12398 = vrot.lane.b32.xlu0 %v36259_v27, %s39240_s28  ;;  %33175 = vmatprep.subr.msk.mxu0 %vm39262_vm0, %v9986_v52 }
 0x244   : > { %10229 = vmatprep.mubr.f32.mxu0 %v36151_v0  ;;  %v9973_v53 = vpop.permute.xlu1 %9972 }
 0x245   : > { %v9971_v42 = vpop.permute.xlu0 %9970  ;;  %33174 = vmatmul.mubr.msk.f32.vlgmr.msra.gmra.mrb[4].mxu0 %vm39261_vm1, %v36429_v44 }
 0x246   : > { %33176 = vmatpush1.msk.msra.mxu0 %vm39262_vm0, %v9985_v25  ;;  %12404 = vrot.lane.b32.xlu1 %v36289_v46, %s39240_s28  ;;  %v9988_v54 = vsel %vm39242_vm15, %v9969_v4, %v9971_v42  ;;  %v9989_v49 = vsel %vm39242_vm15, %v9971_v42, %v9973_v53 }
 0x247   : > { %12402 = vrot.lane.b32.xlu0 %v36277_v37, %s39240_s28  ;;  %33178 = vmatprep.subr.msk.mxu0 %vm39262_vm0, %v9988_v54  ;;  %s39246_s28 = smov 83  }
 0x248   : > { %10300 = vmatprep.mubr.f32.mxu0 %v36151_v0  ;;  %v9977_v40 = vpop.permute.xlu1 %9976 }
 0x249   : > { %v9975_v55 = vpop.permute.xlu0 %9974  ;;  %33177 = vmatmul.mubr.msk.f32.vlgmr.msra.gmra.mrb[6].mxu0 %vm39261_vm1, %v36429_v44 }
 0x24a   : > { %33179 = vmatpush1.msk.msra.mxu0 %vm39262_vm0, %v9987_v34  ;;  %12989 = vrot.lane.b32.xlu1 %v36179_v56, %s39243_s12  ;;  %v9990_v5 = vsel %vm39242_vm15, %v9973_v53, %v9975_v55  ;;  %v9991_v8 = vsel %vm39242_vm15, %v9975_v55, %v9977_v40  ;;  %vm39248_vm15 = vcmask 785408  }
 0x24b   : > { %12987 = vrot.lane.b32.xlu0 %v36183_v11, %s39243_s12  ;;  %33181 = vmatprep.subr.msk.mxu0 %vm39262_vm0, %v9990_v5 }
 0x24c   : > { %10371 = vmatprep.mubr.f32.mxu0 %v36151_v0  ;;  %v10562_v7 = vpop.permute.xlu1 %10561 }
 0x24d   : > { %v10560_v43 = vpop.permute.xlu0 %10559  ;;  %33180 = vmatmul.mubr.msk.f32.vlgmr.msra.gmra.mrb[8].mxu0 %vm39261_vm1, %v36429_v44 }
 0x24e   : > { %33182 = vmatpush1.msk.msra.mxu0 %vm39262_vm0, %v9989_v49  ;;  %12991 = vrot.lane.b32.xlu1 %v36192_v57, %s39243_s12  ;;  %v10587_v2 = vsel %vm39245_vm14, %v10560_v43, %v10562_v7 }
 0x24f   : > { %33184 = vmatprep.subr.msk.mxu0 %vm39262_vm0, %v9977_v40  ;;  %12985 = vrot.lane.b32.xlu0 %v36166_v58, %s39243_s12 }
 0x250   : > { %10442 = vmatprep.mubr.f32.mxu0 %v36151_v0  ;;  %v10564_v9 = vpop.permute.xlu1 %10563 }
 0x251   : > { %v10558_v50 = vpop.permute.xlu0 %10557  ;;  %33183 = vmatmul.mubr.msk.f32.vlgmr.msra.gmra.mrb[10].mxu0 %vm39261_vm1, %v36429_v44  ;;  %v10588_v12 = vsel %vm39245_vm14, %v10562_v7, %v10564_v9 }
 0x252   : > { %33185 = vmatpush1.msk.msra.mxu0 %vm39262_vm0, %v9991_v8  ;;  %12995 = vrot.lane.b32.xlu1 %v36212_v15, %s39243_s12  ;;  %v10586_v10 = vsel %vm39245_vm14, %v10558_v50, %v10560_v43 }
 0x253   : > { %33188 = vmatprep.subr.msk.mxu0 %vm39262_vm0, %v10587_v2  ;;  %12993 = vrot.lane.b32.xlu0 %v36201_v13, %s39243_s12 }
 0x254   : > { %10513 = vmatprep.mubr.f32.mxu0 %v36151_v0  ;;  %v10568_v59 = vpop.permute.xlu1 %10567 }
 0x255   : > { %v10566_v3 = vpop.permute.xlu0 %10565  ;;  %33186 = vmatmul.mubr.msk.f32.vlgmr.msra.gmra.mrb[12].mxu0 %vm39261_vm1, %v36429_v44 }
 0x256   : > { %33189 = vmatpush1.msk.msra.mxu0 %vm39262_vm0, %v10586_v10  ;;  %12999 = vrot.lane.b32.xlu1 %v36230_v20, %s39243_s12  ;;  %v10589_v62 = vsel %vm39245_vm14, %v10564_v9, %v10566_v3  ;;  %v10590_v22 = vsel %vm39245_vm14, %v10566_v3, %v10568_v59 }
 0x257   : > { %12997 = vrot.lane.b32.xlu0 %v36218_v17, %s39243_s12  ;;  %33191 = vmatprep.subr.msk.mxu0 %vm39262_vm0, %v10589_v62 }
 0x258   : > { %10694 = vmatprep.mubr.f32.mxu0 %v36151_v0  ;;  %v10572_v60 = vpop.permute.xlu1 %10571 }
 0x259   : > { %v10570_v6 = vpop.permute.xlu0 %10569  ;;  %33190 = vmatmul.mubr.msk.f32.vlgmr.msra.gmra.mrb[0].mxu0 %vm39261_vm1, %v36510_v63 }
 0x25a   : > { %33192 = vmatpush1.msk.msra.mxu0 %vm39262_vm0, %v10588_v12  ;;  %13003 = vrot.lane.b32.xlu1 %v36253_v26, %s39243_s12  ;;  %v10591_v16 = vsel %vm39245_vm14, %v10568_v59, %v10570_v6  ;;  %v10592_v23 = vsel %vm39245_vm14, %v10570_v6, %v10572_v60 }
 0x25b   : > { %13001 = vrot.lane.b32.xlu0 %v36236_v28, %s39243_s12  ;;  %33194 = vmatprep.subr.msk.mxu0 %vm39262_vm0, %v10591_v16 }
 0x25c   : > { %10765 = vmatprep.mubr.f32.mxu0 %v36151_v0  ;;  %v10576_v61 = vpop.permute.xlu1 %10575 }
 0x25d   : > { %v10574_v18 = vpop.permute.xlu0 %10573  ;;  %33193 = vmatmul.mubr.msk.f32.vlgmr.msra.gmra.mrb[2].mxu0 %vm39261_vm1, %v36510_v63 }
 0x25e   : > { %33195 = vmatpush1.msk.msra.mxu0 %vm39262_vm0, %v10590_v22  ;;  %13007 = vrot.lane.b32.xlu1 %v36271_v33, %s39243_s12  ;;  %v10593_v14 = vsel %vm39245_vm14, %v10572_v60, %v10574_v18  ;;  %v10594_v29 = vsel %vm39245_vm14, %v10574_v18, %v10576_v61  ;;  %v36701_v18 = vld [vmem:[%s34834_s13 + $0x8] sm:$0xff] }
 0x25f   : > { %13005 = vrot.lane.b32.xlu0 %v36259_v27, %s39243_s12  ;;  %33197 = vmatprep.subr.msk.mxu0 %vm39262_vm0, %v10593_v14 }
 0x260   : > { %10836 = vmatprep.mubr.f32.mxu0 %v36151_v0  ;;  %v10580_v19 = vpop.permute.xlu1 %10579 }
 0x261   : > { %v10578_v21 = vpop.permute.xlu0 %10577  ;;  %33196 = vmatmul.mubr.msk.f32.vlgmr.msra.gmra.mrb[4].mxu0 %vm39261_vm1, %v36510_v63 }
 0x262   : > { %33198 = vmatpush1.msk.msra.mxu0 %vm39262_vm0, %v10592_v23  ;;  %13011 = vrot.lane.b32.xlu1 %v36289_v46, %s39243_s12  ;;  %v10595_v24 = vsel %vm39245_vm14, %v10576_v61, %v10578_v21  ;;  %v10596_v47 = vsel %vm39245_vm14, %v10578_v21, %v10580_v19  ;;  %v36718_v23 = vcombine.high %v36701_v18, %v36701_v18 }
 0x263   : > { %13009 = vrot.lane.b32.xlu0 %v36277_v37, %s39243_s12  ;;  %33200 = vmatprep.subr.msk.mxu0 %vm39262_vm0, %v10595_v24  ;;  %s39249_s12 = smov 82  }
 0x264   : > { %10907 = vmatprep.mubr.f32.mxu0 %v36151_v0  ;;  %v10584_v35 = vpop.permute.xlu1 %10583 }
 0x265   : > { %v10582_v36 = vpop.permute.xlu0 %10581  ;;  %33199 = vmatmul.mubr.msk.f32.vlgmr.msra.gmra.mrb[6].mxu0 %vm39261_vm1, %v36510_v63 }
 0x266   : > { %33201 = vmatpush1.msk.msra.mxu0 %vm39262_vm0, %v10594_v29  ;;  %13596 = vrot.lane.b32.xlu1 %v36179_v56, %s39246_s28  ;;  %v10597_v31 = vsel %vm39245_vm14, %v10580_v19, %v10582_v36  ;;  %v10598_v44 = vsel %vm39245_vm14, %v10582_v36, %v10584_v35  ;;  %vm39251_vm14 = vcmask 777216   ;;  %v36736_v29 = vld [vmem:[%s34834_s13 + $0x18] sm:$0xff] }
 0x267   : > { %13594 = vrot.lane.b32.xlu0 %v36183_v11, %s39246_s28  ;;  %33203 = vmatprep.subr.msk.mxu0 %vm39262_vm0, %v10597_v31 }
 0x268   : > { %10978 = vmatprep.mubr.f32.mxu0 %v36151_v0  ;;  %v11169_v32 = vpop.permute.xlu1 %11168 }
 0x269   : > { %v11167_v38 = vpop.permute.xlu0 %11166  ;;  %33202 = vmatmul.mubr.msk.f32.vlgmr.msra.gmra.mrb[8].mxu0 %vm39261_vm1, %v36510_v63 }
 0x26a   : > { %33204 = vmatpush1.msk.msra.mxu0 %vm39262_vm0, %v10596_v47  ;;  %13598 = vrot.lane.b32.xlu1 %v36192_v57, %s39246_s28  ;;  %v11194_v48 = vsel %vm39248_vm15, %v11167_v38, %v11169_v32  ;;  %v36747_v47 = vcombine.high %v36736_v29, %v36736_v29 }
 0x26b   : > { %33206 = vmatprep.subr.msk.mxu0 %vm39262_vm0, %v10584_v35  ;;  %13592 = vrot.lane.b32.xlu0 %v36166_v58, %s39246_s28 }
 0x26c   : > { %11049 = vmatprep.mubr.f32.mxu0 %v36151_v0  ;;  %v11171_v39 = vpop.permute.xlu1 %11170 }
 0x26d   : > { %v11165_v45 = vpop.permute.xlu0 %11164  ;;  %33205 = vmatmul.mubr.msk.f32.vlgmr.msra.gmra.mrb[10].mxu0 %vm39261_vm1, %v36510_v63  ;;  %v11195_v53 = vsel %vm39248_vm15, %v11169_v32, %v11171_v39 }
 0x26e   : > { %33207 = vmatpush1.msk.msra.mxu0 %vm39262_vm0, %v10598_v44  ;;  %13602 = vrot.lane.b32.xlu1 %v36212_v15, %s39246_s28  ;;  %v11193_v1 = vsel %vm39248_vm15, %v11165_v45, %v11167_v38  ;;  %v36753_v38 = vld [vmem:[%s34834_s13 + $0x20] sm:$0xff] }
 0x26f   : > { %33210 = vmatprep.subr.msk.mxu0 %vm39262_vm0, %v11194_v48  ;;  %13600 = vrot.lane.b32.xlu0 %v36201_v13, %s39246_s28 }
 0x270   : > { %11120 = vmatprep.mubr.f32.mxu0 %v36151_v0  ;;  %v11175_v51 = vpop.permute.xlu1 %11174 }
 0x271   : > { %v11173_v4 = vpop.permute.xlu0 %11172  ;;  %33208 = vmatmul.mubr.msk.f32.vlgmr.msra.gmra.mrb[12].mxu0 %vm39261_vm1, %v36510_v63 }
 0x272   : > { %33211 = vmatpush1.msk.msra.mxu0 %vm39262_vm0, %v11193_v1  ;;  %13606 = vrot.lane.b32.xlu1 %v36230_v20, %s39246_s28  ;;  %v11196_v41 = vsel %vm39248_vm15, %v11171_v39, %v11173_v4  ;;  %v11197_v40 = vsel %vm39248_vm15, %v11173_v4, %v11175_v51  ;;  %v36771_v1 = vld [vmem:[%s34834_s13 + $0x28] sm:$0xff] }
 0x273   : > { %13604 = vrot.lane.b32.xlu0 %v36218_v17, %s39246_s28  ;;  %33213 = vmatprep.subr.msk.mxu0 %vm39262_vm0, %v11196_v41 }
 0x274   : > { %11301 = vmatprep.mubr.f32.mxu0 %v36151_v0  ;;  %v11179_v52 = vpop.permute.xlu1 %11178 }
 0x275   : > { %v11177_v25 = vpop.permute.xlu0 %11176  ;;  %33212 = vmatmul.mubr.msk.f32.vlgmr.msra.gmra.mrb[0].mxu0 %vm39261_vm1, %v36591_v30 }
 0x276   : > { %33214 = vmatpush1.msk.msra.mxu0 %vm39262_vm0, %v11195_v53  ;;  %13610 = vrot.lane.b32.xlu1 %v36253_v26, %s39246_s28  ;;  %v11198_v42 = vsel %vm39248_vm15, %v11175_v51, %v11177_v25  ;;  %v11199_v7 = vsel %vm39248_vm15, %v11177_v25, %v11179_v52  ;;  %v36765_v51 = vcombine.high %v36753_v38, %v36753_v38  ;;  %v36784_v53 = vld [vmem:[%s39215_s1 + $0xa0] sm:$0xff]  ;;  %v36794_v25 = vld [vmem:[%s34834_s13 + $0x30] sm:$0xff] }
 0x277   : > { %13608 = vrot.lane.b32.xlu0 %v36236_v28, %s39246_s28  ;;  %33216 = vmatprep.subr.msk.mxu0 %vm39262_vm0, %v11198_v42  ;;  %v36796_v42 = vld [vmem:[#allocation2 + $0x68] sm:$0xff] }
 0x278   : > { %11372 = vmatprep.mubr.f32.mxu0 %v36151_v0  ;;  %v11183_v54 = vpop.permute.xlu1 %11182 }
 0x279   : > { %v11181_v34 = vpop.permute.xlu0 %11180  ;;  %33215 = vmatmul.mubr.msk.f32.vlgmr.msra.gmra.mrb[2].mxu0 %vm39261_vm1, %v36591_v30 }
 0x27a   : > { %33217 = vmatpush1.msk.msra.mxu0 %vm39262_vm0, %v11197_v40  ;;  %13614 = vrot.lane.b32.xlu1 %v36271_v33, %s39246_s28  ;;  %v11200_v55 = vsel %vm39248_vm15, %v11179_v52, %v11181_v34  ;;  %v11201_v8 = vsel %vm39248_vm15, %v11181_v34, %v11183_v54 }
 0x27b   : > { %13612 = vrot.lane.b32.xlu0 %v36259_v27, %s39246_s28  ;;  %33219 = vmatprep.subr.msk.mxu0 %vm39262_vm0, %v11200_v55 }
 0x27c   : > { %11443 = vmatprep.mubr.f32.mxu0 %v36151_v0  ;;  %v11187_v5 = vpop.permute.xlu1 %11186 }
 0x27d   : > { %v11185_v49 = vpop.permute.xlu0 %11184  ;;  %33218 = vmatmul.mubr.msk.f32.vlgmr.msra.gmra.mrb[4].mxu0 %vm39261_vm1, %v36591_v30 }
 0x27e   : > { %33220 = vmatpush1.msk.msra.mxu0 %vm39262_vm0, %v11199_v7  ;;  %13618 = vrot.lane.b32.xlu1 %v36289_v46, %s39246_s28  ;;  %v11202_v43 = vsel %vm39248_vm15, %v11183_v54, %v11185_v49  ;;  %v11203_v10 = vsel %vm39248_vm15, %v11185_v49, %v11187_v5  ;;  %v36814_v7 = vld [vmem:[%s34834_s13 + $0x38] sm:$0xff] }
 0x27f   : > { %13616 = vrot.lane.b32.xlu0 %v36277_v37, %s39246_s28  ;;  %33222 = vmatprep.subr.msk.mxu0 %vm39262_vm0, %v11202_v43  ;;  %s39252_s28 = smov 72  }
 0x280   : > { %11514 = vmatprep.mubr.f32.mxu0 %v36151_v0  ;;  %v11191_v9 = vpop.permute.xlu1 %11190 }
 0x281   : > { %v11189_v50 = vpop.permute.xlu0 %11188  ;;  %33221 = vmatmul.mubr.msk.f32.vlgmr.msra.gmra.mrb[6].mxu0 %vm39261_vm1, %v36591_v30 }
 0x282   : > { %33223 = vmatpush1.msk.msra.mxu0 %vm39262_vm0, %v11201_v8  ;;  %14203 = vrot.lane.b32.xlu1 %v36179_v56, %s39249_s12  ;;  %v11204_v2 = vsel %vm39248_vm15, %v11187_v5, %v11189_v50  ;;  %v36808_v5 = vcombine.high %v36794_v25, %v36794_v25 }
 0x283   : > { %14201 = vrot.lane.b32.xlu0 %v36183_v11, %s39249_s12  ;;  %33225 = vmatprep.subr.msk.mxu0 %vm39262_vm0, %v11204_v2  ;;  %v11205_v11 = vsel %vm39248_vm15, %v11189_v50, %v11191_v9  ;;  %vm39254_vm15 = vcmask 769024   ;;  %v36826_v50 = vcombine.high %v36814_v7, %v36814_v7 }
 0x284   : > { %11585 = vmatprep.mubr.f32.mxu0 %v36151_v0  ;;  %v11776_v59 = vpop.permute.xlu1 %11775 }
 0x285   : > { %v11774_v3 = vpop.permute.xlu0 %11773  ;;  %33224 = vmatmul.mubr.msk.f32.vlgmr.msra.gmra.mrb[8].mxu0 %vm39261_vm1, %v36591_v30 }
 0x286   : > { %33226 = vmatpush1.msk.msra.mxu0 %vm39262_vm0, %v11203_v10  ;;  %14205 = vrot.lane.b32.xlu1 %v36192_v57, %s39249_s12  ;;  %v11801_v63 = vsel %vm39251_vm14, %v11774_v3, %v11776_v59 }
 0x287   : > { %33228 = vmatprep.subr.msk.mxu0 %vm39262_vm0, %v11191_v9  ;;  %14199 = vrot.lane.b32.xlu0 %v36166_v58, %s39249_s12 }
 0x288   : > { %11656 = vmatprep.mubr.f32.mxu0 %v36151_v0  ;;  %v11778_v56 = vpop.permute.xlu1 %11777 }
 0x289   : > { %v11772_v62 = vpop.permute.xlu0 %11771  ;;  %33227 = vmatmul.mubr.msk.f32.vlgmr.msra.gmra.mrb[10].mxu0 %vm39261_vm1, %v36591_v30  ;;  %v11802_v6 = vsel %vm39251_vm14, %v11776_v59, %v11778_v56 }
 0x28a   : > { %33229 = vmatpush1.msk.msra.mxu0 %vm39262_vm0, %v11205_v11  ;;  %14209 = vrot.lane.b32.xlu1 %v36212_v15, %s39249_s12  ;;  %v11800_v57 = vsel %vm39251_vm14, %v11772_v62, %v11774_v3 }
 0x28b   : > { %33232 = vmatprep.subr.msk.mxu0 %vm39262_vm0, %v11801_v63  ;;  %14207 = vrot.lane.b32.xlu0 %v36201_v13, %s39249_s12  ;;  %v36672_v13 = vld [vmem:[%s39215_s1 + $0x98] sm:$0xff] }
 0x28c   : > { %11727 = vmatprep.mubr.f32.mxu0 %v36151_v0  ;;  %v11782_v58 = vpop.permute.xlu1 %11781 }
 0x28d   : > { %v11780_v60 = vpop.permute.xlu0 %11779  ;;  %33230 = vmatmul.mubr.msk.f32.vlgmr.msra.gmra.mrb[12].mxu0 %vm39261_vm1, %v36591_v30 }
 0x28e   : > { %33233 = vmatpush1.msk.msra.mxu0 %vm39262_vm0, %v11800_v57  ;;  %14213 = vrot.lane.b32.xlu1 %v36230_v20, %s39249_s12  ;;  %v11803_v15 = vsel %vm39251_vm14, %v11778_v56, %v11780_v60  ;;  %v11804_v61 = vsel %vm39251_vm14, %v11780_v60, %v11782_v58 }
 0x28f   : > { %14211 = vrot.lane.b32.xlu0 %v36218_v17, %s39249_s12  ;;  %33235 = vmatprep.subr.msk.mxu0 %vm39262_vm0, %v11803_v15 }
 0x290   : > { %11908 = vmatprep.mubr.f32.mxu0 %v36151_v0  ;;  %v11786_v12 = vpop.permute.xlu1 %11785 }
 0x291   : > { %v11784_v16 = vpop.permute.xlu0 %11783  ;;  %33234 = vmatmul.mubr.msk.f32.vlgmr.msra.gmra.mrb[0].mxu0 %vm39261_vm1, %v36672_v13 }
 0x292   : > { %33236 = vmatpush1.msk.msra.mxu0 %vm39262_vm0, %v11802_v6  ;;  %14217 = vrot.lane.b32.xlu1 %v36253_v26, %s39249_s12  ;;  %v11805_v20 = vsel %vm39251_vm14, %v11782_v58, %v11784_v16  ;;  %v11806_v14 = vsel %vm39251_vm14, %v11784_v16, %v11786_v12 }
 0x293   : > { %14215 = vrot.lane.b32.xlu0 %v36236_v28, %s39249_s12  ;;  %33238 = vmatprep.subr.msk.mxu0 %vm39262_vm0, %v11805_v20 }
 0x294   : > { %11979 = vmatprep.mubr.f32.mxu0 %v36151_v0  ;;  %v11790_v17 = vpop.permute.xlu1 %11789 }
 0x295   : > { %v11788_v22 = vpop.permute.xlu0 %11787  ;;  %33237 = vmatmul.mubr.msk.f32.vlgmr.msra.gmra.mrb[2].mxu0 %vm39261_vm1, %v36672_v13 }
 0x296   : > { %33239 = vmatpush1.msk.msra.mxu0 %vm39262_vm0, %v11804_v61  ;;  %14221 = vrot.lane.b32.xlu1 %v36271_v33, %s39249_s12  ;;  %v11807_v26 = vsel %vm39251_vm14, %v11786_v12, %v11788_v22  ;;  %v36714_v33 = vld [vmem:[%s34834_s13 + $0x10] sm:$0xff]  ;;  %v11808_v24 = vsel %vm39251_vm14, %v11788_v22, %v11790_v17  ;;  %v36885_v22 = vld [vmem:[%s39215_s1 + $0xa8] sm:$0xff] }
 0x297   : > { %14219 = vrot.lane.b32.xlu0 %v36259_v27, %s39249_s12  ;;  %33241 = vmatprep.subr.msk.mxu0 %vm39262_vm0, %v11807_v26 }
 0x298   : > { %12050 = vmatprep.mubr.f32.mxu0 %v36151_v0  ;;  %v11794_v28 = vpop.permute.xlu1 %11793 }
 0x299   : > { %v11792_v19 = vpop.permute.xlu0 %11791  ;;  %33240 = vmatmul.mubr.msk.f32.vlgmr.msra.gmra.mrb[4].mxu0 %vm39261_vm1, %v36672_v13 }
 0x29a   : > { %33242 = vmatpush1.msk.msra.mxu0 %vm39262_vm0, %v11806_v14  ;;  %14225 = vrot.lane.b32.xlu1 %v36289_v46, %s39249_s12  ;;  %v11809_v27 = vsel %vm39251_vm14, %v11790_v17, %v11792_v19  ;;  %v11810_v31 = vsel %vm39251_vm14, %v11792_v19, %v11794_v28 }
 0x29b   : > { %14223 = vrot.lane.b32.xlu0 %v36277_v37, %s39249_s12  ;;  %33244 = vmatprep.subr.msk.mxu0 %vm39262_vm0, %v11809_v27  ;;  %v36727_v37 = vcombine.high %v36714_v33, %v36714_v33  ;;  %s39255_s12 = smov 71  }
 0x29c   : > { %12121 = vmatprep.mubr.f32.mxu0 %v36151_v0  ;;  %v11798_v21 = vpop.permute.xlu1 %11797 }
 0x29d   : > { %v11796_v46 = vpop.permute.xlu0 %11795  ;;  %33243 = vmatmul.mubr.msk.f32.vlgmr.msra.gmra.mrb[6].mxu0 %vm39261_vm1, %v36672_v13 }
 0x29e   : > { %33245 = vmatpush1.msk.msra.mxu0 %vm39262_vm0, %v11808_v24  ;;  %14810 = vrot.lane.b32.xlu1 %v36714_v33, %s39252_s28  ;;  %v11811_v35 = vsel %vm39251_vm14, %v11794_v28, %v11796_v46  ;;  %v11812_v44 = vsel %vm39251_vm14, %v11796_v46, %v11798_v21  ;;  %vm39257_vm14 = vcmask 687104  }
 0x29f   : > { %14808 = vrot.lane.b32.xlu0 %v36718_v23, %s39252_s28  ;;  %33247 = vmatprep.subr.msk.mxu0 %vm39262_vm0, %v11811_v35 }
 0x2a0   : > { %12192 = vmatprep.mubr.f32.mxu0 %v36151_v0  ;;  %v12383_v36 = vpop.permute.xlu1 %12382 }
 0x2a1   : > { %v12381_v32 = vpop.permute.xlu0 %12380  ;;  %33246 = vmatmul.mubr.msk.f32.vlgmr.msra.gmra.mrb[8].mxu0 %vm39261_vm1, %v36672_v13 }
 0x2a2   : > { %33248 = vmatpush1.msk.msra.mxu0 %vm39262_vm0, %v11810_v31  ;;  %14812 = vrot.lane.b32.xlu1 %v36727_v37, %s39252_s28  ;;  %v12408_v48 = vsel %vm39254_vm15, %v12381_v32, %v12383_v36 }
 0x2a3   : > { %33250 = vmatprep.subr.msk.mxu0 %vm39262_vm0, %v11798_v21  ;;  %14806 = vrot.lane.b32.xlu0 %v36701_v18, %s39252_s28 }
 0x2a4   : > { %12263 = vmatprep.mubr.f32.mxu0 %v36151_v0  ;;  %v12385_v39 = vpop.permute.xlu1 %12384 }
 0x2a5   : > { %v12379_v45 = vpop.permute.xlu0 %12378  ;;  %33249 = vmatmul.mubr.msk.f32.vlgmr.msra.gmra.mrb[10].mxu0 %vm39261_vm1, %v36672_v13  ;;  %v12409_v40 = vsel %vm39254_vm15, %v12383_v36, %v12385_v39 }
 0x2a6   : > { %33251 = vmatpush1.msk.msra.mxu0 %vm39262_vm0, %v11812_v44  ;;  %14816 = vrot.lane.b32.xlu1 %v36747_v47, %s39252_s28  ;;  %v12407_v41 = vsel %vm39254_vm15, %v12379_v45, %v12381_v32 }
 0x2a7   : > { %33254 = vmatprep.subr.msk.mxu0 %vm39262_vm0, %v12408_v48  ;;  %14814 = vrot.lane.b32.xlu0 %v36736_v29, %s39252_s28 }
 0x2a8   : > { %12334 = vmatprep.mubr.f32.mxu0 %v36151_v0  ;;  %v12389_v4 = vpop.permute.xlu1 %12388  ;;  %v36788_v0 = vcombine.high %v36771_v1, %v36771_v1 }
 0x2a9   : > { %v12387_v30 = vpop.permute.xlu0 %12386  ;;  %33252 = vmatmul.mubr.msk.f32.vlgmr.msra.gmra.mrb[12].mxu0 %vm39261_vm1, %v36672_v13 }
 0x2aa   : > { %33255 = vmatpush1.msk.msra.mxu0 %vm39262_vm0, %v12407_v41  ;;  %14820 = vrot.lane.b32.xlu1 %v36765_v51, %s39252_s28  ;;  %v12410_v52 = vsel %vm39254_vm15, %v12385_v39, %v12387_v30  ;;  %v12411_v43 = vsel %vm39254_vm15, %v12387_v30, %v12389_v4 }
 0x2ab   : > { %14818 = vrot.lane.b32.xlu0 %v36753_v38, %s39252_s28  ;;  %33257 = vmatprep.subr.msk.mxu0 %vm39262_vm0, %v12410_v52 }
 0x2ac   : > { %12515 = vmatprep.mubr.f32.mxu0 %v36796_v42  ;;  %v12393_v54 = vpop.permute.xlu1 %12392 }
 0x2ad   : > { %v12391_v34 = vpop.permute.xlu0 %12390  ;;  %33256 = vmatmul.mubr.msk.f32.vlgmr.msra.gmra.mrb[0].mxu0 %vm39261_vm1, %v36784_v53 }
 0x2ae   : > { %33258 = vmatpush1.msk.msra.mxu0 %vm39262_vm0, %v12409_v40  ;;  %14824 = vrot.lane.b32.xlu1 %v36788_v0, %s39252_s28  ;;  %v12412_v55 = vsel %vm39254_vm15, %v12389_v4, %v12391_v34  ;;  %v12413_v59 = vsel %vm39254_vm15, %v12391_v34, %v12393_v54 }
 0x2af   : > { %14822 = vrot.lane.b32.xlu0 %v36771_v1, %s39252_s28  ;;  %33260 = vmatprep.subr.msk.mxu0 %vm39262_vm0, %v12412_v55 }
 0x2b0   : > { %12586 = vmatprep.mubr.f32.mxu0 %v36796_v42  ;;  %v12397_v49 = vpop.permute.xlu1 %12396 }
 0x2b1   : > { %v12395_v9 = vpop.permute.xlu0 %12394  ;;  %33259 = vmatmul.mubr.msk.f32.vlgmr.msra.gmra.mrb[2].mxu0 %vm39261_vm1, %v36784_v53 }
 0x2b2   : > { %33261 = vmatpush1.msk.msra.mxu0 %vm39262_vm0, %v12411_v43  ;;  %14828 = vrot.lane.b32.xlu1 %v36808_v5, %s39252_s28  ;;  %v12414_v8 = vsel %vm39254_vm15, %v12393_v54, %v12395_v9  ;;  %v12415_v11 = vsel %vm39254_vm15, %v12395_v9, %v12397_v49 }
 0x2b3   : > { %14826 = vrot.lane.b32.xlu0 %v36794_v25, %s39252_s28  ;;  %33263 = vmatprep.subr.msk.mxu0 %vm39262_vm0, %v12414_v8 }
 0x2b4   : > { %12657 = vmatprep.mubr.f32.mxu0 %v36796_v42  ;;  %v12401_v2 = vpop.permute.xlu1 %12400 }
 0x2b5   : > { %v12399_v10 = vpop.permute.xlu0 %12398  ;;  %33262 = vmatmul.mubr.msk.f32.vlgmr.msra.gmra.mrb[4].mxu0 %vm39261_vm1, %v36784_v53 }
 0x2b6   : > { %33264 = vmatpush1.msk.msra.mxu0 %vm39262_vm0, %v12413_v59  ;;  %14832 = vrot.lane.b32.xlu1 %v36826_v50, %s39252_s28  ;;  %v12416_v3 = vsel %vm39254_vm15, %v12397_v49, %v12399_v10  ;;  %v12417_v57 = vsel %vm39254_vm15, %v12399_v10, %v12401_v2  ;;  %v34740_v49 = vmov 0  }
 0x2b7   : > { %14830 = vrot.lane.b32.xlu0 %v36814_v7, %s39252_s28  ;;  %33266 = vmatprep.subr.msk.mxu0 %vm39262_vm0, %v12416_v3  ;;  %s34739_s28 = smov 70  }
 0x2b8   : > { %12728 = vmatprep.mubr.f32.mxu0 %v36796_v42  ;;  %v12405_v56 = vpop.permute.xlu1 %12404  ;;  %34472 = vset.pattern.permute.xlu0 %v34740_v49 }
 0x2b9   : > { %v12403_v62 = vpop.permute.xlu0 %12402  ;;  %33265 = vmatmul.mubr.msk.f32.vlgmr.msra.gmra.mrb[6].mxu0 %vm39261_vm1, %v36784_v53  ;;  %34518 = vset.pattern.permute.xlu1 %v34740_v49 }
 0x2ba   : > { %33267 = vmatpush1.msk.msra.mxu0 %vm39262_vm0, %v12415_v11  ;;  %15417 = vrot.lane.b32.xlu1 %v36714_v33, %s39255_s12  ;;  %v12418_v63 = vsel %vm39254_vm15, %v12401_v2, %v12403_v62  ;;  %v12419_v13 = vsel %vm39254_vm15, %v12403_v62, %v12405_v56  ;;  %vm39258_vm15 = vcmask 678912  }
 0x2bb   : > { %15415 = vrot.lane.b32.xlu0 %v36718_v23, %s39255_s12  ;;  %33269 = vmatprep.subr.msk.mxu0 %vm39262_vm0, %v12418_v63 }
 0x2bc   : > { %12799 = vmatprep.mubr.f32.mxu0 %v36796_v42  ;;  %v12990_v58 = vpop.permute.xlu1 %12989 }
 0x2bd   : > { %v12988_v60 = vpop.permute.xlu0 %12987  ;;  %33268 = vmatmul.mubr.msk.f32.vlgmr.msra.gmra.mrb[8].mxu0 %vm39261_vm1, %v36784_v53 }
 0x2be   : > { %33270 = vmatpush1.msk.msra.mxu0 %vm39262_vm0, %v12417_v57  ;;  %15419 = vrot.lane.b32.xlu1 %v36727_v37, %s39255_s12  ;;  %v13015_v6 = vsel %vm39257_vm14, %v12988_v60, %v12990_v58 }
 0x2bf   : > { %33272 = vmatprep.subr.msk.mxu0 %vm39262_vm0, %v12405_v56  ;;  %15413 = vrot.lane.b32.xlu0 %v36701_v18, %s39255_s12 }
 0x2c0   : > { %12870 = vmatprep.mubr.f32.mxu0 %v36796_v42  ;;  %v12992_v15 = vpop.permute.xlu1 %12991 }
 0x2c1   : > { %v12986_v12 = vpop.permute.xlu0 %12985  ;;  %33271 = vmatmul.mubr.msk.f32.vlgmr.msra.gmra.mrb[10].mxu0 %vm39261_vm1, %v36784_v53  ;;  %v13016_v28 = vsel %vm39257_vm14, %v12990_v58, %v12992_v15 }
 0x2c2   : > { %33273 = vmatpush1.msk.msra.mxu0 %vm39262_vm0, %v12419_v13  ;;  %15423 = vrot.lane.b32.xlu1 %v36747_v47, %s39255_s12  ;;  %v13014_v20 = vsel %vm39257_vm14, %v12986_v12, %v12988_v60 }
 0x2c3   : > { %33276 = vmatprep.subr.msk.mxu0 %vm39262_vm0, %v13015_v6  ;;  %15421 = vrot.lane.b32.xlu0 %v36736_v29, %s39255_s12  ;;  %v33319_v6 = vld [vmem:[%s39215_s1 + $0xb8] sm:$0xff] }
 0x2c4   : > { %12941 = vmatprep.mubr.f32.mxu0 %v36796_v42  ;;  %v12996_v16 = vpop.permute.xlu1 %12995 }
 0x2c5   : > { %v12994_v17 = vpop.permute.xlu0 %12993  ;;  %33274 = vmatmul.mubr.msk.f32.vlgmr.msra.gmra.mrb[12].mxu0 %vm39261_vm1, %v36784_v53 }
 0x2c6   : > { %33277 = vmatpush1.msk.msra.mxu0 %vm39262_vm0, %v13014_v20  ;;  %15427 = vrot.lane.b32.xlu1 %v36765_v51, %s39255_s12  ;;  %v13017_v61 = vsel %vm39257_vm14, %v12992_v15, %v12994_v17  ;;  %v13018_v21 = vsel %vm39257_vm14, %v12994_v17, %v12996_v16 }
 0x2c7   : > { %15425 = vrot.lane.b32.xlu0 %v36753_v38, %s39255_s12  ;;  %33279 = vmatprep.subr.msk.mxu0 %vm39262_vm0, %v13017_v61 }
 0x2c8   : > { %13122 = vmatprep.mubr.f32.mxu0 %v36796_v42  ;;  %v13000_v26 = vpop.permute.xlu1 %12999 }
 0x2c9   : > { %v12998_v14 = vpop.permute.xlu0 %12997  ;;  %33278 = vmatmul.mubr.msk.f32.vlgmr.msra.gmra.mrb[0].mxu0 %vm39261_vm1, %v36885_v22 }
 0x2ca   : > { %33280 = vmatpush1.msk.msra.mxu0 %vm39262_vm0, %v13016_v28  ;;  %15431 = vrot.lane.b32.xlu1 %v36788_v0, %s39255_s12  ;;  %v13019_v19 = vsel %vm39257_vm14, %v12996_v16, %v12998_v14  ;;  %v13020_v36 = vsel %vm39257_vm14, %v12998_v14, %v13000_v26 }
 0x2cb   : > { %15429 = vrot.lane.b32.xlu0 %v36771_v1, %s39255_s12  ;;  %33282 = vmatprep.subr.msk.mxu0 %vm39262_vm0, %v13019_v19 }
 0x2cc   : > { %13193 = vmatprep.mubr.f32.mxu0 %v36796_v42  ;;  %v13004_v27 = vpop.permute.xlu1 %13003 }
 0x2cd   : > { %v13002_v24 = vpop.permute.xlu0 %13001  ;;  %33281 = vmatmul.mubr.msk.f32.vlgmr.msra.gmra.mrb[2].mxu0 %vm39261_vm1, %v36885_v22 }
 0x2ce   : > { %33283 = vmatpush1.msk.msra.mxu0 %vm39262_vm0, %v13018_v21  ;;  %15435 = vrot.lane.b32.xlu1 %v36808_v5, %s39255_s12  ;;  %v13021_v46 = vsel %vm39257_vm14, %v13000_v26, %v13002_v24  ;;  %v13022_v44 = vsel %vm39257_vm14, %v13002_v24, %v13004_v27 }
 0x2cf   : > { %15433 = vrot.lane.b32.xlu0 %v36794_v25, %s39255_s12  ;;  %33285 = vmatprep.subr.msk.mxu0 %vm39262_vm0, %v13021_v46 }
 0x2d0   : > { %13264 = vmatprep.mubr.f32.mxu0 %v36796_v42  ;;  %v13008_v35 = vpop.permute.xlu1 %13007 }
 0x2d1   : > { %v13006_v31 = vpop.permute.xlu0 %13005  ;;  %33284 = vmatmul.mubr.msk.f32.vlgmr.msra.gmra.mrb[4].mxu0 %vm39261_vm1, %v36885_v22 }
 0x2d2   : > { %33286 = vmatpush1.msk.msra.mxu0 %vm39262_vm0, %v13020_v36  ;;  %15439 = vrot.lane.b32.xlu1 %v36826_v50, %s39255_s12  ;;  %v13023_v32 = vsel %vm39257_vm14, %v13004_v27, %v13006_v31  ;;  %v13024_v41 = vsel %vm39257_vm14, %v13006_v31, %v13008_v35 }
 0x2d3   : > { %15437 = vrot.lane.b32.xlu0 %v36814_v7, %s39255_s12  ;;  %33288 = vmatprep.subr.msk.mxu0 %vm39262_vm0, %v13023_v32  ;;  %s39267_s12 = smov 98  }
 0x2d4   : > { %13335 = vmatprep.mubr.f32.mxu0 %v36796_v42  ;;  %v13012_v39 = vpop.permute.xlu1 %13011 }
 0x2d5   : > { %v13010_v45 = vpop.permute.xlu0 %13009  ;;  %33287 = vmatmul.mubr.msk.f32.vlgmr.msra.gmra.mrb[6].mxu0 %vm39261_vm1, %v36885_v22 }
 0x2d6   : > { %33289 = vmatpush1.msk.msra.mxu0 %vm39262_vm0, %v13022_v44  ;;  %16024 = vrot.lane.b32.xlu1 %v36714_v33, %s34739_s28  ;;  %v13025_v48 = vsel %vm39257_vm14, %v13008_v35, %v13010_v45 }
 0x2d7   : > { %16022 = vrot.lane.b32.xlu0 %v36718_v23, %s34739_s28  ;;  %33291 = vmatprep.subr.msk.mxu0 %vm39262_vm0, %v13025_v48  ;;  %v13026_v23 = vsel %vm39257_vm14, %v13010_v45, %v13012_v39  ;;  %vm39259_vm14 = vcmask 670720  }
 0x2d8   : > { %13406 = vmatprep.mubr.f32.mxu0 %v36796_v42  ;;  %v13597_v4 = vpop.permute.xlu1 %13596 }
 0x2d9   : > { %v13595_v30 = vpop.permute.xlu0 %13594  ;;  %33290 = vmatmul.mubr.msk.f32.vlgmr.msra.gmra.mrb[8].mxu0 %vm39261_vm1, %v36885_v22 }
 0x2da   : > { %33292 = vmatpush1.msk.msra.mxu0 %vm39262_vm0, %v13024_v41  ;;  %16026 = vrot.lane.b32.xlu1 %v36727_v37, %s34739_s28  ;;  %v13622_v53 = vsel %vm39258_vm15, %v13595_v30, %v13597_v4 }
 0x2db   : > { %33294 = vmatprep.subr.msk.mxu0 %vm39262_vm0, %v13012_v39  ;;  %16020 = vrot.lane.b32.xlu0 %v36701_v18, %s34739_s28 }
 0x2dc   : > { %13477 = vmatprep.mubr.f32.mxu0 %v36796_v42  ;;  %v13599_v33 = vpop.permute.xlu1 %13598 }
 0x2dd   : > { %v13593_v52 = vpop.permute.xlu0 %13592  ;;  %33293 = vmatmul.mubr.msk.f32.vlgmr.msra.gmra.mrb[10].mxu0 %vm39261_vm1, %v36885_v22  ;;  %v13623_v34 = vsel %vm39258_vm15, %v13597_v4, %v13599_v33 }
 0x2de   : > { %33295 = vmatpush1.msk.msra.mxu0 %vm39262_vm0, %v13026_v23  ;;  %16030 = vrot.lane.b32.xlu1 %v36747_v47, %s34739_s28  ;;  %v13621_v37 = vsel %vm39258_vm15, %v13593_v52, %v13595_v30 }
 0x2df   : > { %33298 = vmatprep.subr.msk.mxu0 %vm39262_vm0, %v13622_v53  ;;  %16028 = vrot.lane.b32.xlu0 %v36736_v29, %s34739_s28  ;;  %v36966_v29 = vld [vmem:[%s39215_s1 + $0xb0] sm:$0xff]  ;;  %v33341_v53 = vld [vmem:[%s39215_s1 + $0xc0] sm:$0xff] }
 0x2e0   : > { %13548 = vmatprep.mubr.f32.mxu0 %v36796_v42  ;;  %v13603_v18 = vpop.permute.xlu1 %13602 }
 0x2e1   : > { %v13601_v54 = vpop.permute.xlu0 %13600  ;;  %33296 = vmatmul.mubr.msk.f32.vlgmr.msra.gmra.mrb[12].mxu0 %vm39261_vm1, %v36885_v22 }
 0x2e2   : > { %33299 = vmatpush1.msk.msra.mxu0 %vm39262_vm0, %v13621_v37  ;;  %v13624_v40 = vsel %vm39258_vm15, %v13599_v33, %v13601_v54  ;;  %16034 = vrot.lane.b32.xlu1 %v36765_v51, %s34739_s28  ;;  %v13625_v43 = vsel %vm39258_vm15, %v13601_v54, %v13603_v18 }
 0x2e3   : > { %16032 = vrot.lane.b32.xlu0 %v36753_v38, %s34739_s28  ;;  %33301 = vmatprep.subr.msk.mxu0 %vm39262_vm0, %v13624_v40 }
 0x2e4   : > { %13729 = vmatprep.mubr.f32.mxu0 %v36796_v42  ;;  %v13607_v47 = vpop.permute.xlu1 %13606 }
 0x2e5   : > { %v13605_v55 = vpop.permute.xlu0 %13604  ;;  %33300 = vmatmul.mubr.msk.f32.vlgmr.msra.gmra.mrb[0].mxu0 %vm39261_vm1, %v36966_v29 }
 0x2e6   : > { %33302 = vmatpush1.msk.msra.mxu0 %vm39262_vm0, %v13623_v34  ;;  %v13626_v51 = vsel %vm39258_vm15, %v13603_v18, %v13605_v55  ;;  %16038 = vrot.lane.b32.xlu1 %v36788_v0, %s34739_s28  ;;  %v13627_v8 = vsel %vm39258_vm15, %v13605_v55, %v13607_v47 }
 0x2e7   : > { %16036 = vrot.lane.b32.xlu0 %v36771_v1, %s34739_s28  ;;  %33304 = vmatprep.subr.msk.mxu0 %vm39262_vm0, %v13626_v51 }
 0x2e8   : > { %13800 = vmatprep.mubr.f32.mxu0 %v36796_v42  ;;  %v13611_v38 = vpop.permute.xlu1 %13610 }
 0x2e9   : > { %v13609_v9 = vpop.permute.xlu0 %13608  ;;  %33303 = vmatmul.mubr.msk.f32.vlgmr.msra.gmra.mrb[2].mxu0 %vm39261_vm1, %v36966_v29 }
 0x2ea   : > { %33305 = vmatpush1.msk.msra.mxu0 %vm39262_vm0, %v13625_v43  ;;  %v13628_v0 = vsel %vm39258_vm15, %v13607_v47, %v13609_v9  ;;  %16042 = vrot.lane.b32.xlu1 %v36808_v5, %s34739_s28  ;;  %v250_v5 = vld [vmem:[%s39216_s2] sm:$0xff]  ;;  %v13629_v10 = vsel %vm39258_vm15, %v13609_v9, %v13611_v38 }
 0x2eb   : > { %16040 = vrot.lane.b32.xlu0 %v36794_v25, %s34739_s28  ;;  %33307 = vmatprep.subr.msk.mxu0 %vm39262_vm0, %v13628_v0 }
 0x2ec   : > { %13871 = vmatprep.mubr.f32.mxu0 %v36796_v42  ;;  %v13615_v1 = vpop.permute.xlu1 %13614 }
 0x2ed   : > { %v13613_v2 = vpop.permute.xlu0 %13612  ;;  %33306 = vmatmul.mubr.msk.f32.vlgmr.msra.gmra.mrb[4].mxu0 %vm39261_vm1, %v36966_v29 }
 0x2ee   : > { %33308 = vmatpush1.msk.msra.mxu0 %vm39262_vm0, %v13627_v8  ;;  %v13630_v59 = vsel %vm39258_vm15, %v13611_v38, %v13613_v2  ;;  %16046 = vrot.lane.b32.xlu1 %v36826_v50, %s34739_s28  ;;  %v13631_v56 = vsel %vm39258_vm15, %v13613_v2, %v13615_v1 }
 0x2ef   : > { %16044 = vrot.lane.b32.xlu0 %v36814_v7, %s34739_s28  ;;  %33310 = vmatprep.subr.msk.mxu0 %vm39262_vm0, %v13630_v59 }
 0x2f0   : > { %13942 = vmatprep.mubr.f32.mxu0 %v36796_v42  ;;  %v13619_v25 = vpop.permute.xlu1 %13618 }
 0x2f1   : > { %v13617_v3 = vpop.permute.xlu0 %13616  ;;  %33309 = vmatmul.mubr.msk.f32.vlgmr.msra.gmra.mrb[6].mxu0 %vm39261_vm1, %v36966_v29 }
 0x2f2   : > { %33311 = vmatpush1.msk.msra.mxu0 %vm39262_vm0, %v13629_v10  ;;  %v13632_v50 = vsel %vm39258_vm15, %v13615_v1, %v13617_v3  ;;  %14013 = vmatprep.mubr.f32.mxu0 %v36796_v42  ;;  %v13633_v63 = vsel %vm39258_vm15, %v13617_v3, %v13619_v25  ;;  %vm39260_vm15 = vcmask 588800  }
 0x2f3   : > { %33313 = vmatprep.subr.msk.mxu0 %vm39262_vm0, %v13632_v50  ;;  %253 = vperm.xlu0 %34472, %v250_v5  }
 0x2f4   : > { %v14204_v7 = vpop.permute.xlu1 %14203 }
 0x2f5   : > { %v14202_v11 = vpop.permute.xlu0 %14201  ;;  %33312 = vmatmul.mubr.msk.f32.vlgmr.msra.gmra.mrb[8].mxu0 %vm39261_vm1, %v36966_v29 }
 0x2f6   : > { %33314 = vmatpush1.msk.msra.mxu0 %vm39262_vm0, %v13631_v56  ;;  %14084 = vmatprep.mubr.f32.mxu0 %v36796_v42  ;;  %v14229_v57 = vsel %vm39259_vm14, %v14202_v11, %v14204_v7 }
 0x2f7   : > { %33316 = vmatprep.subr.msk.mxu0 %vm39262_vm0, %v13619_v25 }
 0x2f8   : > { %v14206_v62 = vpop.permute.xlu1 %14205 }
 0x2f9   : > { %v14200_v58 = vpop.permute.xlu0 %14199  ;;  %33315 = vmatmul.mubr.msk.f32.vlgmr.msra.gmra.mrb[10].mxu0 %vm39261_vm1, %v36966_v29  ;;  %v14230_v20 = vsel %vm39259_vm14, %v14204_v7, %v14206_v62 }
 0x2fa   : > { %33317 = vmatpush1.msk.msra.mxu0 %vm39262_vm0, %v13633_v63  ;;  %14155 = vmatprep.mubr.f32.mxu0 %v36796_v42  ;;  %v14228_v15 = vsel %vm39259_vm14, %v14200_v58, %v14202_v11  ;;  %v33363_v63 = vld [vmem:[%s39215_s1 + $0xc8] sm:$0xff] }
 0x2fb   : > { %33320 = vmatprep.subr.msk.mxu0 %vm39262_vm0, %v14229_v57 }
 0x2fc   : > { %v14210_v60 = vpop.permute.xlu1 %14209 }
 0x2fd   : > { %v14208_v13 = vpop.permute.xlu0 %14207  ;;  %33318 = vmatmul.mubr.msk.f32.vlgmr.msra.gmra.mrb[12].mxu0 %vm39261_vm1, %v36966_v29 }
 0x2fe   : > { %33321 = vmatpush1.msk.msra.mxu0 %vm39262_vm0, %v14228_v15  ;;  %v14231_v12 = vsel %vm39259_vm14, %v14206_v62, %v14208_v13  ;;  %14336 = vmatprep.mubr.f32.mxu0 %v36796_v42  ;;  %v14232_v26 = vsel %vm39259_vm14, %v14208_v13, %v14210_v60 }
 0x2ff   : > { %33323 = vmatprep.subr.msk.mxu0 %vm39262_vm0, %v14231_v12 }
 0x300   : > { %v14214_v16 = vpop.permute.xlu1 %14213 }
 0x301   : > { %v14212_v17 = vpop.permute.xlu0 %14211  ;;  %33322 = vmatmul.mubr.msk.f32.vlgmr.msra.gmra.mrb[0].mxu0 %vm39261_vm1, %v33319_v6 }
 0x302   : > { %33324 = vmatpush1.msk.msra.mxu0 %vm39262_vm0, %v14230_v20  ;;  %v14233_v61 = vsel %vm39259_vm14, %v14210_v60, %v14212_v17  ;;  %14407 = vmatprep.mubr.f32.mxu0 %v36796_v42  ;;  %v14234_v27 = vsel %vm39259_vm14, %v14212_v17, %v14214_v16 }
 0x303   : > { %33326 = vmatprep.subr.msk.mxu0 %vm39262_vm0, %v14233_v61 }
 0x304   : > { %v14218_v22 = vpop.permute.xlu1 %14217 }
 0x305   : > { %v14216_v28 = vpop.permute.xlu0 %14215  ;;  %33325 = vmatmul.mubr.msk.f32.vlgmr.msra.gmra.mrb[2].mxu0 %vm39261_vm1, %v33319_v6 }
 0x306   : > { %33327 = vmatpush1.msk.msra.mxu0 %vm39262_vm0, %v14232_v26  ;;  %v14235_v14 = vsel %vm39259_vm14, %v14214_v16, %v14216_v28  ;;  %14478 = vmatprep.mubr.f32.mxu0 %v36796_v42  ;;  %v14236_v35 = vsel %vm39259_vm14, %v14216_v28, %v14218_v22 }
 0x307   : > { %33329 = vmatprep.subr.msk.mxu0 %vm39262_vm0, %v14235_v14 }
 0x308   : > { %v14222_v19 = vpop.permute.xlu1 %14221 }
 0x309   : > { %v14220_v21 = vpop.permute.xlu0 %14219  ;;  %33328 = vmatmul.mubr.msk.f32.vlgmr.msra.gmra.mrb[4].mxu0 %vm39261_vm1, %v33319_v6 }
 0x30a   : > { %33330 = vmatpush1.msk.msra.mxu0 %vm39262_vm0, %v14234_v27  ;;  %v14237_v24 = vsel %vm39259_vm14, %v14218_v22, %v14220_v21  ;;  %14549 = vmatprep.mubr.f32.mxu0 %v36796_v42  ;;  %v14238_v39 = vsel %vm39259_vm14, %v14220_v21, %v14222_v19 }
 0x30b   : > { %33332 = vmatprep.subr.msk.mxu0 %vm39262_vm0, %v14237_v24 }
 0x30c   : > { %v14226_v46 = vpop.permute.xlu1 %14225 }
 0x30d   : > { %v14224_v36 = vpop.permute.xlu0 %14223  ;;  %33331 = vmatmul.mubr.msk.f32.vlgmr.msra.gmra.mrb[6].mxu0 %vm39261_vm1, %v33319_v6 }
 0x30e   : > { %33333 = vmatpush1.msk.msra.mxu0 %vm39262_vm0, %v14236_v35  ;;  %v14239_v31 = vsel %vm39259_vm14, %v14222_v19, %v14224_v36  ;;  %14620 = vmatprep.mubr.f32.mxu0 %v36796_v42  ;;  %v14240_v48 = vsel %vm39259_vm14, %v14224_v36, %v14226_v46  ;;  %vm15441_vm14 = vcmask 580608  }
 0x30f   : > { %33335 = vmatprep.subr.msk.mxu0 %vm39262_vm0, %v14239_v31 }
 0x310   : > { %v14811_v32 = vpop.permute.xlu1 %14810 }
 0x311   : > { %v14809_v44 = vpop.permute.xlu0 %14808  ;;  %33334 = vmatmul.mubr.msk.f32.vlgmr.msra.gmra.mrb[8].mxu0 %vm39261_vm1, %v33319_v6 }
 0x312   : > { %33336 = vmatpush1.msk.msra.mxu0 %vm39262_vm0, %v14238_v39  ;;  %14691 = vmatprep.mubr.f32.mxu0 %v36796_v42  ;;  %v14836_v41 = vsel %vm39260_vm15, %v14809_v44, %v14811_v32  ;;  %v33385_v39 = vld [vmem:[%s39215_s1 + $0xd0] sm:$0xff] }
 0x313   : > { %33338 = vmatprep.subr.msk.mxu0 %vm39262_vm0, %v14226_v46 }
 0x314   : > { %v14813_v45 = vpop.permute.xlu1 %14812 }
 0x315   : > { %v14807_v4 = vpop.permute.xlu0 %14806  ;;  %33337 = vmatmul.mubr.msk.f32.vlgmr.msra.gmra.mrb[10].mxu0 %vm39261_vm1, %v33319_v6  ;;  %v14837_v37 = vsel %vm39260_vm15, %v14811_v32, %v14813_v45 }
 0x316   : > { %33339 = vmatpush1.msk.msra.mxu0 %vm39262_vm0, %v14240_v48  ;;  %14762 = vmatprep.mubr.f32.mxu0 %v36796_v42  ;;  %v14835_v33 = vsel %vm39260_vm15, %v14807_v4, %v14809_v44 }
 0x317   : > { %33342 = vmatprep.subr.msk.mxu0 %vm39262_vm0, %v14836_v41 }
 0x318   : > { %v14817_v30 = vpop.permute.xlu1 %14816 }
 0x319   : > { %v14815_v23 = vpop.permute.xlu0 %14814  ;;  %33340 = vmatmul.mubr.msk.f32.vlgmr.msra.gmra.mrb[12].mxu0 %vm39261_vm1, %v33319_v6 }
 0x31a   : > { %33343 = vmatpush1.msk.msra.mxu0 %vm39262_vm0, %v14835_v33  ;;  %v14838_v52 = vsel %vm39260_vm15, %v14813_v45, %v14815_v23  ;;  %14943 = vmatprep.mubr.f32.mxu0 %v36796_v42  ;;  %v14839_v47 = vsel %vm39260_vm15, %v14815_v23, %v14817_v30 }
 0x31b   : > { %33345 = vmatprep.subr.msk.mxu0 %vm39262_vm0, %v14838_v52 }
 0x31c   : > { %v14821_v18 = vpop.permute.xlu1 %14820 }
 0x31d   : > { %v14819_v54 = vpop.permute.xlu0 %14818  ;;  %33344 = vmatmul.mubr.msk.f32.vlgmr.msra.gmra.mrb[0].mxu0 %vm39261_vm1, %v33341_v53 }
 0x31e   : > { %33346 = vmatpush1.msk.msra.mxu0 %vm39262_vm0, %v14837_v37  ;;  %v14840_v40 = vsel %vm39260_vm15, %v14817_v30, %v14819_v54  ;;  %15014 = vmatprep.mubr.f32.mxu0 %v36796_v42  ;;  %v14841_v38 = vsel %vm39260_vm15, %v14819_v54, %v14821_v18 }
 0x31f   : > { %33348 = vmatprep.subr.msk.mxu0 %vm39262_vm0, %v14840_v40 }
 0x320   : > { %v14825_v29 = vpop.permute.xlu1 %14824 }
 0x321   : > { %v14823_v34 = vpop.permute.xlu0 %14822  ;;  %33347 = vmatmul.mubr.msk.f32.vlgmr.msra.gmra.mrb[2].mxu0 %vm39261_vm1, %v33341_v53 }
 0x322   : > { %33349 = vmatpush1.msk.msra.mxu0 %vm39262_vm0, %v14839_v47  ;;  %v14842_v55 = vsel %vm39260_vm15, %v14821_v18, %v14823_v34  ;;  %15085 = vmatprep.mubr.f32.mxu0 %v36796_v42  ;;  %v14843_v0 = vsel %vm39260_vm15, %v14823_v34, %v14825_v29 }
 0x323   : > { %33351 = vmatprep.subr.msk.mxu0 %vm39262_vm0, %v14842_v55 }
 0x324   : > { %v14829_v51 = vpop.permute.xlu1 %14828 }
 0x325   : > { %v14827_v49 = vpop.permute.xlu0 %14826  ;;  %33350 = vmatmul.mubr.msk.f32.vlgmr.msra.gmra.mrb[4].mxu0 %vm39261_vm1, %v33341_v53 }
 0x326   : > { %33352 = vmatpush1.msk.msra.mxu0 %vm39262_vm0, %v14841_v38  ;;  %v14844_v43 = vsel %vm39260_vm15, %v14825_v29, %v14827_v49  ;;  %15156 = vmatprep.mubr.f32.mxu0 %v36796_v42  ;;  %v14845_v59 = vsel %vm39260_vm15, %v14827_v49, %v14829_v51 }
 0x327   : > { %33354 = vmatprep.subr.msk.mxu0 %vm39262_vm0, %v14844_v43 }
 0x328   : > { %v14833_v9 = vpop.permute.xlu1 %14832 }
 0x329   : > { %v14831_v1 = vpop.permute.xlu0 %14830  ;;  %33353 = vmatmul.mubr.msk.f32.vlgmr.msra.gmra.mrb[6].mxu0 %vm39261_vm1, %v33341_v53 }
 0x32a   : > { %33355 = vmatpush1.msk.msra.mxu0 %vm39262_vm0, %v14843_v0  ;;  %v14846_v8 = vsel %vm39260_vm15, %v14829_v51, %v14831_v1  ;;  %15227 = vmatprep.mubr.f32.mxu0 %v36796_v42  ;;  %v14847_v10 = vsel %vm39260_vm15, %v14831_v1, %v14833_v9  ;;  %vm16048_vm15 = vcmask 572416  }
 0x32b   : > { %33357 = vmatprep.subr.msk.mxu0 %vm39262_vm0, %v14846_v8 }
 0x32c   : > { %v15418_v2 = vpop.permute.xlu1 %15417 }
 0x32d   : > { %v15416_v25 = vpop.permute.xlu0 %15415  ;;  %33356 = vmatmul.mubr.msk.f32.vlgmr.msra.gmra.mrb[8].mxu0 %vm39261_vm1, %v33341_v53 }
 0x32e   : > { %33358 = vmatpush1.msk.msra.mxu0 %vm39262_vm0, %v14845_v59  ;;  %15298 = vmatprep.mubr.f32.mxu0 %v36796_v42  ;;  %v15443_v50 = vsel %vm15441_vm14, %v15416_v25, %v15418_v2 }
 0x32f   : > { %33360 = vmatprep.subr.msk.mxu0 %vm39262_vm0, %v14833_v9 }
 0x330   : > { %v15420_v5 = vpop.permute.xlu1 %15419 }
 0x331   : > { %v15414_v3 = vpop.permute.xlu0 %15413  ;;  %33359 = vmatmul.mubr.msk.f32.vlgmr.msra.gmra.mrb[10].mxu0 %vm39261_vm1, %v33341_v53  ;;  %v15444_v57 = vsel %vm15441_vm14, %v15418_v2, %v15420_v5 }
 0x332   : > { %33361 = vmatpush1.msk.msra.mxu0 %vm39262_vm0, %v14847_v10  ;;  %15369 = vmatprep.mubr.f32.mxu0 %v36796_v42  ;;  %v15442_v56 = vsel %vm15441_vm14, %v15414_v3, %v15416_v25 }
 0x333   : > { %33364 = vmatprep.subr.msk.mxu0 %vm39262_vm0, %v15443_v50 }
 0x334   : > { %v15424_v7 = vpop.permute.xlu1 %15423 }
 0x335   : > { %v15422_v11 = vpop.permute.xlu0 %15421  ;;  %33362 = vmatmul.mubr.msk.f32.vlgmr.msra.gmra.mrb[12].mxu0 %vm39261_vm1, %v33341_v53 }
 0x336   : > { %33365 = vmatpush1.msk.msra.mxu0 %vm39262_vm0, %v15442_v56  ;;  %v15445_v62 = vsel %vm15441_vm14, %v15420_v5, %v15422_v11  ;;  %15550 = vmatprep.mubr.f32.mxu0 %v36796_v42  ;;  %v15446_v12 = vsel %vm15441_vm14, %v15422_v11, %v15424_v7 }
 0x337   : > { %33367 = vmatprep.subr.msk.mxu0 %vm39262_vm0, %v15445_v62 }
 0x338   : > { %v15428_v58 = vpop.permute.xlu1 %15427 }
 0x339   : > { %v15426_v60 = vpop.permute.xlu0 %15425  ;;  %33366 = vmatmul.mubr.msk.f32.vlgmr.msra.gmra.mrb[0].mxu0 %vm39261_vm1, %v33363_v63 }
 0x33a   : > { %33368 = vmatpush1.msk.msra.mxu0 %vm39262_vm0, %v15444_v57  ;;  %v15447_v15 = vsel %vm15441_vm14, %v15424_v7, %v15426_v60  ;;  %15621 = vmatprep.mubr.f32.mxu0 %v36796_v42  ;;  %v15448_v17 = vsel %vm15441_vm14, %v15426_v60, %v15428_v58 }
 0x33b   : > { %33370 = vmatprep.subr.msk.mxu0 %vm39262_vm0, %v15447_v15 }
 0x33c   : > { %v15432_v13 = vpop.permute.xlu1 %15431 }
 0x33d   : > { %v15430_v6 = vpop.permute.xlu0 %15429  ;;  %33369 = vmatmul.mubr.msk.f32.vlgmr.msra.gmra.mrb[2].mxu0 %vm39261_vm1, %v33363_v63 }
 0x33e   : > { %33371 = vmatpush1.msk.msra.mxu0 %vm39262_vm0, %v15446_v12  ;;  %v15449_v16 = vsel %vm15441_vm14, %v15428_v58, %v15430_v6  ;;  %15692 = vmatprep.mubr.f32.mxu0 %v36796_v42  ;;  %v15450_v28 = vsel %vm15441_vm14, %v15430_v6, %v15432_v13 }
 0x33f   : > { %33373 = vmatprep.subr.msk.mxu0 %vm39262_vm0, %v15449_v16 }
 0x340   : > { %v15436_v20 = vpop.permute.xlu1 %15435 }
 0x341   : > { %v15434_v61 = vpop.permute.xlu0 %15433  ;;  %33372 = vmatmul.mubr.msk.f32.vlgmr.msra.gmra.mrb[4].mxu0 %vm39261_vm1, %v33363_v63 }
 0x342   : > { %33374 = vmatpush1.msk.msra.mxu0 %vm39262_vm0, %v15448_v17  ;;  %v15451_v22 = vsel %vm15441_vm14, %v15432_v13, %v15434_v61  ;;  %15763 = vmatprep.mubr.f32.mxu0 %v36796_v42  ;;  %v15452_v27 = vsel %vm15441_vm14, %v15434_v61, %v15436_v20 }
 0x343   : > { %33376 = vmatprep.subr.msk.mxu0 %vm39262_vm0, %v15451_v22 }
 0x344   : > { %v15440_v26 = vpop.permute.xlu1 %15439 }
 0x345   : > { %v15438_v14 = vpop.permute.xlu0 %15437  ;;  %33375 = vmatmul.mubr.msk.f32.vlgmr.msra.gmra.mrb[6].mxu0 %vm39261_vm1, %v33363_v63 }
 0x346   : > { %33377 = vmatpush1.msk.msra.mxu0 %vm39262_vm0, %v15450_v28  ;;  %v15453_v19 = vsel %vm15441_vm14, %v15436_v20, %v15438_v14  ;;  %15834 = vmatprep.mubr.f32.mxu0 %v36796_v42  ;;  %v15454_v24 = vsel %vm15441_vm14, %v15438_v14, %v15440_v26 }
 0x347   : > { %33379 = vmatprep.subr.msk.mxu1 %vm39262_vm0, %v15453_v19  ;;  %33382 = vmatprep.subr.msk.mxu0 %vm39262_vm0, %v15440_v26  ;;  %v37224_v26 = vld [vmem:[%s39217_s3] sm:$0xff] }
 0x348   : > { %33380 = vmatpush1.msk.msra.mxu1 %vm39262_vm0, %v15452_v27  ;;  %v16025_v21 = vpop.permute.xlu1 %16024 }
 0x349   : > { %v16023_v46 = vpop.permute.xlu0 %16022  ;;  %33378 = vmatmul.mubr.msk.f32.vlgmr.msra.gmra.mrb[8].mxu0 %vm39261_vm1, %v33363_v63  ;;  %33381 = vmatmul.mubr.msk.f32.vlgmr.msra.gmra.mrb[0].mxu1 %vm39261_vm1, %v33363_v63 }
 0x34a   : > { %33383 = vmatpush1.msk.msra.mxu0 %vm39262_vm0, %v15454_v24  ;;  %v16050_v35 = vsel %vm16048_vm15, %v16023_v46, %v16025_v21  ;;  %15976 = vmatprep.mubr.f32.mxu0 %v36796_v42 }
 0x34b   : > { %33386 = vmatprep.subr.msk.mxu0 %vm39262_vm0, %v16050_v35  ;;  %16228 = vmatprep.mubr.f32.mxu1 %v36796_v42 }
 0x34c   : > { %v16027_v36 = vpop.permute.xlu1 %16026 }
 0x34d   : > { %v16021_v31 = vpop.permute.xlu0 %16020  ;;  %33384 = vmatmul.mubr.msk.f32.vlgmr.msra.gmra.mrb[12].mxu0 %vm39261_vm1, %v33363_v63  ;;  %v16051_v4 = vsel %vm16048_vm15, %v16025_v21, %v16027_v36 }
 0x34e   : > { %v16049_v32 = vsel %vm16048_vm15, %v16021_v31, %v16023_v46  ;;  %16157 = vmatprep.mubr.f32.mxu0 %v36796_v42 }
 0x34f   : > { %33387 = vmatpush1.msk.msra.mxu0 %vm39262_vm0, %v16049_v32 }
 0x350   : > { %v16031_v44 = vpop.permute.xlu1 %16030 }
 0x351   : > { %v16029_v45 = vpop.permute.xlu0 %16028  ;;  %33388 = vmatmul.mubr.msk.f32.vlgmr.msra.gmra.mrb[0].mxu0 %vm39261_vm1, %v33385_v39 }
 0x352   : > { %v16052_v48 = vsel %vm16048_vm15, %v16027_v36, %v16029_v45  ;;  %16299 = vmatprep.mubr.f32.mxu0 %v36796_v42  ;;  %v16053_v23 = vsel %vm16048_vm15, %v16029_v45, %v16031_v44 }
 0x353   : > { %33389 = vmatprep.subr.msk.mxu1 %vm39262_vm0, %v16052_v48 }
 0x354   : > { %33390 = vmatpush1.msk.msra.mxu1 %vm39262_vm0, %v16051_v4  ;;  %v16035_v41 = vpop.permute.xlu1 %16034 }
 0x355   : > { %33391 = vmatmul.mubr.msk.f32.vlgmr.msra.gmra.mrb[2].mxu1 %vm39261_vm1, %v33385_v39  ;;  %v16033_v30 = vpop.permute.xlu0 %16032 }
 0x356   : > { %v16054_v33 = vsel %vm16048_vm15, %v16031_v44, %v16033_v30  ;;  %16370 = vmatprep.mubr.f32.mxu1 %v36796_v42  ;;  %v16055_v37 = vsel %vm16048_vm15, %v16033_v30, %v16035_v41 }
 0x357   : > { %33392 = vmatprep.subr.msk.mxu0 %vm39262_vm0, %v16054_v33 }
 0x358   : > { %33393 = vmatpush1.msk.msra.mxu0 %vm39262_vm0, %v16053_v23  ;;  %v16039_v52 = vpop.permute.xlu1 %16038 }
 0x359   : > { %v16037_v53 = vpop.permute.xlu0 %16036  ;;  %33394 = vmatmul.mubr.msk.f32.vlgmr.msra.gmra.mrb[4].mxu0 %vm39261_vm1, %v33385_v39 }
 0x35a   : > { %v16056_v18 = vsel %vm16048_vm15, %v16035_v41, %v16037_v53  ;;  %16441 = vmatprep.mubr.f32.mxu0 %v36796_v42  ;;  %v16057_v47 = vsel %vm16048_vm15, %v16037_v53, %v16039_v52 }
 0x35b   : > { %33395 = vmatprep.subr.msk.mxu1 %vm39262_vm0, %v16056_v18 }
 0x35c   : > { %33396 = vmatpush1.msk.msra.mxu1 %vm39262_vm0, %v16055_v37  ;;  %v16043_v54 = vpop.permute.xlu1 %16042 }
 0x35d   : > { %33397 = vmatmul.mubr.msk.f32.vlgmr.msra.gmra.mrb[4].mxu1 %vm39261_vm1, %v33385_v39  ;;  %v16041_v40 = vpop.permute.xlu0 %16040 }
 0x35e   : > { %v16058_v29 = vsel %vm16048_vm15, %v16039_v52, %v16041_v40  ;;  %16512 = vmatprep.mubr.f32.mxu1 %v36796_v42  ;;  %v16059_v49 = vsel %vm16048_vm15, %v16041_v40, %v16043_v54 }
 0x35f   : > { %33398 = vmatprep.subr.msk.mxu0 %vm39262_vm0, %v16058_v29 }
 0x360   : > { %33399 = vmatpush1.msk.msra.mxu0 %vm39262_vm0, %v16057_v47  ;;  %v16047_v34 = vpop.permute.xlu1 %16046 }
 0x361   : > { %v16045_v55 = vpop.permute.xlu0 %16044  ;;  %33400 = vmatmul.mubr.msk.f32.vlgmr.msra.gmra.mrb[8].mxu0 %vm39261_vm1, %v33385_v39  ;;  %33404 = vmatprep.subr.msk.mxu0 %vm39262_vm0, %v16047_v34 }
 0x362   : > { %v16061_v51 = vsel %vm16048_vm15, %v16045_v55, %v16047_v34  ;;  %v16060_v38 = vsel %vm16048_vm15, %v16043_v54, %v16045_v55  ;;  %16583 = vmatprep.mubr.f32.mxu0 %v36796_v42 }
 0x363   : > { %33401 = vmatprep.subr.msk.mxu1 %vm39262_vm0, %v16060_v38  ;;  %33405 = vmatpush1.msk.msra.mxu0 %vm39262_vm0, %v16061_v51 }
 0x364   : > { %33402 = vmatpush1.msk.msra.mxu1 %vm39262_vm0, %v16059_v49  ;;  %vm16647_vm0 = vcmask 523264  }
 0x365   : > { %33403 = vmatmul.mubr.msk.f32.vlgmr.msra.gmra.mrb[0].mxu1 %vm39261_vm1, %v33385_v39  ;;  %33406 = vmatmul.mubr.msk.f32.vlgmr.msra.gmra.mrb[12].mxu0 %vm39261_vm1, %v33385_v39  ;;  %vm16670_vm1 = vcmask 64512  }
 0x366   : > { %16738 = vmatprep.mubr.f32.mxu1 %v36796_v42  ;;  %32259 = vmatprep.mubr.f32.mxu0 %v36796_v42 }
 0x372   : > { %v37205_v59 = vpop.permute.xlu0 %253 }
 0x404   : > { %v15300_v43 = vpop.f32.mrb[10].mxu0 }
 0x405   : > { %v15302_v9 = vpop.f32.mrb[11].mxu0  ;;  %v33661_v46 = vadd.f32 %v15300_v43, %v37205_v59  ;;  %v37429_v43 = vld [vmem:[%s39217_s3 + $0x8] sm:$0xff] }
 0x406   : > { %v33663_v35 = vadd.f32 %v15302_v9, %v37205_v59 }
 0x410   : > { %v15623_v0 = vpop.f32.mrb[2].mxu0 }
 0x411   : > { %v15625_v1 = vpop.f32.mrb[3].mxu0  ;;  %v33649_v50 = vadd.f32 %v15623_v0, %v37205_v59 }
 0x412   : > { %v33651_v7 = vadd.f32 %v15625_v1, %v37205_v59 }
 0x418   : > { %v15765_v8 = vpop.f32.mrb[6].mxu0 }
 0x419   : > { %v15767_v2 = vpop.f32.mrb[7].mxu0  ;;  %v33655_v13 = vadd.f32 %v15765_v8, %v37205_v59 }
 0x41a   : > { %v33657_v12 = vadd.f32 %v15767_v2, %v37205_v59 }
 0x424   : > { %v16159_v25 = vpop.f32.mrb[0].mxu0 }
 0x425   : > { %v33647_v5 = vadd.f32 %v16159_v25, %v37205_v59  ;;  %v16161_v10 = vpop.f32.mrb[1].mxu0 }
 0x426   : > { %v33648_v3 = vadd.f32 %v16161_v10, %v37205_v59 }
 0x427   : > { %34561 = vtanh.f32 %v33647_v5 }
 0x428   : > { %34563 = vtanh.f32 %v33648_v3  ;;  %v16230_v56 = vpop.f32.mrb[2].mxu1 }
 0x429   : > { %v33650_v11 = vadd.f32 %v33649_v50, %v16230_v56  ;;  %v16232_v62 = vpop.f32.mrb[3].mxu1 }
 0x42a   : > { %v33652_v63 = vadd.f32 %v33651_v7, %v16232_v62 }
 0x42b   : > { %34565 = vtanh.f32 %v33650_v11 }
 0x42c   : > { %34567 = vtanh.f32 %v33652_v63  ;;  %v16301_v58 = vpop.f32.mrb[4].mxu0 }
 0x42d   : > { %v33653_v57 = vadd.f32 %v16301_v58, %v37205_v59  ;;  %v16303_v60 = vpop.f32.mrb[5].mxu0 }
 0x42e   : > { %v33654_v15 = vadd.f32 %v16303_v60, %v37205_v59 }
 0x42f   : > { %34569 = vtanh.f32 %v33653_v57 }
 0x430   : > { %34571 = vtanh.f32 %v33654_v15  ;;  %v16372_v6 = vpop.f32.mrb[4].mxu1 }
 0x431   : > { %v37215_v16 = vpop.eup %34561  ;;  %v33656_v20 = vadd.f32 %v33655_v13, %v16372_v6  ;;  %v16374_v17 = vpop.f32.mrb[5].mxu1 }
 0x432   : > { %v37217_v61 = vpop.eup %34563  ;;  %v33658_v22 = vadd.f32 %v33657_v12, %v16374_v17  ;;  %17201 = vrot.lane.b32.xlu0 %v37215_v16, %s34714_s14 }
 0x433   : > { %16635 = vst [vmem:[#allocation2 + $0x8] sm:$0xff] %v37217_v61  ;;  %34573 = vtanh.f32 %v33656_v20  ;;  %16674 = vmatprep.subr.mxu1 %v37217_v61 }
 0x434   : > { %34575 = vtanh.f32 %v33658_v22  ;;  %v16443_v28 = vpop.f32.mrb[8].mxu0  ;;  %16675 = vmatpush1.msra.mxu1 %v37215_v16 }
 0x435   : > { %v37229_v14 = vpop.eup %34565  ;;  %v33659_v19 = vadd.f32 %v16443_v28, %v37205_v59  ;;  %v16445_v27 = vpop.f32.mrb[9].mxu0  ;;  %33407 = vmatmul.mubr.msk.f32.vlgmr.msra.gmra.mrb[6].mxu1 %vm16670_vm1, %v37224_v26 }
 0x436   : > { %v37234_v21 = vpop.eup %34567  ;;  %16636 = vst [vmem:[#allocation2 + $0x10] sm:$0xff] %v37229_v14  ;;  %v33660_v24 = vadd.f32 %v16445_v27, %v37205_v59  ;;  %17205 = vrot.lane.b32.xlu1 %v37229_v14, %s34714_s14  ;;  %16809 = vmatprep.mubr.f32.mxu1 %v36796_v42 }
 0x437   : > { %16637 = vst [vmem:[#allocation2 + $0x18] sm:$0xff] %v37234_v21  ;;  %34577 = vtanh.f32 %v33659_v19  ;;  %16745 = vmatprep.subr.mxu1 %v37234_v21 }
 0x438   : > { %34579 = vtanh.f32 %v33660_v24  ;;  %v16514_v36 = vpop.f32.mrb[0].mxu1  ;;  %v16585_v31 = vpop.f32.mrb[12].mxu0  ;;  %16746 = vmatpush1.msra.mxu1 %v37229_v14 }
 0x439   : > { %v37246_v32 = vpop.eup %34569  ;;  %v33662_v39 = vadd.f32 %v33661_v46, %v16514_v36  ;;  %v33665_v44 = vadd.f32 %v16585_v31, %v37205_v59  ;;  %v16516_v45 = vpop.f32.mrb[1].mxu1  ;;  %33408 = vmatmul.mubr.msk.f32.vlgmr.msra.gmra.mrb[8].mxu1 %vm16670_vm1, %v37224_v26 }
 0x43a   : > { %v16587_v48 = vpop.f32.mrb[13].mxu0  ;;  %v37251_v4 = vpop.eup %34571  ;;  %16638 = vst [vmem:[#allocation2 + $0x20] sm:$0xff] %v37246_v32  ;;  %v33664_v41 = vadd.f32 %v33663_v35, %v16516_v45  ;;  %17203 = vrot.lane.b32.xlu1 %v37217_v61, %s34714_s14  ;;  %17209 = vrot.lane.b32.xlu0 %v37246_v32, %s34714_s14 }
 0x43b   : > { %v33666_v30 = vadd.f32 %v16587_v48, %v37205_v59  ;;  %16639 = vst [vmem:[#allocation2 + $0x28] sm:$0xff] %v37251_v4  ;;  %34581 = vtanh.f32 %v33662_v39  ;;  %16816 = vmatprep.subr.mxu1 %v37251_v4  ;;  %16880 = vmatprep.mubr.f32.mxu1 %v36796_v42  ;;  %v37276_v42 = vld [vmem:[#allocation2 + $0x68] sm:$0xff] }
 0x43c   : > { %34583 = vtanh.f32 %v33665_v44  ;;  %16817 = vmatpush1.msra.mxu1 %v37246_v32 }
 0x43d   : > { %v37263_v33 = vpop.eup %34573  ;;  %34585 = vtanh.f32 %v33664_v41  ;;  %33409 = vmatmul.mubr.msk.f32.vlgmr.msra.gmra.mrb[10].mxu1 %vm16670_vm1, %v37224_v26 }
 0x43e   : > { %v37267_v23 = vpop.eup %34575  ;;  %16640 = vst [vmem:[#allocation2 + $0x30] sm:$0xff] %v37263_v33  ;;  %34587 = vtanh.f32 %v33666_v30  ;;  %17207 = vrot.lane.b32.xlu1 %v37234_v21, %s34714_s14  ;;  %17213 = vrot.lane.b32.xlu0 %v37263_v33, %s34714_s14 }
 0x43f   : > { %16641 = vst [vmem:[#allocation2 + $0x38] sm:$0xff] %v37267_v23  ;;  %16887 = vmatprep.subr.mxu1 %v37267_v23  ;;  %16951 = vmatprep.mubr.f32.mxu1 %v37276_v42 }
 0x440   : > { %16888 = vmatpush1.msra.mxu1 %v37263_v33 }
 0x441   : > { %v37280_v52 = vpop.eup %34577  ;;  %33410 = vmatmul.mubr.msk.f32.vlgmr.msra.gmra.mrb[12].mxu1 %vm16670_vm1, %v37224_v26 }
 0x442   : > { %v37284_v53 = vpop.eup %34579  ;;  %16642 = vst [vmem:[#allocation2 + $0x40] sm:$0xff] %v37280_v52  ;;  %17211 = vrot.lane.b32.xlu1 %v37251_v4, %s34714_s14  ;;  %17217 = vrot.lane.b32.xlu0 %v37280_v52, %s34714_s14 }
 0x443   : > { %16643 = vst [vmem:[#allocation2 + $0x48] sm:$0xff] %v37284_v53  ;;  %16958 = vmatprep.subr.mxu1 %v37284_v53  ;;  %17022 = vmatprep.mubr.f32.mxu1 %v37276_v42 }
 0x444   : > { %16959 = vmatpush1.msra.mxu1 %v37280_v52 }
 0x445   : > { %v37295_v18 = vpop.eup %34581  ;;  %33411 = vmatmul.mubr.msk.f32.vlgmr.msra.gmra.mrb[14].mxu1 %vm16670_vm1, %v37224_v26 }
 0x446   : > { %v37299_v37 = vpop.eup %34583  ;;  %16644 = vst [vmem:[#allocation2 + $0x50] sm:$0xff] %v37295_v18  ;;  %17215 = vrot.lane.b32.xlu1 %v37267_v23, %s34714_s14  ;;  %17221 = vrot.lane.b32.xlu0 %v37295_v18, %s34714_s14 }
 0x447   : > { %v37306_v54 = vpop.eup %34585  ;;  %16646 = vst [vmem:[#allocation2 + $0x60] sm:$0xff] %v37299_v37  ;;  %17093 = vmatprep.mubr.f32.mxu1 %v37276_v42 }
 0x448   : > { %v34588_v40 = vpop.eup %34587  ;;  %16645 = vst [vmem:[#allocation2 + $0x58] sm:$0xff] %v37306_v54  ;;  %17029 = vmatprep.subr.mxu1 %v37306_v54 }
 0x449   : > { %16648 = vst.msk [vmem:[#allocation2 + $0x68] sm:$0xff] %vm16647_vm0, %v34588_v40  ;;  %17030 = vmatpush1.msra.mxu1 %v37295_v18 }
 0x44a   : > { %17219 = vrot.lane.b32.xlu1 %v37284_v53, %s34714_s14  ;;  %33412 = vmatmul.mubr.msk.f32.vlgmr.msra.gmra.mrb[16].mxu1 %vm16670_vm1, %v37224_v26 }
 0x44b   : > { %17225 = vrot.lane.b32.xlu0 %v37299_v37, %s34714_s14  ;;  %17164 = vmatprep.mubr.f32.mxu1 %v37276_v42 }
 0x44e   : > { %17223 = vrot.lane.b32.xlu1 %v37306_v54, %s34714_s14 }
 0x44f   : > { %17774 = vrot.lane.b32.xlu0 %v37217_v61, %s34715_s17 }
 0x450   : > { %v37325_v29 = vld [vmem:[#allocation2 + $0x68] sm:$0xff] }
 0x451   : > { %17100 = vmatprep.subr.mxu1 %v37325_v29 }
 0x452   : > { %17101 = vmatpush1.msra.mxu1 %v37299_v37  ;;  %17227 = vrot.lane.b32.xlu1 %v37325_v29, %s34714_s14  ;;  %s39358_s14 = smov 72  }
 0x453   : > { %17772 = vrot.lane.b32.xlu0 %v37215_v16, %s34715_s17  ;;  %33413 = vmatmul.mubr.msk.f32.vlgmr.msra.gmra.mrb[18].mxu1 %vm16670_vm1, %v37224_v26  ;;  %v37495_v26 = vld [vmem:[%s39217_s3 + $0x10] sm:$0xff] }
 0x454   : > { %17323 = vmatprep.mubr.f32.mxu1 %v37276_v42 }
 0x456   : > { %17776 = vrot.lane.b32.xlu1 %v37229_v14, %s34715_s17 }
 0x457   : > { %17780 = vrot.lane.b32.xlu0 %v37246_v32, %s34715_s17 }
 0x45a   : > { %17778 = vrot.lane.b32.xlu1 %v37234_v21, %s34715_s17 }
 0x45b   : > { %17784 = vrot.lane.b32.xlu0 %v37263_v33, %s34715_s17 }
 0x45e   : > { %17782 = vrot.lane.b32.xlu1 %v37251_v4, %s34715_s17 }
 0x45f   : > { %17788 = vrot.lane.b32.xlu0 %v37280_v52, %s34715_s17 }
 0x462   : > { %17786 = vrot.lane.b32.xlu1 %v37267_v23, %s34715_s17 }
 0x463   : > { %17792 = vrot.lane.b32.xlu0 %v37295_v18, %s34715_s17 }
 0x466   : > { %17790 = vrot.lane.b32.xlu1 %v37284_v53, %s34715_s17 }
 0x467   : > { %17796 = vrot.lane.b32.xlu0 %v37299_v37, %s34715_s17 }
 0x46a   : > { %17794 = vrot.lane.b32.xlu1 %v37306_v54, %s34715_s17 }
 0x46b   : > { %18345 = vrot.lane.b32.xlu0 %v37217_v61, %s34716_s18 }
 0x46e   : > { %17798 = vrot.lane.b32.xlu1 %v37325_v29, %s34715_s17  ;;  %s39269_s17 = smov 87  }
 0x46f   : > { %18343 = vrot.lane.b32.xlu0 %v37215_v16, %s34716_s18 }
 0x472   : > { %18347 = vrot.lane.b32.xlu1 %v37229_v14, %s34716_s18 }
 0x473   : > { %18351 = vrot.lane.b32.xlu0 %v37246_v32, %s34716_s18 }
 0x476   : > { %18349 = vrot.lane.b32.xlu1 %v37234_v21, %s34716_s18 }
 0x477   : > { %18355 = vrot.lane.b32.xlu0 %v37263_v33, %s34716_s18 }
 0x47a   : > { %18353 = vrot.lane.b32.xlu1 %v37251_v4, %s34716_s18 }
 0x47b   : > { %18359 = vrot.lane.b32.xlu0 %v37280_v52, %s34716_s18 }
 0x47e   : > { %18357 = vrot.lane.b32.xlu1 %v37267_v23, %s34716_s18 }
 0x47f   : > { %18363 = vrot.lane.b32.xlu0 %v37295_v18, %s34716_s18 }
 0x482   : > { %18361 = vrot.lane.b32.xlu1 %v37284_v53, %s34716_s18 }
 0x483   : > { %18367 = vrot.lane.b32.xlu0 %v37299_v37, %s34716_s18 }
 0x486   : > { %18365 = vrot.lane.b32.xlu1 %v37306_v54, %s34716_s18 }
 0x487   : > { %18916 = vrot.lane.b32.xlu0 %v37217_v61, %s34717_s19 }
 0x48a   : > { %18369 = vrot.lane.b32.xlu1 %v37325_v29, %s34716_s18  ;;  %s39265_s18 = smov 100  }
 0x48b   : > { %18914 = vrot.lane.b32.xlu0 %v37215_v16, %s34717_s19 }
 0x48e   : > { %18918 = vrot.lane.b32.xlu1 %v37229_v14, %s34717_s19 }
 0x48f   : > { %18922 = vrot.lane.b32.xlu0 %v37246_v32, %s34717_s19 }
 0x492   : > { %18920 = vrot.lane.b32.xlu1 %v37234_v21, %s34717_s19 }
 0x493   : > { %18926 = vrot.lane.b32.xlu0 %v37263_v33, %s34717_s19 }
 0x496   : > { %18924 = vrot.lane.b32.xlu1 %v37251_v4, %s34717_s19 }
 0x497   : > { %18930 = vrot.lane.b32.xlu0 %v37280_v52, %s34717_s19 }
 0x49a   : > { %18928 = vrot.lane.b32.xlu1 %v37267_v23, %s34717_s19 }
 0x49b   : > { %18934 = vrot.lane.b32.xlu0 %v37295_v18, %s34717_s19 }
 0x49e   : > { %18932 = vrot.lane.b32.xlu1 %v37284_v53, %s34717_s19 }
 0x49f   : > { %18938 = vrot.lane.b32.xlu0 %v37299_v37, %s34717_s19 }
 0x4a2   : > { %18936 = vrot.lane.b32.xlu1 %v37306_v54, %s34717_s19 }
 0x4a3   : > { %19487 = vrot.lane.b32.xlu0 %v37217_v61, %s34718_s20 }
 0x4a4   : > { %v17202_v47 = vpop.permute.xlu0 %17201 }
 0x4a6   : > { %18940 = vrot.lane.b32.xlu1 %v37325_v29, %s34717_s19  ;;  %s39270_s19 = smov 86  }
 0x4a7   : > { %19485 = vrot.lane.b32.xlu0 %v37215_v16, %s34718_s20 }
 0x4a8   : > { %v17206_v34 = vpop.permute.xlu1 %17205 }
 0x4aa   : > { %19489 = vrot.lane.b32.xlu1 %v37229_v14, %s34718_s20 }
 0x4ab   : > { %19493 = vrot.lane.b32.xlu0 %v37246_v32, %s34718_s20 }
 0x4ac   : > { %v17204_v55 = vpop.permute.xlu1 %17203  ;;  %v17210_v51 = vpop.permute.xlu0 %17209 }
 0x4ad   : > { %v17230_v38 = vsel %vm873_vm2, %v17204_v55, %v17206_v34  ;;  %v17229_v49 = vsel %vm873_vm2, %v17202_v47, %v17204_v55 }
 0x4ae   : > { %19491 = vrot.lane.b32.xlu1 %v37234_v21, %s34718_s20  ;;  %17259 = vmatprep.subr.mxu1 %v17230_v38 }
 0x4af   : > { %19497 = vrot.lane.b32.xlu0 %v37263_v33, %s34718_s20  ;;  %17260 = vmatpush1.msra.mxu1 %v17229_v49 }
 0x4b0   : > { %v17208_v9 = vpop.permute.xlu1 %17207  ;;  %v17214_v0 = vpop.permute.xlu0 %17213  ;;  %33415 = vmatmul.mubr.msk.f32.vlgmr.msra.gmra.mrb[6].mxu1 %vm16670_vm1, %v37429_v43 }
 0x4b1   : > { %v17232_v1 = vsel %vm873_vm2, %v17208_v9, %v17210_v51  ;;  %v17231_v8 = vsel %vm873_vm2, %v17206_v34, %v17208_v9  ;;  %17394 = vmatprep.mubr.f32.mxu1 %v37276_v42 }
 0x4b2   : > { %19495 = vrot.lane.b32.xlu1 %v37251_v4, %s34718_s20  ;;  %17330 = vmatprep.subr.mxu1 %v17232_v1 }
 0x4b3   : > { %19501 = vrot.lane.b32.xlu0 %v37280_v52, %s34718_s20  ;;  %17331 = vmatpush1.msra.mxu1 %v17231_v8 }
 0x4b4   : > { %v17212_v2 = vpop.permute.xlu1 %17211  ;;  %v17218_v59 = vpop.permute.xlu0 %17217  ;;  %33416 = vmatmul.mubr.msk.f32.vlgmr.msra.gmra.mrb[8].mxu1 %vm16670_vm1, %v37429_v43 }
 0x4b5   : > { %v17234_v25 = vsel %vm873_vm2, %v17212_v2, %v17214_v0  ;;  %v17233_v5 = vsel %vm873_vm2, %v17210_v51, %v17212_v2  ;;  %17465 = vmatprep.mubr.f32.mxu1 %v37276_v42 }
 0x4b6   : > { %19499 = vrot.lane.b32.xlu1 %v37267_v23, %s34718_s20  ;;  %17401 = vmatprep.subr.mxu1 %v17234_v25 }
 0x4b7   : > { %19505 = vrot.lane.b32.xlu0 %v37295_v18, %s34718_s20  ;;  %17402 = vmatpush1.msra.mxu1 %v17233_v5 }
 0x4b8   : > { %v17216_v10 = vpop.permute.xlu1 %17215  ;;  %v17222_v3 = vpop.permute.xlu0 %17221  ;;  %33417 = vmatmul.mubr.msk.f32.vlgmr.msra.gmra.mrb[10].mxu1 %vm16670_vm1, %v37429_v43 }
 0x4b9   : > { %v17236_v50 = vsel %vm873_vm2, %v17216_v10, %v17218_v59  ;;  %v17235_v7 = vsel %vm873_vm2, %v17214_v0, %v17216_v10  ;;  %17536 = vmatprep.mubr.f32.mxu1 %v37276_v42 }
 0x4ba   : > { %19503 = vrot.lane.b32.xlu1 %v37284_v53, %s34718_s20  ;;  %17472 = vmatprep.subr.mxu1 %v17236_v50 }
 0x4bb   : > { %19509 = vrot.lane.b32.xlu0 %v37299_v37, %s34718_s20  ;;  %17473 = vmatpush1.msra.mxu1 %v17235_v7 }
 0x4bc   : > { %v17220_v56 = vpop.permute.xlu1 %17219  ;;  %33418 = vmatmul.mubr.msk.f32.vlgmr.msra.gmra.mrb[12].mxu1 %vm16670_vm1, %v37429_v43 }
 0x4bd   : > { %v17226_v11 = vpop.permute.xlu0 %17225  ;;  %v17238_v62 = vsel %vm873_vm2, %v17220_v56, %v17222_v3  ;;  %v17237_v63 = vsel %vm873_vm2, %v17218_v59, %v17220_v56  ;;  %17607 = vmatprep.mubr.f32.mxu1 %v37276_v42  ;;  %v37562_v59 = vld [vmem:[%s39217_s3 + $0x18] sm:$0xff] }
 0x4be   : > { %19507 = vrot.lane.b32.xlu1 %v37306_v54, %s34718_s20  ;;  %17543 = vmatprep.subr.mxu1 %v17238_v62 }
 0x4bf   : > { %20058 = vrot.lane.b32.xlu0 %v37217_v61, %s34719_s29  ;;  %17544 = vmatpush1.msra.mxu1 %v17237_v63 }
 0x4c0   : > { %v17224_v58 = vpop.permute.xlu1 %17223  ;;  %33419 = vmatmul.mubr.msk.f32.vlgmr.msra.gmra.mrb[14].mxu1 %vm16670_vm1, %v37429_v43 }
 0x4c1   : > { %v17775_v57 = vpop.permute.xlu0 %17774  ;;  %v17240_v60 = vsel %vm873_vm2, %v17224_v58, %v17226_v11  ;;  %v17239_v15 = vsel %vm873_vm2, %v17222_v3, %v17224_v58  ;;  %17678 = vmatprep.mubr.f32.mxu1 %v37276_v42 }
 0x4c2   : > { %19511 = vrot.lane.b32.xlu1 %v37325_v29, %s34718_s20  ;;  %17614 = vmatprep.subr.mxu1 %v17240_v60  ;;  %s39266_s20 = smov 99  }
 0x4c3   : > { %20056 = vrot.lane.b32.xlu0 %v37215_v16, %s34719_s29  ;;  %17615 = vmatpush1.msra.mxu1 %v17239_v15 }
 0x4c4   : > { %v17228_v13 = vpop.permute.xlu1 %17227  ;;  %33420 = vmatmul.mubr.msk.f32.vlgmr.msra.gmra.mrb[16].mxu1 %vm16670_vm1, %v37429_v43 }
 0x4c5   : > { %v17773_v12 = vpop.permute.xlu0 %17772  ;;  %17685 = vmatprep.subr.mxu1 %v17228_v13  ;;  %v17241_v6 = vsel %vm873_vm2, %v17226_v11, %v17228_v13  ;;  %17749 = vmatprep.mubr.f32.mxu1 %v37276_v42  ;;  %vm39271_vm2 = vcmask 809984  }
 0x4c6   : > { %20060 = vrot.lane.b32.xlu1 %v37229_v14, %s34719_s29  ;;  %17686 = vmatpush1.msra.mxu1 %v17241_v6  ;;  %v17800_v28 = vsel %vm1480_vm3, %v17773_v12, %v17775_v57 }
 0x4c7   : > { %20064 = vrot.lane.b32.xlu0 %v37246_v32, %s34719_s29 }
 0x4c8   : > { %v17777_v20 = vpop.permute.xlu1 %17776  ;;  %33421 = vmatmul.mubr.msk.f32.vlgmr.msra.gmra.mrb[18].mxu1 %vm16670_vm1, %v37429_v43 }
 0x4c9   : > { %v17781_v17 = vpop.permute.xlu0 %17780  ;;  %v17801_v22 = vsel %vm1480_vm3, %v17775_v57, %v17777_v20  ;;  %17894 = vmatprep.mubr.f32.mxu1 %v37276_v42 }
 0x4ca   : > { %20062 = vrot.lane.b32.xlu1 %v37234_v21, %s34719_s29  ;;  %17830 = vmatprep.subr.mxu1 %v17801_v22 }
 0x4cb   : > { %20068 = vrot.lane.b32.xlu0 %v37263_v33, %s34719_s29  ;;  %17831 = vmatpush1.msra.mxu1 %v17800_v28 }
 0x4cc   : > { %v17779_v19 = vpop.permute.xlu1 %17778  ;;  %33423 = vmatmul.mubr.msk.f32.vlgmr.msra.gmra.mrb[6].mxu1 %vm16670_vm1, %v37495_v26 }
 0x4cd   : > { %v17785_v27 = vpop.permute.xlu0 %17784  ;;  %v17803_v24 = vsel %vm1480_vm3, %v17779_v19, %v17781_v17  ;;  %v17802_v46 = vsel %vm1480_vm3, %v17777_v20, %v17779_v19  ;;  %17965 = vmatprep.mubr.f32.mxu1 %v37276_v42 }
 0x4ce   : > { %20066 = vrot.lane.b32.xlu1 %v37251_v4, %s34719_s29  ;;  %17901 = vmatprep.subr.mxu1 %v17803_v24 }
 0x4cf   : > { %20072 = vrot.lane.b32.xlu0 %v37280_v52, %s34719_s29  ;;  %17902 = vmatpush1.msra.mxu1 %v17802_v46 }
 0x4d0   : > { %v17783_v35 = vpop.permute.xlu1 %17782  ;;  %33424 = vmatmul.mubr.msk.f32.vlgmr.msra.gmra.mrb[8].mxu1 %vm16670_vm1, %v37495_v26 }
 0x4d1   : > { %v17789_v36 = vpop.permute.xlu0 %17788  ;;  %v17805_v31 = vsel %vm1480_vm3, %v17783_v35, %v17785_v27  ;;  %v17804_v39 = vsel %vm1480_vm3, %v17781_v17, %v17783_v35  ;;  %18036 = vmatprep.mubr.f32.mxu1 %v37276_v42  ;;  %v37629_v35 = vld [vmem:[%s39217_s3 + $0x20] sm:$0xff] }
 0x4d2   : > { %20070 = vrot.lane.b32.xlu1 %v37267_v23, %s34719_s29  ;;  %17972 = vmatprep.subr.mxu1 %v17805_v31 }
 0x4d3   : > { %20076 = vrot.lane.b32.xlu0 %v37295_v18, %s34719_s29  ;;  %17973 = vmatpush1.msra.mxu1 %v17804_v39 }
 0x4d4   : > { %v17787_v44 = vpop.permute.xlu1 %17786  ;;  %33425 = vmatmul.mubr.msk.f32.vlgmr.msra.gmra.mrb[10].mxu1 %vm16670_vm1, %v37495_v26 }
 0x4d5   : > { %v17793_v45 = vpop.permute.xlu0 %17792  ;;  %v17807_v48 = vsel %vm1480_vm3, %v17787_v44, %v17789_v36  ;;  %v17806_v41 = vsel %vm1480_vm3, %v17785_v27, %v17787_v44  ;;  %18107 = vmatprep.mubr.f32.mxu1 %v37276_v42 }
 0x4d6   : > { %20074 = vrot.lane.b32.xlu1 %v37284_v53, %s34719_s29  ;;  %18043 = vmatprep.subr.mxu1 %v17807_v48 }
 0x4d7   : > { %20080 = vrot.lane.b32.xlu0 %v37299_v37, %s34719_s29  ;;  %18044 = vmatpush1.msra.mxu1 %v17806_v41 }
 0x4d8   : > { %v17791_v30 = vpop.permute.xlu1 %17790  ;;  %33426 = vmatmul.mubr.msk.f32.vlgmr.msra.gmra.mrb[12].mxu1 %vm16670_vm1, %v37495_v26 }
 0x4d9   : > { %v17797_v40 = vpop.permute.xlu0 %17796  ;;  %v17809_v47 = vsel %vm1480_vm3, %v17791_v30, %v17793_v45  ;;  %v17808_v34 = vsel %vm1480_vm3, %v17789_v36, %v17791_v30  ;;  %18178 = vmatprep.mubr.f32.mxu1 %v37276_v42 }
 0x4da   : > { %20078 = vrot.lane.b32.xlu1 %v37306_v54, %s34719_s29  ;;  %18114 = vmatprep.subr.mxu1 %v17809_v47 }
 0x4db   : > { %20629 = vrot.lane.b32.xlu0 %v37217_v61, %s34720_s11  ;;  %18115 = vmatpush1.msra.mxu1 %v17808_v34 }
 0x4dc   : > { %v17795_v55 = vpop.permute.xlu1 %17794  ;;  %33427 = vmatmul.mubr.msk.f32.vlgmr.msra.gmra.mrb[14].mxu1 %vm16670_vm1, %v37495_v26 }
 0x4dd   : > { %v18346_v51 = vpop.permute.xlu0 %18345  ;;  %v17811_v38 = vsel %vm1480_vm3, %v17795_v55, %v17797_v40  ;;  %v17810_v49 = vsel %vm1480_vm3, %v17793_v45, %v17795_v55  ;;  %18249 = vmatprep.mubr.f32.mxu1 %v37276_v42 }
 0x4de   : > { %20082 = vrot.lane.b32.xlu1 %v37325_v29, %s34719_s29  ;;  %18185 = vmatprep.subr.mxu1 %v17811_v38  ;;  %s39332_s29 = smov 83  }
 0x4df   : > { %20627 = vrot.lane.b32.xlu0 %v37215_v16, %s34720_s11  ;;  %18186 = vmatpush1.msra.mxu1 %v17810_v49 }
 0x4e0   : > { %v17799_v43 = vpop.permute.xlu1 %17798  ;;  %33428 = vmatmul.mubr.msk.f32.vlgmr.msra.gmra.mrb[16].mxu1 %vm16670_vm1, %v37495_v26 }
 0x4e1   : > { %v18344_v9 = vpop.permute.xlu0 %18343  ;;  %18256 = vmatprep.subr.mxu1 %v17799_v43  ;;  %v17812_v0 = vsel %vm1480_vm3, %v17797_v40, %v17799_v43  ;;  %18320 = vmatprep.mubr.f32.mxu1 %v37276_v42  ;;  %vm39272_vm3 = vmmov %vm39271_vm2 }
 0x4e2   : > { %20631 = vrot.lane.b32.xlu1 %v37229_v14, %s34720_s11  ;;  %18257 = vmatpush1.msra.mxu1 %v17812_v0  ;;  %v18371_v25 = vsel %vm2087_vm4, %v18344_v9, %v18346_v51 }
 0x4e3   : > { %20635 = vrot.lane.b32.xlu0 %v37246_v32, %s34720_s11 }
 0x4e4   : > { %v18348_v1 = vpop.permute.xlu1 %18347  ;;  %33429 = vmatmul.mubr.msk.f32.vlgmr.msra.gmra.mrb[18].mxu1 %vm16670_vm1, %v37495_v26 }
 0x4e5   : > { %v18352_v8 = vpop.permute.xlu0 %18351  ;;  %v18372_v2 = vsel %vm2087_vm4, %v18346_v51, %v18348_v1  ;;  %18465 = vmatprep.mubr.f32.mxu1 %v37276_v42 }
 0x4e6   : > { %20633 = vrot.lane.b32.xlu1 %v37234_v21, %s34720_s11  ;;  %18401 = vmatprep.subr.mxu1 %v18372_v2 }
 0x4e7   : > { %20639 = vrot.lane.b32.xlu0 %v37263_v33, %s34720_s11  ;;  %18402 = vmatpush1.msra.mxu1 %v18371_v25 }
 0x4e8   : > { %v18350_v5 = vpop.permute.xlu1 %18349  ;;  %33431 = vmatmul.mubr.msk.f32.vlgmr.msra.gmra.mrb[6].mxu1 %vm16670_vm1, %v37562_v59 }
 0x4e9   : > { %v18356_v10 = vpop.permute.xlu0 %18355  ;;  %v18374_v3 = vsel %vm2087_vm4, %v18350_v5, %v18352_v8  ;;  %v18373_v50 = vsel %vm2087_vm4, %v18348_v1, %v18350_v5  ;;  %18536 = vmatprep.mubr.f32.mxu1 %v37276_v42 }
 0x4ea   : > { %20637 = vrot.lane.b32.xlu1 %v37251_v4, %s34720_s11  ;;  %18472 = vmatprep.subr.mxu1 %v18374_v3 }
 0x4eb   : > { %20643 = vrot.lane.b32.xlu0 %v37280_v52, %s34720_s11  ;;  %18473 = vmatpush1.msra.mxu1 %v18373_v50 }
 0x4ec   : > { %v18354_v7 = vpop.permute.xlu1 %18353  ;;  %33432 = vmatmul.mubr.msk.f32.vlgmr.msra.gmra.mrb[8].mxu1 %vm16670_vm1, %v37562_v59 }
 0x4ed   : > { %v18360_v56 = vpop.permute.xlu0 %18359  ;;  %v18376_v11 = vsel %vm2087_vm4, %v18354_v7, %v18356_v10  ;;  %v18375_v62 = vsel %vm2087_vm4, %v18352_v8, %v18354_v7  ;;  %18607 = vmatprep.mubr.f32.mxu1 %v37276_v42  ;;  %v37696_v7 = vld [vmem:[%s39217_s3 + $0x28] sm:$0xff] }
 0x4ee   : > { %20641 = vrot.lane.b32.xlu1 %v37267_v23, %s34720_s11  ;;  %18543 = vmatprep.subr.mxu1 %v18376_v11 }
 0x4ef   : > { %20647 = vrot.lane.b32.xlu0 %v37295_v18, %s34720_s11  ;;  %18544 = vmatpush1.msra.mxu1 %v18375_v62 }
 0x4f0   : > { %v18358_v63 = vpop.permute.xlu1 %18357  ;;  %33433 = vmatmul.mubr.msk.f32.vlgmr.msra.gmra.mrb[10].mxu1 %vm16670_vm1, %v37562_v59 }
 0x4f1   : > { %v18364_v58 = vpop.permute.xlu0 %18363  ;;  %v18378_v57 = vsel %vm2087_vm4, %v18358_v63, %v18360_v56  ;;  %v18377_v60 = vsel %vm2087_vm4, %v18356_v10, %v18358_v63  ;;  %18678 = vmatprep.mubr.f32.mxu1 %v37276_v42 }
 0x4f2   : > { %20645 = vrot.lane.b32.xlu1 %v37284_v53, %s34720_s11  ;;  %18614 = vmatprep.subr.mxu1 %v18378_v57 }
 0x4f3   : > { %20651 = vrot.lane.b32.xlu0 %v37299_v37, %s34720_s11  ;;  %18615 = vmatpush1.msra.mxu1 %v18377_v60 }
 0x4f4   : > { %v18362_v15 = vpop.permute.xlu1 %18361  ;;  %33434 = vmatmul.mubr.msk.f32.vlgmr.msra.gmra.mrb[12].mxu1 %vm16670_vm1, %v37562_v59 }
 0x4f5   : > { %v18368_v13 = vpop.permute.xlu0 %18367  ;;  %v18380_v12 = vsel %vm2087_vm4, %v18362_v15, %v18364_v58  ;;  %v18379_v6 = vsel %vm2087_vm4, %v18360_v56, %v18362_v15  ;;  %18749 = vmatprep.mubr.f32.mxu1 %v37276_v42 }
 0x4f6   : > { %20649 = vrot.lane.b32.xlu1 %v37306_v54, %s34720_s11  ;;  %18685 = vmatprep.subr.mxu1 %v18380_v12 }
 0x4f7   : > { %21200 = vrot.lane.b32.xlu0 %v37217_v61, %s34721_s16  ;;  %18686 = vmatpush1.msra.mxu1 %v18379_v6 }
 0x4f8   : > { %v18366_v20 = vpop.permute.xlu1 %18365  ;;  %33435 = vmatmul.mubr.msk.f32.vlgmr.msra.gmra.mrb[14].mxu1 %vm16670_vm1, %v37562_v59 }
 0x4f9   : > { %v18917_v17 = vpop.permute.xlu0 %18916  ;;  %v18382_v22 = vsel %vm2087_vm4, %v18366_v20, %v18368_v13  ;;  %v18381_v26 = vsel %vm2087_vm4, %v18364_v58, %v18366_v20  ;;  %18820 = vmatprep.mubr.f32.mxu1 %v37276_v42 }
 0x4fa   : > { %20653 = vrot.lane.b32.xlu1 %v37325_v29, %s34720_s11  ;;  %18756 = vmatprep.subr.mxu1 %v18382_v22  ;;  %s39281_s11 = smov 96  }
 0x4fb   : > { %21198 = vrot.lane.b32.xlu0 %v37215_v16, %s34721_s16  ;;  %18757 = vmatpush1.msra.mxu1 %v18381_v26 }
 0x4fc   : > { %v18370_v28 = vpop.permute.xlu1 %18369  ;;  %33436 = vmatmul.mubr.msk.f32.vlgmr.msra.gmra.mrb[16].mxu1 %vm16670_vm1, %v37562_v59 }
 0x4fd   : > { %v18915_v19 = vpop.permute.xlu0 %18914  ;;  %18827 = vmatprep.subr.mxu1 %v18370_v28  ;;  %v18383_v27 = vsel %vm2087_vm4, %v18368_v13, %v18370_v28  ;;  %18891 = vmatprep.mubr.f32.mxu1 %v37276_v42  ;;  %vm39273_vm4 = vmmov %vm39271_vm2 }
 0x4fe   : > { %21202 = vrot.lane.b32.xlu1 %v37229_v14, %s34721_s16  ;;  %18828 = vmatpush1.msra.mxu1 %v18383_v27  ;;  %v18942_v36 = vsel %vm2694_vm5, %v18915_v19, %v18917_v17 }
 0x4ff   : > { %21206 = vrot.lane.b32.xlu0 %v37246_v32, %s34721_s16 }
 0x500   : > { %v18919_v24 = vpop.permute.xlu1 %18918  ;;  %33437 = vmatmul.mubr.msk.f32.vlgmr.msra.gmra.mrb[18].mxu1 %vm16670_vm1, %v37562_v59 }
 0x501   : > { %v18923_v16 = vpop.permute.xlu0 %18922  ;;  %v18943_v46 = vsel %vm2694_vm5, %v18917_v17, %v18919_v24  ;;  %19036 = vmatprep.mubr.f32.mxu1 %v37276_v42 }
 0x502   : > { %21204 = vrot.lane.b32.xlu1 %v37234_v21, %s34721_s16  ;;  %18972 = vmatprep.subr.mxu1 %v18943_v46 }
 0x503   : > { %21210 = vrot.lane.b32.xlu0 %v37263_v33, %s34721_s16  ;;  %18973 = vmatpush1.msra.mxu1 %v18942_v36 }
 0x504   : > { %v18921_v31 = vpop.permute.xlu1 %18920  ;;  %33439 = vmatmul.mubr.msk.f32.vlgmr.msra.gmra.mrb[6].mxu1 %vm16670_vm1, %v37629_v35 }
 0x505   : > { %v18927_v39 = vpop.permute.xlu0 %18926  ;;  %v18945_v44 = vsel %vm2694_vm5, %v18921_v31, %v18923_v16  ;;  %v18944_v45 = vsel %vm2694_vm5, %v18919_v24, %v18921_v31  ;;  %19107 = vmatprep.mubr.f32.mxu1 %v37276_v42 }
 0x506   : > { %21208 = vrot.lane.b32.xlu1 %v37251_v4, %s34721_s16  ;;  %19043 = vmatprep.subr.mxu1 %v18945_v44  ;;  %v37763_v44 = vld [vmem:[%s39217_s3 + $0x30] sm:$0xff] }
 0x507   : > { %21214 = vrot.lane.b32.xlu0 %v37280_v52, %s34721_s16  ;;  %19044 = vmatpush1.msra.mxu1 %v18944_v45 }
 0x508   : > { %v18925_v48 = vpop.permute.xlu1 %18924  ;;  %33440 = vmatmul.mubr.msk.f32.vlgmr.msra.gmra.mrb[8].mxu1 %vm16670_vm1, %v37629_v35 }
 0x509   : > { %v18931_v41 = vpop.permute.xlu0 %18930  ;;  %v18947_v30 = vsel %vm2694_vm5, %v18925_v48, %v18927_v39  ;;  %v18946_v40 = vsel %vm2694_vm5, %v18923_v16, %v18925_v48  ;;  %19178 = vmatprep.mubr.f32.mxu1 %v37276_v42 }
 0x50a   : > { %21212 = vrot.lane.b32.xlu1 %v37267_v23, %s34721_s16  ;;  %19114 = vmatprep.subr.mxu1 %v18947_v30 }
 0x50b   : > { %21218 = vrot.lane.b32.xlu0 %v37295_v18, %s34721_s16  ;;  %19115 = vmatpush1.msra.mxu1 %v18946_v40 }
 0x50c   : > { %v18929_v47 = vpop.permute.xlu1 %18928  ;;  %33441 = vmatmul.mubr.msk.f32.vlgmr.msra.gmra.mrb[10].mxu1 %vm16670_vm1, %v37629_v35 }
 0x50d   : > { %v18935_v34 = vpop.permute.xlu0 %18934  ;;  %v18949_v55 = vsel %vm2694_vm5, %v18929_v47, %v18931_v41  ;;  %v18948_v51 = vsel %vm2694_vm5, %v18927_v39, %v18929_v47  ;;  %19249 = vmatprep.mubr.f32.mxu1 %v37276_v42 }
 0x50e   : > { %21216 = vrot.lane.b32.xlu1 %v37284_v53, %s34721_s16  ;;  %19185 = vmatprep.subr.mxu1 %v18949_v55 }
 0x50f   : > { %21222 = vrot.lane.b32.xlu0 %v37299_v37, %s34721_s16  ;;  %19186 = vmatpush1.msra.mxu1 %v18948_v51 }
 0x510   : > { %v18933_v38 = vpop.permute.xlu1 %18932  ;;  %33442 = vmatmul.mubr.msk.f32.vlgmr.msra.gmra.mrb[12].mxu1 %vm16670_vm1, %v37629_v35 }
 0x511   : > { %v18939_v49 = vpop.permute.xlu0 %18938  ;;  %v18951_v43 = vsel %vm2694_vm5, %v18933_v38, %v18935_v34  ;;  %v18950_v9 = vsel %vm2694_vm5, %v18931_v41, %v18933_v38  ;;  %19320 = vmatprep.mubr.f32.mxu1 %v37276_v42 }
 0x512   : > { %21220 = vrot.lane.b32.xlu1 %v37306_v54, %s34721_s16  ;;  %19256 = vmatprep.subr.mxu1 %v18951_v43 }
 0x513   : > { %21799 = vrot.lane.b32.xlu0 %v37229_v14, %s34722_s9  ;;  %19257 = vmatpush1.msra.mxu1 %v18950_v9 }
 0x514   : > { %v18937_v0 = vpop.permute.xlu1 %18936  ;;  %33443 = vmatmul.mubr.msk.f32.vlgmr.msra.gmra.mrb[14].mxu1 %vm16670_vm1, %v37629_v35 }
 0x515   : > { %v19488_v1 = vpop.permute.xlu0 %19487  ;;  %v18953_v8 = vsel %vm2694_vm5, %v18937_v0, %v18939_v49  ;;  %v18952_v2 = vsel %vm2694_vm5, %v18935_v34, %v18937_v0  ;;  %19391 = vmatprep.mubr.f32.mxu1 %v37276_v42 }
 0x516   : > { %21224 = vrot.lane.b32.xlu1 %v37325_v29, %s34721_s16  ;;  %19327 = vmatprep.subr.mxu1 %v18953_v8  ;;  %s39346_s16 = smov 82  }
 0x517   : > { %21797 = vrot.lane.b32.xlu0 %v37217_v61, %s34722_s9  ;;  %19328 = vmatpush1.msra.mxu1 %v18952_v2 }
 0x518   : > { %v18941_v59 = vpop.permute.xlu1 %18940  ;;  %33444 = vmatmul.mubr.msk.f32.vlgmr.msra.gmra.mrb[16].mxu1 %vm16670_vm1, %v37629_v35 }
 0x519   : > { %v19486_v25 = vpop.permute.xlu0 %19485  ;;  %19398 = vmatprep.subr.mxu1 %v18941_v59  ;;  %v18954_v5 = vsel %vm2694_vm5, %v18939_v49, %v18941_v59  ;;  %19462 = vmatprep.mubr.f32.mxu1 %v37276_v42  ;;  %v37823_v59 = vld [vmem:[#allocation2 + $0x18] sm:$0xff]  ;;  %vm39274_vm5 = vmmov %vm39271_vm2 }
 0x51a   : > { %21801 = vrot.lane.b32.xlu1 %v37234_v21, %s34722_s9  ;;  %19399 = vmatpush1.msra.mxu1 %v18954_v5  ;;  %v19513_v56 = vsel %vm3301_vm6, %v19486_v25, %v19488_v1  ;;  %v37827_v25 = vld [vmem:[#allocation2 + $0x28] sm:$0xff] }
 0x51b   : > { %21805 = vrot.lane.b32.xlu0 %v37251_v4, %s34722_s9 }
 0x51c   : > { %v19490_v10 = vpop.permute.xlu1 %19489  ;;  %33445 = vmatmul.mubr.msk.f32.vlgmr.msra.gmra.mrb[18].mxu1 %vm16670_vm1, %v37629_v35 }
 0x51d   : > { %v19494_v3 = vpop.permute.xlu0 %19493  ;;  %v19514_v50 = vsel %vm3301_vm6, %v19488_v1, %v19490_v10  ;;  %19607 = vmatprep.mubr.f32.mxu1 %v37276_v42 }
 0x51e   : > { %21803 = vrot.lane.b32.xlu1 %v37246_v32, %s34722_s9  ;;  %19543 = vmatprep.subr.mxu1 %v19514_v50  ;;  %v37838_v50 = vld [vmem:[%s39217_s3 + $0x38] sm:$0xff] }
 0x51f   : > { %21809 = vrot.lane.b32.xlu0 %v37267_v23, %s34722_s9  ;;  %19544 = vmatpush1.msra.mxu1 %v19513_v56  ;;  %v37841_v56 = vld [vmem:[#allocation2 + $0x20] sm:$0xff] }
 0x520   : > { %v19492_v11 = vpop.permute.xlu1 %19491  ;;  %33447 = vmatmul.mubr.msk.f32.vlgmr.msra.gmra.mrb[6].mxu1 %vm16670_vm1, %v37696_v7 }
 0x521   : > { %v19498_v62 = vpop.permute.xlu0 %19497  ;;  %v19516_v63 = vsel %vm3301_vm6, %v19492_v11, %v19494_v3  ;;  %v19515_v58 = vsel %vm3301_vm6, %v19490_v10, %v19492_v11  ;;  %19678 = vmatprep.mubr.f32.mxu1 %v37276_v42  ;;  %v37845_v11 = vld [vmem:[#allocation2 + $0x38] sm:$0xff] }
 0x522   : > { %21807 = vrot.lane.b32.xlu1 %v37263_v33, %s34722_s9  ;;  %19614 = vmatprep.subr.mxu1 %v19516_v63 }
 0x523   : > { %21813 = vrot.lane.b32.xlu0 %v37284_v53, %s34722_s9  ;;  %19615 = vmatpush1.msra.mxu1 %v19515_v58 }
 0x524   : > { %v19496_v57 = vpop.permute.xlu1 %19495  ;;  %33448 = vmatmul.mubr.msk.f32.vlgmr.msra.gmra.mrb[8].mxu1 %vm16670_vm1, %v37696_v7 }
 0x525   : > { %v19502_v60 = vpop.permute.xlu0 %19501  ;;  %v19518_v15 = vsel %vm3301_vm6, %v19496_v57, %v19498_v62  ;;  %v19517_v13 = vsel %vm3301_vm6, %v19494_v3, %v19496_v57  ;;  %19749 = vmatprep.mubr.f32.mxu1 %v37276_v42  ;;  %v37853_v57 = vld [vmem:[#allocation2 + $0x70] sm:$0xff] }
 0x526   : > { %21811 = vrot.lane.b32.xlu1 %v37280_v52, %s34722_s9  ;;  %19685 = vmatprep.subr.mxu1 %v19518_v15  ;;  %v37860_v15 = vld [vmem:[#allocation2 + $0x48] sm:$0xff] }
 0x527   : > { %21817 = vrot.lane.b32.xlu0 %v37306_v54, %s34722_s9  ;;  %19686 = vmatpush1.msra.mxu1 %v19517_v13 }
 0x528   : > { %v19500_v12 = vpop.permute.xlu1 %19499  ;;  %33449 = vmatmul.mubr.msk.f32.vlgmr.msra.gmra.mrb[10].mxu1 %vm16670_vm1, %v37696_v7 }
 0x529   : > { %v19506_v6 = vpop.permute.xlu0 %19505  ;;  %v19520_v20 = vsel %vm3301_vm6, %v19500_v12, %v19502_v60  ;;  %v19519_v17 = vsel %vm3301_vm6, %v19498_v62, %v19500_v12  ;;  %19820 = vmatprep.mubr.f32.mxu1 %v37276_v42 }
 0x52a   : > { %21815 = vrot.lane.b32.xlu1 %v37295_v18, %s34722_s9  ;;  %19756 = vmatprep.subr.mxu1 %v19520_v20 }
 0x52b   : > { %21821 = vrot.lane.b32.xlu0 %v37325_v29, %s34722_s9  ;;  %19757 = vmatpush1.msra.mxu1 %v19519_v17  ;;  %v37869_v17 = vld [vmem:[#allocation2 + $0x40] sm:$0xff] }
 0x52c   : > { %v19504_v22 = vpop.permute.xlu1 %19503  ;;  %33450 = vmatmul.mubr.msk.f32.vlgmr.msra.gmra.mrb[12].mxu1 %vm16670_vm1, %v37696_v7 }
 0x52d   : > { %v19510_v26 = vpop.permute.xlu0 %19509  ;;  %v19522_v28 = vsel %vm3301_vm6, %v19504_v22, %v19506_v6  ;;  %v19521_v19 = vsel %vm3301_vm6, %v19502_v60, %v19504_v22  ;;  %19891 = vmatprep.mubr.f32.mxu1 %v37276_v42  ;;  %v37856_v60 = vld [vmem:[#allocation2 + $0x30] sm:$0xff] }
 0x52e   : > { %21819 = vrot.lane.b32.xlu1 %v37299_v37, %s34722_s9  ;;  %19827 = vmatprep.subr.mxu1 %v19522_v28 }
 0x52f   : > { %22370 = vrot.lane.b32.xlu0 %v37229_v14, %s34723_s15  ;;  %19828 = vmatpush1.msra.mxu1 %v19521_v19 }
 0x530   : > { %v19508_v27 = vpop.permute.xlu1 %19507  ;;  %33451 = vmatmul.mubr.msk.f32.vlgmr.msra.gmra.mrb[14].mxu1 %vm16670_vm1, %v37696_v7 }
 0x531   : > { %v20059_v24 = vpop.permute.xlu0 %20058  ;;  %v19524_v16 = vsel %vm3301_vm6, %v19508_v27, %v19510_v26  ;;  %v19523_v46 = vsel %vm3301_vm6, %v19506_v6, %v19508_v27  ;;  %19962 = vmatprep.mubr.f32.mxu1 %v37276_v42  ;;  %v37880_v27 = vld [vmem:[#allocation2 + $0x50] sm:$0xff] }
 0x532   : > { %21823 = vrot.lane.b32.xlu1 %v37276_v42, %s34722_s9  ;;  %19898 = vmatprep.subr.mxu1 %v19524_v16  ;;  %s39268_s9 = smov 88  }
 0x533   : > { %22368 = vrot.lane.b32.xlu0 %v37217_v61, %s34723_s15  ;;  %19899 = vmatpush1.msra.mxu1 %v19523_v46 }
 0x534   : > { %v19512_v14 = vpop.permute.xlu1 %19511  ;;  %33452 = vmatmul.mubr.msk.f32.vlgmr.msra.gmra.mrb[16].mxu1 %vm16670_vm1, %v37696_v7 }
 0x535   : > { %v20057_v35 = vpop.permute.xlu0 %20056  ;;  %19969 = vmatprep.subr.mxu1 %v19512_v14  ;;  %v19525_v36 = vsel %vm3301_vm6, %v19510_v26, %v19512_v14  ;;  %20033 = vmatprep.mubr.f32.mxu1 %v37276_v42  ;;  %v37891_v14 = vld [vmem:[#allocation2 + $0x60] sm:$0xff]  ;;  %vm39275_vm6 = vmmov %vm39271_vm2 }
 0x536   : > { %22372 = vrot.lane.b32.xlu1 %v37234_v21, %s34723_s15  ;;  %19970 = vmatpush1.msra.mxu1 %v19525_v36  ;;  %v20084_v21 = vsel %vm3908_vm7, %v20057_v35, %v20059_v24 }
 0x537   : > { %22376 = vrot.lane.b32.xlu0 %v37251_v4, %s34723_s15 }
 0x538   : > { %v20061_v31 = vpop.permute.xlu1 %20060  ;;  %33453 = vmatmul.mubr.msk.f32.vlgmr.msra.gmra.mrb[18].mxu1 %vm16670_vm1, %v37696_v7 }
 0x539   : > { %v20065_v61 = vpop.permute.xlu0 %20064  ;;  %v20085_v39 = vsel %vm3908_vm7, %v20059_v24, %v20061_v31  ;;  %20178 = vmatprep.mubr.f32.mxu1 %v37276_v42 }
 0x53a   : > { %22374 = vrot.lane.b32.xlu1 %v37246_v32, %s34723_s15  ;;  %20114 = vmatprep.subr.mxu1 %v20085_v39 }
 0x53b   : > { %22380 = vrot.lane.b32.xlu0 %v37267_v23, %s34723_s15  ;;  %20115 = vmatpush1.msra.mxu1 %v20084_v21 }
 0x53c   : > { %v20063_v4 = vpop.permute.xlu1 %20062  ;;  %33455 = vmatmul.mubr.msk.f32.vlgmr.msra.gmra.mrb[6].mxu1 %vm16670_vm1, %v37763_v44 }
 0x53d   : > { %v20069_v45 = vpop.permute.xlu0 %20068  ;;  %v20087_v48 = vsel %vm3908_vm7, %v20063_v4, %v20065_v61  ;;  %v20086_v41 = vsel %vm3908_vm7, %v20061_v31, %v20063_v4  ;;  %20249 = vmatprep.mubr.f32.mxu1 %v37276_v42 }
 0x53e   : > { %22378 = vrot.lane.b32.xlu1 %v37263_v33, %s34723_s15  ;;  %20185 = vmatprep.subr.mxu1 %v20087_v48  ;;  %v37921_v48 = vld [vmem:[%s39217_s3 + $0x40] sm:$0xff] }
 0x53f   : > { %22384 = vrot.lane.b32.xlu0 %v37284_v53, %s34723_s15  ;;  %20186 = vmatpush1.msra.mxu1 %v20086_v41 }
 0x540   : > { %v20067_v32 = vpop.permute.xlu1 %20066  ;;  %33456 = vmatmul.mubr.msk.f32.vlgmr.msra.gmra.mrb[8].mxu1 %vm16670_vm1, %v37763_v44 }
 0x541   : > { %v20073_v23 = vpop.permute.xlu0 %20072  ;;  %v20089_v30 = vsel %vm3908_vm7, %v20067_v32, %v20069_v45  ;;  %v20088_v40 = vsel %vm3908_vm7, %v20065_v61, %v20067_v32  ;;  %20320 = vmatprep.mubr.f32.mxu1 %v37276_v42 }
 0x542   : > { %22382 = vrot.lane.b32.xlu1 %v37280_v52, %s34723_s15  ;;  %20256 = vmatprep.subr.mxu1 %v20089_v30 }
 0x543   : > { %22388 = vrot.lane.b32.xlu0 %v37306_v54, %s34723_s15  ;;  %20257 = vmatpush1.msra.mxu1 %v20088_v40 }
 0x544   : > { %v20071_v33 = vpop.permute.xlu1 %20070  ;;  %33457 = vmatmul.mubr.msk.f32.vlgmr.msra.gmra.mrb[10].mxu1 %vm16670_vm1, %v37763_v44 }
 0x545   : > { %v20077_v53 = vpop.permute.xlu0 %20076  ;;  %v20091_v47 = vsel %vm3908_vm7, %v20071_v33, %v20073_v23  ;;  %v20090_v34 = vsel %vm3908_vm7, %v20069_v45, %v20071_v33  ;;  %20391 = vmatprep.mubr.f32.mxu1 %v37276_v42 }
 0x546   : > { %22386 = vrot.lane.b32.xlu1 %v37295_v18, %s34723_s15  ;;  %20327 = vmatprep.subr.mxu1 %v20091_v47  ;;  %v37804_v18 = vld [vmem:[#allocation2 + $0x10] sm:$0xff] }
 0x547   : > { %22392 = vrot.lane.b32.xlu0 %v37325_v29, %s34723_s15  ;;  %20328 = vmatpush1.msra.mxu1 %v20090_v34 }
 0x548   : > { %v20075_v52 = vpop.permute.xlu1 %20074  ;;  %33458 = vmatmul.mubr.msk.f32.vlgmr.msra.gmra.mrb[12].mxu1 %vm16670_vm1, %v37763_v44 }
 0x549   : > { %v20081_v55 = vpop.permute.xlu0 %20080  ;;  %v20093_v51 = vsel %vm3908_vm7, %v20075_v52, %v20077_v53  ;;  %v20092_v38 = vsel %vm3908_vm7, %v20073_v23, %v20075_v52  ;;  %20462 = vmatprep.mubr.f32.mxu1 %v37276_v42  ;;  %v37944_v52 = vld [vmem:[#allocation2 + $0x58] sm:$0xff] }
 0x54a   : > { %22390 = vrot.lane.b32.xlu1 %v37299_v37, %s34723_s15  ;;  %20398 = vmatprep.subr.mxu1 %v20093_v51  ;;  %v37815_v37 = vld [vmem:[#allocation2 + $0x8] sm:$0xff] }
 0x54b   : > { %22941 = vrot.lane.b32.xlu0 %v37804_v18, %s34724_s10  ;;  %20399 = vmatpush1.msra.mxu1 %v20092_v38 }
 0x54c   : > { %v20079_v49 = vpop.permute.xlu1 %20078  ;;  %33459 = vmatmul.mubr.msk.f32.vlgmr.msra.gmra.mrb[14].mxu1 %vm16670_vm1, %v37763_v44 }
 0x54d   : > { %v20630_v43 = vpop.permute.xlu0 %20629  ;;  %v20095_v9 = vsel %vm3908_vm7, %v20079_v49, %v20081_v55  ;;  %v20094_v0 = vsel %vm3908_vm7, %v20077_v53, %v20079_v49  ;;  %20533 = vmatprep.mubr.f32.mxu1 %v37276_v42 }
 0x54e   : > { %22394 = vrot.lane.b32.xlu1 %v37276_v42, %s34723_s15  ;;  %20469 = vmatprep.subr.mxu1 %v20095_v9  ;;  %s39306_s15 = smov 94  }
 0x54f   : > { %22939 = vrot.lane.b32.xlu0 %v37815_v37, %s34724_s10  ;;  %20470 = vmatpush1.msra.mxu1 %v20094_v0 }
 0x550   : > { %v20083_v1 = vpop.permute.xlu1 %20082  ;;  %33460 = vmatmul.mubr.msk.f32.vlgmr.msra.gmra.mrb[16].mxu1 %vm16670_vm1, %v37763_v44 }
 0x551   : > { %v20628_v8 = vpop.permute.xlu0 %20627  ;;  %20540 = vmatprep.subr.mxu1 %v20083_v1  ;;  %v20096_v2 = vsel %vm3908_vm7, %v20081_v55, %v20083_v1  ;;  %20604 = vmatprep.mubr.f32.mxu1 %v37276_v42  ;;  %vm39276_vm7 = vmmov %vm39271_vm2 }
 0x552   : > { %22943 = vrot.lane.b32.xlu1 %v37823_v59, %s34724_s10  ;;  %20541 = vmatpush1.msra.mxu1 %v20096_v2  ;;  %v20655_v7 = vsel %vm4515_vm8, %v20628_v8, %v20630_v43 }
 0x553   : > { %22947 = vrot.lane.b32.xlu0 %v37827_v25, %s34724_s10 }
 0x554   : > { %v20632_v5 = vpop.permute.xlu1 %20631  ;;  %33461 = vmatmul.mubr.msk.f32.vlgmr.msra.gmra.mrb[18].mxu1 %vm16670_vm1, %v37763_v44 }
 0x555   : > { %v20636_v10 = vpop.permute.xlu0 %20635  ;;  %v20656_v3 = vsel %vm4515_vm8, %v20630_v43, %v20632_v5  ;;  %20749 = vmatprep.mubr.f32.mxu1 %v37276_v42  ;;  %v37955_v43 = vld [vmem:[#allocation2 + $0x68] sm:$0xff] }
 0x556   : > { %22945 = vrot.lane.b32.xlu1 %v37841_v56, %s34724_s10  ;;  %20685 = vmatprep.subr.mxu1 %v20656_v3 }
 0x557   : > { %22951 = vrot.lane.b32.xlu0 %v37845_v11, %s34724_s10  ;;  %20686 = vmatpush1.msra.mxu1 %v20655_v7 }
 0x558   : > { %v20634_v42 = vpop.permute.xlu1 %20633  ;;  %33463 = vmatmul.mubr.msk.f32.vlgmr.msra.gmra.mrb[6].mxu1 %vm16670_vm1, %v37838_v50 }
 0x559   : > { %v20640_v62 = vpop.permute.xlu0 %20639  ;;  %v20658_v63 = vsel %vm4515_vm8, %v20634_v42, %v20636_v10  ;;  %v20657_v58 = vsel %vm4515_vm8, %v20632_v5, %v20634_v42  ;;  %20820 = vmatprep.mubr.f32.mxu1 %v37853_v57 }
 0x55a   : > { %22949 = vrot.lane.b32.xlu1 %v37856_v60, %s34724_s10  ;;  %20756 = vmatprep.subr.mxu1 %v20658_v63 }
 0x55b   : > { %22955 = vrot.lane.b32.xlu0 %v37860_v15, %s34724_s10  ;;  %20757 = vmatpush1.msra.mxu1 %v20657_v58 }
 0x55c   : > { %v20638_v13 = vpop.permute.xlu1 %20637  ;;  %33464 = vmatmul.mubr.msk.f32.vlgmr.msra.gmra.mrb[8].mxu1 %vm16670_vm1, %v37838_v50 }
 0x55d   : > { %v20644_v12 = vpop.permute.xlu0 %20643  ;;  %v20660_v6 = vsel %vm4515_vm8, %v20638_v13, %v20640_v62  ;;  %v20659_v20 = vsel %vm4515_vm8, %v20636_v10, %v20638_v13  ;;  %20891 = vmatprep.mubr.f32.mxu1 %v37853_v57  ;;  %v37992_v13 = vld [vmem:[%s39217_s3 + $0x48] sm:$0xff] }
 0x55e   : > { %22953 = vrot.lane.b32.xlu1 %v37869_v17, %s34724_s10  ;;  %20827 = vmatprep.subr.mxu1 %v20660_v6 }
 0x55f   : > { %22959 = vrot.lane.b32.xlu0 %v37306_v54, %s34724_s10  ;;  %20828 = vmatpush1.msra.mxu1 %v20659_v20 }
 0x560   : > { %v20642_v22 = vpop.permute.xlu1 %20641  ;;  %33465 = vmatmul.mubr.msk.f32.vlgmr.msra.gmra.mrb[10].mxu1 %vm16670_vm1, %v37838_v50 }
 0x561   : > { %v20648_v26 = vpop.permute.xlu0 %20647  ;;  %v20662_v28 = vsel %vm4515_vm8, %v20642_v22, %v20644_v12  ;;  %v20661_v19 = vsel %vm4515_vm8, %v20640_v62, %v20642_v22  ;;  %20962 = vmatprep.mubr.f32.mxu1 %v37853_v57 }
 0x562   : > { %22957 = vrot.lane.b32.xlu1 %v37880_v27, %s34724_s10  ;;  %20898 = vmatprep.subr.mxu1 %v20662_v28 }
 0x563   : > { %22963 = vrot.lane.b32.xlu0 %v37325_v29, %s34724_s10  ;;  %20899 = vmatpush1.msra.mxu1 %v20661_v19 }
 0x564   : > { %v20646_v54 = vpop.permute.xlu1 %20645  ;;  %33466 = vmatmul.mubr.msk.f32.vlgmr.msra.gmra.mrb[12].mxu1 %vm16670_vm1, %v37838_v50 }
 0x565   : > { %v20652_v24 = vpop.permute.xlu0 %20651  ;;  %v20664_v16 = vsel %vm4515_vm8, %v20646_v54, %v20648_v26  ;;  %v20663_v46 = vsel %vm4515_vm8, %v20644_v12, %v20646_v54  ;;  %21033 = vmatprep.mubr.f32.mxu1 %v37853_v57 }
 0x566   : > { %22961 = vrot.lane.b32.xlu1 %v37891_v14, %s34724_s10  ;;  %20969 = vmatprep.subr.mxu1 %v20664_v16 }
 0x567   : > { %23512 = vrot.lane.b32.xlu0 %v37804_v18, %s39265_s18  ;;  %20970 = vmatpush1.msra.mxu1 %v20663_v46 }
 0x568   : > { %v20650_v29 = vpop.permute.xlu1 %20649  ;;  %33467 = vmatmul.mubr.msk.f32.vlgmr.msra.gmra.mrb[14].mxu1 %vm16670_vm1, %v37838_v50 }
 0x569   : > { %v21201_v35 = vpop.permute.xlu0 %21200  ;;  %v20666_v36 = vsel %vm4515_vm8, %v20650_v29, %v20652_v24  ;;  %v20665_v31 = vsel %vm4515_vm8, %v20648_v26, %v20650_v29  ;;  %21104 = vmatprep.mubr.f32.mxu1 %v37853_v57 }
 0x56a   : > { %22965 = vrot.lane.b32.xlu1 %v37853_v57, %s34724_s10  ;;  %21040 = vmatprep.subr.mxu1 %v20666_v36  ;;  %s39320_s10 = smov 84  }
 0x56b   : > { %23510 = vrot.lane.b32.xlu0 %v37815_v37, %s39265_s18  ;;  %21041 = vmatpush1.msra.mxu1 %v20665_v31 }
 0x56c   : > { %v20654_v61 = vpop.permute.xlu1 %20653  ;;  %33468 = vmatmul.mubr.msk.f32.vlgmr.msra.gmra.mrb[16].mxu1 %vm16670_vm1, %v37838_v50 }
 0x56d   : > { %v21199_v39 = vpop.permute.xlu0 %21198  ;;  %21111 = vmatprep.subr.mxu1 %v20654_v61  ;;  %v20667_v44 = vsel %vm4515_vm8, %v20652_v24, %v20654_v61  ;;  %21175 = vmatprep.mubr.f32.mxu1 %v37853_v57  ;;  %vm39277_vm8 = vmmov %vm39271_vm2 }
 0x56e   : > { %23514 = vrot.lane.b32.xlu1 %v37823_v59, %s39265_s18  ;;  %21112 = vmatpush1.msra.mxu1 %v20667_v44  ;;  %v21226_v41 = vsel %vm5122_vm9, %v21199_v39, %v21201_v35 }
 0x56f   : > { %23518 = vrot.lane.b32.xlu0 %v37827_v25, %s39265_s18 }
 0x570   : > { %v21203_v21 = vpop.permute.xlu1 %21202  ;;  %33469 = vmatmul.mubr.msk.f32.vlgmr.msra.gmra.mrb[18].mxu1 %vm16670_vm1, %v37838_v50 }
 0x571   : > { %v21207_v4 = vpop.permute.xlu0 %21206  ;;  %v21227_v45 = vsel %vm5122_vm9, %v21201_v35, %v21203_v21  ;;  %21320 = vmatprep.mubr.f32.mxu1 %v37853_v57 }
 0x572   : > { %23516 = vrot.lane.b32.xlu1 %v37841_v56, %s39265_s18  ;;  %21256 = vmatprep.subr.mxu1 %v21227_v45 }
 0x573   : > { %23522 = vrot.lane.b32.xlu0 %v37845_v11, %s39265_s18  ;;  %21257 = vmatpush1.msra.mxu1 %v21226_v41 }
 0x574   : > { %v21205_v32 = vpop.permute.xlu1 %21204  ;;  %33471 = vmatmul.mubr.msk.f32.vlgmr.msra.gmra.mrb[6].mxu1 %vm16670_vm1, %v37921_v48 }
 0x575   : > { %v21211_v23 = vpop.permute.xlu0 %21210  ;;  %v21229_v30 = vsel %vm5122_vm9, %v21205_v32, %v21207_v4  ;;  %v21228_v40 = vsel %vm5122_vm9, %v21203_v21, %v21205_v32  ;;  %21391 = vmatprep.mubr.f32.mxu1 %v37853_v57 }
 0x576   : > { %23520 = vrot.lane.b32.xlu1 %v37856_v60, %s39265_s18  ;;  %21327 = vmatprep.subr.mxu1 %v21229_v30 }
 0x577   : > { %23526 = vrot.lane.b32.xlu0 %v37860_v15, %s39265_s18  ;;  %21328 = vmatpush1.msra.mxu1 %v21228_v40 }
 0x578   : > { %v21209_v33 = vpop.permute.xlu1 %21208  ;;  %33472 = vmatmul.mubr.msk.f32.vlgmr.msra.gmra.mrb[8].mxu1 %vm16670_vm1, %v37921_v48 }
 0x579   : > { %v21215_v53 = vpop.permute.xlu0 %21214  ;;  %v21231_v47 = vsel %vm5122_vm9, %v21209_v33, %v21211_v23  ;;  %v21230_v34 = vsel %vm5122_vm9, %v21207_v4, %v21209_v33  ;;  %21462 = vmatprep.mubr.f32.mxu1 %v37853_v57  ;;  %v38059_v33 = vld [vmem:[%s39217_s3 + $0x50] sm:$0xff] }
 0x57a   : > { %23524 = vrot.lane.b32.xlu1 %v37869_v17, %s39265_s18  ;;  %21398 = vmatprep.subr.mxu1 %v21231_v47 }
 0x57b   : > { %23530 = vrot.lane.b32.xlu0 %v37944_v52, %s39265_s18  ;;  %21399 = vmatpush1.msra.mxu1 %v21230_v34 }
 0x57c   : > { %v21213_v55 = vpop.permute.xlu1 %21212  ;;  %33473 = vmatmul.mubr.msk.f32.vlgmr.msra.gmra.mrb[10].mxu1 %vm16670_vm1, %v37921_v48 }
 0x57d   : > { %v21219_v51 = vpop.permute.xlu0 %21218  ;;  %v21233_v38 = vsel %vm5122_vm9, %v21213_v55, %v21215_v53  ;;  %v21232_v49 = vsel %vm5122_vm9, %v21211_v23, %v21213_v55  ;;  %21533 = vmatprep.mubr.f32.mxu1 %v37853_v57 }
 0x57e   : > { %23528 = vrot.lane.b32.xlu1 %v37880_v27, %s39265_s18  ;;  %21469 = vmatprep.subr.mxu1 %v21233_v38 }
 0x57f   : > { %23534 = vrot.lane.b32.xlu0 %v37955_v43, %s39265_s18  ;;  %21470 = vmatpush1.msra.mxu1 %v21232_v49 }
 0x580   : > { %v21217_v9 = vpop.permute.xlu1 %21216  ;;  %33474 = vmatmul.mubr.msk.f32.vlgmr.msra.gmra.mrb[12].mxu1 %vm16670_vm1, %v37921_v48 }
 0x581   : > { %v21223_v0 = vpop.permute.xlu0 %21222  ;;  %v21235_v1 = vsel %vm5122_vm9, %v21217_v9, %v21219_v51  ;;  %v21234_v8 = vsel %vm5122_vm9, %v21215_v53, %v21217_v9  ;;  %21604 = vmatprep.mubr.f32.mxu1 %v37853_v57 }
 0x582   : > { %23532 = vrot.lane.b32.xlu1 %v37891_v14, %s39265_s18  ;;  %21540 = vmatprep.subr.mxu1 %v21235_v1 }
 0x583   : > { %24083 = vrot.lane.b32.xlu0 %v37804_v18, %s39266_s20  ;;  %21541 = vmatpush1.msra.mxu1 %v21234_v8 }
 0x584   : > { %v21221_v2 = vpop.permute.xlu1 %21220  ;;  %33475 = vmatmul.mubr.msk.f32.vlgmr.msra.gmra.mrb[14].mxu1 %vm16670_vm1, %v37921_v48 }
 0x585   : > { %v21800_v5 = vpop.permute.xlu0 %21799  ;;  %v21237_v10 = vsel %vm5122_vm9, %v21221_v2, %v21223_v0  ;;  %v21236_v3 = vsel %vm5122_vm9, %v21219_v51, %v21221_v2  ;;  %21675 = vmatprep.mubr.f32.mxu1 %v37853_v57 }
 0x586   : > { %23536 = vrot.lane.b32.xlu1 %v37853_v57, %s39265_s18  ;;  %21611 = vmatprep.subr.mxu1 %v21237_v10  ;;  %s39373_s18 = smov 71  }
 0x587   : > { %24081 = vrot.lane.b32.xlu0 %v37815_v37, %s39266_s20  ;;  %21612 = vmatpush1.msra.mxu1 %v21236_v3 }
 0x588   : > { %v21225_v50 = vpop.permute.xlu1 %21224  ;;  %33476 = vmatmul.mubr.msk.f32.vlgmr.msra.gmra.mrb[16].mxu1 %vm16670_vm1, %v37921_v48 }
 0x589   : > { %v21798_v7 = vpop.permute.xlu0 %21797  ;;  %21682 = vmatprep.subr.mxu1 %v21225_v50  ;;  %v21238_v42 = vsel %vm5122_vm9, %v21223_v0, %v21225_v50  ;;  %21746 = vmatprep.mubr.f32.mxu1 %v37853_v57  ;;  %vm39278_vm9 = vmmov %vm39271_vm2 }
 0x58a   : > { %24085 = vrot.lane.b32.xlu1 %v37823_v59, %s39266_s20  ;;  %21683 = vmatpush1.msra.mxu1 %v21238_v42  ;;  %v21825_v12 = vsel %vm5729_vm10, %v21798_v7, %v21800_v5 }
 0x58b   : > { %24089 = vrot.lane.b32.xlu0 %v37827_v25, %s39266_s20 }
 0x58c   : > { %v21802_v62 = vpop.permute.xlu1 %21801  ;;  %33477 = vmatmul.mubr.msk.f32.vlgmr.msra.gmra.mrb[18].mxu1 %vm16670_vm1, %v37921_v48 }
 0x58d   : > { %v21806_v63 = vpop.permute.xlu0 %21805  ;;  %v21826_v58 = vsel %vm5729_vm10, %v21800_v5, %v21802_v62  ;;  %21919 = vmatprep.mubr.f32.mxu1 %v37853_v57 }
 0x58e   : > { %24087 = vrot.lane.b32.xlu1 %v37841_v56, %s39266_s20  ;;  %21855 = vmatprep.subr.mxu1 %v21826_v58 }
 0x58f   : > { %24093 = vrot.lane.b32.xlu0 %v37845_v11, %s39266_s20  ;;  %21856 = vmatpush1.msra.mxu1 %v21825_v12 }
 0x590   : > { %v21804_v6 = vpop.permute.xlu1 %21803  ;;  %33479 = vmatmul.mubr.msk.f32.vlgmr.msra.gmra.mrb[6].mxu1 %vm16670_vm1, %v37992_v13 }
 0x591   : > { %v21810_v20 = vpop.permute.xlu0 %21809  ;;  %v21828_v22 = vsel %vm5729_vm10, %v21804_v6, %v21806_v63  ;;  %v21827_v26 = vsel %vm5729_vm10, %v21802_v62, %v21804_v6  ;;  %21990 = vmatprep.mubr.f32.mxu1 %v37853_v57 }
 0x592   : > { %24091 = vrot.lane.b32.xlu1 %v37856_v60, %s39266_s20  ;;  %21926 = vmatprep.subr.mxu1 %v21828_v22 }
 0x593   : > { %24097 = vrot.lane.b32.xlu0 %v37860_v15, %s39266_s20  ;;  %21927 = vmatpush1.msra.mxu1 %v21827_v26 }
 0x594   : > { %v21808_v28 = vpop.permute.xlu1 %21807  ;;  %33480 = vmatmul.mubr.msk.f32.vlgmr.msra.gmra.mrb[8].mxu1 %vm16670_vm1, %v37992_v13 }
 0x595   : > { %v21814_v19 = vpop.permute.xlu0 %21813  ;;  %v21830_v54 = vsel %vm5729_vm10, %v21808_v28, %v21810_v20  ;;  %v21829_v24 = vsel %vm5729_vm10, %v21806_v63, %v21808_v28  ;;  %22061 = vmatprep.mubr.f32.mxu1 %v37853_v57  ;;  %v38126_v28 = vld [vmem:[%s39217_s3 + $0x58] sm:$0xff] }
 0x596   : > { %24095 = vrot.lane.b32.xlu1 %v37869_v17, %s39266_s20  ;;  %21997 = vmatprep.subr.mxu1 %v21830_v54 }
 0x597   : > { %24101 = vrot.lane.b32.xlu0 %v37944_v52, %s39266_s20  ;;  %21998 = vmatpush1.msra.mxu1 %v21829_v24 }
 0x598   : > { %v21812_v16 = vpop.permute.xlu1 %21811  ;;  %33481 = vmatmul.mubr.msk.f32.vlgmr.msra.gmra.mrb[10].mxu1 %vm16670_vm1, %v37992_v13 }
 0x599   : > { %v21818_v46 = vpop.permute.xlu0 %21817  ;;  %v21832_v29 = vsel %vm5729_vm10, %v21812_v16, %v21814_v19  ;;  %v21831_v35 = vsel %vm5729_vm10, %v21810_v20, %v21812_v16  ;;  %22132 = vmatprep.mubr.f32.mxu1 %v37853_v57 }
 0x59a   : > { %24099 = vrot.lane.b32.xlu1 %v37880_v27, %s39266_s20  ;;  %22068 = vmatprep.subr.mxu1 %v21832_v29 }
 0x59b   : > { %24105 = vrot.lane.b32.xlu0 %v37955_v43, %s39266_s20  ;;  %22069 = vmatpush1.msra.mxu1 %v21831_v35 }
 0x59c   : > { %v21816_v36 = vpop.permute.xlu1 %21815  ;;  %33482 = vmatmul.mubr.msk.f32.vlgmr.msra.gmra.mrb[12].mxu1 %vm16670_vm1, %v37992_v13 }
 0x59d   : > { %v21822_v31 = vpop.permute.xlu0 %21821  ;;  %v21834_v61 = vsel %vm5729_vm10, %v21816_v36, %v21818_v46  ;;  %v21833_v39 = vsel %vm5729_vm10, %v21814_v19, %v21816_v36  ;;  %22203 = vmatprep.mubr.f32.mxu1 %v37853_v57 }
 0x59e   : > { %24103 = vrot.lane.b32.xlu1 %v37891_v14, %s39266_s20  ;;  %22139 = vmatprep.subr.mxu1 %v21834_v61 }
 0x59f   : > { %24654 = vrot.lane.b32.xlu0 %v37804_v18, %s39267_s12  ;;  %22140 = vmatpush1.msra.mxu1 %v21833_v39 }
 0x5a0   : > { %v21820_v44 = vpop.permute.xlu1 %21819  ;;  %33483 = vmatmul.mubr.msk.f32.vlgmr.msra.gmra.mrb[14].mxu1 %vm16670_vm1, %v37992_v13 }
 0x5a1   : > { %v22371_v21 = vpop.permute.xlu0 %22370  ;;  %v21836_v4 = vsel %vm5729_vm10, %v21820_v44, %v21822_v31  ;;  %v21835_v45 = vsel %vm5729_vm10, %v21818_v46, %v21820_v44  ;;  %22274 = vmatprep.mubr.f32.mxu1 %v37853_v57 }
 0x5a2   : > { %24107 = vrot.lane.b32.xlu1 %v37853_v57, %s39266_s20  ;;  %22210 = vmatprep.subr.mxu1 %v21836_v4 }
 0x5a3   : > { %24652 = vrot.lane.b32.xlu0 %v37815_v37, %s39267_s12  ;;  %22211 = vmatpush1.msra.mxu1 %v21835_v45 }
 0x5a4   : > { %v21824_v48 = vpop.permute.xlu1 %21823  ;;  %33484 = vmatmul.mubr.msk.f32.vlgmr.msra.gmra.mrb[16].mxu1 %vm16670_vm1, %v37992_v13 }
 0x5a5   : > { %v22369_v41 = vpop.permute.xlu0 %22368  ;;  %22281 = vmatprep.subr.mxu1 %v21824_v48  ;;  %v21837_v32 = vsel %vm5729_vm10, %v21822_v31, %v21824_v48  ;;  %22345 = vmatprep.mubr.f32.mxu1 %v37853_v57  ;;  %vm39279_vm10 = vmmov %vm39271_vm2 }
 0x5a6   : > { %24656 = vrot.lane.b32.xlu1 %v37823_v59, %s39267_s12  ;;  %22282 = vmatpush1.msra.mxu1 %v21837_v32  ;;  %v22396_v53 = vsel %vm6336_vm11, %v22369_v41, %v22371_v21 }
 0x5a7   : > { %24660 = vrot.lane.b32.xlu0 %v37827_v25, %s39267_s12 }
 0x5a8   : > { %v22373_v23 = vpop.permute.xlu1 %22372  ;;  %33485 = vmatmul.mubr.msk.f32.vlgmr.msra.gmra.mrb[18].mxu1 %vm16670_vm1, %v37992_v13 }
 0x5a9   : > { %v22377_v30 = vpop.permute.xlu0 %22376  ;;  %v22397_v40 = vsel %vm6336_vm11, %v22371_v21, %v22373_v23  ;;  %22490 = vmatprep.mubr.f32.mxu1 %v37853_v57 }
 0x5aa   : > { %24658 = vrot.lane.b32.xlu1 %v37841_v56, %s39267_s12  ;;  %22426 = vmatprep.subr.mxu1 %v22397_v40 }
 0x5ab   : > { %24664 = vrot.lane.b32.xlu0 %v37845_v11, %s39267_s12  ;;  %22427 = vmatpush1.msra.mxu1 %v22396_v53 }
 0x5ac   : > { %v22375_v47 = vpop.permute.xlu1 %22374  ;;  %33487 = vmatmul.mubr.msk.f32.vlgmr.msra.gmra.mrb[6].mxu1 %vm16670_vm1, %v38059_v33 }
 0x5ad   : > { %v22381_v34 = vpop.permute.xlu0 %22380  ;;  %v22399_v55 = vsel %vm6336_vm11, %v22375_v47, %v22377_v30  ;;  %v22398_v51 = vsel %vm6336_vm11, %v22373_v23, %v22375_v47  ;;  %22561 = vmatprep.mubr.f32.mxu1 %v37853_v57 }
 0x5ae   : > { %24662 = vrot.lane.b32.xlu1 %v37856_v60, %s39267_s12  ;;  %22497 = vmatprep.subr.mxu1 %v22399_v55 }
 0x5af   : > { %24668 = vrot.lane.b32.xlu0 %v37860_v15, %s39267_s12  ;;  %22498 = vmatpush1.msra.mxu1 %v22398_v51 }
 0x5b0   : > { %v22379_v38 = vpop.permute.xlu1 %22378  ;;  %33488 = vmatmul.mubr.msk.f32.vlgmr.msra.gmra.mrb[8].mxu1 %vm16670_vm1, %v38059_v33 }
 0x5b1   : > { %v22385_v49 = vpop.permute.xlu0 %22384  ;;  %v22401_v9 = vsel %vm6336_vm11, %v22379_v38, %v22381_v34  ;;  %v22400_v0 = vsel %vm6336_vm11, %v22377_v30, %v22379_v38  ;;  %22632 = vmatprep.mubr.f32.mxu1 %v37853_v57  ;;  %v38193_v38 = vld [vmem:[%s39217_s3 + $0x60] sm:$0xff] }
 0x5b2   : > { %24666 = vrot.lane.b32.xlu1 %v37869_v17, %s39267_s12  ;;  %22568 = vmatprep.subr.mxu1 %v22401_v9 }
 0x5b3   : > { %24672 = vrot.lane.b32.xlu0 %v37944_v52, %s39267_s12  ;;  %22569 = vmatpush1.msra.mxu1 %v22400_v0 }
 0x5b4   : > { %v22383_v1 = vpop.permute.xlu1 %22382  ;;  %33489 = vmatmul.mubr.msk.f32.vlgmr.msra.gmra.mrb[10].mxu1 %vm16670_vm1, %v38059_v33 }
 0x5b5   : > { %v22389_v8 = vpop.permute.xlu0 %22388  ;;  %v22403_v2 = vsel %vm6336_vm11, %v22383_v1, %v22385_v49  ;;  %v22402_v5 = vsel %vm6336_vm11, %v22381_v34, %v22383_v1  ;;  %22703 = vmatprep.mubr.f32.mxu1 %v37853_v57 }
 0x5b6   : > { %24670 = vrot.lane.b32.xlu1 %v37880_v27, %s39267_s12  ;;  %22639 = vmatprep.subr.mxu1 %v22403_v2 }
 0x5b7   : > { %24676 = vrot.lane.b32.xlu0 %v37955_v43, %s39267_s12  ;;  %22640 = vmatpush1.msra.mxu1 %v22402_v5 }
 0x5b8   : > { %v22387_v10 = vpop.permute.xlu1 %22386  ;;  %33490 = vmatmul.mubr.msk.f32.vlgmr.msra.gmra.mrb[12].mxu1 %vm16670_vm1, %v38059_v33 }
 0x5b9   : > { %v22393_v3 = vpop.permute.xlu0 %22392  ;;  %v22405_v50 = vsel %vm6336_vm11, %v22387_v10, %v22389_v8  ;;  %v22404_v7 = vsel %vm6336_vm11, %v22385_v49, %v22387_v10  ;;  %22774 = vmatprep.mubr.f32.mxu1 %v37853_v57 }
 0x5ba   : > { %24674 = vrot.lane.b32.xlu1 %v37891_v14, %s39267_s12  ;;  %22710 = vmatprep.subr.mxu1 %v22405_v50 }
 0x5bb   : > { %25225 = vrot.lane.b32.xlu0 %v37804_v18, %s39268_s9  ;;  %22711 = vmatpush1.msra.mxu1 %v22404_v7 }
 0x5bc   : > { %v22391_v42 = vpop.permute.xlu1 %22390  ;;  %33491 = vmatmul.mubr.msk.f32.vlgmr.msra.gmra.mrb[14].mxu1 %vm16670_vm1, %v38059_v33 }
 0x5bd   : > { %v22942_v62 = vpop.permute.xlu0 %22941  ;;  %v22407_v63 = vsel %vm6336_vm11, %v22391_v42, %v22393_v3  ;;  %v22406_v58 = vsel %vm6336_vm11, %v22389_v8, %v22391_v42  ;;  %22845 = vmatprep.mubr.f32.mxu1 %v37853_v57 }
 0x5be   : > { %24678 = vrot.lane.b32.xlu1 %v37853_v57, %s39267_s12  ;;  %22781 = vmatprep.subr.mxu1 %v22407_v63 }
 0x5bf   : > { %25223 = vrot.lane.b32.xlu0 %v37815_v37, %s39268_s9  ;;  %22782 = vmatpush1.msra.mxu1 %v22406_v58 }
 0x5c0   : > { %v22395_v13 = vpop.permute.xlu1 %22394  ;;  %33492 = vmatmul.mubr.msk.f32.vlgmr.msra.gmra.mrb[16].mxu1 %vm16670_vm1, %v38059_v33 }
 0x5c1   : > { %v22940_v12 = vpop.permute.xlu0 %22939  ;;  %22852 = vmatprep.subr.mxu1 %v22395_v13  ;;  %v22408_v6 = vsel %vm6336_vm11, %v22393_v3, %v22395_v13  ;;  %22916 = vmatprep.mubr.f32.mxu1 %v37853_v57  ;;  %vm39280_vm11 = vmmov %vm39271_vm2 }
 0x5c2   : > { %25227 = vrot.lane.b32.xlu1 %v37823_v59, %s39268_s9  ;;  %22853 = vmatpush1.msra.mxu1 %v22408_v6  ;;  %v22967_v19 = vsel %vm6943_vm12, %v22940_v12, %v22942_v62 }
 0x5c3   : > { %25231 = vrot.lane.b32.xlu0 %v37827_v25, %s39268_s9 }
 0x5c4   : > { %v22944_v20 = vpop.permute.xlu1 %22943  ;;  %33493 = vmatmul.mubr.msk.f32.vlgmr.msra.gmra.mrb[18].mxu1 %vm16670_vm1, %v38059_v33 }
 0x5c5   : > { %v22948_v22 = vpop.permute.xlu0 %22947  ;;  %v22968_v26 = vsel %vm6943_vm12, %v22942_v62, %v22944_v20  ;;  %23061 = vmatprep.mubr.f32.mxu1 %v37853_v57 }
 0x5c6   : > { %25229 = vrot.lane.b32.xlu1 %v37841_v56, %s39268_s9  ;;  %22997 = vmatprep.subr.mxu1 %v22968_v26 }
 0x5c7   : > { %25235 = vrot.lane.b32.xlu0 %v37845_v11, %s39268_s9  ;;  %22998 = vmatpush1.msra.mxu1 %v22967_v19 }
 0x5c8   : > { %v22946_v54 = vpop.permute.xlu1 %22945  ;;  %33495 = vmatmul.mubr.msk.f32.vlgmr.msra.gmra.mrb[6].mxu1 %vm16670_vm1, %v38126_v28 }
 0x5c9   : > { %v22952_v24 = vpop.permute.xlu0 %22951  ;;  %v22970_v16 = vsel %vm6943_vm12, %v22946_v54, %v22948_v22  ;;  %v22969_v46 = vsel %vm6943_vm12, %v22944_v20, %v22946_v54  ;;  %23132 = vmatprep.mubr.f32.mxu1 %v37853_v57 }
 0x5ca   : > { %25233 = vrot.lane.b32.xlu1 %v37856_v60, %s39268_s9  ;;  %23068 = vmatprep.subr.mxu1 %v22970_v16  ;;  %v38260_v16 = vld [vmem:[%s39217_s3 + $0x68] sm:$0xff] }
 0x5cb   : > { %25239 = vrot.lane.b32.xlu0 %v37860_v15, %s39268_s9  ;;  %23069 = vmatpush1.msra.mxu1 %v22969_v46 }
 0x5cc   : > { %v22950_v29 = vpop.permute.xlu1 %22949  ;;  %33496 = vmatmul.mubr.msk.f32.vlgmr.msra.gmra.mrb[8].mxu1 %vm16670_vm1, %v38126_v28 }
 0x5cd   : > { %v22956_v35 = vpop.permute.xlu0 %22955  ;;  %v22972_v36 = vsel %vm6943_vm12, %v22950_v29, %v22952_v24  ;;  %v22971_v31 = vsel %vm6943_vm12, %v22948_v22, %v22950_v29  ;;  %23203 = vmatprep.mubr.f32.mxu1 %v37853_v57 }
 0x5ce   : > { %25237 = vrot.lane.b32.xlu1 %v37869_v17, %s39268_s9  ;;  %23139 = vmatprep.subr.mxu1 %v22972_v36 }
 0x5cf   : > { %25243 = vrot.lane.b32.xlu0 %v37944_v52, %s39268_s9  ;;  %23140 = vmatpush1.msra.mxu1 %v22971_v31 }
 0x5d0   : > { %v22954_v61 = vpop.permute.xlu1 %22953  ;;  %33497 = vmatmul.mubr.msk.f32.vlgmr.msra.gmra.mrb[10].mxu1 %vm16670_vm1, %v38126_v28 }
 0x5d1   : > { %v22960_v39 = vpop.permute.xlu0 %22959  ;;  %v22974_v44 = vsel %vm6943_vm12, %v22954_v61, %v22956_v35  ;;  %v22973_v21 = vsel %vm6943_vm12, %v22952_v24, %v22954_v61  ;;  %23274 = vmatprep.mubr.f32.mxu1 %v37853_v57 }
 0x5d2   : > { %25241 = vrot.lane.b32.xlu1 %v37880_v27, %s39268_s9  ;;  %23210 = vmatprep.subr.mxu1 %v22974_v44 }
 0x5d3   : > { %25247 = vrot.lane.b32.xlu0 %v37955_v43, %s39268_s9  ;;  %23211 = vmatpush1.msra.mxu1 %v22973_v21 }
 0x5d4   : > { %v22958_v4 = vpop.permute.xlu1 %22957  ;;  %33498 = vmatmul.mubr.msk.f32.vlgmr.msra.gmra.mrb[12].mxu1 %vm16670_vm1, %v38126_v28 }
 0x5d5   : > { %v22964_v45 = vpop.permute.xlu0 %22963  ;;  %v22976_v48 = vsel %vm6943_vm12, %v22958_v4, %v22960_v39  ;;  %v22975_v41 = vsel %vm6943_vm12, %v22956_v35, %v22958_v4  ;;  %23345 = vmatprep.mubr.f32.mxu1 %v37853_v57  ;;  %v38299_v4 = vld [vmem:[#allocation2 + $0x18] sm:$0xff] }
 0x5d6   : > { %25245 = vrot.lane.b32.xlu1 %v37891_v14, %s39268_s9  ;;  %23281 = vmatprep.subr.mxu1 %v22976_v48 }
 0x5d7   : > { %25796 = vrot.lane.b32.xlu0 %v37804_v18, %s39269_s17  ;;  %23282 = vmatpush1.msra.mxu1 %v22975_v41  ;;  %v38310_v41 = vld [vmem:[#allocation2 + $0x10] sm:$0xff] }
 0x5d8   : > { %v22962_v32 = vpop.permute.xlu1 %22961  ;;  %33499 = vmatmul.mubr.msk.f32.vlgmr.msra.gmra.mrb[14].mxu1 %vm16670_vm1, %v38126_v28 }
 0x5d9   : > { %v23513_v23 = vpop.permute.xlu0 %23512  ;;  %v22978_v30 = vsel %vm6943_vm12, %v22962_v32, %v22964_v45  ;;  %v22977_v40 = vsel %vm6943_vm12, %v22960_v39, %v22962_v32  ;;  %23416 = vmatprep.mubr.f32.mxu1 %v37853_v57 }
 0x5da   : > { %25249 = vrot.lane.b32.xlu1 %v37853_v57, %s39268_s9  ;;  %23352 = vmatprep.subr.mxu1 %v22978_v30  ;;  %s34741_s9 = smov [#allocation3]  }
 0x5db   : > { %25794 = vrot.lane.b32.xlu0 %v37815_v37, %s39269_s17  ;;  %23353 = vmatpush1.msra.mxu1 %v22977_v40  ;;  %v38322_v40 = vld [vmem:[#allocation2 + $0x30] sm:$0xff] }
 0x5dc   : > { %v22966_v33 = vpop.permute.xlu1 %22965  ;;  %33500 = vmatmul.mubr.msk.f32.vlgmr.msra.gmra.mrb[16].mxu1 %vm16670_vm1, %v38126_v28 }
 0x5dd   : > { %v23511_v53 = vpop.permute.xlu0 %23510  ;;  %23423 = vmatprep.subr.mxu1 %v22966_v33  ;;  %v22979_v47 = vsel %vm6943_vm12, %v22964_v45, %v22966_v33  ;;  %23487 = vmatprep.mubr.f32.mxu1 %v37853_v57  ;;  %vm39282_vm12 = vmmov %vm39271_vm2 }
 0x5de   : > { %25798 = vrot.lane.b32.xlu1 %v37823_v59, %s39269_s17  ;;  %23424 = vmatpush1.msra.mxu1 %v22979_v47  ;;  %v23538_v49 = vsel %vm7550_vm13, %v23511_v53, %v23513_v23  ;;  %v38330_v47 = vld [vmem:[#allocation2 + $0x28] sm:$0xff] }
 0x5df   : > { %25802 = vrot.lane.b32.xlu0 %v37827_v25, %s39269_s17 }
 0x5e0   : > { %v23515_v34 = vpop.permute.xlu1 %23514  ;;  %33501 = vmatmul.mubr.msk.f32.vlgmr.msra.gmra.mrb[18].mxu1 %vm16670_vm1, %v38126_v28 }
 0x5e1   : > { %v23519_v55 = vpop.permute.xlu0 %23518  ;;  %v23539_v51 = vsel %vm7550_vm13, %v23513_v23, %v23515_v34  ;;  %23632 = vmatprep.mubr.f32.mxu1 %v37853_v57  ;;  %v38318_v23 = vld [vmem:[#allocation2 + $0x20] sm:$0xff] }
 0x5e2   : > { %25800 = vrot.lane.b32.xlu1 %v37841_v56, %s39269_s17  ;;  %23568 = vmatprep.subr.mxu1 %v23539_v51 }
 0x5e3   : > { %25806 = vrot.lane.b32.xlu0 %v37845_v11, %s39269_s17  ;;  %23569 = vmatpush1.msra.mxu1 %v23538_v49 }
 0x5e4   : > { %v23517_v9 = vpop.permute.xlu1 %23516  ;;  %33503 = vmatmul.mubr.msk.f32.vlgmr.msra.gmra.mrb[6].mxu1 %vm16670_vm1, %v38193_v38 }
 0x5e5   : > { %v23523_v0 = vpop.permute.xlu0 %23522  ;;  %v23541_v1 = vsel %vm7550_vm13, %v23517_v9, %v23519_v55  ;;  %v23540_v8 = vsel %vm7550_vm13, %v23515_v34, %v23517_v9  ;;  %23703 = vmatprep.mubr.f32.mxu1 %v37853_v57 }
 0x5e6   : > { %25804 = vrot.lane.b32.xlu1 %v37856_v60, %s39269_s17  ;;  %23639 = vmatprep.subr.mxu1 %v23541_v1 }
 0x5e7   : > { %25810 = vrot.lane.b32.xlu0 %v37860_v15, %s39269_s17  ;;  %23640 = vmatpush1.msra.mxu1 %v23540_v8 }
 0x5e8   : > { %v23521_v2 = vpop.permute.xlu1 %23520  ;;  %33504 = vmatmul.mubr.msk.f32.vlgmr.msra.gmra.mrb[8].mxu1 %vm16670_vm1, %v38193_v38 }
 0x5e9   : > { %v23527_v5 = vpop.permute.xlu0 %23526  ;;  %v23543_v10 = vsel %vm7550_vm13, %v23521_v2, %v23523_v0  ;;  %v23542_v3 = vsel %vm7550_vm13, %v23519_v55, %v23521_v2  ;;  %23774 = vmatprep.mubr.f32.mxu1 %v37853_v57  ;;  %v38337_v55 = vld [vmem:[%s39217_s3 + $0x70] sm:$0xff] }
 0x5ea   : > { %25808 = vrot.lane.b32.xlu1 %v37869_v17, %s39269_s17  ;;  %23710 = vmatprep.subr.mxu1 %v23543_v10  ;;  %v38353_v2 = vld [vmem:[#allocation2 + $0x50] sm:$0xff] }
 0x5eb   : > { %25814 = vrot.lane.b32.xlu0 %v37944_v52, %s39269_s17  ;;  %23711 = vmatpush1.msra.mxu1 %v23542_v3  ;;  %v38361_v3 = vld [vmem:[#allocation2 + $0x48] sm:$0xff] }
 0x5ec   : > { %v23525_v50 = vpop.permute.xlu1 %23524  ;;  %33505 = vmatmul.mubr.msk.f32.vlgmr.msra.gmra.mrb[10].mxu1 %vm16670_vm1, %v38193_v38 }
 0x5ed   : > { %v23531_v7 = vpop.permute.xlu0 %23530  ;;  %v23545_v42 = vsel %vm7550_vm13, %v23525_v50, %v23527_v5  ;;  %v23544_v62 = vsel %vm7550_vm13, %v23523_v0, %v23525_v50  ;;  %23845 = vmatprep.mubr.f32.mxu1 %v37853_v57  ;;  %v38348_v0 = vld [vmem:[#allocation2 + $0x38] sm:$0xff] }
 0x5ee   : > { %25812 = vrot.lane.b32.xlu1 %v37880_v27, %s39269_s17  ;;  %23781 = vmatprep.subr.mxu1 %v23545_v42  ;;  %v38366_v42 = vld [vmem:[#allocation2 + $0x60] sm:$0xff] }
 0x5ef   : > { %25818 = vrot.lane.b32.xlu0 %v37955_v43, %s39269_s17  ;;  %23782 = vmatpush1.msra.mxu1 %v23544_v62  ;;  %v38372_v62 = vld [vmem:[#allocation2 + $0x70] sm:$0xff] }
 0x5f0   : > { %v23529_v63 = vpop.permute.xlu1 %23528  ;;  %33506 = vmatmul.mubr.msk.f32.vlgmr.msra.gmra.mrb[12].mxu1 %vm16670_vm1, %v38193_v38 }
 0x5f1   : > { %v23535_v58 = vpop.permute.xlu0 %23534  ;;  %v23547_v13 = vsel %vm7550_vm13, %v23529_v63, %v23531_v7  ;;  %v23546_v12 = vsel %vm7550_vm13, %v23527_v5, %v23529_v63  ;;  %23916 = vmatprep.mubr.f32.mxu1 %v37853_v57  ;;  %v38376_v63 = vpack.i.bf16 %v38372_v62, %v38372_v62 }
 0x5f2   : > { %25816 = vrot.lane.b32.xlu1 %v37891_v14, %s39269_s17  ;;  %23852 = vmatprep.subr.mxu1 %v23547_v13  ;;  %v38380_v13 = vld [vmem:[#allocation2 + $0x58] sm:$0xff] }
 0x5f3   : > { %26367 = vrot.lane.b32.xlu0 %v37804_v18, %s39270_s19  ;;  %23853 = vmatpush1.msra.mxu1 %v23546_v12 }
 0x5f4   : > { %v23533_v6 = vpop.permute.xlu1 %23532  ;;  %33507 = vmatmul.mubr.msk.f32.vlgmr.msra.gmra.mrb[14].mxu1 %vm16670_vm1, %v38193_v38 }
 0x5f5   : > { %v24084_v20 = vpop.permute.xlu0 %24083  ;;  %v23549_v22 = vsel %vm7550_vm13, %v23533_v6, %v23535_v58  ;;  %v23548_v26 = vsel %vm7550_vm13, %v23531_v7, %v23533_v6  ;;  %23987 = vmatprep.mubr.f32.mxu1 %v37853_v57 }
 0x5f6   : > { %25820 = vrot.lane.b32.xlu1 %v37853_v57, %s39269_s17  ;;  %23923 = vmatprep.subr.mxu1 %v23549_v22 }
 0x5f7   : > { %26365 = vrot.lane.b32.xlu0 %v37815_v37, %s39270_s19  ;;  %23924 = vmatpush1.msra.mxu1 %v23548_v26  ;;  %v38391_v26 = vld [vmem:[#allocation2 + $0x68] sm:$0xff] }
 0x5f8   : > { %v23537_v18 = vpop.permute.xlu1 %23536  ;;  %33508 = vmatmul.mubr.msk.f32.vlgmr.msra.gmra.mrb[16].mxu1 %vm16670_vm1, %v38193_v38 }
 0x5f9   : > { %v24082_v28 = vpop.permute.xlu0 %24081  ;;  %23994 = vmatprep.subr.mxu1 %v23537_v18  ;;  %v23550_v19 = vsel %vm7550_vm13, %v23535_v58, %v23537_v18  ;;  %24058 = vmatprep.mubr.f32.mxu1 %v37853_v57  ;;  %vm39283_vm13 = vmmov %vm39271_vm2 }
 0x5fa   : > { %26369 = vrot.lane.b32.xlu1 %v37823_v59, %s39270_s19  ;;  %23995 = vmatpush1.msra.mxu1 %v23550_v19  ;;  %v24109_v59 = vsel %vm39272_vm3, %v24082_v28, %v24084_v20  ;;  %vm39284_vm3 = vcmask 801792  }
 0x5fb   : > { %26373 = vrot.lane.b32.xlu0 %v37827_v25, %s39270_s19 }
 0x5fc   : > { %v24086_v54 = vpop.permute.xlu1 %24085  ;;  %33509 = vmatmul.mubr.msk.f32.vlgmr.msra.gmra.mrb[18].mxu1 %vm16670_vm1, %v38193_v38  ;;  %v38340_v38 = vld [vmem:[#allocation2 + $0x40] sm:$0xff] }
 0x5fd   : > { %v24090_v37 = vpop.permute.xlu0 %24089  ;;  %v24110_v24 = vsel %vm39271_vm2, %v24084_v20, %v24086_v54  ;;  %24203 = vmatprep.mubr.f32.mxu1 %v37853_v57 }
 0x5fe   : > { %26371 = vrot.lane.b32.xlu1 %v37841_v56, %s39270_s19  ;;  %24139 = vmatprep.subr.mxu1 %v24110_v24 }
 0x5ff   : > { %26377 = vrot.lane.b32.xlu0 %v37845_v11, %s39270_s19  ;;  %24140 = vmatpush1.msra.mxu1 %v24109_v59 }
 0x600   : > { %v24088_v25 = vpop.permute.xlu1 %24087  ;;  %33511 = vmatmul.mubr.msk.f32.vlgmr.msra.gmra.mrb[6].mxu1 %vm16670_vm1, %v38260_v16 }
 0x601   : > { %v24094_v46 = vpop.permute.xlu0 %24093  ;;  %v24112_v29 = vsel %vm39273_vm4, %v24088_v25, %v24090_v37  ;;  %v24111_v35 = vsel %vm39274_vm5, %v24086_v54, %v24088_v25  ;;  %24274 = vmatprep.mubr.f32.mxu1 %v37853_v57  ;;  %vm39285_vm4 = vmmov %vm39284_vm3 }
 0x602   : > { %26375 = vrot.lane.b32.xlu1 %v37856_v60, %s39270_s19  ;;  %24210 = vmatprep.subr.mxu1 %v24112_v29  ;;  %vm39286_vm5 = vmmov %vm39284_vm3 }
 0x603   : > { %26381 = vrot.lane.b32.xlu0 %v37860_v15, %s39270_s19  ;;  %24211 = vmatpush1.msra.mxu1 %v24111_v35 }
 0x604   : > { %v24092_v56 = vpop.permute.xlu1 %24091  ;;  %33512 = vmatmul.mubr.msk.f32.vlgmr.msra.gmra.mrb[8].mxu1 %vm16670_vm1, %v38260_v16 }
 0x605   : > { %v24098_v11 = vpop.permute.xlu0 %24097  ;;  %v24114_v36 = vsel %vm39275_vm6, %v24092_v56, %v24094_v46  ;;  %v24113_v31 = vsel %vm39276_vm7, %v24090_v37, %v24092_v56  ;;  %24345 = vmatprep.mubr.f32.mxu1 %v37853_v57  ;;  %vm39287_vm6 = vmmov %vm39284_vm3  ;;  %v38424_v56 = vld [vmem:[%s39217_s3 + $0x78] sm:$0xff] }
 0x606   : > { %26379 = vrot.lane.b32.xlu1 %v37869_v17, %s39270_s19  ;;  %24281 = vmatprep.subr.mxu1 %v24114_v36  ;;  %vm39288_vm7 = vmmov %vm39284_vm3 }
 0x607   : > { %26385 = vrot.lane.b32.xlu0 %v37944_v52, %s39270_s19  ;;  %24282 = vmatpush1.msra.mxu1 %v24113_v31 }
 0x608   : > { %v24096_v60 = vpop.permute.xlu1 %24095  ;;  %33513 = vmatmul.mubr.msk.f32.vlgmr.msra.gmra.mrb[10].mxu1 %vm16670_vm1, %v38260_v16 }
 0x609   : > { %v24102_v15 = vpop.permute.xlu0 %24101  ;;  %v24116_v61 = vsel %vm39277_vm8, %v24096_v60, %v24098_v11  ;;  %v24115_v39 = vsel %vm39278_vm9, %v24094_v46, %v24096_v60  ;;  %24416 = vmatprep.mubr.f32.mxu1 %v37853_v57  ;;  %vm39289_vm8 = vmmov %vm39284_vm3 }
 0x60a   : > { %26383 = vrot.lane.b32.xlu1 %v37880_v27, %s39270_s19  ;;  %24352 = vmatprep.subr.mxu1 %v24116_v61  ;;  %vm39290_vm9 = vmmov %vm39284_vm3 }
 0x60b   : > { %26389 = vrot.lane.b32.xlu0 %v37955_v43, %s39270_s19  ;;  %24353 = vmatpush1.msra.mxu1 %v24115_v39 }
 0x60c   : > { %v24100_v17 = vpop.permute.xlu1 %24099  ;;  %33514 = vmatmul.mubr.msk.f32.vlgmr.msra.gmra.mrb[12].mxu1 %vm16670_vm1, %v38260_v16 }
 0x60d   : > { %v24106_v52 = vpop.permute.xlu0 %24105  ;;  %v24118_v44 = vsel %vm39279_vm10, %v24100_v17, %v24102_v15  ;;  %v24117_v21 = vsel %vm39280_vm11, %v24098_v11, %v24100_v17  ;;  %24487 = vmatprep.mubr.f32.mxu1 %v37853_v57  ;;  %vm39291_vm10 = vmmov %vm39284_vm3 }
 0x60e   : > { %26387 = vrot.lane.b32.xlu1 %v37891_v14, %s39270_s19  ;;  %24423 = vmatprep.subr.mxu1 %v24118_v44  ;;  %vm39292_vm11 = vmmov %vm39284_vm3 }
 0x60f   : > { %26966 = vrot.lane.b32.xlu0 %v38299_v4, %s39281_s11  ;;  %24424 = vmatpush1.msra.mxu1 %v24117_v21 }
 0x610   : > { %v24104_v27 = vpop.permute.xlu1 %24103  ;;  %33515 = vmatmul.mubr.msk.f32.vlgmr.msra.gmra.mrb[14].mxu1 %vm16670_vm1, %v38260_v16 }
 0x611   : > { %v24655_v43 = vpop.permute.xlu0 %24654  ;;  %v24120_v45 = vsel %vm39282_vm12, %v24104_v27, %v24106_v52  ;;  %v24119_v48 = vsel %vm39283_vm13, %v24102_v15, %v24104_v27  ;;  %24558 = vmatprep.mubr.f32.mxu1 %v37853_v57  ;;  %vm39293_vm12 = vmmov %vm39284_vm3 }
 0x612   : > { %26391 = vrot.lane.b32.xlu1 %v37853_v57, %s39270_s19  ;;  %24494 = vmatprep.subr.mxu1 %v24120_v45  ;;  %vm39295_vm13 = vmmov %vm39284_vm3  ;;  %s242_s19 = sand.u32 1, %s34703_s22  }
 0x613   : > { %26964 = vrot.lane.b32.xlu0 %v38310_v41, %s39281_s11  ;;  %24495 = vmatpush1.msra.mxu1 %v24119_v48  ;;  %s34403_s20 = smul.u32 112, %s242_s19 }
 0x614   : > { %v24108_v14 = vpop.permute.xlu1 %24107  ;;  %33516 = vmatmul.mubr.msk.f32.vlgmr.msra.gmra.mrb[16].mxu1 %vm16670_vm1, %v38260_v16 }
 0x615   : > { %v24653_v32 = vpop.permute.xlu0 %24652  ;;  %24565 = vmatprep.subr.mxu1 %v24108_v14  ;;  %v24121_v30 = vsel %vm39271_vm2, %v24106_v52, %v24108_v14  ;;  %24629 = vmatprep.mubr.f32.mxu1 %v37853_v57  ;;  %vm39296_vm2 = vmmov %vm39284_vm3 }
 0x616   : > { %26968 = vrot.lane.b32.xlu1 %v38318_v23, %s39281_s11  ;;  %24566 = vmatpush1.msra.mxu1 %v24121_v30  ;;  %v24680_v51 = vsel %vm39285_vm4, %v24653_v32, %v24655_v43  ;;  %vm39298_vm4 = vcmask 719872  }
 0x617   : > { %26972 = vrot.lane.b32.xlu0 %v38322_v40, %s39281_s11 }
 0x618   : > { %v24657_v33 = vpop.permute.xlu1 %24656  ;;  %33517 = vmatmul.mubr.msk.f32.vlgmr.msra.gmra.mrb[18].mxu1 %vm16670_vm1, %v38260_v16 }
 0x619   : > { %v24661_v53 = vpop.permute.xlu0 %24660  ;;  %v24681_v34 = vsel %vm39284_vm3, %v24655_v43, %v24657_v33  ;;  %24774 = vmatprep.mubr.f32.mxu1 %v37853_v57  ;;  %vm39297_vm3 = vmmov %vm39296_vm2 }
 0x61a   : > { %26970 = vrot.lane.b32.xlu1 %v38330_v47, %s39281_s11  ;;  %24710 = vmatprep.subr.mxu1 %v24681_v34 }
 0x61b   : > { %26976 = vrot.lane.b32.xlu0 %v38340_v38, %s39281_s11  ;;  %24711 = vmatpush1.msra.mxu1 %v24680_v51 }
 0x61c   : > { %v24659_v49 = vpop.permute.xlu1 %24658  ;;  %33519 = vmatmul.mubr.msk.f32.vlgmr.msra.gmra.mrb[6].mxu1 %vm16670_vm1, %v38337_v55 }
 0x61d   : > { %v24665_v9 = vpop.permute.xlu0 %24664  ;;  %v24683_v1 = vsel %vm39286_vm5, %v24659_v49, %v24661_v53  ;;  %v24682_v8 = vsel %vm39287_vm6, %v24657_v33, %v24659_v49  ;;  %24845 = vmatprep.mubr.f32.mxu1 %v37853_v57  ;;  %vm39299_vm5 = vmmov %vm39298_vm4 }
 0x61e   : > { %26974 = vrot.lane.b32.xlu1 %v38348_v0, %s39281_s11  ;;  %24781 = vmatprep.subr.mxu1 %v24683_v1  ;;  %vm39300_vm6 = vmmov %vm39298_vm4 }
 0x61f   : > { %26980 = vrot.lane.b32.xlu0 %v38353_v2, %s39281_s11  ;;  %24782 = vmatpush1.msra.mxu1 %v24682_v8 }
 0x620   : > { %v24663_v5 = vpop.permute.xlu1 %24662  ;;  %33520 = vmatmul.mubr.msk.f32.vlgmr.msra.gmra.mrb[8].mxu1 %vm16670_vm1, %v38337_v55 }
 0x621   : > { %v24669_v10 = vpop.permute.xlu0 %24668  ;;  %v24685_v50 = vsel %vm39288_vm7, %v24663_v5, %v24665_v9  ;;  %v24684_v7 = vsel %vm39289_vm8, %v24661_v53, %v24663_v5  ;;  %24916 = vmatprep.mubr.f32.mxu1 %v37853_v57  ;;  %vm39301_vm7 = vmmov %vm39298_vm4  ;;  %v38491_v5 = vld [vmem:[%s39217_s3 + $0x80] sm:$0xff] }
 0x622   : > { %26978 = vrot.lane.b32.xlu1 %v38361_v3, %s39281_s11  ;;  %24852 = vmatprep.subr.mxu1 %v24685_v50  ;;  %vm39302_vm8 = vmmov %vm39298_vm4 }
 0x623   : > { %26984 = vrot.lane.b32.xlu0 %v38366_v42, %s39281_s11  ;;  %24853 = vmatpush1.msra.mxu1 %v24684_v7 }
 0x624   : > { %v24667_v58 = vpop.permute.xlu1 %24666  ;;  %33521 = vmatmul.mubr.msk.f32.vlgmr.msra.gmra.mrb[10].mxu1 %vm16670_vm1, %v38337_v55 }
 0x625   : > { %v24673_v57 = vpop.permute.xlu0 %24672  ;;  %v24687_v12 = vsel %vm39290_vm9, %v24667_v58, %v24669_v10  ;;  %v24686_v6 = vsel %vm39291_vm10, %v24665_v9, %v24667_v58  ;;  %24987 = vmatprep.mubr.f32.mxu1 %v38372_v62  ;;  %vm39303_vm9 = vmmov %vm39298_vm4 }
 0x626   : > { %26982 = vrot.lane.b32.xlu1 %v38380_v13, %s39281_s11  ;;  %24923 = vmatprep.subr.mxu1 %v24687_v12  ;;  %vm39304_vm10 = vmmov %vm39298_vm4 }
 0x627   : > { %34474 = vrot.lane.b32.xlu0 %v38376_v63, %s39281_s11  ;;  %24924 = vmatpush1.msra.mxu1 %v24686_v6 }
 0x628   : > { %v24671_v20 = vpop.permute.xlu1 %24670  ;;  %33522 = vmatmul.mubr.msk.f32.vlgmr.msra.gmra.mrb[12].mxu1 %vm16670_vm1, %v38337_v55 }
 0x629   : > { %v24677_v22 = vpop.permute.xlu0 %24676  ;;  %v24689_v18 = vsel %vm39292_vm11, %v24671_v20, %v24673_v57  ;;  %v24688_v28 = vsel %vm39293_vm12, %v24669_v10, %v24671_v20  ;;  %25058 = vmatprep.mubr.f32.mxu1 %v38372_v62  ;;  %vm39305_vm11 = vmmov %vm39298_vm4 }
 0x62a   : > { %26986 = vrot.lane.b32.xlu1 %v38391_v26, %s39281_s11  ;;  %24994 = vmatprep.subr.mxu1 %v24689_v18  ;;  %vm39307_vm12 = vmmov %vm39298_vm4 }
 0x62b   : > { %27539 = vrot.lane.b32.xlu0 %v38318_v23, %s39294_s26  ;;  %24995 = vmatpush1.msra.mxu1 %v24688_v28 }
 0x62c   : > { %v24675_v19 = vpop.permute.xlu1 %24674  ;;  %33523 = vmatmul.mubr.msk.f32.vlgmr.msra.gmra.mrb[14].mxu1 %vm16670_vm1, %v38337_v55 }
 0x62d   : > { %v25226_v54 = vpop.permute.xlu0 %25225  ;;  %v24691_v37 = vsel %vm39295_vm13, %v24675_v19, %v24677_v22  ;;  %v24690_v24 = vsel %vm39296_vm2, %v24673_v57, %v24675_v19  ;;  %25129 = vmatprep.mubr.f32.mxu1 %v38372_v62  ;;  %vm39308_vm13 = vmmov %vm39298_vm4 }
 0x62e   : > { %27537 = vrot.lane.b32.xlu1 %v38299_v4, %s39294_s26  ;;  %25065 = vmatprep.subr.mxu1 %v24691_v37  ;;  %vm39309_vm2 = vmmov %vm39298_vm4 }
 0x62f   : > { %27541 = vrot.lane.b32.xlu0 %v38330_v47, %s39294_s26  ;;  %25066 = vmatpush1.msra.mxu1 %v24690_v24 }
 0x630   : > { %v24679_v16 = vpop.permute.xlu1 %24678  ;;  %33524 = vmatmul.mubr.msk.f32.vlgmr.msra.gmra.mrb[16].mxu1 %vm16670_vm1, %v38337_v55 }
 0x631   : > { %v25224_v59 = vpop.permute.xlu0 %25223  ;;  %25136 = vmatprep.subr.mxu1 %v24679_v16  ;;  %v24692_v25 = vsel %vm39297_vm3, %v24677_v22, %v24679_v16  ;;  %25200 = vmatprep.mubr.f32.mxu1 %v38372_v62  ;;  %vm39310_vm3 = vmmov %vm39309_vm2 }
 0x632   : > { %27535 = vrot.lane.b32.xlu1 %v38310_v41, %s39294_s26  ;;  %25137 = vmatpush1.msra.mxu1 %v24692_v25  ;;  %v25251_v11 = vsel %vm39299_vm5, %v25224_v59, %v25226_v54  ;;  %vm39312_vm5 = vcmask 711680  }
 0x633   : > { %27545 = vrot.lane.b32.xlu0 %v38348_v0, %s39294_s26 }
 0x634   : > { %v25228_v46 = vpop.permute.xlu1 %25227  ;;  %33525 = vmatmul.mubr.msk.f32.vlgmr.msra.gmra.mrb[18].mxu1 %vm16670_vm1, %v38337_v55 }
 0x635   : > { %v25232_v29 = vpop.permute.xlu0 %25231  ;;  %v25252_v35 = vsel %vm39298_vm4, %v25226_v54, %v25228_v46  ;;  %25345 = vmatprep.mubr.f32.mxu1 %v38372_v62  ;;  %vm39311_vm4 = vmmov %vm39309_vm2 }
 0x636   : > { %27543 = vrot.lane.b32.xlu1 %v38322_v40, %s39294_s26  ;;  %25281 = vmatprep.subr.mxu1 %v25252_v35 }
 0x637   : > { %27549 = vrot.lane.b32.xlu0 %v38361_v3, %s39294_s26  ;;  %25282 = vmatpush1.msra.mxu1 %v25251_v11 }
 0x638   : > { %v25230_v36 = vpop.permute.xlu1 %25229  ;;  %33527 = vmatmul.mubr.msk.f32.vlgmr.msra.gmra.mrb[6].mxu1 %vm16670_vm1, %v38424_v56 }
 0x639   : > { %v25236_v31 = vpop.permute.xlu0 %25235  ;;  %v25254_v60 = vsel %vm39300_vm6, %v25230_v36, %v25232_v29  ;;  %v25253_v15 = vsel %vm39301_vm7, %v25228_v46, %v25230_v36  ;;  %25416 = vmatprep.mubr.f32.mxu1 %v38372_v62  ;;  %vm39313_vm6 = vmmov %vm39312_vm5 }
 0x63a   : > { %27547 = vrot.lane.b32.xlu1 %v38340_v38, %s39294_s26  ;;  %25352 = vmatprep.subr.mxu1 %v25254_v60  ;;  %vm39314_vm7 = vmmov %vm39312_vm5 }
 0x63b   : > { %27553 = vrot.lane.b32.xlu0 %v38380_v13, %s39294_s26  ;;  %25353 = vmatpush1.msra.mxu1 %v25253_v15 }
 0x63c   : > { %v25234_v61 = vpop.permute.xlu1 %25233  ;;  %33528 = vmatmul.mubr.msk.f32.vlgmr.msra.gmra.mrb[8].mxu1 %vm16670_vm1, %v38424_v56 }
 0x63d   : > { %v25240_v39 = vpop.permute.xlu0 %25239  ;;  %v25256_v17 = vsel %vm39302_vm8, %v25234_v61, %v25236_v31  ;;  %v25255_v52 = vsel %vm39303_vm9, %v25232_v29, %v25234_v61  ;;  %25487 = vmatprep.mubr.f32.mxu1 %v38372_v62  ;;  %vm39315_vm8 = vmmov %vm39312_vm5  ;;  %v38558_v61 = vld [vmem:[%s39217_s3 + $0x88] sm:$0xff] }
 0x63e   : > { %27551 = vrot.lane.b32.xlu1 %v38353_v2, %s39294_s26  ;;  %25423 = vmatprep.subr.mxu1 %v25256_v17  ;;  %vm39316_vm9 = vmmov %vm39312_vm5 }
 0x63f   : > { %27557 = vrot.lane.b32.xlu0 %v38391_v26, %s39294_s26  ;;  %25424 = vmatpush1.msra.mxu1 %v25255_v52 }
 0x640   : > { %v25238_v44 = vpop.permute.xlu1 %25237  ;;  %33529 = vmatmul.mubr.msk.f32.vlgmr.msra.gmra.mrb[10].mxu1 %vm16670_vm1, %v38424_v56 }
 0x641   : > { %v25244_v21 = vpop.permute.xlu0 %25243  ;;  %v25258_v27 = vsel %vm39304_vm10, %v25238_v44, %v25240_v39  ;;  %v25257_v43 = vsel %vm39305_vm11, %v25236_v31, %v25238_v44  ;;  %25558 = vmatprep.mubr.f32.mxu1 %v38372_v62  ;;  %vm39317_vm10 = vmmov %vm39312_vm5 }
 0x642   : > { %27555 = vrot.lane.b32.xlu1 %v38366_v42, %s39294_s26  ;;  %25494 = vmatprep.subr.mxu1 %v25258_v27  ;;  %vm39318_vm11 = vmmov %vm39312_vm5 }
 0x643   : > { %28108 = vrot.lane.b32.xlu0 %v38299_v4, %s39306_s15  ;;  %25495 = vmatpush1.msra.mxu1 %v25257_v43 }
 0x644   : > { %v25242_v45 = vpop.permute.xlu1 %25241  ;;  %33530 = vmatmul.mubr.msk.f32.vlgmr.msra.gmra.mrb[12].mxu1 %vm16670_vm1, %v38424_v56 }
 0x645   : > { %v25248_v48 = vpop.permute.xlu0 %25247  ;;  %v25260_v14 = vsel %vm39307_vm12, %v25242_v45, %v25244_v21  ;;  %v25259_v32 = vsel %vm39308_vm13, %v25240_v39, %v25242_v45  ;;  %25629 = vmatprep.mubr.f32.mxu1 %v38372_v62  ;;  %vm39319_vm12 = vmmov %vm39312_vm5 }
 0x646   : > { %34479 = vrot.lane.b32.xlu1 %v38376_v63, %s39294_s26  ;;  %25565 = vmatprep.subr.mxu1 %v25260_v14  ;;  %vm39321_vm13 = vmmov %vm39312_vm5 }
 0x647   : > { %28106 = vrot.lane.b32.xlu0 %v38310_v41, %s39306_s15  ;;  %25566 = vmatpush1.msra.mxu1 %v25259_v32 }
 0x648   : > { %v25246_v30 = vpop.permute.xlu1 %25245  ;;  %33531 = vmatmul.mubr.msk.f32.vlgmr.msra.gmra.mrb[14].mxu1 %vm16670_vm1, %v38424_v56 }
 0x649   : > { %v25797_v33 = vpop.permute.xlu0 %25796  ;;  %v25262_v53 = vsel %vm39309_vm2, %v25246_v30, %v25248_v48  ;;  %v25261_v34 = vsel %vm39310_vm3, %v25244_v21, %v25246_v30  ;;  %25700 = vmatprep.mubr.f32.mxu1 %v38372_v62  ;;  %vm39322_vm2 = vmmov %vm39312_vm5 }
 0x64a   : > { %28110 = vrot.lane.b32.xlu1 %v38318_v23, %s39306_s15  ;;  %25636 = vmatprep.subr.mxu1 %v25262_v53  ;;  %vm39323_vm3 = vmmov %vm39322_vm2 }
 0x64b   : > { %28114 = vrot.lane.b32.xlu0 %v38322_v40, %s39306_s15  ;;  %25637 = vmatpush1.msra.mxu1 %v25261_v34 }
 0x64c   : > { %v25250_v55 = vpop.permute.xlu1 %25249  ;;  %33532 = vmatmul.mubr.msk.f32.vlgmr.msra.gmra.mrb[16].mxu1 %vm16670_vm1, %v38424_v56 }
 0x64d   : > { %v25795_v51 = vpop.permute.xlu0 %25794  ;;  %25707 = vmatprep.subr.mxu1 %v25250_v55  ;;  %v25263_v49 = vsel %vm39311_vm4, %v25248_v48, %v25250_v55  ;;  %25771 = vmatprep.mubr.f32.mxu1 %v38372_v62  ;;  %vm39324_vm4 = vmmov %vm39322_vm2 }
 0x64e   : > { %28112 = vrot.lane.b32.xlu1 %v38330_v47, %s39306_s15  ;;  %25708 = vmatpush1.msra.mxu1 %v25263_v49  ;;  %v25822_v10 = vsel %vm39313_vm6, %v25795_v51, %v25797_v33  ;;  %vm39326_vm6 = vcmask 703488  }
 0x64f   : > { %28118 = vrot.lane.b32.xlu0 %v38340_v38, %s39306_s15 }
 0x650   : > { %v25799_v9 = vpop.permute.xlu1 %25798  ;;  %33533 = vmatmul.mubr.msk.f32.vlgmr.msra.gmra.mrb[18].mxu1 %vm16670_vm1, %v38424_v56 }
 0x651   : > { %v25803_v1 = vpop.permute.xlu0 %25802  ;;  %v25823_v8 = vsel %vm39312_vm5, %v25797_v33, %v25799_v9  ;;  %25916 = vmatprep.mubr.f32.mxu1 %v38372_v62  ;;  %vm39325_vm5 = vmmov %vm39322_vm2 }
 0x652   : > { %28116 = vrot.lane.b32.xlu1 %v38348_v0, %s39306_s15  ;;  %25852 = vmatprep.subr.mxu1 %v25823_v8 }
 0x653   : > { %28122 = vrot.lane.b32.xlu0 %v38353_v2, %s39306_s15  ;;  %25853 = vmatpush1.msra.mxu1 %v25822_v10 }
 0x654   : > { %v25801_v50 = vpop.permute.xlu1 %25800  ;;  %33535 = vmatmul.mubr.msk.f32.vlgmr.msra.gmra.mrb[6].mxu1 %vm16670_vm1, %v38491_v5 }
 0x655   : > { %v25807_v7 = vpop.permute.xlu0 %25806  ;;  %v25825_v58 = vsel %vm39314_vm7, %v25801_v50, %v25803_v1  ;;  %v25824_v57 = vsel %vm39315_vm8, %v25799_v9, %v25801_v50  ;;  %25987 = vmatprep.mubr.f32.mxu1 %v38372_v62  ;;  %vm39327_vm7 = vmmov %vm39326_vm6 }
 0x656   : > { %28120 = vrot.lane.b32.xlu1 %v38361_v3, %s39306_s15  ;;  %25923 = vmatprep.subr.mxu1 %v25825_v58  ;;  %vm39328_vm8 = vmmov %vm39326_vm6 }
 0x657   : > { %28126 = vrot.lane.b32.xlu0 %v38366_v42, %s39306_s15  ;;  %25924 = vmatpush1.msra.mxu1 %v25824_v57 }
 0x658   : > { %v25805_v12 = vpop.permute.xlu1 %25804  ;;  %33536 = vmatmul.mubr.msk.f32.vlgmr.msra.gmra.mrb[8].mxu1 %vm16670_vm1, %v38491_v5 }
 0x659   : > { %v25811_v6 = vpop.permute.xlu0 %25810  ;;  %v25827_v20 = vsel %vm39316_vm9, %v25805_v12, %v25807_v7  ;;  %v25826_v22 = vsel %vm39317_vm10, %v25803_v1, %v25805_v12  ;;  %26058 = vmatprep.mubr.f32.mxu1 %v38372_v62  ;;  %vm39329_vm9 = vmmov %vm39326_vm6  ;;  %v38625_v12 = vld [vmem:[%s39217_s3 + $0x90] sm:$0xff] }
 0x65a   : > { %28124 = vrot.lane.b32.xlu1 %v38380_v13, %s39306_s15  ;;  %25994 = vmatprep.subr.mxu1 %v25827_v20  ;;  %vm39330_vm10 = vmmov %vm39326_vm6 }
 0x65b   : > { %34484 = vrot.lane.b32.xlu0 %v38376_v63, %s39306_s15  ;;  %25995 = vmatpush1.msra.mxu1 %v25826_v22 }
 0x65c   : > { %v25809_v18 = vpop.permute.xlu1 %25808  ;;  %33537 = vmatmul.mubr.msk.f32.vlgmr.msra.gmra.mrb[10].mxu1 %vm16670_vm1, %v38491_v5 }
 0x65d   : > { %v25815_v28 = vpop.permute.xlu0 %25814  ;;  %v25829_v19 = vsel %vm39318_vm11, %v25809_v18, %v25811_v6  ;;  %v25828_v54 = vsel %vm39319_vm12, %v25807_v7, %v25809_v18  ;;  %26129 = vmatprep.mubr.f32.mxu1 %v38372_v62  ;;  %vm39331_vm11 = vmmov %vm39326_vm6 }
 0x65e   : > { %28128 = vrot.lane.b32.xlu1 %v38391_v26, %s39306_s15  ;;  %26065 = vmatprep.subr.mxu1 %v25829_v19  ;;  %vm39333_vm12 = vmmov %vm39326_vm6 }
 0x65f   : > { %28681 = vrot.lane.b32.xlu0 %v38318_v23, %s39320_s10  ;;  %26066 = vmatpush1.msra.mxu1 %v25828_v54 }
 0x660   : > { %v25813_v37 = vpop.permute.xlu1 %25812  ;;  %33538 = vmatmul.mubr.msk.f32.vlgmr.msra.gmra.mrb[12].mxu1 %vm16670_vm1, %v38491_v5 }
 0x661   : > { %v25819_v24 = vpop.permute.xlu0 %25818  ;;  %v25831_v16 = vsel %vm39321_vm13, %v25813_v37, %v25815_v28  ;;  %v25830_v59 = vsel %vm39322_vm2, %v25811_v6, %v25813_v37  ;;  %26200 = vmatprep.mubr.f32.mxu1 %v38372_v62  ;;  %vm39334_vm13 = vmmov %vm39326_vm6 }
 0x662   : > { %28679 = vrot.lane.b32.xlu1 %v38299_v4, %s39320_s10  ;;  %26136 = vmatprep.subr.mxu1 %v25831_v16  ;;  %vm39335_vm2 = vmmov %vm39326_vm6 }
 0x663   : > { %28683 = vrot.lane.b32.xlu0 %v38330_v47, %s39320_s10  ;;  %26137 = vmatpush1.msra.mxu1 %v25830_v59 }
 0x664   : > { %v25817_v25 = vpop.permute.xlu1 %25816  ;;  %33539 = vmatmul.mubr.msk.f32.vlgmr.msra.gmra.mrb[14].mxu1 %vm16670_vm1, %v38491_v5 }
 0x665   : > { %v26368_v46 = vpop.permute.xlu0 %26367  ;;  %v25833_v29 = vsel %vm39323_vm3, %v25817_v25, %v25819_v24  ;;  %v25832_v35 = vsel %vm39324_vm4, %v25815_v28, %v25817_v25  ;;  %26271 = vmatprep.mubr.f32.mxu1 %v38372_v62  ;;  %vm39336_vm3 = vmmov %vm39335_vm2 }
 0x666   : > { %28677 = vrot.lane.b32.xlu1 %v38310_v41, %s39320_s10  ;;  %26207 = vmatprep.subr.mxu1 %v25833_v29  ;;  %vm39337_vm4 = vmmov %vm39335_vm2 }
 0x667   : > { %28687 = vrot.lane.b32.xlu0 %v38348_v0, %s39320_s10  ;;  %26208 = vmatpush1.msra.mxu1 %v25832_v35 }
 0x668   : > { %v25821_v56 = vpop.permute.xlu1 %25820  ;;  %33540 = vmatmul.mubr.msk.f32.vlgmr.msra.gmra.mrb[16].mxu1 %vm16670_vm1, %v38491_v5 }
 0x669   : > { %v26366_v11 = vpop.permute.xlu0 %26365  ;;  %26278 = vmatprep.subr.mxu1 %v25821_v56  ;;  %v25834_v36 = vsel %vm39325_vm5, %v25819_v24, %v25821_v56  ;;  %26342 = vmatprep.mubr.f32.mxu1 %v38372_v62  ;;  %vm39338_vm5 = vmmov %vm39335_vm2 }
 0x66a   : > { %28685 = vrot.lane.b32.xlu1 %v38322_v40, %s39320_s10  ;;  %26279 = vmatpush1.msra.mxu1 %v25834_v36  ;;  %v26393_v39 = vsel %vm39327_vm7, %v26366_v11, %v26368_v46  ;;  %vm39340_vm7 = vcmask 785408  }
 0x66b   : > { %28691 = vrot.lane.b32.xlu0 %v38361_v3, %s39320_s10 }
 0x66c   : > { %v26370_v31 = vpop.permute.xlu1 %26369  ;;  %33541 = vmatmul.mubr.msk.f32.vlgmr.msra.gmra.mrb[18].mxu1 %vm16670_vm1, %v38491_v5 }
 0x66d   : > { %v26374_v60 = vpop.permute.xlu0 %26373  ;;  %v26394_v15 = vsel %vm39326_vm6, %v26368_v46, %v26370_v31  ;;  %26487 = vmatprep.mubr.f32.mxu1 %v38372_v62  ;;  %vm39339_vm6 = vmmov %vm39335_vm2 }
 0x66e   : > { %28689 = vrot.lane.b32.xlu1 %v38340_v38, %s39320_s10  ;;  %26423 = vmatprep.subr.mxu1 %v26394_v15 }
 0x66f   : > { %28695 = vrot.lane.b32.xlu0 %v38380_v13, %s39320_s10  ;;  %26424 = vmatpush1.msra.mxu1 %v26393_v39 }
 0x670   : > { %v26372_v17 = vpop.permute.xlu1 %26371  ;;  %33543 = vmatmul.mubr.msk.f32.vlgmr.msra.gmra.mrb[6].mxu1 %vm16670_vm1, %v38558_v61 }
 0x671   : > { %v26378_v52 = vpop.permute.xlu0 %26377  ;;  %v26396_v44 = vsel %vm39328_vm8, %v26372_v17, %v26374_v60  ;;  %v26395_v21 = vsel %vm39329_vm9, %v26370_v31, %v26372_v17  ;;  %26558 = vmatprep.mubr.f32.mxu1 %v38372_v62  ;;  %vm39341_vm8 = vmmov %vm39340_vm7 }
 0x672   : > { %28693 = vrot.lane.b32.xlu1 %v38353_v2, %s39320_s10  ;;  %26494 = vmatprep.subr.mxu1 %v26396_v44  ;;  %vm39342_vm9 = vmmov %vm39340_vm7 }
 0x673   : > { %28699 = vrot.lane.b32.xlu0 %v38391_v26, %s39320_s10  ;;  %26495 = vmatpush1.msra.mxu1 %v26395_v21 }
 0x674   : > { %v26376_v27 = vpop.permute.xlu1 %26375  ;;  %33544 = vmatmul.mubr.msk.f32.vlgmr.msra.gmra.mrb[8].mxu1 %vm16670_vm1, %v38558_v61 }
 0x675   : > { %v26382_v43 = vpop.permute.xlu0 %26381  ;;  %v26398_v45 = vsel %vm39330_vm10, %v26376_v27, %v26378_v52  ;;  %v26397_v48 = vsel %vm39331_vm11, %v26374_v60, %v26376_v27  ;;  %26629 = vmatprep.mubr.f32.mxu1 %v38372_v62  ;;  %vm39343_vm10 = vmmov %vm39340_vm7 }
 0x676   : > { %28697 = vrot.lane.b32.xlu1 %v38366_v42, %s39320_s10  ;;  %26565 = vmatprep.subr.mxu1 %v26398_v45  ;;  %vm39344_vm11 = vmmov %vm39340_vm7 }
 0x677   : > { %29250 = vrot.lane.b32.xlu0 %v38299_v4, %s39332_s29  ;;  %26566 = vmatpush1.msra.mxu1 %v26397_v48  ;;  %v38693_v48 = vld [vmem:[%s39217_s3 + $0x98] sm:$0xff] }
 0x678   : > { %v26380_v14 = vpop.permute.xlu1 %26379  ;;  %33545 = vmatmul.mubr.msk.f32.vlgmr.msra.gmra.mrb[10].mxu1 %vm16670_vm1, %v38558_v61 }
 0x679   : > { %v26386_v32 = vpop.permute.xlu0 %26385  ;;  %v26400_v30 = vsel %vm39333_vm12, %v26380_v14, %v26382_v43  ;;  %v26399_v33 = vsel %vm39334_vm13, %v26378_v52, %v26380_v14  ;;  %26700 = vmatprep.mubr.f32.mxu1 %v38372_v62  ;;  %vm39345_vm12 = vmmov %vm39340_vm7 }
 0x67a   : > { %34489 = vrot.lane.b32.xlu1 %v38376_v63, %s39320_s10  ;;  %26636 = vmatprep.subr.mxu1 %v26400_v30  ;;  %vm39347_vm13 = vmmov %vm39340_vm7 }
 0x67b   : > { %29248 = vrot.lane.b32.xlu0 %v38310_v41, %s39332_s29  ;;  %26637 = vmatpush1.msra.mxu1 %v26399_v33 }
 0x67c   : > { %v26384_v53 = vpop.permute.xlu1 %26383  ;;  %33546 = vmatmul.mubr.msk.f32.vlgmr.msra.gmra.mrb[12].mxu1 %vm16670_vm1, %v38558_v61 }
 0x67d   : > { %v26390_v34 = vpop.permute.xlu0 %26389  ;;  %v26402_v55 = vsel %vm39335_vm2, %v26384_v53, %v26386_v32  ;;  %v26401_v51 = vsel %vm39336_vm3, %v26382_v43, %v26384_v53  ;;  %26771 = vmatprep.mubr.f32.mxu1 %v38372_v62  ;;  %vm39348_vm2 = vmmov %vm39340_vm7 }
 0x67e   : > { %29252 = vrot.lane.b32.xlu1 %v38318_v23, %s39332_s29  ;;  %26707 = vmatprep.subr.mxu1 %v26402_v55  ;;  %vm39349_vm3 = vmmov %vm39348_vm2 }
 0x67f   : > { %29256 = vrot.lane.b32.xlu0 %v38322_v40, %s39332_s29  ;;  %26708 = vmatpush1.msra.mxu1 %v26401_v51 }
 0x680   : > { %v26388_v49 = vpop.permute.xlu1 %26387  ;;  %33547 = vmatmul.mubr.msk.f32.vlgmr.msra.gmra.mrb[14].mxu1 %vm16670_vm1, %v38558_v61 }
 0x681   : > { %v26967_v9 = vpop.permute.xlu0 %26966  ;;  %v26404_v1 = vsel %vm39337_vm4, %v26388_v49, %v26390_v34  ;;  %v26403_v8 = vsel %vm39338_vm5, %v26386_v32, %v26388_v49  ;;  %26842 = vmatprep.mubr.f32.mxu1 %v38372_v62  ;;  %vm39350_vm4 = vmmov %vm39348_vm2 }
 0x682   : > { %29254 = vrot.lane.b32.xlu1 %v38330_v47, %s39332_s29  ;;  %26778 = vmatprep.subr.mxu1 %v26404_v1  ;;  %vm39351_vm5 = vmmov %vm39348_vm2 }
 0x683   : > { %29260 = vrot.lane.b32.xlu0 %v38340_v38, %s39332_s29  ;;  %26779 = vmatpush1.msra.mxu1 %v26403_v8 }
 0x684   : > { %v26392_v5 = vpop.permute.xlu1 %26391  ;;  %33548 = vmatmul.mubr.msk.f32.vlgmr.msra.gmra.mrb[16].mxu1 %vm16670_vm1, %v38558_v61 }
 0x685   : > { %v26965_v10 = vpop.permute.xlu0 %26964  ;;  %26849 = vmatprep.subr.mxu1 %v26392_v5  ;;  %v26405_v50 = vsel %vm39339_vm6, %v26390_v34, %v26392_v5  ;;  %26913 = vmatprep.mubr.f32.mxu1 %v38372_v62  ;;  %vm39352_vm6 = vmmov %vm39348_vm2 }
 0x686   : > { %29258 = vrot.lane.b32.xlu1 %v38348_v0, %s39332_s29  ;;  %26850 = vmatpush1.msra.mxu1 %v26405_v50  ;;  %v26992_v6 = vsel %vm39341_vm8, %v26965_v10, %v26967_v9  ;;  %vm39354_vm8 = vcmask 777216  }
 0x687   : > { %29264 = vrot.lane.b32.xlu0 %v38353_v2, %s39332_s29 }
 0x688   : > { %v26969_v7 = vpop.permute.xlu1 %26968  ;;  %33549 = vmatmul.mubr.msk.f32.vlgmr.msra.gmra.mrb[18].mxu1 %vm16670_vm1, %v38558_v61 }
 0x689   : > { %v26973_v58 = vpop.permute.xlu0 %26972  ;;  %v26993_v57 = vsel %vm39340_vm7, %v26967_v9, %v26969_v7  ;;  %27086 = vmatprep.mubr.f32.mxu1 %v38372_v62  ;;  %vm39353_vm7 = vmmov %vm39348_vm2 }
 0x68a   : > { %29262 = vrot.lane.b32.xlu1 %v38361_v3, %s39332_s29  ;;  %27022 = vmatprep.subr.mxu1 %v26993_v57 }
 0x68b   : > { %29268 = vrot.lane.b32.xlu0 %v38366_v42, %s39332_s29  ;;  %27023 = vmatpush1.msra.mxu1 %v26992_v6 }
 0x68c   : > { %v26971_v20 = vpop.permute.xlu1 %26970  ;;  %33551 = vmatmul.mubr.msk.f32.vlgmr.msra.gmra.mrb[6].mxu1 %vm16670_vm1, %v38625_v12 }
 0x68d   : > { %v26977_v22 = vpop.permute.xlu0 %26976  ;;  %v26995_v18 = vsel %vm39342_vm9, %v26971_v20, %v26973_v58  ;;  %v26994_v28 = vsel %vm39343_vm10, %v26969_v7, %v26971_v20  ;;  %27157 = vmatprep.mubr.f32.mxu1 %v38372_v62  ;;  %vm39355_vm9 = vmmov %vm39354_vm8 }
 0x68e   : > { %29266 = vrot.lane.b32.xlu1 %v38380_v13, %s39332_s29  ;;  %27093 = vmatprep.subr.mxu1 %v26995_v18  ;;  %vm39356_vm10 = vmmov %vm39354_vm8 }
 0x68f   : > { %34494 = vrot.lane.b32.xlu0 %v38376_v63, %s39332_s29  ;;  %27094 = vmatpush1.msra.mxu1 %v26994_v28 }
 0x690   : > { %v26975_v19 = vpop.permute.xlu1 %26974  ;;  %33552 = vmatmul.mubr.msk.f32.vlgmr.msra.gmra.mrb[8].mxu1 %vm16670_vm1, %v38625_v12 }
 0x691   : > { %v26981_v54 = vpop.permute.xlu0 %26980  ;;  %v26997_v37 = vsel %vm39344_vm11, %v26975_v19, %v26977_v22  ;;  %v26996_v24 = vsel %vm39345_vm12, %v26973_v58, %v26975_v19  ;;  %27228 = vmatprep.mubr.f32.mxu1 %v38372_v62  ;;  %vm39357_vm11 = vmmov %vm39354_vm8 }
 0x692   : > { %29270 = vrot.lane.b32.xlu1 %v38391_v26, %s39332_s29  ;;  %27164 = vmatprep.subr.mxu1 %v26997_v37  ;;  %vm39359_vm12 = vmmov %vm39354_vm8  ;;  %s39142_s29 = scalar_lea.vmem [#allocation3], %s34403_s20 }
 0x693   : > { %29823 = vrot.lane.b32.xlu0 %v38318_v23, %s39346_s16  ;;  %27165 = vmatpush1.msra.mxu1 %v26996_v24  ;;  %s32749_s11 = sshll.u32 %s39142_s29, 4  ;;  %s39169_s11 = int_to_ptr.vmem [resolvable:$true] %s32749_s11 }
 0x694   : > { %v26979_v16 = vpop.permute.xlu1 %26978  ;;  %33553 = vmatmul.mubr.msk.f32.vlgmr.msra.gmra.mrb[10].mxu1 %vm16670_vm1, %v38625_v12  ;;  %s34649_s26 = scalar_lea.vmem %s39169_s11, 1792 }
 0x695   : > { %v26985_v59 = vpop.permute.xlu0 %26984  ;;  %v26999_v25 = vsel %vm39347_vm13, %v26979_v16, %v26981_v54  ;;  %v26998_v46 = vsel %vm39348_vm2, %v26977_v22, %v26979_v16  ;;  %27299 = vmatprep.mubr.f32.mxu1 %v38372_v62  ;;  %vm39360_vm13 = vmmov %vm39354_vm8  ;;  %p34650_p11 = scmp.ne.s32.totalorder %s39169_s11, %s34649_s26 }
 0x696   : > { %29821 = vrot.lane.b32.xlu1 %v38299_v4, %s39346_s16  ;;  %27235 = vmatprep.subr.mxu1 %v26999_v25  ;;  %vm39361_vm2 = vmmov %vm39354_vm8  ;;  %v38764_v25 = vld [vmem:[%s39217_s3 + $0xa0] sm:$0xff] }
 0x697   : > { %29825 = vrot.lane.b32.xlu0 %v38330_v47, %s39346_s16  ;;  %27236 = vmatpush1.msra.mxu1 %v26998_v46  ;;  %p34651_p12 = pnand %p34650_p11, %p34815_p5 }
 0x698   : > { %v26983_v29 = vpop.permute.xlu1 %26982  ;;  %33554 = vmatmul.mubr.msk.f32.vlgmr.msra.gmra.mrb[12].mxu1 %vm16670_vm1, %v38625_v12 }
 0x699   : > { %v34475_v35 = vpop.permute.xlu0 %34474  ;;  %v27001_v56 = vsel %vm39349_vm3, %v26983_v29, %v26985_v59  ;;  %v27000_v11 = vsel %vm39350_vm4, %v26981_v54, %v26983_v29  ;;  %27370 = vmatprep.mubr.f32.mxu1 %v38372_v62  ;;  %vm39362_vm3 = vmmov %vm39361_vm2  ;;  %p34652_p13 = pneg %p34651_p12 }
 0x69a   : > { %v34477_v36 = vunpack.i.h.bf16 %v34475_v35  ;;  %v34476_v31 = vunpack.i.l.bf16 %v34475_v35  ;;  %29819 = vrot.lane.b32.xlu1 %v38310_v41, %s39346_s16  ;;  %27306 = vmatprep.subr.mxu1 %v27001_v56  ;;  %vm39363_vm4 = vmmov %vm39361_vm2 }
 0x69b   : > { %29829 = vrot.lane.b32.xlu0 %v38348_v0, %s39346_s16  ;;  %27307 = vmatpush1.msra.mxu1 %v27000_v11 }
 0x69c   : > { %v26987_v60 = vpop.permute.xlu1 %26986  ;;  %33555 = vmatmul.mubr.msk.f32.vlgmr.msra.gmra.mrb[14].mxu1 %vm16670_vm1, %v38625_v12  ;;  %v27004_v17 = vsel %vm39353_vm7, %v34476_v31, %v34477_v36  ;;  %vm39366_vm7 = vmmov %vm39361_vm2 }
 0x69d   : > { %v27540_v15 = vpop.permute.xlu0 %27539  ;;  %v27003_v61 = vsel %vm39351_vm5, %v26987_v60, %v34476_v31  ;;  %v27002_v39 = vsel %vm39352_vm6, %v26985_v59, %v26987_v60  ;;  %27441 = vmatprep.mubr.f32.mxu1 %v38372_v62  ;;  %vm39364_vm5 = vmmov %vm39361_vm2 }
 0x69e   : > { %29827 = vrot.lane.b32.xlu1 %v38322_v40, %s39346_s16  ;;  %27377 = vmatprep.subr.mxu1 %v27003_v61  ;;  %vm39365_vm6 = vmmov %vm39361_vm2 }
 0x69f   : > { %29833 = vrot.lane.b32.xlu0 %v38361_v3, %s39346_s16  ;;  %27378 = vmatpush1.msra.mxu1 %v27002_v39 }
 0x6a0   : > { %v27538_v52 = vpop.permute.xlu1 %27537  ;;  %27448 = vmatprep.subr.mxu1 %v34477_v36  ;;  %33556 = vmatmul.mubr.msk.f32.vlgmr.msra.gmra.mrb[16].mxu1 %vm16670_vm1, %v38625_v12 }
 0x6a1   : > { %v27542_v44 = vpop.permute.xlu0 %27541  ;;  %27449 = vmatpush1.msra.mxu1 %v27004_v17  ;;  %v27564_v21 = vsel %vm39354_vm8, %v27538_v52, %v27540_v15  ;;  %27512 = vmatprep.mubr.f32.mxu1 %v38372_v62  ;;  %vm39367_vm8 = vmmov %vm39361_vm2 }
 0x6a2   : > { %29831 = vrot.lane.b32.xlu1 %v38340_v38, %s39346_s16  ;;  %27593 = vmatprep.subr.mxu1 %v27564_v21  ;;  %v27565_v33 = vsel %vm39357_vm11, %v27540_v15, %v27542_v44 }
 0x6a3   : > { %29837 = vrot.lane.b32.xlu0 %v38380_v13, %s39346_s16 }
 0x6a4   : > { %v27536_v27 = vpop.permute.xlu1 %27535  ;;  %33557 = vmatmul.mubr.msk.f32.vlgmr.msra.gmra.mrb[18].mxu1 %vm16670_vm1, %v38625_v12 }
 0x6a5   : > { %v27546_v43 = vpop.permute.xlu0 %27545  ;;  %v27563_v45 = vsel %vm39355_vm9, %v27536_v27, %v27538_v52  ;;  %27657 = vmatprep.mubr.f32.mxu1 %v38372_v62  ;;  %vm39368_vm9 = vcmask 769024  }
 0x6a6   : > { %29835 = vrot.lane.b32.xlu1 %v38353_v2, %s39346_s16  ;;  %27594 = vmatpush1.msra.mxu1 %v27563_v45  ;;  %vm39370_vm11 = vmmov %vm39368_vm9 }
 0x6a7   : > { %29841 = vrot.lane.b32.xlu0 %v38391_v26, %s39346_s16 }
 0x6a8   : > { %v27544_v14 = vpop.permute.xlu1 %27543  ;;  %33559 = vmatmul.mubr.msk.f32.vlgmr.msra.gmra.mrb[6].mxu1 %vm16670_vm1, %v38693_v48 }
 0x6a9   : > { %v27550_v32 = vpop.permute.xlu0 %27549  ;;  %v27566_v30 = vsel %vm39356_vm10, %v27542_v44, %v27544_v14  ;;  %27728 = vmatprep.mubr.f32.mxu1 %v38372_v62  ;;  %v27567_v51 = vsel %vm39360_vm13, %v27544_v14, %v27546_v43  ;;  %vm39369_vm10 = vmmov %vm39368_vm9  ;;  %v34636_v14 = vld [vmem:[#allocation2 + $0x18] sm:$0xff] }
 0x6aa   : > { %29839 = vrot.lane.b32.xlu1 %v38366_v42, %s39346_s16  ;;  %27664 = vmatprep.subr.mxu1 %v27566_v30  ;;  %vm39372_vm13 = vmmov %vm39368_vm9 }
 0x6ab   : > { %30392 = vrot.lane.b32.xlu0 %v38299_v4, %s39358_s14  ;;  %27665 = vmatpush1.msra.mxu1 %v27565_v33 }
 0x6ac   : > { %v27548_v53 = vpop.permute.xlu1 %27547  ;;  %33560 = vmatmul.mubr.msk.f32.vlgmr.msra.gmra.mrb[8].mxu1 %vm16670_vm1, %v38693_v48 }
 0x6ad   : > { %v27554_v34 = vpop.permute.xlu0 %27553  ;;  %v27568_v55 = vsel %vm39359_vm12, %v27546_v43, %v27548_v53  ;;  %27799 = vmatprep.mubr.f32.mxu1 %v38372_v62  ;;  %v27569_v8 = vsel %vm39362_vm3, %v27548_v53, %v27550_v32  ;;  %vm39371_vm12 = vmmov %vm39368_vm9  ;;  %v34637_v53 = vld [vmem:[#allocation2 + $0x10] sm:$0xff] }
 0x6ae   : > { %34499 = vrot.lane.b32.xlu1 %v38376_v63, %s39346_s16  ;;  %27735 = vmatprep.subr.mxu1 %v27568_v55 }
 0x6af   : > { %30390 = vrot.lane.b32.xlu0 %v38310_v41, %s39358_s14  ;;  %27736 = vmatpush1.msra.mxu1 %v27567_v51 }
 0x6b0   : > { %v27552_v49 = vpop.permute.xlu1 %27551  ;;  %33561 = vmatmul.mubr.msk.f32.vlgmr.msra.gmra.mrb[10].mxu1 %vm16670_vm1, %v38693_v48 }
 0x6b1   : > { %v27558_v9 = vpop.permute.xlu0 %27557  ;;  %v27570_v1 = vsel %vm39361_vm2, %v27550_v32, %v27552_v49  ;;  %27870 = vmatprep.mubr.f32.mxu1 %v38372_v62  ;;  %v27571_v7 = vsel %vm39364_vm5, %v27552_v49, %v27554_v34  ;;  %vm39374_vm2 = vmmov %vm39368_vm9 }
 0x6b2   : > { %30394 = vrot.lane.b32.xlu1 %v38318_v23, %s39358_s14  ;;  %27806 = vmatprep.subr.mxu1 %v27570_v1  ;;  %vm39375_vm3 = vmmov %vm39374_vm2 }
 0x6b3   : > { %30398 = vrot.lane.b32.xlu0 %v38322_v40, %s39358_s14  ;;  %27807 = vmatpush1.msra.mxu1 %v27569_v8  ;;  %vm39377_vm5 = vmmov %vm39374_vm2 }
 0x6b4   : > { %v27556_v5 = vpop.permute.xlu1 %27555  ;;  %33562 = vmatmul.mubr.msk.f32.vlgmr.msra.gmra.mrb[12].mxu1 %vm16670_vm1, %v38693_v48 }
 0x6b5   : > { %v28109_v10 = vpop.permute.xlu0 %28108  ;;  %v27572_v50 = vsel %vm39363_vm4, %v27554_v34, %v27556_v5  ;;  %27941 = vmatprep.mubr.f32.mxu1 %v38372_v62  ;;  %v27573_v18 = vsel %vm39366_vm7, %v27556_v5, %v27558_v9  ;;  %vm39376_vm4 = vmmov %vm39374_vm2 }
 0x6b6   : > { %30396 = vrot.lane.b32.xlu1 %v38330_v47, %s39358_s14  ;;  %27877 = vmatprep.subr.mxu1 %v27572_v50  ;;  %vm39379_vm7 = vmmov %vm39374_vm2  ;;  %v34640_v50 = vld [vmem:[#allocation2 + $0x28] sm:$0xff] }
 0x6b7   : > { %30402 = vrot.lane.b32.xlu0 %v38340_v38, %s39358_s14  ;;  %27878 = vmatpush1.msra.mxu1 %v27571_v7  ;;  %v34641_v7 = vld [vmem:[#allocation2 + $0x40] sm:$0xff] }
 0x6b8   : > { %v34480_v58 = vpop.permute.xlu1 %34479  ;;  %33563 = vmatmul.mubr.msk.f32.vlgmr.msra.gmra.mrb[14].mxu1 %vm16670_vm1, %v38693_v48 }
 0x6b9   : > { %v28107_v57 = vpop.permute.xlu0 %28106  ;;  %v34481_v12 = vunpack.i.l.bf16 %v34480_v58  ;;  %28012 = vmatprep.mubr.f32.mxu1 %v38372_v62  ;;  %v34482_v6 = vunpack.i.h.bf16 %v34480_v58 }
 0x6ba   : > { %30400 = vrot.lane.b32.xlu1 %v38348_v0, %s39358_s14  ;;  %v28134_v59 = vsel %vm39370_vm11, %v28107_v57, %v28109_v10 }
 0x6bb   : > { %30406 = vrot.lane.b32.xlu0 %v38353_v2, %s39358_s14  ;;  %v27574_v20 = vsel %vm39365_vm6, %v27558_v9, %v34481_v12  ;;  %v27575_v19 = vsel %vm39367_vm8, %v34481_v12, %v34482_v6  ;;  %vm39378_vm6 = vmmov %vm39374_vm2  ;;  %v34638_v9 = vld [vmem:[#allocation2 + $0x20] sm:$0xff] }
 0x6bc   : > { %v28111_v22 = vpop.permute.xlu1 %28110  ;;  %27948 = vmatprep.subr.mxu1 %v27574_v20  ;;  %vm39380_vm8 = vmmov %vm39374_vm2  ;;  %v34642_v20 = vld [vmem:[#allocation2 + $0x38] sm:$0xff] }
 0x6bd   : > { %v28115_v28 = vpop.permute.xlu0 %28114  ;;  %27949 = vmatpush1.msra.mxu1 %v27573_v18  ;;  %v28135_v37 = vsel %vm39368_vm9, %v28109_v10, %v28111_v22  ;;  %vm39381_vm9 = vmmov %vm39374_vm2 }
 0x6be   : > { %30404 = vrot.lane.b32.xlu1 %v38361_v3, %s39358_s14  ;;  %33564 = vmatmul.mubr.msk.f32.vlgmr.msra.gmra.mrb[16].mxu1 %vm16670_vm1, %v38693_v48 }
 0x6bf   : > { %30410 = vrot.lane.b32.xlu0 %v38366_v42, %s39358_s14  ;;  %28019 = vmatprep.subr.mxu1 %v34482_v6 }
 0x6c0   : > { %28020 = vmatpush1.msra.mxu1 %v27575_v19  ;;  %v28113_v54 = vpop.permute.xlu1 %28112  ;;  %28083 = vmatprep.mubr.f32.mxu1 %v38372_v62 }
 0x6c1   : > { %v28119_v24 = vpop.permute.xlu0 %28118  ;;  %28164 = vmatprep.subr.mxu1 %v28135_v37  ;;  %v28137_v16 = vsel %vm39369_vm10, %v28113_v54, %v28115_v28  ;;  %v28136_v56 = vsel %vm39372_vm13, %v28111_v22, %v28113_v54  ;;  %vm39382_vm10 = vcmask 687104   ;;  %v34643_v22 = vld [vmem:[#allocation2 + $0x50] sm:$0xff] }
 0x6c2   : > { %30408 = vrot.lane.b32.xlu1 %v38380_v13, %s39358_s14  ;;  %33565 = vmatmul.mubr.msk.f32.vlgmr.msra.gmra.mrb[18].mxu1 %vm16670_vm1, %v38693_v48  ;;  %vm39383_vm11 = vmmov %vm39382_vm10  ;;  %v38862_v54 = vld [vmem:[#allocation2 + $0x70] sm:$0xff] }
 0x6c3   : > { %34504 = vrot.lane.b32.xlu0 %v38376_v63, %s39358_s14  ;;  %28165 = vmatpush1.msra.mxu1 %v28134_v59  ;;  %vm39385_vm13 = vmmov %vm39382_vm10  ;;  %v32103_v37 = vld [vmem:[%s34834_s13 + $0x10] sm:$0xff]  ;;  %v34645_v59 = vld [vmem:[#allocation2 + $0x48] sm:$0xff] }
 0x6c4   : > { %28235 = vmatprep.subr.mxu1 %v28137_v16  ;;  %v28117_v46 = vpop.permute.xlu1 %28116  ;;  %28228 = vmatprep.mubr.f32.mxu1 %v38372_v62 }
 0x6c5   : > { %v28123_v29 = vpop.permute.xlu0 %28122  ;;  %v28139_v35 = vsel %vm39371_vm12, %v28117_v46, %v28119_v24  ;;  %v28138_v60 = vsel %vm39375_vm3, %v28115_v28, %v28117_v46  ;;  %vm39384_vm12 = vmmov %vm39382_vm10  ;;  %v32102_v28 = vld [vmem:[%s34834_s13 + $0x8] sm:$0xff] }
 0x6c6   : > { %30412 = vrot.lane.b32.xlu1 %v38391_v26, %s39358_s14  ;;  %33567 = vmatmul.mubr.msk.f32.vlgmr.msra.gmra.mrb[6].mxu1 %vm16670_vm1, %v38764_v25  ;;  %s34653_s14 = sshll.u32 %s34741_s9, 4  ;;  %s34654_s14 = int_to_ptr.vmem [resolvable:$false] %s34653_s14 }
 0x6c7   : > { %30965 = vrot.lane.b32.xlu0 %v38318_v23, %s39373_s18  ;;  %28236 = vmatpush1.msra.mxu1 %v28136_v56  ;;  %v32117_v56 = vcombine.high %v32103_v37, %v32103_v37  ;;  %s34655_s15 = scalar_lea.vmem %s34654_s14, 3584  ;;  %p34656_p0 = scmp.lt.s32.totalorder %s39169_s11, %s34654_s14 }
 0x6c8   : > { %28306 = vmatprep.subr.mxu1 %v28139_v35  ;;  %v28121_v11 = vpop.permute.xlu1 %28120  ;;  %28299 = vmatprep.mubr.f32.mxu1 %v38372_v62  ;;  %p34657_p1 = scmp.lt.s32.totalorder %s34655_s15, %s34649_s26 }
 0x6c9   : > { %v28127_v36 = vpop.permute.xlu0 %28126  ;;  %v28141_v31 = vsel %vm39374_vm2, %v28121_v11, %v28123_v29  ;;  %vm39386_vm2 = vmmov %vm39382_vm10 }
 0x6ca   : > { %30963 = vrot.lane.b32.xlu1 %v38299_v4, %s39373_s18  ;;  %33568 = vmatmul.mubr.msk.f32.vlgmr.msra.gmra.mrb[8].mxu1 %vm16670_vm1, %v38764_v25  ;;  %v28140_v4 = vsel %vm39377_vm5, %v28119_v24, %v28121_v11  ;;  %vm39387_vm3 = vmmov %vm39386_vm2  ;;  %v34646_v11 = vld [vmem:[#allocation2 + $0x58] sm:$0xff]  ;;  %p34658_p2 = por %p34657_p1, %p34656_p0 }
 0x6cb   : > { %30967 = vrot.lane.b32.xlu0 %v38330_v47, %s39373_s18  ;;  %28307 = vmatpush1.msra.mxu1 %v28138_v60  ;;  %vm39389_vm5 = vmmov %vm39386_vm2 }
 0x6cc   : > { %28377 = vmatprep.subr.mxu1 %v28141_v31  ;;  %v28125_v23 = vpop.permute.xlu1 %28124  ;;  %28370 = vmatprep.mubr.f32.mxu1 %v38372_v62  ;;  %p34659_p3 = pnand %p34658_p2, %p34652_p13 }
 0x6cd   : > { %v34485_v15 = vpop.permute.xlu0 %34484  ;;  %v28143_v61 = vsel %vm39376_vm4, %v28125_v23, %v28127_v36  ;;  %v28142_v44 = vsel %vm39379_vm7, %v28123_v29, %v28125_v23  ;;  %vm39388_vm4 = vmmov %vm39386_vm2 }
 0x6ce   : > { %v34486_v39 = vunpack.i.l.bf16 %v34485_v15  ;;  %30961 = vrot.lane.b32.xlu1 %v38310_v41, %s39373_s18  ;;  %33569 = vmatmul.mubr.msk.f32.vlgmr.msra.gmra.mrb[10].mxu1 %vm16670_vm1, %v38764_v25  ;;  %v34487_v41 = vunpack.i.h.bf16 %v34485_v15  ;;  %vm39391_vm7 = vmmov %vm39386_vm2 }
 0x6cf   : > { %30971 = vrot.lane.b32.xlu0 %v38348_v0, %s39373_s18  ;;  %28378 = vmatpush1.msra.mxu1 %v28140_v4  ;;  %v32104_v4 = vld [vmem:[%s34834_s13 + $0x18] sm:$0xff] }
 0x6d0   : > { %28448 = vmatprep.subr.mxu1 %v28143_v61  ;;  %v28129_v47 = vpop.permute.xlu1 %28128  ;;  %28441 = vmatprep.mubr.f32.mxu1 %v38372_v62  ;;  %v38888_v61 = vld [vmem:[%s39217_s3 + $0xb0] sm:$0xff] }
 0x6d1   : > { %v28682_v17 = vpop.permute.xlu0 %28681  ;;  %v28145_v52 = vsel %vm39378_vm6, %v28129_v47, %v34486_v39  ;;  %v28144_v27 = vsel %vm39380_vm8, %v28127_v36, %v28129_v47  ;;  %vm39390_vm6 = vmmov %vm39386_vm2 }
 0x6d2   : > { %30969 = vrot.lane.b32.xlu1 %v38322_v40, %s39373_s18  ;;  %33570 = vmatmul.mubr.msk.f32.vlgmr.msra.gmra.mrb[12].mxu1 %vm16670_vm1, %v38764_v25  ;;  %vm39392_vm8 = vmmov %vm39386_vm2 }
 0x6d3   : > { %30975 = vrot.lane.b32.xlu0 %v38361_v3, %s39373_s18  ;;  %28449 = vmatpush1.msra.mxu1 %v28142_v44  ;;  %v34648_v44 = vld [vmem:[#allocation2 + $0x68] sm:$0xff] }
 0x6d4   : > { %28519 = vmatprep.subr.mxu1 %v28145_v52  ;;  %v28680_v0 = vpop.permute.xlu1 %28679  ;;  %28512 = vmatprep.mubr.f32.mxu1 %v38372_v62  ;;  %v34647_v52 = vld [vmem:[#allocation2 + $0x60] sm:$0xff] }
 0x6d5   : > { %v28684_v21 = vpop.permute.xlu0 %28683 }
 0x6d6   : > { %30973 = vrot.lane.b32.xlu1 %v38340_v38, %s39373_s18  ;;  %33571 = vmatmul.mubr.msk.f32.vlgmr.msra.gmra.mrb[14].mxu1 %vm16670_vm1, %v38764_v25  ;;  %v28146_v38 = vsel %vm39381_vm9, %v34486_v39, %v34487_v41  ;;  %vm39393_vm9 = vmmov %vm39386_vm2 }
 0x6d7   : > { %30979 = vrot.lane.b32.xlu0 %v38380_v13, %s39373_s18  ;;  %28520 = vmatpush1.msra.mxu1 %v28144_v27  ;;  %v28706_v13 = vsel %vm39382_vm10, %v28680_v0, %v28682_v17  ;;  %vm39394_vm10 = vmmov %vm39386_vm2 }
 0x6d8   : > { %28590 = vmatprep.subr.mxu1 %v34487_v41  ;;  %v28678_v40 = vpop.permute.xlu1 %28677  ;;  %28583 = vmatprep.mubr.f32.mxu1 %v38372_v62 }
 0x6d9   : > { %v28688_v3 = vpop.permute.xlu0 %28687 }
 0x6da   : > { %30977 = vrot.lane.b32.xlu1 %v38353_v2, %s39373_s18  ;;  %33572 = vmatmul.mubr.msk.f32.vlgmr.msra.gmra.mrb[16].mxu1 %vm16670_vm1, %v38764_v25  ;;  %v28705_v2 = vsel %vm39384_vm12, %v28678_v40, %v28680_v0  ;;  %v32118_v0 = vcombine.high %v32104_v4, %v32104_v4  ;;  %v32105_v40 = vld [vmem:[%s34834_s13 + $0x20] sm:$0xff] }
 0x6db   : > { %30983 = vrot.lane.b32.xlu0 %v38391_v26, %s39373_s18  ;;  %28591 = vmatpush1.msra.mxu1 %v28146_v38  ;;  %v38830_v26 = vld [vmem:[%s39217_s3 + $0xa8] sm:$0xff]  ;;  %v34513_v38 = vpack.i.bf16 %v38862_v54, %v38862_v54 }
 0x6dc   : > { %28735 = vmatprep.subr.mxu1 %v28706_v13  ;;  %v28686_v43 = vpop.permute.xlu1 %28685  ;;  %28654 = vmatprep.mubr.f32.mxu1 %v38372_v62 }
 0x6dd   : > { %v28692_v45 = vpop.permute.xlu0 %28691  ;;  %v28708_v48 = vsel %vm39383_vm11, %v28684_v21, %v28686_v43  ;;  %v28709_v49 = vsel %vm39388_vm4, %v28686_v43, %v28688_v3  ;;  %vm39395_vm11 = vcmask 678912  }
 0x6de   : > { %30981 = vrot.lane.b32.xlu1 %v38366_v42, %s39373_s18  ;;  %33573 = vmatmul.mubr.msk.f32.vlgmr.msra.gmra.mrb[18].mxu1 %vm16670_vm1, %v38764_v25  ;;  %v28707_v42 = vsel %vm39386_vm2, %v28682_v17, %v28684_v21  ;;  %v32116_v25 = vcombine.high %v32102_v28, %v32102_v28  ;;  %vm39396_vm12 = vmmov %vm39395_vm11 }
 0x6df   : > { %31534 = vrot.lane.b32.xlu0 %v34636_v14, %s34739_s28  ;;  %28736 = vmatpush1.msra.mxu1 %v28705_v2  ;;  %vm39398_vm2 = vmmov %vm39395_vm11  ;;  %v32106_v2 = vld [vmem:[%s34834_s13 + $0x28] sm:$0xff] }
 0x6e0   : > { %28806 = vmatprep.subr.mxu1 %v28708_v48  ;;  %v28690_v32 = vpop.permute.xlu1 %28689  ;;  %28799 = vmatprep.mubr.f32.mxu1 %v38372_v62  ;;  %vm39400_vm4 = vmmov %vm39398_vm2 }
 0x6e1   : > { %v28696_v30 = vpop.permute.xlu0 %28695  ;;  %v28710_v33 = vsel %vm39385_vm13, %v28688_v3, %v28690_v32  ;;  %v28711_v10 = vsel %vm39390_vm6, %v28690_v32, %v28692_v45  ;;  %vm39397_vm13 = vmmov %vm39395_vm11 }
 0x6e2   : > { %34509 = vrot.lane.b32.xlu1 %v38376_v63, %s39373_s18  ;;  %33575 = vmatmul.mubr.msk.f32.vlgmr.msra.gmra.mrb[6].mxu1 %vm16670_vm1, %v38830_v26  ;;  %v34639_v63 = vld [vmem:[#allocation2 + $0x30] sm:$0xff]  ;;  %vm39402_vm6 = vmmov %vm39398_vm2 }
 0x6e3   : > { %31532 = vrot.lane.b32.xlu0 %v34637_v53, %s34739_s28  ;;  %28807 = vmatpush1.msra.mxu1 %v28707_v42  ;;  %v32107_v53 = vld [vmem:[%s34834_s13 + $0x30] sm:$0xff] }
 0x6e4   : > { %28877 = vmatprep.subr.mxu1 %v28710_v33  ;;  %v28694_v34 = vpop.permute.xlu1 %28693  ;;  %28870 = vmatprep.mubr.f32.mxu1 %v38372_v62  ;;  %v32120_v33 = vcombine.high %v32106_v2, %v32106_v2 }
 0x6e5   : > { %v28700_v55 = vpop.permute.xlu0 %28699  ;;  %v28712_v51 = vsel %vm39387_vm3, %v28692_v45, %v28694_v34  ;;  %v28713_v6 = vsel %vm39391_vm7, %v28694_v34, %v28696_v30  ;;  %vm39399_vm3 = vmmov %vm39398_vm2  ;;  %v32119_v45 = vcombine.high %v32105_v40, %v32105_v40 }
 0x6e6   : > { %31536 = vrot.lane.b32.xlu1 %v34638_v9, %s34739_s28  ;;  %33576 = vmatmul.mubr.msk.f32.vlgmr.msra.gmra.mrb[8].mxu1 %vm16670_vm1, %v38830_v26  ;;  %vm39403_vm7 = vmmov %vm39398_vm2  ;;  %v32121_v9 = vcombine.high %v32107_v53, %v32107_v53 }
 0x6e7   : > { %31540 = vrot.lane.b32.xlu0 %v34639_v63, %s34739_s28  ;;  %28878 = vmatpush1.msra.mxu1 %v28709_v49 }
 0x6e8   : > { %28948 = vmatprep.subr.mxu1 %v28712_v51  ;;  %v28698_v1 = vpop.permute.xlu1 %28697  ;;  %28941 = vmatprep.mubr.f32.mxu1 %v38372_v62 }
 0x6e9   : > { %v29251_v8 = vpop.permute.xlu0 %29250  ;;  %v28714_v5 = vsel %vm39389_vm5, %v28696_v30, %v28698_v1  ;;  %v28715_v16 = vsel %vm39393_vm9, %v28698_v1, %v28700_v55  ;;  %vm39401_vm5 = vmmov %vm39398_vm2  ;;  %v32108_v1 = vld [vmem:[%s34834_s13 + $0x38] sm:$0xff]  ;;  %s34404_s13 = smul.u32 1792, %s34798_s25  ;;  %s32735_s25 = scalar_lea.sflag [#allocation4], %s242_s19 }
 0x6ea   : > { %31538 = vrot.lane.b32.xlu1 %v34640_v50, %s34739_s28  ;;  %33577 = vmatmul.mubr.msk.f32.vlgmr.msra.gmra.mrb[10].mxu1 %vm16670_vm1, %v38830_v26  ;;  %vm39405_vm9 = vmmov %vm39398_vm2 }
 0x6eb   : > { %31544 = vrot.lane.b32.xlu0 %v34641_v7, %s34739_s28  ;;  %28949 = vmatpush1.msra.mxu1 %v28711_v10  ;;  %v32122_v10 = vcombine.high %v32108_v1, %v32108_v1 }
 0x6ec   : > { %29019 = vmatprep.subr.mxu1 %v28714_v5  ;;  %v34490_v58 = vpop.permute.xlu1 %34489  ;;  %29012 = vmatprep.mubr.f32.mxu1 %v38372_v62 }
 0x6ed   : > { %v29249_v57 = vpop.permute.xlu0 %29248  ;;  %v34491_v12 = vunpack.i.l.bf16 %v34490_v58  ;;  %v34492_v19 = vunpack.i.h.bf16 %v34490_v58 }
 0x6ee   : > { %31542 = vrot.lane.b32.xlu1 %v34642_v20, %s34739_s28  ;;  %33578 = vmatmul.mubr.msk.f32.vlgmr.msra.gmra.mrb[12].mxu1 %vm16670_vm1, %v38830_v26  ;;  %v29276_v23 = vsel %vm39396_vm12, %v29249_v57, %v29251_v8  ;;  %vm39408_vm12 = vcmask 670720  }
 0x6ef   : > { %31548 = vrot.lane.b32.xlu0 %v34643_v22, %s34739_s28  ;;  %29020 = vmatpush1.msra.mxu1 %v28713_v6  ;;  %v28716_v18 = vsel %vm39392_vm8, %v28700_v55, %v34491_v12  ;;  %v28717_v35 = vsel %vm39394_vm10, %v34491_v12, %v34492_v19  ;;  %vm39404_vm8 = vmmov %vm39398_vm2  ;;  %v33590_v22 = vld [vmem:[%s39217_s3 + $0xb8] sm:$0xff] }
 0x6f0   : > { %v29253_v62 = vpop.permute.xlu1 %29252  ;;  %29090 = vmatprep.subr.mxu1 %v28716_v18  ;;  %29083 = vmatprep.mubr.f32.mxu1 %v38862_v54  ;;  %vm39406_vm10 = vmmov %vm39398_vm2  ;;  %v16649_v18 = vld [vmem:[%s39218_s4] sm:$0xff] }
 0x6f1   : > { %v29257_v24 = vpop.permute.xlu0 %29256  ;;  %v29277_v36 = vsel %vm39395_vm11, %v29251_v8, %v29253_v62  ;;  %vm39407_vm11 = vmmov %vm39398_vm2 }
 0x6f2   : > { %31546 = vrot.lane.b32.xlu1 %v34645_v59, %s34739_s28  ;;  %33579 = vmatmul.mubr.msk.f32.vlgmr.msra.gmra.mrb[14].mxu1 %vm16670_vm1, %v38830_v26 }
 0x6f3   : > { %32127 = vrot.lane.b32.xlu0 %v32103_v37, %s34739_s28  ;;  %29091 = vmatpush1.msra.mxu1 %v28715_v16 }
 0x6f4   : > { %29161 = vmatprep.subr.mxu1 %v34492_v19  ;;  %v29255_v46 = vpop.permute.xlu1 %29254  ;;  %29154 = vmatprep.mubr.f32.mxu1 %v38862_v54 }
 0x6f5   : > { %v29261_v29 = vpop.permute.xlu0 %29260  ;;  %v29279_v15 = vsel %vm39397_vm13, %v29255_v46, %v29257_v24  ;;  %v29278_v17 = vsel %vm39398_vm2, %v29253_v62, %v29255_v46  ;;  %vm39409_vm13 = vmmov %vm39408_vm12 }
 0x6f6   : > { %32125 = vrot.lane.b32.xlu1 %v32116_v25, %s34739_s28  ;;  %33580 = vmatmul.mubr.msk.f32.vlgmr.msra.gmra.mrb[16].mxu1 %vm16670_vm1, %v38830_v26  ;;  %vm39410_vm2 = vmmov %vm39408_vm12 }
 0x6f7   : > { %31550 = vrot.lane.b32.xlu0 %v34646_v11, %s34739_s28  ;;  %29162 = vmatpush1.msra.mxu1 %v28717_v35 }
 0x6f8   : > { %29306 = vmatprep.subr.mxu1 %v29277_v36  ;;  %v29259_v31 = vpop.permute.xlu1 %29258  ;;  %29225 = vmatprep.mubr.f32.mxu1 %v38862_v54 }
 0x6f9   : > { %v29265_v60 = vpop.permute.xlu0 %29264  ;;  %v29281_v41 = vsel %vm39399_vm3, %v29259_v31, %v29261_v29  ;;  %v29280_v3 = vsel %vm39400_vm4, %v29257_v24, %v29259_v31  ;;  %vm39411_vm3 = vmmov %vm39410_vm2 }
 0x6fa   : > { %32123 = vrot.lane.b32.xlu1 %v32102_v28, %s34739_s28  ;;  %33581 = vmatmul.mubr.msk.f32.vlgmr.msra.gmra.mrb[18].mxu1 %vm16670_vm1, %v38830_v26  ;;  %vm39412_vm4 = vmmov %vm39410_vm2 }
 0x6fb   : > { %32129 = vrot.lane.b32.xlu0 %v32117_v56, %s34739_s28  ;;  %29307 = vmatpush1.msra.mxu1 %v29276_v23 }
 0x6fc   : > { %29377 = vmatprep.subr.mxu1 %v29279_v15  ;;  %v29263_v39 = vpop.permute.xlu1 %29262  ;;  %29370 = vmatprep.mubr.f32.mxu1 %v38862_v54 }
 0x6fd   : > { %v29269_v47 = vpop.permute.xlu0 %29268  ;;  %v29283_v13 = vsel %vm39401_vm5, %v29263_v39, %v29265_v60  ;;  %v29282_v14 = vsel %vm39402_vm6, %v29261_v29, %v29263_v39  ;;  %vm39413_vm5 = vmmov %vm39410_vm2 }
 0x6fe   : > { %31552 = vrot.lane.b32.xlu1 %v34647_v52, %s34739_s28  ;;  %33583 = vmatmul.mubr.msk.f32.vlgmr.msra.gmra.mrb[6].mxu1 %vm16670_vm1, %v38888_v61  ;;  %vm39414_vm6 = vmmov %vm39410_vm2 }
 0x6ff   : > { %31554 = vrot.lane.b32.xlu0 %v34648_v44, %s34739_s28  ;;  %29378 = vmatpush1.msra.mxu1 %v29278_v17 }
 0x700   : > { %29448 = vmatprep.subr.mxu1 %v29281_v41  ;;  %v29267_v21 = vpop.permute.xlu1 %29266  ;;  %29441 = vmatprep.mubr.f32.mxu1 %v38862_v54 }
 0x701   : > { %v34495_v27 = vpop.permute.xlu0 %34494  ;;  %v29285_v32 = vsel %vm39403_vm7, %v29267_v21, %v29269_v47  ;;  %v29284_v34 = vsel %vm39404_vm8, %v29265_v60, %v29267_v21  ;;  %vm39415_vm7 = vmmov %vm39410_vm2 }
 0x702   : > { %32131 = vrot.lane.b32.xlu1 %v32104_v4, %s34739_s28  ;;  %33584 = vmatmul.mubr.msk.f32.vlgmr.msra.gmra.mrb[8].mxu1 %vm16670_vm1, %v38888_v61  ;;  %v34496_v26 = vunpack.i.l.bf16 %v34495_v27  ;;  %v34497_v51 = vunpack.i.h.bf16 %v34495_v27  ;;  %vm39416_vm8 = vmmov %vm39410_vm2 }
 0x703   : > { %29449 = vmatpush1.msra.mxu1 %v29280_v3  ;;  %32133 = vrot.lane.b32.xlu0 %v32118_v0, %s34739_s28 }
 0x704   : > { %29519 = vmatprep.subr.mxu1 %v29283_v13  ;;  %v29271_v43 = vpop.permute.xlu1 %29270  ;;  %29512 = vmatprep.mubr.f32.mxu1 %v38862_v54  ;;  %v29288_v7 = vsel %vm39407_vm11, %v34496_v26, %v34497_v51  ;;  %vm39419_vm11 = vmmov %vm39410_vm2 }
 0x705   : > { %v29824_v48 = vpop.permute.xlu0 %29823  ;;  %v29287_v55 = vsel %vm39405_vm9, %v29271_v43, %v34496_v26  ;;  %v29286_v8 = vsel %vm39406_vm10, %v29269_v47, %v29271_v43  ;;  %vm39417_vm9 = vmmov %vm39410_vm2 }
 0x706   : > { %34514 = vrot.lane.b32.xlu1 %v34513_v38, %s34739_s28  ;;  %33585 = vmatmul.mubr.msk.f32.vlgmr.msra.gmra.mrb[10].mxu1 %vm16670_vm1, %v38888_v61  ;;  %vm39418_vm10 = vmmov %vm39410_vm2 }
 0x707   : > { %29520 = vmatpush1.msra.mxu1 %v29282_v14  ;;  %29583 = vmatprep.mubr.f32.mxu1 %v38862_v54 }
 0x708   : > { %29590 = vmatprep.subr.mxu1 %v29285_v32  ;;  %v29822_v30 = vpop.permute.xlu1 %29821  ;;  %32137 = vrot.lane.b32.xlu0 %v32119_v45, %s34739_s28 }
 0x709   : > { %v29826_v42 = vpop.permute.xlu0 %29825  ;;  %v29848_v58 = vsel %vm39408_vm12, %v29822_v30, %v29824_v48  ;;  %vm39420_vm12 = vmmov %vm39410_vm2 }
 0x70a   : > { %32135 = vrot.lane.b32.xlu1 %v32105_v40, %s34739_s28  ;;  %33586 = vmatmul.mubr.msk.f32.vlgmr.msra.gmra.mrb[12].mxu1 %vm16670_vm1, %v38888_v61  ;;  %v29849_v62 = vsel %vm39411_vm3, %v29824_v48, %v29826_v42  ;;  %v33598_v40 = vld [vmem:[%s39217_s3 + $0xc0] sm:$0xff] }
 0x70b   : > { %29591 = vmatpush1.msra.mxu1 %v29284_v34  ;;  %29654 = vmatprep.mubr.f32.mxu1 %v38862_v54 }
 0x70c   : > { %29661 = vmatprep.subr.mxu1 %v29287_v55  ;;  %v29820_v49 = vpop.permute.xlu1 %29819  ;;  %32141 = vrot.lane.b32.xlu0 %v32120_v33, %s34739_s28 }
 0x70d   : > { %v29830_v63 = vpop.permute.xlu0 %29829  ;;  %v29847_v6 = vsel %vm39409_vm13, %v29820_v49, %v29822_v30  ;;  %vm39421_vm13 = vcmask 588800  }
 0x70e   : > { %32139 = vrot.lane.b32.xlu1 %v32106_v2, %s34739_s28  ;;  %33587 = vmatmul.mubr.msk.f32.vlgmr.msra.gmra.mrb[14].mxu1 %vm16670_vm1, %v38888_v61 }
 0x70f   : > { %29662 = vmatpush1.msra.mxu1 %v29286_v8  ;;  %29725 = vmatprep.mubr.f32.mxu1 %v38862_v54 }
 0x710   : > { %29732 = vmatprep.subr.mxu1 %v34497_v51  ;;  %v29828_v5 = vpop.permute.xlu1 %29827  ;;  %32145 = vrot.lane.b32.xlu0 %v32121_v9, %s34739_s28 }
 0x711   : > { %v29834_v50 = vpop.permute.xlu0 %29833  ;;  %v29850_v20 = vsel %vm39410_vm2, %v29826_v42, %v29828_v5  ;;  %v29851_v59 = vsel %vm39413_vm5, %v29828_v5, %v29830_v63  ;;  %vm39422_vm2 = vmmov %vm39421_vm13 }
 0x712   : > { %32143 = vrot.lane.b32.xlu1 %v32107_v53, %s34739_s28  ;;  %33588 = vmatmul.mubr.msk.f32.vlgmr.msra.gmra.mrb[16].mxu1 %vm16670_vm1, %v38888_v61  ;;  %vm39423_vm3 = vmmov %vm39422_vm2 }
 0x713   : > { %29733 = vmatpush1.msra.mxu1 %v29288_v7  ;;  %29796 = vmatprep.mubr.f32.mxu1 %v38862_v54  ;;  %vm39425_vm5 = vmmov %vm39422_vm2 }
 0x714   : > { %29877 = vmatprep.subr.mxu1 %v29848_v58  ;;  %v29832_v57 = vpop.permute.xlu1 %29831  ;;  %32149 = vrot.lane.b32.xlu0 %v32122_v10, %s34739_s28 }
 0x715   : > { %v29838_v12 = vpop.permute.xlu0 %29837  ;;  %v29852_v37 = vsel %vm39412_vm4, %v29830_v63, %v29832_v57  ;;  %v29853_v35 = vsel %vm39415_vm7, %v29832_v57, %v29834_v50  ;;  %vm39424_vm4 = vmmov %vm39422_vm2 }
 0x716   : > { %32147 = vrot.lane.b32.xlu1 %v32108_v1, %s34739_s28  ;;  %33589 = vmatmul.mubr.msk.f32.vlgmr.msra.gmra.mrb[18].mxu1 %vm16670_vm1, %v38888_v61  ;;  %vm39427_vm7 = vmmov %vm39422_vm2  ;;  %s39167_s28 = scalar_lea.hbm %s39220_s6, %s34404_s13 }
 0x717   : > { %29878 = vmatpush1.msra.mxu1 %v29847_v6  ;;  %29941 = vmatprep.mubr.f32.mxu1 %v38862_v54  ;;  %v33606_v6 = vld [vmem:[%s39217_s3 + $0xc8] sm:$0xff] }
 0x718   : > { %29948 = vmatprep.subr.mxu1 %v29850_v20  ;;  %v29836_v28 = vpop.permute.xlu1 %29835 }
 0x719   : > { %v29842_v19 = vpop.permute.xlu0 %29841  ;;  %v29854_v25 = vsel %vm39414_vm6, %v29834_v50, %v29836_v28  ;;  %v29855_v60 = vsel %vm39417_vm9, %v29836_v28, %v29838_v12  ;;  %vm39426_vm6 = vmmov %vm39422_vm2 }
 0x71a   : > { %33591 = vmatmul.mubr.msk.f32.vlgmr.msra.gmra.mrb[6].mxu1 %vm16670_vm1, %v33590_v22  ;;  %16652 = vperm.xlu1 %34518, %v16649_v18   ;;  %vm39429_vm9 = vmmov %vm39422_vm2 }
 0x71b   : > { %29949 = vmatpush1.msra.mxu1 %v29849_v62  ;;  %30012 = vmatprep.mubr.f32.mxu1 %v38862_v54 }
 0x71c   : > { %30019 = vmatprep.subr.mxu1 %v29852_v37  ;;  %v29840_v24 = vpop.permute.xlu1 %29839 }
 0x71d   : > { %v30393_v16 = vpop.permute.xlu0 %30392  ;;  %v29856_v11 = vsel %vm39416_vm8, %v29838_v12, %v29840_v24  ;;  %v29857_v39 = vsel %vm39419_vm11, %v29840_v24, %v29842_v19  ;;  %vm39428_vm8 = vmmov %vm39422_vm2 }
 0x71e   : > { %33592 = vmatmul.mubr.msk.f32.vlgmr.msra.gmra.mrb[8].mxu1 %vm16670_vm1, %v33590_v22  ;;  %vm39431_vm11 = vmmov %vm39422_vm2 }
 0x71f   : > { %30020 = vmatpush1.msra.mxu1 %v29851_v59  ;;  %30083 = vmatprep.mubr.f32.mxu1 %v38862_v54 }
 0x720   : > { %30090 = vmatprep.subr.mxu1 %v29854_v25  ;;  %v34500_v46 = vpop.permute.xlu1 %34499 }
 0x721   : > { %v30391_v29 = vpop.permute.xlu0 %30390  ;;  %v34501_v56 = vunpack.i.l.bf16 %v34500_v46  ;;  %v34502_v4 = vunpack.i.h.bf16 %v34500_v46 }
 0x722   : > { %33593 = vmatmul.mubr.msk.f32.vlgmr.msra.gmra.mrb[10].mxu1 %vm16670_vm1, %v33590_v22  ;;  %v30418_v21 = vsel %vm39422_vm2, %v30391_v29, %v30393_v16 }
 0x723   : > { %30091 = vmatpush1.msra.mxu1 %v29853_v35  ;;  %30154 = vmatprep.mubr.f32.mxu1 %v38862_v54  ;;  %v29858_v23 = vsel %vm39418_vm10, %v29842_v19, %v34501_v56  ;;  %v29859_v52 = vsel %vm39420_vm12, %v34501_v56, %v34502_v4  ;;  %vm39430_vm10 = vmmov %vm39422_vm2 }
 0x724   : > { %30161 = vmatprep.subr.mxu1 %v29856_v11  ;;  %v30395_v36 = vpop.permute.xlu1 %30394  ;;  %vm39432_vm12 = vmmov %vm39422_vm2 }
 0x725   : > { %v30399_v31 = vpop.permute.xlu0 %30398  ;;  %v30419_v44 = vsel %vm39421_vm13, %v30393_v16, %v30395_v36  ;;  %vm39433_vm13 = vmmov %vm39422_vm2  ;;  %vm39434_vm2 = vcmask 1043456  }
 0x726   : > { %33594 = vmatmul.mubr.msk.f32.vlgmr.msra.gmra.mrb[12].mxu1 %vm16670_vm1, %v33590_v22 }
 0x727   : > { %30162 = vmatpush1.msra.mxu1 %v29855_v60  ;;  %30225 = vmatprep.mubr.f32.mxu1 %v38862_v54 }
 0x728   : > { %30232 = vmatprep.subr.mxu1 %v29858_v23  ;;  %v30397_v15 = vpop.permute.xlu1 %30396 }
 0x729   : > { %v30403_v61 = vpop.permute.xlu0 %30402  ;;  %v30421_v27 = vsel %vm39423_vm3, %v30397_v15, %v30399_v31  ;;  %v30420_v13 = vsel %vm39424_vm4, %v30395_v36, %v30397_v15  ;;  %vm39436_vm3 = vcmask 31744   ;;  %vm39437_vm4 = vmmov %vm39434_vm2 }
 0x72a   : > { %33595 = vmatmul.mubr.msk.f32.vlgmr.msra.gmra.mrb[14].mxu1 %vm16670_vm1, %v33590_v22 }
 0x72b   : > { %30233 = vmatpush1.msra.mxu1 %v29857_v39  ;;  %30296 = vmatprep.mubr.f32.mxu1 %v38862_v54 }
 0x72c   : > { %30303 = vmatprep.subr.mxu1 %v34502_v4  ;;  %v30401_v47 = vpop.permute.xlu1 %30400 }
 0x72d   : > { %v30407_v17 = vpop.permute.xlu0 %30406  ;;  %v30423_v43 = vsel %vm39425_vm5, %v30401_v47, %v30403_v61  ;;  %v30422_v2 = vsel %vm39426_vm6, %v30399_v31, %v30401_v47  ;;  %vm39438_vm5 = vmmov %vm39434_vm2 }
 0x72e   : > { %33596 = vmatmul.mubr.msk.f32.vlgmr.msra.gmra.mrb[16].mxu1 %vm16670_vm1, %v33590_v22  ;;  %vm39439_vm6 = vmmov %vm39436_vm3 }
 0x72f   : > { %30304 = vmatpush1.msra.mxu1 %v29859_v52  ;;  %30367 = vmatprep.mubr.f32.mxu1 %v38862_v54 }
 0x730   : > { %30448 = vmatprep.subr.mxu1 %v30419_v44  ;;  %v30405_v41 = vpop.permute.xlu1 %30404 }
 0x731   : > { %v30411_v0 = vpop.permute.xlu0 %30410  ;;  %v30425_v14 = vsel %vm39427_vm7, %v30405_v41, %v30407_v17  ;;  %v30424_v30 = vsel %vm39428_vm8, %v30403_v61, %v30405_v41  ;;  %vm39440_vm7 = vmmov %vm39434_vm2 }
 0x732   : > { %33597 = vmatmul.mubr.msk.f32.vlgmr.msra.gmra.mrb[18].mxu1 %vm16670_vm1, %v33590_v22  ;;  %vm39441_vm8 = vmmov %vm39434_vm2 }
 0x733   : > { %30449 = vmatpush1.msra.mxu1 %v30418_v21  ;;  %30512 = vmatprep.mubr.f32.mxu1 %v38862_v54  ;;  %v39045_v21 = vld [vmem:[%s39217_s3 + $0xd0] sm:$0xff] }
 0x734   : > { %30519 = vmatprep.subr.mxu1 %v30421_v27  ;;  %v30409_v3 = vpop.permute.xlu1 %30408 }
 0x735   : > { %v34505_v38 = vpop.permute.xlu0 %34504  ;;  %v30427_v42 = vsel %vm39429_vm9, %v30409_v3, %v30411_v0  ;;  %v30426_v55 = vsel %vm39430_vm10, %v30407_v17, %v30409_v3  ;;  %vm39442_vm9 = vmmov %vm39436_vm3 }
 0x736   : > { %33599 = vmatmul.mubr.msk.f32.vlgmr.msra.gmra.mrb[6].mxu1 %vm16670_vm1, %v33598_v40  ;;  %v34506_v33 = vunpack.i.l.bf16 %v34505_v38  ;;  %v34507_v63 = vunpack.i.h.bf16 %v34505_v38  ;;  %v39051_v38 = vld [vmem:[%s39219_s5] sm:$0xff]  ;;  %vm39443_vm10 = vmmov %vm39434_vm2 }
 0x737   : > { %30520 = vmatpush1.msra.mxu1 %v30420_v13  ;;  %30583 = vmatprep.mubr.f32.mxu1 %v38862_v54 }
 0x738   : > { %30590 = vmatprep.subr.mxu1 %v30423_v43  ;;  %v30413_v45 = vpop.permute.xlu1 %30412  ;;  %v30430_v10 = vsel %vm39433_vm13, %v34506_v33, %v34507_v63  ;;  %vm39446_vm13 = vmmov %vm39434_vm2 }
 0x739   : > { %v30966_v48 = vpop.permute.xlu0 %30965  ;;  %v30429_v51 = vsel %vm39431_vm11, %v30413_v45, %v34506_v33  ;;  %v30428_v1 = vsel %vm39432_vm12, %v30411_v0, %v30413_v45  ;;  %vm39444_vm11 = vmmov %vm39434_vm2 }
 0x73a   : > { %33600 = vmatmul.mubr.msk.f32.vlgmr.msra.gmra.mrb[8].mxu1 %vm16670_vm1, %v33598_v40  ;;  %vm39445_vm12 = vmmov %vm39436_vm3 }
 0x73b   : > { %30591 = vmatpush1.msra.mxu1 %v30422_v2  ;;  %30654 = vmatprep.mubr.f32.mxu1 %v38862_v54 }
 0x73c   : > { %30661 = vmatprep.subr.mxu1 %v30425_v14  ;;  %v30964_v26 = vpop.permute.xlu1 %30963 }
 0x73d   : > { %v30968_v32 = vpop.permute.xlu0 %30967  ;;  %v30990_v50 = vsel %vm15441_vm14, %v30964_v26, %v30966_v48 }
 0x73e   : > { %33601 = vmatmul.mubr.msk.f32.vlgmr.msra.gmra.mrb[10].mxu1 %vm16670_vm1, %v33598_v40  ;;  %v30991_v18 = vsel %vm15441_vm14, %v30966_v48, %v30968_v32 }
 0x73f   : > { %30662 = vmatpush1.msra.mxu1 %v30424_v30  ;;  %30725 = vmatprep.mubr.f32.mxu1 %v38862_v54 }
 0x740   : > { %30732 = vmatprep.subr.mxu1 %v30427_v42  ;;  %v30962_v53 = vpop.permute.xlu1 %30961 }
 0x741   : > { %v30972_v34 = vpop.permute.xlu0 %30971  ;;  %v30989_v57 = vsel %vm15441_vm14, %v30962_v53, %v30964_v26 }
 0x742   : > { %33602 = vmatmul.mubr.msk.f32.vlgmr.msra.gmra.mrb[12].mxu1 %vm16670_vm1, %v33598_v40 }
 0x743   : > { %30733 = vmatpush1.msra.mxu1 %v30426_v55  ;;  %30796 = vmatprep.mubr.f32.mxu1 %v38862_v54 }
 0x744   : > { %30803 = vmatprep.subr.mxu1 %v30429_v51  ;;  %v30970_v49 = vpop.permute.xlu1 %30969 }
 0x745   : > { %v30976_v9 = vpop.permute.xlu0 %30975  ;;  %v30992_v12 = vsel %vm15441_vm14, %v30968_v32, %v30970_v49  ;;  %v30993_v37 = vsel %vm15441_vm14, %v30970_v49, %v30972_v34 }
 0x746   : > { %33603 = vmatmul.mubr.msk.f32.vlgmr.msra.gmra.mrb[14].mxu1 %vm16670_vm1, %v33598_v40 }
 0x747   : > { %30804 = vmatpush1.msra.mxu1 %v30428_v1  ;;  %30867 = vmatprep.mubr.f32.mxu1 %v38862_v54 }
 0x748   : > { %30874 = vmatprep.subr.mxu1 %v34507_v63  ;;  %v30974_v8 = vpop.permute.xlu1 %30973 }
 0x749   : > { %v30980_v5 = vpop.permute.xlu0 %30979  ;;  %v30994_v28 = vsel %vm15441_vm14, %v30972_v34, %v30974_v8  ;;  %v30995_v25 = vsel %vm15441_vm14, %v30974_v8, %v30976_v9 }
 0x74a   : > { %33604 = vmatmul.mubr.msk.f32.vlgmr.msra.gmra.mrb[16].mxu1 %vm16670_vm1, %v33598_v40 }
 0x74b   : > { %30875 = vmatpush1.msra.mxu1 %v30430_v10  ;;  %30938 = vmatprep.mubr.f32.mxu1 %v38862_v54 }
 0x74c   : > { %31019 = vmatprep.subr.mxu1 %v30990_v50  ;;  %v30978_v7 = vpop.permute.xlu1 %30977 }
 0x74d   : > { %v30984_v58 = vpop.permute.xlu0 %30983  ;;  %v30996_v24 = vsel %vm15441_vm14, %v30976_v9, %v30978_v7  ;;  %v30997_v11 = vsel %vm15441_vm14, %v30978_v7, %v30980_v5 }
 0x74e   : > { %33605 = vmatmul.mubr.msk.f32.vlgmr.msra.gmra.mrb[18].mxu1 %vm16670_vm1, %v33598_v40 }
 0x74f   : > { %31020 = vmatpush1.msra.mxu1 %v30989_v57  ;;  %31083 = vmatprep.mubr.f32.mxu1 %v38862_v54 }
 0x750   : > { %31090 = vmatprep.subr.mxu1 %v30992_v12  ;;  %v30982_v20 = vpop.permute.xlu1 %30981 }
 0x751   : > { %v31535_v22 = vpop.permute.xlu0 %31534  ;;  %v30998_v29 = vsel %vm15441_vm14, %v30980_v5, %v30982_v20  ;;  %v30999_v23 = vsel %vm15441_vm14, %v30982_v20, %v30984_v58 }
 0x752   : > { %33607 = vmatmul.mubr.msk.f32.vlgmr.msra.gmra.mrb[6].mxu1 %vm16670_vm1, %v33606_v6 }
 0x753   : > { %31091 = vmatpush1.msra.mxu1 %v30991_v18  ;;  %31154 = vmatprep.mubr.f32.mxu1 %v38862_v54 }
 0x754   : > { %31161 = vmatprep.subr.mxu1 %v30994_v28  ;;  %v34510_v19 = vpop.permute.xlu1 %34509 }
 0x755   : > { %v31533_v62 = vpop.permute.xlu0 %31532  ;;  %v34511_v46 = vunpack.i.l.bf16 %v34510_v19  ;;  %v34512_v15 = vunpack.i.h.bf16 %v34510_v19 }
 0x756   : > { %33608 = vmatmul.mubr.msk.f32.vlgmr.msra.gmra.mrb[8].mxu1 %vm16670_vm1, %v33606_v6  ;;  %v31560_v41 = vsel %vm16048_vm15, %v31533_v62, %v31535_v22 }
 0x757   : > { %31162 = vmatpush1.msra.mxu1 %v30993_v37  ;;  %31225 = vmatprep.mubr.f32.mxu1 %v38862_v54  ;;  %v31000_v36 = vsel %vm15441_vm14, %v30984_v58, %v34511_v46  ;;  %v31001_v4 = vsel %vm15441_vm14, %v34511_v46, %v34512_v15  ;;  %vm39435_vm14 = vmmov %vm39434_vm2 }
 0x758   : > { %31232 = vmatprep.subr.mxu1 %v30996_v24  ;;  %v31537_v16 = vpop.permute.xlu1 %31536 }
 0x759   : > { %v31541_v59 = vpop.permute.xlu0 %31540  ;;  %v31561_v47 = vsel %vm16048_vm15, %v31535_v22, %v31537_v16 }
 0x75a   : > { %33609 = vmatmul.mubr.msk.f32.vlgmr.msra.gmra.mrb[10].mxu1 %vm16670_vm1, %v33606_v6 }
 0x75b   : > { %31233 = vmatpush1.msra.mxu1 %v30995_v25  ;;  %31296 = vmatprep.mubr.f32.mxu1 %v38862_v54 }
 0x75c   : > { %31303 = vmatprep.subr.mxu1 %v30998_v29  ;;  %v31539_v35 = vpop.permute.xlu1 %31538 }
 0x75d   : > { %v31545_v56 = vpop.permute.xlu0 %31544  ;;  %v31563_v0 = vsel %vm16048_vm15, %v31539_v35, %v31541_v59  ;;  %v31562_v13 = vsel %vm16048_vm15, %v31537_v16, %v31539_v35 }
 0x75e   : > { %33610 = vmatmul.mubr.msk.f32.vlgmr.msra.gmra.mrb[12].mxu1 %vm16670_vm1, %v33606_v6 }
 0x75f   : > { %31304 = vmatpush1.msra.mxu1 %v30997_v11  ;;  %31367 = vmatprep.mubr.f32.mxu1 %v38862_v54 }
 0x760   : > { %31374 = vmatprep.subr.mxu1 %v31000_v36  ;;  %v31543_v31 = vpop.permute.xlu1 %31542 }
 0x761   : > { %v39027_v60 = vpop.permute.xlu0 %31548  ;;  %v31565_v43 = vsel %vm16048_vm15, %v31543_v31, %v31545_v56  ;;  %v31564_v48 = vsel %vm16048_vm15, %v31541_v59, %v31543_v31 }
 0x762   : > { %33611 = vmatmul.mubr.msk.f32.vlgmr.msra.gmra.mrb[14].mxu1 %vm16670_vm1, %v33606_v6 }
 0x763   : > { %31375 = vmatpush1.msra.mxu1 %v30999_v23  ;;  %31438 = vmatprep.mubr.f32.mxu1 %v38862_v54 }
 0x764   : > { %31445 = vmatprep.subr.mxu1 %v34512_v15  ;;  %v31547_v61 = vpop.permute.xlu1 %31546 }
 0x765   : > { %v32128_v39 = vpop.permute.xlu0 %32127  ;;  %v31567_v14 = vsel %vm16048_vm15, %v31547_v61, %v39027_v60  ;;  %v31566_v30 = vsel %vm16048_vm15, %v31545_v56, %v31547_v61 }
 0x766   : > { %33612 = vmatmul.mubr.msk.f32.vlgmr.msra.gmra.mrb[16].mxu1 %vm16670_vm1, %v33606_v6 }
 0x767   : > { %31446 = vmatpush1.msra.mxu1 %v31001_v4  ;;  %31509 = vmatprep.mubr.f32.mxu1 %v38862_v54 }
 0x768   : > { %31590 = vmatprep.subr.mxu1 %v31561_v47  ;;  %v32126_v17 = vpop.permute.xlu1 %32125 }
 0x769   : > { %v31551_v52 = vpop.permute.xlu0 %31550  ;;  %v32152_v44 = vsel %vm16048_vm15, %v32126_v17, %v32128_v39 }
 0x76a   : > { %33613 = vmatmul.mubr.msk.f32.vlgmr.msra.gmra.mrb[18].mxu1 %vm16670_vm1, %v33606_v6  ;;  %33622 = vmatprep.subr.msk.mxu0 %vm39434_vm2, %v32152_v44  ;;  %v31568_v51 = vsel %vm16048_vm15, %v39027_v60, %v31551_v52 }
 0x76b   : > { %31591 = vmatpush1.msra.mxu1 %v31560_v41  ;;  %31654 = vmatprep.mubr.f32.mxu1 %v38862_v54 }
 0x76c   : > { %31661 = vmatprep.subr.mxu1 %v31563_v0  ;;  %v32124_v27 = vpop.permute.xlu1 %32123 }
 0x76d   : > { %v32130_v40 = vpop.permute.xlu0 %32129  ;;  %v32151_v3 = vsel %vm16048_vm15, %v32124_v27, %v32126_v17 }
 0x76e   : > { %33615 = vmatmul.mubr.msk.f32.vlgmr.msra.gmra.mrb[6].mxu1 %vm16670_vm1, %v39045_v21  ;;  %33623 = vmatpush1.msk.msra.mxu0 %vm39435_vm14, %v32151_v3  ;;  %v32153_v33 = vsel %vm16048_vm15, %v32128_v39, %v32130_v40  ;;  %vm39447_vm14 = vmmov %vm39436_vm3 }
 0x76f   : > { %31662 = vmatpush1.msra.mxu1 %v31562_v13  ;;  %31725 = vmatprep.mubr.f32.mxu1 %v38862_v54 }
 0x770   : > { %31732 = vmatprep.subr.mxu1 %v31565_v43  ;;  %v31553_v45 = vpop.permute.xlu1 %31552  ;;  %33624 = vmatmul.mubr.msk.f32.vlgmr.msra.gmra.mrb[14].mxu0 %vm39436_vm3, %v39051_v38  ;;  %vm39448_vm3 = vmmov %vm39434_vm2 }
 0x771   : > { %32330 = vmatprep.mubr.f32.mxu0 %v38862_v54  ;;  %v31555_v2 = vpop.permute.xlu0 %31554  ;;  %v31569_v53 = vsel %vm16048_vm15, %v31551_v52, %v31553_v45 }
 0x772   : > { %33616 = vmatmul.mubr.msk.f32.vlgmr.msra.gmra.mrb[8].mxu1 %vm16670_vm1, %v39045_v21  ;;  %v31570_v5 = vsel %vm16048_vm15, %v31553_v45, %v31555_v2 }
 0x773   : > { %31733 = vmatpush1.msra.mxu1 %v31564_v48  ;;  %31796 = vmatprep.mubr.f32.mxu1 %v38862_v54 }
 0x774   : > { %31803 = vmatprep.subr.mxu1 %v31567_v14  ;;  %v32132_v26 = vpop.permute.xlu1 %32131 }
 0x775   : > { %v32154_v32 = vsel %vm16048_vm15, %v32130_v40, %v32132_v26  ;;  %v32134_v42 = vpop.permute.xlu0 %32133 }
 0x776   : > { %33617 = vmatmul.mubr.msk.f32.vlgmr.msra.gmra.mrb[10].mxu1 %vm16670_vm1, %v39045_v21  ;;  %33625 = vmatprep.subr.msk.mxu0 %vm39437_vm4, %v32154_v32  ;;  %v32155_v10 = vsel %vm16048_vm15, %v32132_v26, %v32134_v42 }
 0x777   : > { %31804 = vmatpush1.msra.mxu1 %v31566_v30  ;;  %33626 = vmatpush1.msk.msra.mxu0 %vm39438_vm5, %v32153_v33  ;;  %vm39451_vm5 = vmmov %vm39439_vm6 }
 0x778   : > { %31874 = vmatprep.subr.mxu1 %v31569_v53  ;;  %v34515_v34 = vpop.permute.xlu1 %34514  ;;  %31867 = vmatprep.mubr.f32.mxu1 %v38862_v54 }
 0x779   : > { %v34516_v55 = vunpack.i.l.bf16 %v34515_v34  ;;  %33627 = vmatmul.mubr.msk.f32.vlgmr.msra.gmra.mrb[16].mxu0 %vm39439_vm6, %v39051_v38  ;;  %v34517_v63 = vunpack.i.h.bf16 %v34515_v34 }
 0x77a   : > { %33618 = vmatmul.mubr.msk.f32.vlgmr.msra.gmra.mrb[12].mxu1 %vm16670_vm1, %v39045_v21  ;;  %v32138_v49 = vpop.permute.xlu0 %32137  ;;  %32401 = vmatprep.mubr.f32.mxu0 %v38862_v54 }
 0x77b   : > { %31875 = vmatpush1.msra.mxu1 %v31568_v51  ;;  %v31571_v9 = vsel %vm16048_vm15, %v31555_v2, %v34516_v55  ;;  %31938 = vmatprep.mubr.f32.mxu1 %v38862_v54  ;;  %v31572_v12 = vsel %vm16048_vm15, %v34516_v55, %v34517_v63 }
 0x77c   : > { %v32136_v1 = vpop.permute.xlu1 %32135  ;;  %31945 = vmatprep.subr.mxu1 %v31571_v9 }
 0x77d   : > { %v32156_v8 = vsel %vm16048_vm15, %v32134_v42, %v32136_v1  ;;  %v32157_v57 = vsel %vm16048_vm15, %v32136_v1, %v32138_v49 }
 0x77e   : > { %33619 = vmatmul.mubr.msk.f32.vlgmr.msra.gmra.mrb[14].mxu1 %vm16670_vm1, %v39045_v21  ;;  %33628 = vmatprep.subr.msk.mxu0 %vm39440_vm7, %v32156_v8  ;;  %v32142_v50 = vpop.permute.xlu0 %32141  ;;  %vm39453_vm7 = vmmov %vm39451_vm5 }
 0x77f   : > { %31946 = vmatpush1.msra.mxu1 %v31570_v5  ;;  %33629 = vmatpush1.msk.msra.mxu0 %vm39441_vm8, %v32155_v10 }
 0x780   : > { %32016 = vmatprep.subr.mxu1 %v34517_v63  ;;  %v32140_v7 = vpop.permute.xlu1 %32139  ;;  %32009 = vmatprep.mubr.f32.mxu1 %v38862_v54 }
 0x781   : > { %v32158_v58 = vsel %vm16048_vm15, %v32138_v49, %v32140_v7  ;;  %33630 = vmatmul.mubr.msk.f32.vlgmr.msra.gmra.mrb[18].mxu0 %vm39442_vm9, %v39051_v38  ;;  %v32159_v18 = vsel %vm16048_vm15, %v32140_v7, %v32142_v50 }
 0x782   : > { %33620 = vmatmul.mubr.msk.f32.vlgmr.msra.gmra.mrb[16].mxu1 %vm16670_vm1, %v39045_v21  ;;  %33631 = vmatprep.subr.msk.mxu0 %vm39443_vm10, %v32158_v58  ;;  %v32146_v6 = vpop.permute.xlu0 %32145 }
 0x783   : > { %32017 = vmatpush1.msra.mxu1 %v31572_v12  ;;  %33632 = vmatpush1.msk.msra.mxu0 %vm39444_vm11, %v32157_v57 }
 0x784   : > { %32472 = vmatprep.mubr.f32.mxu0 %v38862_v54  ;;  %v32144_v20 = vpop.permute.xlu1 %32143  ;;  %32080 = vmatprep.mubr.f32.mxu1 %v38862_v54 }
 0x785   : > { %v32160_v22 = vsel %vm16048_vm15, %v32142_v50, %v32144_v20  ;;  %33633 = vmatmul.mubr.msk.f32.vlgmr.msra.gmra.mrb[20].mxu0 %vm39445_vm12, %v39051_v38  ;;  %v32161_v37 = vsel %vm16048_vm15, %v32144_v20, %v32146_v6 }
 0x786   : > { %33621 = vmatmul.mubr.msk.f32.vlgmr.msra.gmra.mrb[18].mxu1 %vm16670_vm1, %v39045_v21  ;;  %33634 = vmatprep.subr.msk.mxu0 %vm39446_vm13, %v32160_v22  ;;  %v32150_v19 = vpop.permute.xlu0 %32149  ;;  %vm39449_vm1 = vmmov %vm39434_vm2 }
 0x787   : > { %33635 = vmatpush1.msk.msra.mxu0 %vm39434_vm2, %v32159_v18  ;;  %32543 = vmatprep.mubr.f32.mxu0 %v38862_v54  ;;  %vm39450_vm4 = vmmov %vm39449_vm1 }
 0x788   : > { %v32148_v28 = vpop.permute.xlu1 %32147  ;;  %vm39452_vm6 = vmmov %vm39449_vm1 }
 0x789   : > { %v32162_v62 = vsel %vm16048_vm15, %v32146_v6, %v32148_v28  ;;  %33636 = vmatmul.mubr.msk.f32.vlgmr.msra.gmra.mrb[22].mxu0 %vm39447_vm14, %v39051_v38  ;;  %v32163_v24 = vsel %vm16048_vm15, %v32148_v28, %v32150_v19 }
 0x78a   : > { %33637 = vmatprep.subr.msk.mxu0 %vm39448_vm3, %v32162_v62  ;;  %32614 = vmatprep.mubr.f32.mxu0 %v38862_v54 }
 0x78b   : > { %33638 = vmatpush1.msk.msra.mxu0 %vm39449_vm1, %v32161_v37 }
 0x78c   : > { %33640 = vmatprep.subr.msk.mxu0 %vm39450_vm4, %v32150_v19 }
 0x78d   : > { %33639 = vmatmul.mubr.msk.f32.vlgmr.msra.gmra.mrb[24].mxu0 %vm39451_vm5, %v39051_v38 }
 0x78e   : > { %33641 = vmatpush1.msk.msra.mxu0 %vm39452_vm6, %v32163_v24  ;;  %32685 = vmatprep.mubr.f32.mxu0 %v38862_v54 }
 0x791   : > { %33642 = vmatmul.mubr.msk.f32.vlgmr.msra.gmra.mrb[26].mxu0 %vm39453_vm7, %v39051_v38 }
 0x799   : > { %v39129_v16 = vpop.permute.xlu1 %16652 }
 0x841   : > { %v31656_v59 = vpop.f32.mrb[6].mxu1 }
 0x842   : > { %v33667_v25 = vadd.f32 %v31656_v59, %v39129_v16  ;;  %v31658_v46 = vpop.f32.mrb[7].mxu1 }
 0x843   : > { %v33668_v29 = vadd.f32 %v31658_v46, %v39129_v16  ;;  %v32261_v35 = vpop.f32.mrb[14].mxu0 }
 0x844   : > { %34589 = vtanh.f32 %v33667_v25  ;;  %v32263_v56 = vpop.f32.mrb[15].mxu0 }
 0x845   : > { %34591 = vtanh.f32 %v33668_v29  ;;  %v31727_v11 = vpop.f32.mrb[8].mxu1 }
 0x846   : > { %v33669_v36 = vadd.f32 %v31727_v11, %v39129_v16  ;;  %v31729_v54 = vpop.f32.mrb[9].mxu1 }
 0x847   : > { %v33670_v31 = vadd.f32 %v31729_v54, %v39129_v16 }
 0x848   : > { %34593 = vtanh.f32 %v33669_v36 }
 0x849   : > { %34595 = vtanh.f32 %v33670_v31  ;;  %v31798_v60 = vpop.f32.mrb[10].mxu1 }
 0x84a   : > { %v33671_v23 = vadd.f32 %v31798_v60, %v39129_v16  ;;  %v31800_v15 = vpop.f32.mrb[11].mxu1 }
 0x84b   : > { %v33672_v61 = vadd.f32 %v31800_v15, %v39129_v16 }
 0x84c   : > { %34597 = vtanh.f32 %v33671_v23  ;;  %v32332_v39 = vpop.f32.mrb[16].mxu0 }
 0x84d   : > { %34599 = vtanh.f32 %v33672_v61  ;;  %v31869_v4 = vpop.f32.mrb[12].mxu1  ;;  %v32334_v47 = vpop.f32.mrb[17].mxu0 }
 0x84e   : > { %v34590_v17 = vpop.eup %34589  ;;  %v33673_v52 = vadd.f32 %v31869_v4, %v39129_v16  ;;  %v31871_v44 = vpop.f32.mrb[13].mxu1 }
 0x84f   : > { %v34592_v41 = vpop.eup %34591  ;;  %v33674_v0 = vadd.f32 %v31871_v44, %v39129_v16  ;;  %v32706_v21 = vadd.f32 %v34590_v17, %v32261_v35 }
 0x850   : > { %34601 = vtanh.f32 %v33673_v52  ;;  %v32707_v27 = vadd.f32 %v34592_v41, %v32263_v56 }
 0x851   : > { %34603 = vtanh.f32 %v33674_v0  ;;  %32720 = vst [vmem:[%s39142_s29] sm:$0xff] %v32706_v21  ;;  %v31940_v40 = vpop.f32.mrb[14].mxu1 }
 0x852   : > { %v34594_v3 = vpop.eup %34593  ;;  %32721 = vst [vmem:[%s39142_s29 + $0x8] sm:$0xff] %v32707_v27  ;;  %v33675_v38 = vadd.f32 %v31940_v40, %v39129_v16  ;;  %v31942_v13 = vpop.f32.mrb[15].mxu1 }
 0x853   : > { %v34596_v43 = vpop.eup %34595  ;;  %v33676_v45 = vadd.f32 %v31942_v13, %v39129_v16  ;;  %v32708_v48 = vadd.f32 %v34594_v3, %v32332_v39 }
 0x854   : > { %34605 = vtanh.f32 %v33675_v38  ;;  %v32709_v2 = vadd.f32 %v34596_v43, %v32334_v47  ;;  %v32403_v14 = vpop.f32.mrb[18].mxu0 }
 0x855   : > { %34607 = vtanh.f32 %v33676_v45  ;;  %32722 = vst [vmem:[%s39142_s29 + $0x10] sm:$0xff] %v32708_v48  ;;  %v32011_v26 = vpop.f32.mrb[16].mxu1  ;;  %v32405_v32 = vpop.f32.mrb[19].mxu0 }
 0x856   : > { %v34598_v30 = vpop.eup %34597  ;;  %32723 = vst [vmem:[%s39142_s29 + $0x18] sm:$0xff] %v32709_v2  ;;  %v33677_v33 = vadd.f32 %v32011_v26, %v39129_v16  ;;  %v32013_v42 = vpop.f32.mrb[17].mxu1 }
 0x857   : > { %v34600_v53 = vpop.eup %34599  ;;  %v33678_v34 = vadd.f32 %v32013_v42, %v39129_v16  ;;  %v32710_v55 = vadd.f32 %v34598_v30, %v32403_v14 }
 0x858   : > { %34609 = vtanh.f32 %v33677_v33  ;;  %v32711_v51 = vadd.f32 %v34600_v53, %v32405_v32  ;;  %v32474_v49 = vpop.f32.mrb[20].mxu0 }
 0x859   : > { %34611 = vtanh.f32 %v33678_v34  ;;  %32724 = vst [vmem:[%s39142_s29 + $0x20] sm:$0xff] %v32710_v55  ;;  %v32082_v9 = vpop.f32.mrb[18].mxu1  ;;  %v32476_v63 = vpop.f32.mrb[21].mxu0 }
 0x85a   : > { %v34602_v1 = vpop.eup %34601  ;;  %32725 = vst [vmem:[%s39142_s29 + $0x28] sm:$0xff] %v32711_v51  ;;  %v33679_v8 = vadd.f32 %v32082_v9, %v39129_v16  ;;  %v32084_v5 = vpop.f32.mrb[19].mxu1 }
 0x85b   : > { %v34604_v10 = vpop.eup %34603  ;;  %v33680_v50 = vadd.f32 %v32084_v5, %v39129_v16  ;;  %v32712_v7 = vadd.f32 %v34602_v1, %v32474_v49 }
 0x85c   : > { %34613 = vtanh.f32 %v33679_v8  ;;  %v32713_v58 = vadd.f32 %v34604_v10, %v32476_v63  ;;  %v32545_v57 = vpop.f32.mrb[22].mxu0 }
 0x85d   : > { %34615 = vtanh.f32 %v33680_v50  ;;  %32726 = vst [vmem:[%s39142_s29 + $0x30] sm:$0xff] %v32712_v7  ;;  %v32547_v12 = vpop.f32.mrb[23].mxu0 }
 0x85e   : > { %v34606_v6 = vpop.eup %34605  ;;  %32727 = vst [vmem:[%s39142_s29 + $0x38] sm:$0xff] %v32713_v58 }
 0x85f   : > { %v34608_v20 = vpop.eup %34607  ;;  %v32714_v22 = vadd.f32 %v34606_v6, %v32545_v57 }
 0x860   : > { %v32715_v18 = vadd.f32 %v34608_v20, %v32547_v12  ;;  %v32616_v28 = vpop.f32.mrb[24].mxu0 }
 0x861   : > { %32728 = vst [vmem:[%s39142_s29 + $0x40] sm:$0xff] %v32714_v22  ;;  %v32618_v19 = vpop.f32.mrb[25].mxu0 }
 0x862   : > { %v34610_v62 = vpop.eup %34609  ;;  %32729 = vst [vmem:[%s39142_s29 + $0x48] sm:$0xff] %v32715_v18 }
 0x863   : > { %v34612_v37 = vpop.eup %34611  ;;  %v32716_v24 = vadd.f32 %v34610_v62, %v32616_v28 }
 0x864   : > { %v32717_v16 = vadd.f32 %v34612_v37, %v32618_v19  ;;  %v32687_v59 = vpop.f32.mrb[26].mxu0 }
 0x865   : > { %32730 = vst [vmem:[%s39142_s29 + $0x50] sm:$0xff] %v32716_v24  ;;  %v32689_v25 = vpop.f32.mrb[27].mxu0 }
 0x866   : > { %v34614_v46 = vpop.eup %34613  ;;  %32731 = vst [vmem:[%s39142_s29 + $0x58] sm:$0xff] %v32717_v16 }
 0x867   : > { %v34616_v29 = vpop.eup %34615  ;;  %v32718_v35 = vadd.f32 %v34614_v46, %v32687_v59 }
 0x868   : > { %v32719_v56 = vadd.f32 %v34616_v29, %v32689_v25 }
 0x869   : > { %32732 = vst [vmem:[%s39142_s29 + $0x60] sm:$0xff] %v32718_v35 }
 0x86a   : > { %32733 = vst.msk [vmem:[%s39142_s29 + $0x68] sm:$0xff] %vm16647_vm0, %v32719_v56 }
 0x86b   : > { %34662 = shalt.err (!%p34659_p3)
}
 0x86c   : > { %s34663_s17 = scalar_lea.hbm %s39167_s28, 1792  ;;  %s34667_s19 = scalar_lea.hbm %s39220_s6, 3584 }
 0x86d   : > { %p34664_p4 = scmp.ne.s32.totalorder %s39167_s28, %s34663_s17  ;;  %p34668_p9 = scmp.lt.u32.totalorder %s39167_s28, %s39220_s6 }
 0x86e   : > { %p34669_p10 = scmp.lt.u32.totalorder %s34667_s19, %s34663_s17  ;;  %p34671_p12 = scmp.lt.u32.totalorder %s34663_s17, %s39167_s28 }
 0x86f   : > { %p34665_p7 = pnand %p34664_p4, %p34815_p5 }
 0x870   : > { %p34670_p11 = por %p34669_p10, %p34668_p9 }
 0x871   : > { %p34666_p8 = pneg %p34665_p7 }
 0x872   : > { %p34672_p13 = por %p34671_p12, %p34670_p11 }
 0x874   : > { %p34673_p0 = pnand %p34672_p13, %p34666_p8 }
 0x876   : > { %34676 = shalt.err (!%p34673_p0)
}
 0x877   : > { %34405 = dma.vmem_to_hbm [thread:$0]  (%p34815_p5), %s39169_s11, 1792, %s39167_s28, %s32735_s25  }
 0x878 PF: > { %p34411_p1 = scmp.ge.s32.totalorder %s34711_s24, 2  ;;  %s32761_s13 = sand.u32 1, %s34699_s21  }
 0x879   : > { %s32762_s12 = scalar_lea.sflag [#allocation4], %s32761_s13 }
 0x87a   : > { %p34408_p2 = pnand %p34411_p1, %p34819_p6 }
 0x87c   : > { %34694 = dma.done.wait (!%p34408_p2), %s32762_s12, 1792  }
 0x87d   : > { %34696 = vsyncadd (!%p34408_p2), %s32762_s12, 4294965504  ;;  %p16_p3 = scmp.ge.s32.totalorder %s34802_s27, 4   ;;  %s39454_s21 = smov %s34703_s22 }
 0x87e   : > { %s39455_s22 = smov %s34707_s23  ;;  %s39456_s23 = smov %s34813_s30 }
 0x87f   : > { %s39457_s24 = smov %s34802_s27  ;;  %18 = sbr.rel (!%p16_p3) target bundleno = 3 (0x3), region = 131 }
 0x886   :  { %32767 = vsyncpa [#allocation4], 1 }
 0x887   :  { %32769 = vsyncpa [#allocation4 + $0x1], 1 }

</bundles_post_ra>
